<compile_context>
chip_gen: v7x
topology: tpu7x:2x2x1
jax: 0.10.0
libtpu: 0.0.40
codegen_flags: <defaults>
</compile_context>

<pallas_src>
import functools

import jax
import jax.numpy as jnp
from jax import lax
from jax.experimental import pallas as pl
from jax.experimental.pallas import tpu as pltpu


def _conv3x3_relu_stencil_kernel(x_ref, w_ref, b_ref, o_ref, xp_ref):
    # x_ref : (1, Ci, H, W)    f32 VMEM  full image for batch element n
    # w_ref : (Co*Ci*9,)       f32 SMEM  centre-depth-tap weights, (co,ci,kh,kw) order
    # b_ref : (Co,)            f32 SMEM  bias
    # o_ref : (1, Co, TH, W)   f32 VMEM  output stripe, NCHW order
    # xp_ref: (Ci, TH+2, W+2)  f32 VMEM  halo-padded input stripe scratch
    _, Ci, H, W = x_ref.shape
    _, Co, TH, _ = o_ref.shape
    h = pl.program_id(1)
    nh = pl.num_programs(1)
    row0 = pl.multiple_of(h * TH, TH)

    # --- build the halo-padded stripe; only halo rows/cols are zero-filled ---
    zcol = jnp.zeros((Ci, TH + 2, 1), jnp.float32)
    xp_ref[:, :, 0:1] = zcol                      # left halo column
    xp_ref[:, :, W + 1:W + 2] = zcol              # right halo column
    xp_ref[:, 1:TH + 1, 1:W + 1] = x_ref[0, :, pl.ds(row0, TH), :]

    zrow = jnp.zeros((Ci, 1, W), jnp.float32)

    @pl.when(h == 0)
    def _():                                      # image top boundary -> zeros
        xp_ref[:, 0:1, 1:W + 1] = zrow

    @pl.when(h > 0)
    def _():                                      # top halo row from stripe above
        xp_ref[:, 0:1, 1:W + 1] = x_ref[0, :, pl.ds(row0 - 1, 1), :]

    @pl.when(h == nh - 1)
    def _():                                      # image bottom boundary -> zeros
        xp_ref[:, TH + 1:TH + 2, 1:W + 1] = zrow

    @pl.when(h < nh - 1)
    def _():                                      # bottom halo row from stripe below
        xp_ref[:, TH + 1:TH + 2, 1:W + 1] = x_ref[0, :, pl.ds(row0 + TH, 1), :]

    # --- direct 3x3 VPU stencil.  MXU is left idle on purpose: at ~12
    #     flop/byte this kernel is bytes-bound and the old im2col
    #     materialisation (not the matmul) was the bottleneck. ---
    for co in range(Co):
        acc = jnp.full((TH, W), b_ref[co], jnp.float32)
        for ci in range(Ci):
            for kh in range(3):
                for kw in range(3):
                    wv = w_ref[(co * Ci + ci) * 9 + kh * 3 + kw]
                    acc = acc + wv * xp_ref[ci, kh:kh + TH, kw:kw + W]
        o_ref[0, co] = jnp.maximum(acc, 0.0)      # bias + ReLU fused, lane-dense store


def _pick_stripe_height(H, target=64):
    """Largest divisor of H that is a multiple of 8 and <= target (else whole H)."""
    if H % 8 != 0 or H <= target:
        return H
    th = 8
    for cand in range(8, min(H, target) + 1, 8):
        if H % cand == 0:
            th = cand
    return th


def single_slice_3d_wrapper_forward(x_nchw, w3d, bias, *, th=None):
    """Mirror SingleSlice3DWrapper.forward for model_3d = Conv3d(k=3,p=1)+ReLU.

    x_nchw: (N, Cin, H, W) -> (N, Cout, H, W)
    w3d   : (Cout, Cin, 3, 3, 3)  PyTorch OIDHW layout
    bias  : (Cout,)
    """
    N, Ci, H, W = x_nchw.shape
    Co = w3d.shape[0]
    if th is None:
        # v7x (64 MiB VMEM): keep TH<=64-ish; v5e/v6e (128 MiB) can take larger.
        th = _pick_stripe_height(H)
    assert H % th == 0 and (th % 8 == 0 or th == H), (H, th)
    n_stripes = H // th

    # unsqueeze(2) + Conv3d(padding=1) on a single depth slice: only the kd=1
    # (centre) depth tap of the 3D kernel survives.
    w2d = w3d[:, :, 1, :, :].astype(jnp.float32)        # (Co, Ci, 3, 3)
    w_flat = w2d.reshape(Co * Ci * 9)                   # row-major (co, ci, kh, kw)
    b_flat = bias.astype(jnp.float32).reshape(Co)

    return pl.pallas_call(
        _conv3x3_relu_stencil_kernel,
        out_shape=jax.ShapeDtypeStruct((N, Co, H, W), jnp.float32),
        grid=(N, n_stripes),
        in_specs=[
            # Whole image per batch element; block index constant across the
            # stripe axis -> fetched once per n and kept VMEM-resident.
            pl.BlockSpec((1, Ci, H, W), lambda n, h: (n, 0, 0, 0)),
            pl.BlockSpec(memory_space=pltpu.MemorySpace.SMEM),
            pl.BlockSpec(memory_space=pltpu.MemorySpace.SMEM),
        ],
        out_specs=pl.BlockSpec((1, Co, th, W), lambda n, h: (n, 0, h, 0)),
        scratch_shapes=[pltpu.VMEM((Ci, th + 2, W + 2), jnp.float32)],
        compiler_params=pltpu.CompilerParams(
            dimension_semantics=("parallel", "parallel"),
            # At 512x512 / Ci=4 / TH=64 this kernel needs ~11 MiB of VMEM,
            # comfortably inside every generation's budget (incl. v7x 64 MiB).
            vmem_limit_bytes=32 * 1024 * 1024),
    )(x_nchw.astype(jnp.float32), w_flat, b_flat)


def _reference_forward(x_nchw, w3d, bias):
    """Pure-JAX f32 reference that follows the PyTorch wrapper literally."""
    x5d = x_nchw[:, :, None, :, :]                      # unsqueeze(2)
    y5d = lax.conv_general_dilated(
        x5d, w3d,
        window_strides=(1, 1, 1),
        padding=((1, 1), (1, 1), (1, 1)),
        dimension_numbers=("NCDHW", "OIDHW", "NCDHW"),
        precision=lax.Precision.HIGHEST,
    )
    y5d = y5d + bias.reshape(1, -1, 1, 1, 1)
    y5d = jnp.maximum(y5d, 0.0)
    return jnp.squeeze(y5d, axis=2)                     # squeeze(2)


if __name__ == "__main__":
    N, Cin, H, W = 2, 4, 16, 16
    Cout = 8

    kx, kwt, kb = jax.random.split(jax.random.PRNGKey(0), 3)
    x = jax.random.normal(kx, (N, Cin, H, W), jnp.float32)
    w3d = 0.1 * jax.random.normal(kwt, (Cout, Cin, 3, 3, 3), jnp.float32)
    bias = 0.05 * jax.random.normal(kb, (Cout,), jnp.float32)

    # th=8 -> grid (2, 2): exercises the H-striping + halo paths at this size.
    fwd = jax.jit(functools.partial(single_slice_3d_wrapper_forward, th=8))
    out = jax.block_until_ready(fwd(x, w3d, bias))
    ref = jax.block_until_ready(_reference_forward(x, w3d, bias))

    assert out.shape == (N, Cout, H, W), out.shape
    max_err = float(jnp.max(jnp.abs(out - ref)))
    assert jnp.allclose(out, ref, atol=1e-4, rtol=1e-4), max_err
    print("KERNEL_OK")
</pallas_src>

<mosaic_0001>
module attributes {stable_mosaic.version = 11 : i64} {
  func.func @_conv3x3_relu_stencil_kernel(%arg0: i32, %arg1: i32, %arg2: memref<1x4x16x16xf32, #tpu.memory_space<vmem>>, %arg3: memref<288xf32, #tpu.memory_space<smem>>, %arg4: memref<8xf32, #tpu.memory_space<smem>>, %arg5: memref<1x8x8x16xf32, #tpu.memory_space<vmem>>, %arg6: memref<4x10x18xf32, #tpu.memory_space<vmem>>) attributes {dimension_semantics = [#tpu.dimension_semantics<parallel>, #tpu.dimension_semantics<parallel>], iteration_bounds = array<i64: 2, 2>, scalar_prefetch = 0 : i64, scratch_operands = 1 : i64, tpu.core_type = #tpu.core_type<tc>, window_params = [{transform_indices = @transform_0, window_bounds = array<i64: 1, 4, 16, 16>}, {transform_indices = @transform_1, window_bounds = array<i64: 288>}, {transform_indices = @transform_2, window_bounds = array<i64: 8>}, {transform_indices = @transform_3, window_bounds = array<i64: 1, 8, 8, 16>}]} {
    %c8_i32 = arith.constant 8 : i32
    %0 = arith.muli %arg1, %c8_i32 : i32
    %1 = tpu.assume_multiple %0, 8 : i32
    %cst = arith.constant 0.000000e+00 : f32
    %2 = vector.broadcast %cst : f32 to vector<4x10x1xf32>
    %c0 = arith.constant 0 : index
    %c0_0 = arith.constant 0 : index
    %c0_1 = arith.constant 0 : index
    %3 = vector.load %arg6[%c0, %c0_0, %c0_1] : memref<4x10x18xf32, #tpu.memory_space<vmem>>, vector<4x10x1xf32>
    tpu.vector_store %arg6[%c0, %c0_0, %c0_1], %2 {strides = array<i32>} : memref<4x10x18xf32, #tpu.memory_space<vmem>>, vector<4x10x1xf32>,
    %c0_2 = arith.constant 0 : index
    %c0_3 = arith.constant 0 : index
    %c17 = arith.constant 17 : index
    %4 = vector.load %arg6[%c0_2, %c0_3, %c17] : memref<4x10x18xf32, #tpu.memory_space<vmem>>, vector<4x10x1xf32>
    tpu.vector_store %arg6[%c0_2, %c0_3, %c17], %2 {strides = array<i32>} : memref<4x10x18xf32, #tpu.memory_space<vmem>>, vector<4x10x1xf32>,
    %c0_4 = arith.constant 0 : index
    %c0_5 = arith.constant 0 : index
    %5 = arith.index_cast %1 : i32 to index
    %c0_6 = arith.constant 0 : index
    %6 = vector.load %arg2[%c0_4, %c0_5, %5, %c0_6] : memref<1x4x16x16xf32, #tpu.memory_space<vmem>>, vector<1x4x8x16xf32>
    %7 = vector.shape_cast %6 : vector<1x4x8x16xf32> to vector<4x8x16xf32>
    %c0_7 = arith.constant 0 : index
    %c1 = arith.constant 1 : index
    %c1_8 = arith.constant 1 : index
    %8 = vector.load %arg6[%c0_7, %c1, %c1_8] : memref<4x10x18xf32, #tpu.memory_space<vmem>>, vector<4x8x16xf32>
    tpu.vector_store %arg6[%c0_7, %c1, %c1_8], %7 {strides = array<i32>} : memref<4x10x18xf32, #tpu.memory_space<vmem>>, vector<4x8x16xf32>,
    %cst_9 = arith.constant 0.000000e+00 : f32
    %9 = vector.broadcast %cst_9 : f32 to vector<4x1x16xf32>
    %c0_i32 = arith.constant 0 : i32
    %10 = arith.cmpi eq, %arg1, %c0_i32 : i32
    %11 = arith.extui %10 : i1 to i32
    %c0_i32_10 = arith.constant 0 : i32
    %12 = arith.cmpi ne, %11, %c0_i32_10 : i32
    scf.if %12 {
      %c0_931 = arith.constant 0 : index
      %c0_932 = arith.constant 0 : index
      %c1_933 = arith.constant 1 : index
      %1806 = vector.load %arg6[%c0_931, %c0_932, %c1_933] : memref<4x10x18xf32, #tpu.memory_space<vmem>>, vector<4x1x16xf32>
      tpu.vector_store %arg6[%c0_931, %c0_932, %c1_933], %9 {strides = array<i32>} : memref<4x10x18xf32, #tpu.memory_space<vmem>>, vector<4x1x16xf32>,
    } else {
    }
    %c0_i32_11 = arith.constant 0 : i32
    %13 = arith.cmpi sgt, %arg1, %c0_i32_11 : i32
    %14 = arith.extui %13 : i1 to i32
    %c0_i32_12 = arith.constant 0 : i32
    %15 = arith.cmpi ne, %14, %c0_i32_12 : i32
    scf.if %15 {
      %c1_i32_931 = arith.constant 1 : i32
      %1806 = arith.subi %1, %c1_i32_931 : i32
      %c0_932 = arith.constant 0 : index
      %c0_933 = arith.constant 0 : index
      %1807 = arith.index_cast %1806 : i32 to index
      %c0_934 = arith.constant 0 : index
      %1808 = vector.load %arg2[%c0_932, %c0_933, %1807, %c0_934] : memref<1x4x16x16xf32, #tpu.memory_space<vmem>>, vector<1x4x1x16xf32>
      %1809 = vector.shape_cast %1808 : vector<1x4x1x16xf32> to vector<4x1x16xf32>
      %c0_935 = arith.constant 0 : index
      %c0_936 = arith.constant 0 : index
      %c1_937 = arith.constant 1 : index
      %1810 = vector.load %arg6[%c0_935, %c0_936, %c1_937] : memref<4x10x18xf32, #tpu.memory_space<vmem>>, vector<4x1x16xf32>
      tpu.vector_store %arg6[%c0_935, %c0_936, %c1_937], %1809 {strides = array<i32>} : memref<4x10x18xf32, #tpu.memory_space<vmem>>, vector<4x1x16xf32>,
    } else {
    }
    %c1_i32 = arith.constant 1 : i32
    %16 = arith.cmpi eq, %arg1, %c1_i32 : i32
    %17 = arith.extui %16 : i1 to i32
    %c0_i32_13 = arith.constant 0 : i32
    %18 = arith.cmpi ne, %17, %c0_i32_13 : i32
    scf.if %18 {
      %c0_931 = arith.constant 0 : index
      %c9_932 = arith.constant 9 : index
      %c1_933 = arith.constant 1 : index
      %1806 = vector.load %arg6[%c0_931, %c9_932, %c1_933] : memref<4x10x18xf32, #tpu.memory_space<vmem>>, vector<4x1x16xf32>
      tpu.vector_store %arg6[%c0_931, %c9_932, %c1_933], %9 {strides = array<i32>} : memref<4x10x18xf32, #tpu.memory_space<vmem>>, vector<4x1x16xf32>,
    } else {
    }
    %c1_i32_14 = arith.constant 1 : i32
    %19 = arith.cmpi slt, %arg1, %c1_i32_14 : i32
    %20 = arith.extui %19 : i1 to i32
    %c0_i32_15 = arith.constant 0 : i32
    %21 = arith.cmpi ne, %20, %c0_i32_15 : i32
    scf.if %21 {
      %c8_i32_931 = arith.constant 8 : i32
      %1806 = arith.addi %1, %c8_i32_931 : i32
      %c0_932 = arith.constant 0 : index
      %c0_933 = arith.constant 0 : index
      %1807 = arith.index_cast %1806 : i32 to index
      %c0_934 = arith.constant 0 : index
      %1808 = vector.load %arg2[%c0_932, %c0_933, %1807, %c0_934] : memref<1x4x16x16xf32, #tpu.memory_space<vmem>>, vector<1x4x1x16xf32>
      %1809 = vector.shape_cast %1808 : vector<1x4x1x16xf32> to vector<4x1x16xf32>
      %c0_935 = arith.constant 0 : index
      %c9_936 = arith.constant 9 : index
      %c1_937 = arith.constant 1 : index
      %1810 = vector.load %arg6[%c0_935, %c9_936, %c1_937] : memref<4x10x18xf32, #tpu.memory_space<vmem>>, vector<4x1x16xf32>
      tpu.vector_store %arg6[%c0_935, %c9_936, %c1_937], %1809 {strides = array<i32>} : memref<4x10x18xf32, #tpu.memory_space<vmem>>, vector<4x1x16xf32>,
    } else {
    }
    %c0_16 = arith.constant 0 : index
    %22 = memref.load %arg4[%c0_16] : memref<8xf32, #tpu.memory_space<smem>>
    %23 = vector.broadcast %22 : f32 to vector<8x16xf32>
    %c0_17 = arith.constant 0 : index
    %24 = memref.load %arg3[%c0_17] : memref<288xf32, #tpu.memory_space<smem>>
    %c0_18 = arith.constant 0 : index
    %c0_19 = arith.constant 0 : index
    %c0_20 = arith.constant 0 : index
    %25 = vector.load %arg6[%c0_18, %c0_19, %c0_20] : memref<4x10x18xf32, #tpu.memory_space<vmem>>, vector<1x8x16xf32>
    %26 = vector.shape_cast %25 : vector<1x8x16xf32> to vector<8x16xf32>
    %27 = vector.broadcast %24 : f32 to vector<8x16xf32>
    %28 = arith.mulf %27, %26 : vector<8x16xf32>
    %29 = arith.addf %23, %28 : vector<8x16xf32>
    %c1_21 = arith.constant 1 : index
    %30 = memref.load %arg3[%c1_21] : memref<288xf32, #tpu.memory_space<smem>>
    %c0_22 = arith.constant 0 : index
    %c0_23 = arith.constant 0 : index
    %c1_24 = arith.constant 1 : index
    %31 = vector.load %arg6[%c0_22, %c0_23, %c1_24] : memref<4x10x18xf32, #tpu.memory_space<vmem>>, vector<1x8x16xf32>
    %32 = vector.shape_cast %31 : vector<1x8x16xf32> to vector<8x16xf32>
    %33 = vector.broadcast %30 : f32 to vector<8x16xf32>
    %34 = arith.mulf %33, %32 : vector<8x16xf32>
    %35 = arith.addf %29, %34 : vector<8x16xf32>
    %c2 = arith.constant 2 : index
    %36 = memref.load %arg3[%c2] : memref<288xf32, #tpu.memory_space<smem>>
    %c0_25 = arith.constant 0 : index
    %c0_26 = arith.constant 0 : index
    %c2_27 = arith.constant 2 : index
    %37 = vector.load %arg6[%c0_25, %c0_26, %c2_27] : memref<4x10x18xf32, #tpu.memory_space<vmem>>, vector<1x8x16xf32>
    %38 = vector.shape_cast %37 : vector<1x8x16xf32> to vector<8x16xf32>
    %39 = vector.broadcast %36 : f32 to vector<8x16xf32>
    %40 = arith.mulf %39, %38 : vector<8x16xf32>
    %41 = arith.addf %35, %40 : vector<8x16xf32>
    %c3 = arith.constant 3 : index
    %42 = memref.load %arg3[%c3] : memref<288xf32, #tpu.memory_space<smem>>
    %c0_28 = arith.constant 0 : index
    %c1_29 = arith.constant 1 : index
    %c0_30 = arith.constant 0 : index
    %43 = vector.load %arg6[%c0_28, %c1_29, %c0_30] : memref<4x10x18xf32, #tpu.memory_space<vmem>>, vector<1x8x16xf32>
    %44 = vector.shape_cast %43 : vector<1x8x16xf32> to vector<8x16xf32>
    %45 = vector.broadcast %42 : f32 to vector<8x16xf32>
    %46 = arith.mulf %45, %44 : vector<8x16xf32>
    %47 = arith.addf %41, %46 : vector<8x16xf32>
    %c4 = arith.constant 4 : index
    %48 = memref.load %arg3[%c4] : memref<288xf32, #tpu.memory_space<smem>>
    %c0_31 = arith.constant 0 : index
    %c1_32 = arith.constant 1 : index
    %c1_33 = arith.constant 1 : index
    %49 = vector.load %arg6[%c0_31, %c1_32, %c1_33] : memref<4x10x18xf32, #tpu.memory_space<vmem>>, vector<1x8x16xf32>
    %50 = vector.shape_cast %49 : vector<1x8x16xf32> to vector<8x16xf32>
    %51 = vector.broadcast %48 : f32 to vector<8x16xf32>
    %52 = arith.mulf %51, %50 : vector<8x16xf32>
    %53 = arith.addf %47, %52 : vector<8x16xf32>
    %c5 = arith.constant 5 : index
    %54 = memref.load %arg3[%c5] : memref<288xf32, #tpu.memory_space<smem>>
    %c0_34 = arith.constant 0 : index
    %c1_35 = arith.constant 1 : index
    %c2_36 = arith.constant 2 : index
    %55 = vector.load %arg6[%c0_34, %c1_35, %c2_36] : memref<4x10x18xf32, #tpu.memory_space<vmem>>, vector<1x8x16xf32>
    %56 = vector.shape_cast %55 : vector<1x8x16xf32> to vector<8x16xf32>
    %57 = vector.broadcast %54 : f32 to vector<8x16xf32>
    %58 = arith.mulf %57, %56 : vector<8x16xf32>
    %59 = arith.addf %53, %58 : vector<8x16xf32>
    %c6 = arith.constant 6 : index
    %60 = memref.load %arg3[%c6] : memref<288xf32, #tpu.memory_space<smem>>
    %c0_37 = arith.constant 0 : index
    %c2_38 = arith.constant 2 : index
    %c0_39 = arith.constant 0 : index
    %61 = vector.load %arg6[%c0_37, %c2_38, %c0_39] : memref<4x10x18xf32, #tpu.memory_space<vmem>>, vector<1x8x16xf32>
    %62 = vector.shape_cast %61 : vector<1x8x16xf32> to vector<8x16xf32>
    %63 = vector.broadcast %60 : f32 to vector<8x16xf32>
    %64 = arith.mulf %63, %62 : vector<8x16xf32>
    %65 = arith.addf %59, %64 : vector<8x16xf32>
    %c7 = arith.constant 7 : index
    %66 = memref.load %arg3[%c7] : memref<288xf32, #tpu.memory_space<smem>>
    %c0_40 = arith.constant 0 : index
    %c2_41 = arith.constant 2 : index
    %c1_42 = arith.constant 1 : index
    %67 = vector.load %arg6[%c0_40, %c2_41, %c1_42] : memref<4x10x18xf32, #tpu.memory_space<vmem>>, vector<1x8x16xf32>
    %68 = vector.shape_cast %67 : vector<1x8x16xf32> to vector<8x16xf32>
    %69 = vector.broadcast %66 : f32 to vector<8x16xf32>
    %70 = arith.mulf %69, %68 : vector<8x16xf32>
    %71 = arith.addf %65, %70 : vector<8x16xf32>
    %c8 = arith.constant 8 : index
    %72 = memref.load %arg3[%c8] : memref<288xf32, #tpu.memory_space<smem>>
    %c0_43 = arith.constant 0 : index
    %c2_44 = arith.constant 2 : index
    %c2_45 = arith.constant 2 : index
    %73 = vector.load %arg6[%c0_43, %c2_44, %c2_45] : memref<4x10x18xf32, #tpu.memory_space<vmem>>, vector<1x8x16xf32>
    %74 = vector.shape_cast %73 : vector<1x8x16xf32> to vector<8x16xf32>
    %75 = vector.broadcast %72 : f32 to vector<8x16xf32>
    %76 = arith.mulf %75, %74 : vector<8x16xf32>
    %77 = arith.addf %71, %76 : vector<8x16xf32>
    %c9 = arith.constant 9 : index
    %78 = memref.load %arg3[%c9] : memref<288xf32, #tpu.memory_space<smem>>
    %c1_46 = arith.constant 1 : index
    %c0_47 = arith.constant 0 : index
    %c0_48 = arith.constant 0 : index
    %79 = vector.load %arg6[%c1_46, %c0_47, %c0_48] : memref<4x10x18xf32, #tpu.memory_space<vmem>>, vector<1x8x16xf32>
    %80 = vector.shape_cast %79 : vector<1x8x16xf32> to vector<8x16xf32>
    %81 = vector.broadcast %78 : f32 to vector<8x16xf32>
    %82 = arith.mulf %81, %80 : vector<8x16xf32>
    %83 = arith.addf %77, %82 : vector<8x16xf32>
    %c10 = arith.constant 10 : index
    %84 = memref.load %arg3[%c10] : memref<288xf32, #tpu.memory_space<smem>>
    %c1_49 = arith.constant 1 : index
    %c0_50 = arith.constant 0 : index
    %c1_51 = arith.constant 1 : index
    %85 = vector.load %arg6[%c1_49, %c0_50, %c1_51] : memref<4x10x18xf32, #tpu.memory_space<vmem>>, vector<1x8x16xf32>
    %86 = vector.shape_cast %85 : vector<1x8x16xf32> to vector<8x16xf32>
    %87 = vector.broadcast %84 : f32 to vector<8x16xf32>
    %88 = arith.mulf %87, %86 : vector<8x16xf32>
    %89 = arith.addf %83, %88 : vector<8x16xf32>
    %c11 = arith.constant 11 : index
    %90 = memref.load %arg3[%c11] : memref<288xf32, #tpu.memory_space<smem>>
    %c1_52 = arith.constant 1 : index
    %c0_53 = arith.constant 0 : index
    %c2_54 = arith.constant 2 : index
    %91 = vector.load %arg6[%c1_52, %c0_53, %c2_54] : memref<4x10x18xf32, #tpu.memory_space<vmem>>, vector<1x8x16xf32>
    %92 = vector.shape_cast %91 : vector<1x8x16xf32> to vector<8x16xf32>
    %93 = vector.broadcast %90 : f32 to vector<8x16xf32>
    %94 = arith.mulf %93, %92 : vector<8x16xf32>
    %95 = arith.addf %89, %94 : vector<8x16xf32>
    %c12 = arith.constant 12 : index
    %96 = memref.load %arg3[%c12] : memref<288xf32, #tpu.memory_space<smem>>
    %c1_55 = arith.constant 1 : index
    %c1_56 = arith.constant 1 : index
    %c0_57 = arith.constant 0 : index
    %97 = vector.load %arg6[%c1_55, %c1_56, %c0_57] : memref<4x10x18xf32, #tpu.memory_space<vmem>>, vector<1x8x16xf32>
    %98 = vector.shape_cast %97 : vector<1x8x16xf32> to vector<8x16xf32>
    %99 = vector.broadcast %96 : f32 to vector<8x16xf32>
    %100 = arith.mulf %99, %98 : vector<8x16xf32>
    %101 = arith.addf %95, %100 : vector<8x16xf32>
    %c13 = arith.constant 13 : index
    %102 = memref.load %arg3[%c13] : memref<288xf32, #tpu.memory_space<smem>>
    %c1_58 = arith.constant 1 : index
    %c1_59 = arith.constant 1 : index
    %c1_60 = arith.constant 1 : index
    %103 = vector.load %arg6[%c1_58, %c1_59, %c1_60] : memref<4x10x18xf32, #tpu.memory_space<vmem>>, vector<1x8x16xf32>
    %104 = vector.shape_cast %103 : vector<1x8x16xf32> to vector<8x16xf32>
    %105 = vector.broadcast %102 : f32 to vector<8x16xf32>
    %106 = arith.mulf %105, %104 : vector<8x16xf32>
    %107 = arith.addf %101, %106 : vector<8x16xf32>
    %c14 = arith.constant 14 : index
    %108 = memref.load %arg3[%c14] : memref<288xf32, #tpu.memory_space<smem>>
    %c1_61 = arith.constant 1 : index
    %c1_62 = arith.constant 1 : index
    %c2_63 = arith.constant 2 : index
    %109 = vector.load %arg6[%c1_61, %c1_62, %c2_63] : memref<4x10x18xf32, #tpu.memory_space<vmem>>, vector<1x8x16xf32>
    %110 = vector.shape_cast %109 : vector<1x8x16xf32> to vector<8x16xf32>
    %111 = vector.broadcast %108 : f32 to vector<8x16xf32>
    %112 = arith.mulf %111, %110 : vector<8x16xf32>
    %113 = arith.addf %107, %112 : vector<8x16xf32>
    %c15 = arith.constant 15 : index
    %114 = memref.load %arg3[%c15] : memref<288xf32, #tpu.memory_space<smem>>
    %c1_64 = arith.constant 1 : index
    %c2_65 = arith.constant 2 : index
    %c0_66 = arith.constant 0 : index
    %115 = vector.load %arg6[%c1_64, %c2_65, %c0_66] : memref<4x10x18xf32, #tpu.memory_space<vmem>>, vector<1x8x16xf32>
    %116 = vector.shape_cast %115 : vector<1x8x16xf32> to vector<8x16xf32>
    %117 = vector.broadcast %114 : f32 to vector<8x16xf32>
    %118 = arith.mulf %117, %116 : vector<8x16xf32>
    %119 = arith.addf %113, %118 : vector<8x16xf32>
    %c16 = arith.constant 16 : index
    %120 = memref.load %arg3[%c16] : memref<288xf32, #tpu.memory_space<smem>>
    %c1_67 = arith.constant 1 : index
    %c2_68 = arith.constant 2 : index
    %c1_69 = arith.constant 1 : index
    %121 = vector.load %arg6[%c1_67, %c2_68, %c1_69] : memref<4x10x18xf32, #tpu.memory_space<vmem>>, vector<1x8x16xf32>
    %122 = vector.shape_cast %121 : vector<1x8x16xf32> to vector<8x16xf32>
    %123 = vector.broadcast %120 : f32 to vector<8x16xf32>
    %124 = arith.mulf %123, %122 : vector<8x16xf32>
    %125 = arith.addf %119, %124 : vector<8x16xf32>
    %c17_70 = arith.constant 17 : index
    %126 = memref.load %arg3[%c17_70] : memref<288xf32, #tpu.memory_space<smem>>
    %c1_71 = arith.constant 1 : index
    %c2_72 = arith.constant 2 : index
    %c2_73 = arith.constant 2 : index
    %127 = vector.load %arg6[%c1_71, %c2_72, %c2_73] : memref<4x10x18xf32, #tpu.memory_space<vmem>>, vector<1x8x16xf32>
    %128 = vector.shape_cast %127 : vector<1x8x16xf32> to vector<8x16xf32>
    %129 = vector.broadcast %126 : f32 to vector<8x16xf32>
    %130 = arith.mulf %129, %128 : vector<8x16xf32>
    %131 = arith.addf %125, %130 : vector<8x16xf32>
    %c18 = arith.constant 18 : index
    %132 = memref.load %arg3[%c18] : memref<288xf32, #tpu.memory_space<smem>>
    %c2_74 = arith.constant 2 : index
    %c0_75 = arith.constant 0 : index
    %c0_76 = arith.constant 0 : index
    %133 = vector.load %arg6[%c2_74, %c0_75, %c0_76] : memref<4x10x18xf32, #tpu.memory_space<vmem>>, vector<1x8x16xf32>
    %134 = vector.shape_cast %133 : vector<1x8x16xf32> to vector<8x16xf32>
    %135 = vector.broadcast %132 : f32 to vector<8x16xf32>
    %136 = arith.mulf %135, %134 : vector<8x16xf32>
    %137 = arith.addf %131, %136 : vector<8x16xf32>
    %c19 = arith.constant 19 : index
    %138 = memref.load %arg3[%c19] : memref<288xf32, #tpu.memory_space<smem>>
    %c2_77 = arith.constant 2 : index
    %c0_78 = arith.constant 0 : index
    %c1_79 = arith.constant 1 : index
    %139 = vector.load %arg6[%c2_77, %c0_78, %c1_79] : memref<4x10x18xf32, #tpu.memory_space<vmem>>, vector<1x8x16xf32>
    %140 = vector.shape_cast %139 : vector<1x8x16xf32> to vector<8x16xf32>
    %141 = vector.broadcast %138 : f32 to vector<8x16xf32>
    %142 = arith.mulf %141, %140 : vector<8x16xf32>
    %143 = arith.addf %137, %142 : vector<8x16xf32>
    %c20 = arith.constant 20 : index
    %144 = memref.load %arg3[%c20] : memref<288xf32, #tpu.memory_space<smem>>
    %c2_80 = arith.constant 2 : index
    %c0_81 = arith.constant 0 : index
    %c2_82 = arith.constant 2 : index
    %145 = vector.load %arg6[%c2_80, %c0_81, %c2_82] : memref<4x10x18xf32, #tpu.memory_space<vmem>>, vector<1x8x16xf32>
    %146 = vector.shape_cast %145 : vector<1x8x16xf32> to vector<8x16xf32>
    %147 = vector.broadcast %144 : f32 to vector<8x16xf32>
    %148 = arith.mulf %147, %146 : vector<8x16xf32>
    %149 = arith.addf %143, %148 : vector<8x16xf32>
    %c21 = arith.constant 21 : index
    %150 = memref.load %arg3[%c21] : memref<288xf32, #tpu.memory_space<smem>>
    %c2_83 = arith.constant 2 : index
    %c1_84 = arith.constant 1 : index
    %c0_85 = arith.constant 0 : index
    %151 = vector.load %arg6[%c2_83, %c1_84, %c0_85] : memref<4x10x18xf32, #tpu.memory_space<vmem>>, vector<1x8x16xf32>
    %152 = vector.shape_cast %151 : vector<1x8x16xf32> to vector<8x16xf32>
    %153 = vector.broadcast %150 : f32 to vector<8x16xf32>
    %154 = arith.mulf %153, %152 : vector<8x16xf32>
    %155 = arith.addf %149, %154 : vector<8x16xf32>
    %c22 = arith.constant 22 : index
    %156 = memref.load %arg3[%c22] : memref<288xf32, #tpu.memory_space<smem>>
    %c2_86 = arith.constant 2 : index
    %c1_87 = arith.constant 1 : index
    %c1_88 = arith.constant 1 : index
    %157 = vector.load %arg6[%c2_86, %c1_87, %c1_88] : memref<4x10x18xf32, #tpu.memory_space<vmem>>, vector<1x8x16xf32>
    %158 = vector.shape_cast %157 : vector<1x8x16xf32> to vector<8x16xf32>
    %159 = vector.broadcast %156 : f32 to vector<8x16xf32>
    %160 = arith.mulf %159, %158 : vector<8x16xf32>
    %161 = arith.addf %155, %160 : vector<8x16xf32>
    %c23 = arith.constant 23 : index
    %162 = memref.load %arg3[%c23] : memref<288xf32, #tpu.memory_space<smem>>
    %c2_89 = arith.constant 2 : index
    %c1_90 = arith.constant 1 : index
    %c2_91 = arith.constant 2 : index
    %163 = vector.load %arg6[%c2_89, %c1_90, %c2_91] : memref<4x10x18xf32, #tpu.memory_space<vmem>>, vector<1x8x16xf32>
    %164 = vector.shape_cast %163 : vector<1x8x16xf32> to vector<8x16xf32>
    %165 = vector.broadcast %162 : f32 to vector<8x16xf32>
    %166 = arith.mulf %165, %164 : vector<8x16xf32>
    %167 = arith.addf %161, %166 : vector<8x16xf32>
    %c24 = arith.constant 24 : index
    %168 = memref.load %arg3[%c24] : memref<288xf32, #tpu.memory_space<smem>>
    %c2_92 = arith.constant 2 : index
    %c2_93 = arith.constant 2 : index
    %c0_94 = arith.constant 0 : index
    %169 = vector.load %arg6[%c2_92, %c2_93, %c0_94] : memref<4x10x18xf32, #tpu.memory_space<vmem>>, vector<1x8x16xf32>
    %170 = vector.shape_cast %169 : vector<1x8x16xf32> to vector<8x16xf32>
    %171 = vector.broadcast %168 : f32 to vector<8x16xf32>
    %172 = arith.mulf %171, %170 : vector<8x16xf32>
    %173 = arith.addf %167, %172 : vector<8x16xf32>
    %c25 = arith.constant 25 : index
    %174 = memref.load %arg3[%c25] : memref<288xf32, #tpu.memory_space<smem>>
    %c2_95 = arith.constant 2 : index
    %c2_96 = arith.constant 2 : index
    %c1_97 = arith.constant 1 : index
    %175 = vector.load %arg6[%c2_95, %c2_96, %c1_97] : memref<4x10x18xf32, #tpu.memory_space<vmem>>, vector<1x8x16xf32>
    %176 = vector.shape_cast %175 : vector<1x8x16xf32> to vector<8x16xf32>
    %177 = vector.broadcast %174 : f32 to vector<8x16xf32>
    %178 = arith.mulf %177, %176 : vector<8x16xf32>
    %179 = arith.addf %173, %178 : vector<8x16xf32>
    %c26 = arith.constant 26 : index
    %180 = memref.load %arg3[%c26] : memref<288xf32, #tpu.memory_space<smem>>
    %c2_98 = arith.constant 2 : index
    %c2_99 = arith.constant 2 : index
    %c2_100 = arith.constant 2 : index
    %181 = vector.load %arg6[%c2_98, %c2_99, %c2_100] : memref<4x10x18xf32, #tpu.memory_space<vmem>>, vector<1x8x16xf32>
    %182 = vector.shape_cast %181 : vector<1x8x16xf32> to vector<8x16xf32>
    %183 = vector.broadcast %180 : f32 to vector<8x16xf32>
    %184 = arith.mulf %183, %182 : vector<8x16xf32>
    %185 = arith.addf %179, %184 : vector<8x16xf32>
    %c27 = arith.constant 27 : index
    %186 = memref.load %arg3[%c27] : memref<288xf32, #tpu.memory_space<smem>>
    %c3_101 = arith.constant 3 : index
    %c0_102 = arith.constant 0 : index
    %c0_103 = arith.constant 0 : index
    %187 = vector.load %arg6[%c3_101, %c0_102, %c0_103] : memref<4x10x18xf32, #tpu.memory_space<vmem>>, vector<1x8x16xf32>
    %188 = vector.shape_cast %187 : vector<1x8x16xf32> to vector<8x16xf32>
    %189 = vector.broadcast %186 : f32 to vector<8x16xf32>
    %190 = arith.mulf %189, %188 : vector<8x16xf32>
    %191 = arith.addf %185, %190 : vector<8x16xf32>
    %c28 = arith.constant 28 : index
    %192 = memref.load %arg3[%c28] : memref<288xf32, #tpu.memory_space<smem>>
    %c3_104 = arith.constant 3 : index
    %c0_105 = arith.constant 0 : index
    %c1_106 = arith.constant 1 : index
    %193 = vector.load %arg6[%c3_104, %c0_105, %c1_106] : memref<4x10x18xf32, #tpu.memory_space<vmem>>, vector<1x8x16xf32>
    %194 = vector.shape_cast %193 : vector<1x8x16xf32> to vector<8x16xf32>
    %195 = vector.broadcast %192 : f32 to vector<8x16xf32>
    %196 = arith.mulf %195, %194 : vector<8x16xf32>
    %197 = arith.addf %191, %196 : vector<8x16xf32>
    %c29 = arith.constant 29 : index
    %198 = memref.load %arg3[%c29] : memref<288xf32, #tpu.memory_space<smem>>
    %c3_107 = arith.constant 3 : index
    %c0_108 = arith.constant 0 : index
    %c2_109 = arith.constant 2 : index
    %199 = vector.load %arg6[%c3_107, %c0_108, %c2_109] : memref<4x10x18xf32, #tpu.memory_space<vmem>>, vector<1x8x16xf32>
    %200 = vector.shape_cast %199 : vector<1x8x16xf32> to vector<8x16xf32>
    %201 = vector.broadcast %198 : f32 to vector<8x16xf32>
    %202 = arith.mulf %201, %200 : vector<8x16xf32>
    %203 = arith.addf %197, %202 : vector<8x16xf32>
    %c30 = arith.constant 30 : index
    %204 = memref.load %arg3[%c30] : memref<288xf32, #tpu.memory_space<smem>>
    %c3_110 = arith.constant 3 : index
    %c1_111 = arith.constant 1 : index
    %c0_112 = arith.constant 0 : index
    %205 = vector.load %arg6[%c3_110, %c1_111, %c0_112] : memref<4x10x18xf32, #tpu.memory_space<vmem>>, vector<1x8x16xf32>
    %206 = vector.shape_cast %205 : vector<1x8x16xf32> to vector<8x16xf32>
    %207 = vector.broadcast %204 : f32 to vector<8x16xf32>
    %208 = arith.mulf %207, %206 : vector<8x16xf32>
    %209 = arith.addf %203, %208 : vector<8x16xf32>
    %c31 = arith.constant 31 : index
    %210 = memref.load %arg3[%c31] : memref<288xf32, #tpu.memory_space<smem>>
    %c3_113 = arith.constant 3 : index
    %c1_114 = arith.constant 1 : index
    %c1_115 = arith.constant 1 : index
    %211 = vector.load %arg6[%c3_113, %c1_114, %c1_115] : memref<4x10x18xf32, #tpu.memory_space<vmem>>, vector<1x8x16xf32>
    %212 = vector.shape_cast %211 : vector<1x8x16xf32> to vector<8x16xf32>
    %213 = vector.broadcast %210 : f32 to vector<8x16xf32>
    %214 = arith.mulf %213, %212 : vector<8x16xf32>
    %215 = arith.addf %209, %214 : vector<8x16xf32>
    %c32 = arith.constant 32 : index
    %216 = memref.load %arg3[%c32] : memref<288xf32, #tpu.memory_space<smem>>
    %c3_116 = arith.constant 3 : index
    %c1_117 = arith.constant 1 : index
    %c2_118 = arith.constant 2 : index
    %217 = vector.load %arg6[%c3_116, %c1_117, %c2_118] : memref<4x10x18xf32, #tpu.memory_space<vmem>>, vector<1x8x16xf32>
    %218 = vector.shape_cast %217 : vector<1x8x16xf32> to vector<8x16xf32>
    %219 = vector.broadcast %216 : f32 to vector<8x16xf32>
    %220 = arith.mulf %219, %218 : vector<8x16xf32>
    %221 = arith.addf %215, %220 : vector<8x16xf32>
    %c33 = arith.constant 33 : index
    %222 = memref.load %arg3[%c33] : memref<288xf32, #tpu.memory_space<smem>>
    %c3_119 = arith.constant 3 : index
    %c2_120 = arith.constant 2 : index
    %c0_121 = arith.constant 0 : index
    %223 = vector.load %arg6[%c3_119, %c2_120, %c0_121] : memref<4x10x18xf32, #tpu.memory_space<vmem>>, vector<1x8x16xf32>
    %224 = vector.shape_cast %223 : vector<1x8x16xf32> to vector<8x16xf32>
    %225 = vector.broadcast %222 : f32 to vector<8x16xf32>
    %226 = arith.mulf %225, %224 : vector<8x16xf32>
    %227 = arith.addf %221, %226 : vector<8x16xf32>
    %c34 = arith.constant 34 : index
    %228 = memref.load %arg3[%c34] : memref<288xf32, #tpu.memory_space<smem>>
    %c3_122 = arith.constant 3 : index
    %c2_123 = arith.constant 2 : index
    %c1_124 = arith.constant 1 : index
    %229 = vector.load %arg6[%c3_122, %c2_123, %c1_124] : memref<4x10x18xf32, #tpu.memory_space<vmem>>, vector<1x8x16xf32>
    %230 = vector.shape_cast %229 : vector<1x8x16xf32> to vector<8x16xf32>
    %231 = vector.broadcast %228 : f32 to vector<8x16xf32>
    %232 = arith.mulf %231, %230 : vector<8x16xf32>
    %233 = arith.addf %227, %232 : vector<8x16xf32>
    %c35 = arith.constant 35 : index
    %234 = memref.load %arg3[%c35] : memref<288xf32, #tpu.memory_space<smem>>
    %c3_125 = arith.constant 3 : index
    %c2_126 = arith.constant 2 : index
    %c2_127 = arith.constant 2 : index
    %235 = vector.load %arg6[%c3_125, %c2_126, %c2_127] : memref<4x10x18xf32, #tpu.memory_space<vmem>>, vector<1x8x16xf32>
    %236 = vector.shape_cast %235 : vector<1x8x16xf32> to vector<8x16xf32>
    %237 = vector.broadcast %234 : f32 to vector<8x16xf32>
    %238 = arith.mulf %237, %236 : vector<8x16xf32>
    %239 = arith.addf %233, %238 : vector<8x16xf32>
    %cst_128 = arith.constant 0.000000e+00 : f32
    %240 = vector.broadcast %cst_128 : f32 to vector<8x16xf32>
    %241 = arith.maximumf %239, %240 : vector<8x16xf32>
    %c0_129 = arith.constant 0 : index
    %c0_130 = arith.constant 0 : index
    %c0_131 = arith.constant 0 : index
    %c0_132 = arith.constant 0 : index
    %242 = vector.load %arg5[%c0_129, %c0_130, %c0_131, %c0_132] : memref<1x8x8x16xf32, #tpu.memory_space<vmem>>, vector<1x1x8x16xf32>
    %243 = vector.shape_cast %242 : vector<1x1x8x16xf32> to vector<8x16xf32>
    %244 = vector.shape_cast %241 : vector<8x16xf32> to vector<1x1x8x16xf32>
    tpu.vector_store %arg5[%c0_129, %c0_130, %c0_131, %c0_132], %244 {strides = array<i32>} : memref<1x8x8x16xf32, #tpu.memory_space<vmem>>, vector<1x1x8x16xf32>,
    %c1_133 = arith.constant 1 : index
    %245 = memref.load %arg4[%c1_133] : memref<8xf32, #tpu.memory_space<smem>>
    %246 = vector.broadcast %245 : f32 to vector<8x16xf32>
    %c36 = arith.constant 36 : index
    %247 = memref.load %arg3[%c36] : memref<288xf32, #tpu.memory_space<smem>>
    %c0_134 = arith.constant 0 : index
    %c0_135 = arith.constant 0 : index
    %c0_136 = arith.constant 0 : index
    %248 = vector.load %arg6[%c0_134, %c0_135, %c0_136] : memref<4x10x18xf32, #tpu.memory_space<vmem>>, vector<1x8x16xf32>
    %249 = vector.shape_cast %248 : vector<1x8x16xf32> to vector<8x16xf32>
    %250 = vector.broadcast %247 : f32 to vector<8x16xf32>
    %251 = arith.mulf %250, %249 : vector<8x16xf32>
    %252 = arith.addf %246, %251 : vector<8x16xf32>
    %c37 = arith.constant 37 : index
    %253 = memref.load %arg3[%c37] : memref<288xf32, #tpu.memory_space<smem>>
    %c0_137 = arith.constant 0 : index
    %c0_138 = arith.constant 0 : index
    %c1_139 = arith.constant 1 : index
    %254 = vector.load %arg6[%c0_137, %c0_138, %c1_139] : memref<4x10x18xf32, #tpu.memory_space<vmem>>, vector<1x8x16xf32>
    %255 = vector.shape_cast %254 : vector<1x8x16xf32> to vector<8x16xf32>
    %256 = vector.broadcast %253 : f32 to vector<8x16xf32>
    %257 = arith.mulf %256, %255 : vector<8x16xf32>
    %258 = arith.addf %252, %257 : vector<8x16xf32>
    %c38 = arith.constant 38 : index
    %259 = memref.load %arg3[%c38] : memref<288xf32, #tpu.memory_space<smem>>
    %c0_140 = arith.constant 0 : index
    %c0_141 = arith.constant 0 : index
    %c2_142 = arith.constant 2 : index
    %260 = vector.load %arg6[%c0_140, %c0_141, %c2_142] : memref<4x10x18xf32, #tpu.memory_space<vmem>>, vector<1x8x16xf32>
    %261 = vector.shape_cast %260 : vector<1x8x16xf32> to vector<8x16xf32>
    %262 = vector.broadcast %259 : f32 to vector<8x16xf32>
    %263 = arith.mulf %262, %261 : vector<8x16xf32>
    %264 = arith.addf %258, %263 : vector<8x16xf32>
    %c39 = arith.constant 39 : index
    %265 = memref.load %arg3[%c39] : memref<288xf32, #tpu.memory_space<smem>>
    %c0_143 = arith.constant 0 : index
    %c1_144 = arith.constant 1 : index
    %c0_145 = arith.constant 0 : index
    %266 = vector.load %arg6[%c0_143, %c1_144, %c0_145] : memref<4x10x18xf32, #tpu.memory_space<vmem>>, vector<1x8x16xf32>
    %267 = vector.shape_cast %266 : vector<1x8x16xf32> to vector<8x16xf32>
    %268 = vector.broadcast %265 : f32 to vector<8x16xf32>
    %269 = arith.mulf %268, %267 : vector<8x16xf32>
    %270 = arith.addf %264, %269 : vector<8x16xf32>
    %c40 = arith.constant 40 : index
    %271 = memref.load %arg3[%c40] : memref<288xf32, #tpu.memory_space<smem>>
    %c0_146 = arith.constant 0 : index
    %c1_147 = arith.constant 1 : index
    %c1_148 = arith.constant 1 : index
    %272 = vector.load %arg6[%c0_146, %c1_147, %c1_148] : memref<4x10x18xf32, #tpu.memory_space<vmem>>, vector<1x8x16xf32>
    %273 = vector.shape_cast %272 : vector<1x8x16xf32> to vector<8x16xf32>
    %274 = vector.broadcast %271 : f32 to vector<8x16xf32>
    %275 = arith.mulf %274, %273 : vector<8x16xf32>
    %276 = arith.addf %270, %275 : vector<8x16xf32>
    %c41 = arith.constant 41 : index
    %277 = memref.load %arg3[%c41] : memref<288xf32, #tpu.memory_space<smem>>
    %c0_149 = arith.constant 0 : index
    %c1_150 = arith.constant 1 : index
    %c2_151 = arith.constant 2 : index
    %278 = vector.load %arg6[%c0_149, %c1_150, %c2_151] : memref<4x10x18xf32, #tpu.memory_space<vmem>>, vector<1x8x16xf32>
    %279 = vector.shape_cast %278 : vector<1x8x16xf32> to vector<8x16xf32>
    %280 = vector.broadcast %277 : f32 to vector<8x16xf32>
    %281 = arith.mulf %280, %279 : vector<8x16xf32>
    %282 = arith.addf %276, %281 : vector<8x16xf32>
    %c42 = arith.constant 42 : index
    %283 = memref.load %arg3[%c42] : memref<288xf32, #tpu.memory_space<smem>>
    %c0_152 = arith.constant 0 : index
    %c2_153 = arith.constant 2 : index
    %c0_154 = arith.constant 0 : index
    %284 = vector.load %arg6[%c0_152, %c2_153, %c0_154] : memref<4x10x18xf32, #tpu.memory_space<vmem>>, vector<1x8x16xf32>
    %285 = vector.shape_cast %284 : vector<1x8x16xf32> to vector<8x16xf32>
    %286 = vector.broadcast %283 : f32 to vector<8x16xf32>
    %287 = arith.mulf %286, %285 : vector<8x16xf32>
    %288 = arith.addf %282, %287 : vector<8x16xf32>
    %c43 = arith.constant 43 : index
    %289 = memref.load %arg3[%c43] : memref<288xf32, #tpu.memory_space<smem>>
    %c0_155 = arith.constant 0 : index
    %c2_156 = arith.constant 2 : index
    %c1_157 = arith.constant 1 : index
    %290 = vector.load %arg6[%c0_155, %c2_156, %c1_157] : memref<4x10x18xf32, #tpu.memory_space<vmem>>, vector<1x8x16xf32>
    %291 = vector.shape_cast %290 : vector<1x8x16xf32> to vector<8x16xf32>
    %292 = vector.broadcast %289 : f32 to vector<8x16xf32>
    %293 = arith.mulf %292, %291 : vector<8x16xf32>
    %294 = arith.addf %288, %293 : vector<8x16xf32>
    %c44 = arith.constant 44 : index
    %295 = memref.load %arg3[%c44] : memref<288xf32, #tpu.memory_space<smem>>
    %c0_158 = arith.constant 0 : index
    %c2_159 = arith.constant 2 : index
    %c2_160 = arith.constant 2 : index
    %296 = vector.load %arg6[%c0_158, %c2_159, %c2_160] : memref<4x10x18xf32, #tpu.memory_space<vmem>>, vector<1x8x16xf32>
    %297 = vector.shape_cast %296 : vector<1x8x16xf32> to vector<8x16xf32>
    %298 = vector.broadcast %295 : f32 to vector<8x16xf32>
    %299 = arith.mulf %298, %297 : vector<8x16xf32>
    %300 = arith.addf %294, %299 : vector<8x16xf32>
    %c45 = arith.constant 45 : index
    %301 = memref.load %arg3[%c45] : memref<288xf32, #tpu.memory_space<smem>>
    %c1_161 = arith.constant 1 : index
    %c0_162 = arith.constant 0 : index
    %c0_163 = arith.constant 0 : index
    %302 = vector.load %arg6[%c1_161, %c0_162, %c0_163] : memref<4x10x18xf32, #tpu.memory_space<vmem>>, vector<1x8x16xf32>
    %303 = vector.shape_cast %302 : vector<1x8x16xf32> to vector<8x16xf32>
    %304 = vector.broadcast %301 : f32 to vector<8x16xf32>
    %305 = arith.mulf %304, %303 : vector<8x16xf32>
    %306 = arith.addf %300, %305 : vector<8x16xf32>
    %c46 = arith.constant 46 : index
    %307 = memref.load %arg3[%c46] : memref<288xf32, #tpu.memory_space<smem>>
    %c1_164 = arith.constant 1 : index
    %c0_165 = arith.constant 0 : index
    %c1_166 = arith.constant 1 : index
    %308 = vector.load %arg6[%c1_164, %c0_165, %c1_166] : memref<4x10x18xf32, #tpu.memory_space<vmem>>, vector<1x8x16xf32>
    %309 = vector.shape_cast %308 : vector<1x8x16xf32> to vector<8x16xf32>
    %310 = vector.broadcast %307 : f32 to vector<8x16xf32>
    %311 = arith.mulf %310, %309 : vector<8x16xf32>
    %312 = arith.addf %306, %311 : vector<8x16xf32>
    %c47 = arith.constant 47 : index
    %313 = memref.load %arg3[%c47] : memref<288xf32, #tpu.memory_space<smem>>
    %c1_167 = arith.constant 1 : index
    %c0_168 = arith.constant 0 : index
    %c2_169 = arith.constant 2 : index
    %314 = vector.load %arg6[%c1_167, %c0_168, %c2_169] : memref<4x10x18xf32, #tpu.memory_space<vmem>>, vector<1x8x16xf32>
    %315 = vector.shape_cast %314 : vector<1x8x16xf32> to vector<8x16xf32>
    %316 = vector.broadcast %313 : f32 to vector<8x16xf32>
    %317 = arith.mulf %316, %315 : vector<8x16xf32>
    %318 = arith.addf %312, %317 : vector<8x16xf32>
    %c48 = arith.constant 48 : index
    %319 = memref.load %arg3[%c48] : memref<288xf32, #tpu.memory_space<smem>>
    %c1_170 = arith.constant 1 : index
    %c1_171 = arith.constant 1 : index
    %c0_172 = arith.constant 0 : index
    %320 = vector.load %arg6[%c1_170, %c1_171, %c0_172] : memref<4x10x18xf32, #tpu.memory_space<vmem>>, vector<1x8x16xf32>
    %321 = vector.shape_cast %320 : vector<1x8x16xf32> to vector<8x16xf32>
    %322 = vector.broadcast %319 : f32 to vector<8x16xf32>
    %323 = arith.mulf %322, %321 : vector<8x16xf32>
    %324 = arith.addf %318, %323 : vector<8x16xf32>
    %c49 = arith.constant 49 : index
    %325 = memref.load %arg3[%c49] : memref<288xf32, #tpu.memory_space<smem>>
    %c1_173 = arith.constant 1 : index
    %c1_174 = arith.constant 1 : index
    %c1_175 = arith.constant 1 : index
    %326 = vector.load %arg6[%c1_173, %c1_174, %c1_175] : memref<4x10x18xf32, #tpu.memory_space<vmem>>, vector<1x8x16xf32>
    %327 = vector.shape_cast %326 : vector<1x8x16xf32> to vector<8x16xf32>
    %328 = vector.broadcast %325 : f32 to vector<8x16xf32>
    %329 = arith.mulf %328, %327 : vector<8x16xf32>
    %330 = arith.addf %324, %329 : vector<8x16xf32>
    %c50 = arith.constant 50 : index
    %331 = memref.load %arg3[%c50] : memref<288xf32, #tpu.memory_space<smem>>
    %c1_176 = arith.constant 1 : index
    %c1_177 = arith.constant 1 : index
    %c2_178 = arith.constant 2 : index
    %332 = vector.load %arg6[%c1_176, %c1_177, %c2_178] : memref<4x10x18xf32, #tpu.memory_space<vmem>>, vector<1x8x16xf32>
    %333 = vector.shape_cast %332 : vector<1x8x16xf32> to vector<8x16xf32>
    %334 = vector.broadcast %331 : f32 to vector<8x16xf32>
    %335 = arith.mulf %334, %333 : vector<8x16xf32>
    %336 = arith.addf %330, %335 : vector<8x16xf32>
    %c51 = arith.constant 51 : index
    %337 = memref.load %arg3[%c51] : memref<288xf32, #tpu.memory_space<smem>>
    %c1_179 = arith.constant 1 : index
    %c2_180 = arith.constant 2 : index
    %c0_181 = arith.constant 0 : index
    %338 = vector.load %arg6[%c1_179, %c2_180, %c0_181] : memref<4x10x18xf32, #tpu.memory_space<vmem>>, vector<1x8x16xf32>
    %339 = vector.shape_cast %338 : vector<1x8x16xf32> to vector<8x16xf32>
    %340 = vector.broadcast %337 : f32 to vector<8x16xf32>
    %341 = arith.mulf %340, %339 : vector<8x16xf32>
    %342 = arith.addf %336, %341 : vector<8x16xf32>
    %c52 = arith.constant 52 : index
    %343 = memref.load %arg3[%c52] : memref<288xf32, #tpu.memory_space<smem>>
    %c1_182 = arith.constant 1 : index
    %c2_183 = arith.constant 2 : index
    %c1_184 = arith.constant 1 : index
    %344 = vector.load %arg6[%c1_182, %c2_183, %c1_184] : memref<4x10x18xf32, #tpu.memory_space<vmem>>, vector<1x8x16xf32>
    %345 = vector.shape_cast %344 : vector<1x8x16xf32> to vector<8x16xf32>
    %346 = vector.broadcast %343 : f32 to vector<8x16xf32>
    %347 = arith.mulf %346, %345 : vector<8x16xf32>
    %348 = arith.addf %342, %347 : vector<8x16xf32>
    %c53 = arith.constant 53 : index
    %349 = memref.load %arg3[%c53] : memref<288xf32, #tpu.memory_space<smem>>
    %c1_185 = arith.constant 1 : index
    %c2_186 = arith.constant 2 : index
    %c2_187 = arith.constant 2 : index
    %350 = vector.load %arg6[%c1_185, %c2_186, %c2_187] : memref<4x10x18xf32, #tpu.memory_space<vmem>>, vector<1x8x16xf32>
    %351 = vector.shape_cast %350 : vector<1x8x16xf32> to vector<8x16xf32>
    %352 = vector.broadcast %349 : f32 to vector<8x16xf32>
    %353 = arith.mulf %352, %351 : vector<8x16xf32>
    %354 = arith.addf %348, %353 : vector<8x16xf32>
    %c54 = arith.constant 54 : index
    %355 = memref.load %arg3[%c54] : memref<288xf32, #tpu.memory_space<smem>>
    %c2_188 = arith.constant 2 : index
    %c0_189 = arith.constant 0 : index
    %c0_190 = arith.constant 0 : index
    %356 = vector.load %arg6[%c2_188, %c0_189, %c0_190] : memref<4x10x18xf32, #tpu.memory_space<vmem>>, vector<1x8x16xf32>
    %357 = vector.shape_cast %356 : vector<1x8x16xf32> to vector<8x16xf32>
    %358 = vector.broadcast %355 : f32 to vector<8x16xf32>
    %359 = arith.mulf %358, %357 : vector<8x16xf32>
    %360 = arith.addf %354, %359 : vector<8x16xf32>
    %c55 = arith.constant 55 : index
    %361 = memref.load %arg3[%c55] : memref<288xf32, #tpu.memory_space<smem>>
    %c2_191 = arith.constant 2 : index
    %c0_192 = arith.constant 0 : index
    %c1_193 = arith.constant 1 : index
    %362 = vector.load %arg6[%c2_191, %c0_192, %c1_193] : memref<4x10x18xf32, #tpu.memory_space<vmem>>, vector<1x8x16xf32>
    %363 = vector.shape_cast %362 : vector<1x8x16xf32> to vector<8x16xf32>
    %364 = vector.broadcast %361 : f32 to vector<8x16xf32>
    %365 = arith.mulf %364, %363 : vector<8x16xf32>
    %366 = arith.addf %360, %365 : vector<8x16xf32>
    %c56 = arith.constant 56 : index
    %367 = memref.load %arg3[%c56] : memref<288xf32, #tpu.memory_space<smem>>
    %c2_194 = arith.constant 2 : index
    %c0_195 = arith.constant 0 : index
    %c2_196 = arith.constant 2 : index
    %368 = vector.load %arg6[%c2_194, %c0_195, %c2_196] : memref<4x10x18xf32, #tpu.memory_space<vmem>>, vector<1x8x16xf32>
    %369 = vector.shape_cast %368 : vector<1x8x16xf32> to vector<8x16xf32>
    %370 = vector.broadcast %367 : f32 to vector<8x16xf32>
    %371 = arith.mulf %370, %369 : vector<8x16xf32>
    %372 = arith.addf %366, %371 : vector<8x16xf32>
    %c57 = arith.constant 57 : index
    %373 = memref.load %arg3[%c57] : memref<288xf32, #tpu.memory_space<smem>>
    %c2_197 = arith.constant 2 : index
    %c1_198 = arith.constant 1 : index
    %c0_199 = arith.constant 0 : index
    %374 = vector.load %arg6[%c2_197, %c1_198, %c0_199] : memref<4x10x18xf32, #tpu.memory_space<vmem>>, vector<1x8x16xf32>
    %375 = vector.shape_cast %374 : vector<1x8x16xf32> to vector<8x16xf32>
    %376 = vector.broadcast %373 : f32 to vector<8x16xf32>
    %377 = arith.mulf %376, %375 : vector<8x16xf32>
    %378 = arith.addf %372, %377 : vector<8x16xf32>
    %c58 = arith.constant 58 : index
    %379 = memref.load %arg3[%c58] : memref<288xf32, #tpu.memory_space<smem>>
    %c2_200 = arith.constant 2 : index
    %c1_201 = arith.constant 1 : index
    %c1_202 = arith.constant 1 : index
    %380 = vector.load %arg6[%c2_200, %c1_201, %c1_202] : memref<4x10x18xf32, #tpu.memory_space<vmem>>, vector<1x8x16xf32>
    %381 = vector.shape_cast %380 : vector<1x8x16xf32> to vector<8x16xf32>
    %382 = vector.broadcast %379 : f32 to vector<8x16xf32>
    %383 = arith.mulf %382, %381 : vector<8x16xf32>
    %384 = arith.addf %378, %383 : vector<8x16xf32>
    %c59 = arith.constant 59 : index
    %385 = memref.load %arg3[%c59] : memref<288xf32, #tpu.memory_space<smem>>
    %c2_203 = arith.constant 2 : index
    %c1_204 = arith.constant 1 : index
    %c2_205 = arith.constant 2 : index
    %386 = vector.load %arg6[%c2_203, %c1_204, %c2_205] : memref<4x10x18xf32, #tpu.memory_space<vmem>>, vector<1x8x16xf32>
    %387 = vector.shape_cast %386 : vector<1x8x16xf32> to vector<8x16xf32>
    %388 = vector.broadcast %385 : f32 to vector<8x16xf32>
    %389 = arith.mulf %388, %387 : vector<8x16xf32>
    %390 = arith.addf %384, %389 : vector<8x16xf32>
    %c60 = arith.constant 60 : index
    %391 = memref.load %arg3[%c60] : memref<288xf32, #tpu.memory_space<smem>>
    %c2_206 = arith.constant 2 : index
    %c2_207 = arith.constant 2 : index
    %c0_208 = arith.constant 0 : index
    %392 = vector.load %arg6[%c2_206, %c2_207, %c0_208] : memref<4x10x18xf32, #tpu.memory_space<vmem>>, vector<1x8x16xf32>
    %393 = vector.shape_cast %392 : vector<1x8x16xf32> to vector<8x16xf32>
    %394 = vector.broadcast %391 : f32 to vector<8x16xf32>
    %395 = arith.mulf %394, %393 : vector<8x16xf32>
    %396 = arith.addf %390, %395 : vector<8x16xf32>
    %c61 = arith.constant 61 : index
    %397 = memref.load %arg3[%c61] : memref<288xf32, #tpu.memory_space<smem>>
    %c2_209 = arith.constant 2 : index
    %c2_210 = arith.constant 2 : index
    %c1_211 = arith.constant 1 : index
    %398 = vector.load %arg6[%c2_209, %c2_210, %c1_211] : memref<4x10x18xf32, #tpu.memory_space<vmem>>, vector<1x8x16xf32>
    %399 = vector.shape_cast %398 : vector<1x8x16xf32> to vector<8x16xf32>
    %400 = vector.broadcast %397 : f32 to vector<8x16xf32>
    %401 = arith.mulf %400, %399 : vector<8x16xf32>
    %402 = arith.addf %396, %401 : vector<8x16xf32>
    %c62 = arith.constant 62 : index
    %403 = memref.load %arg3[%c62] : memref<288xf32, #tpu.memory_space<smem>>
    %c2_212 = arith.constant 2 : index
    %c2_213 = arith.constant 2 : index
    %c2_214 = arith.constant 2 : index
    %404 = vector.load %arg6[%c2_212, %c2_213, %c2_214] : memref<4x10x18xf32, #tpu.memory_space<vmem>>, vector<1x8x16xf32>
    %405 = vector.shape_cast %404 : vector<1x8x16xf32> to vector<8x16xf32>
    %406 = vector.broadcast %403 : f32 to vector<8x16xf32>
    %407 = arith.mulf %406, %405 : vector<8x16xf32>
    %408 = arith.addf %402, %407 : vector<8x16xf32>
    %c63 = arith.constant 63 : index
    %409 = memref.load %arg3[%c63] : memref<288xf32, #tpu.memory_space<smem>>
    %c3_215 = arith.constant 3 : index
    %c0_216 = arith.constant 0 : index
    %c0_217 = arith.constant 0 : index
    %410 = vector.load %arg6[%c3_215, %c0_216, %c0_217] : memref<4x10x18xf32, #tpu.memory_space<vmem>>, vector<1x8x16xf32>
    %411 = vector.shape_cast %410 : vector<1x8x16xf32> to vector<8x16xf32>
    %412 = vector.broadcast %409 : f32 to vector<8x16xf32>
    %413 = arith.mulf %412, %411 : vector<8x16xf32>
    %414 = arith.addf %408, %413 : vector<8x16xf32>
    %c64 = arith.constant 64 : index
    %415 = memref.load %arg3[%c64] : memref<288xf32, #tpu.memory_space<smem>>
    %c3_218 = arith.constant 3 : index
    %c0_219 = arith.constant 0 : index
    %c1_220 = arith.constant 1 : index
    %416 = vector.load %arg6[%c3_218, %c0_219, %c1_220] : memref<4x10x18xf32, #tpu.memory_space<vmem>>, vector<1x8x16xf32>
    %417 = vector.shape_cast %416 : vector<1x8x16xf32> to vector<8x16xf32>
    %418 = vector.broadcast %415 : f32 to vector<8x16xf32>
    %419 = arith.mulf %418, %417 : vector<8x16xf32>
    %420 = arith.addf %414, %419 : vector<8x16xf32>
    %c65 = arith.constant 65 : index
    %421 = memref.load %arg3[%c65] : memref<288xf32, #tpu.memory_space<smem>>
    %c3_221 = arith.constant 3 : index
    %c0_222 = arith.constant 0 : index
    %c2_223 = arith.constant 2 : index
    %422 = vector.load %arg6[%c3_221, %c0_222, %c2_223] : memref<4x10x18xf32, #tpu.memory_space<vmem>>, vector<1x8x16xf32>
    %423 = vector.shape_cast %422 : vector<1x8x16xf32> to vector<8x16xf32>
    %424 = vector.broadcast %421 : f32 to vector<8x16xf32>
    %425 = arith.mulf %424, %423 : vector<8x16xf32>
    %426 = arith.addf %420, %425 : vector<8x16xf32>
    %c66 = arith.constant 66 : index
    %427 = memref.load %arg3[%c66] : memref<288xf32, #tpu.memory_space<smem>>
    %c3_224 = arith.constant 3 : index
    %c1_225 = arith.constant 1 : index
    %c0_226 = arith.constant 0 : index
    %428 = vector.load %arg6[%c3_224, %c1_225, %c0_226] : memref<4x10x18xf32, #tpu.memory_space<vmem>>, vector<1x8x16xf32>
    %429 = vector.shape_cast %428 : vector<1x8x16xf32> to vector<8x16xf32>
    %430 = vector.broadcast %427 : f32 to vector<8x16xf32>
    %431 = arith.mulf %430, %429 : vector<8x16xf32>
    %432 = arith.addf %426, %431 : vector<8x16xf32>
    %c67 = arith.constant 67 : index
    %433 = memref.load %arg3[%c67] : memref<288xf32, #tpu.memory_space<smem>>
    %c3_227 = arith.constant 3 : index
    %c1_228 = arith.constant 1 : index
    %c1_229 = arith.constant 1 : index
    %434 = vector.load %arg6[%c3_227, %c1_228, %c1_229] : memref<4x10x18xf32, #tpu.memory_space<vmem>>, vector<1x8x16xf32>
    %435 = vector.shape_cast %434 : vector<1x8x16xf32> to vector<8x16xf32>
    %436 = vector.broadcast %433 : f32 to vector<8x16xf32>
    %437 = arith.mulf %436, %435 : vector<8x16xf32>
    %438 = arith.addf %432, %437 : vector<8x16xf32>
    %c68 = arith.constant 68 : index
    %439 = memref.load %arg3[%c68] : memref<288xf32, #tpu.memory_space<smem>>
    %c3_230 = arith.constant 3 : index
    %c1_231 = arith.constant 1 : index
    %c2_232 = arith.constant 2 : index
    %440 = vector.load %arg6[%c3_230, %c1_231, %c2_232] : memref<4x10x18xf32, #tpu.memory_space<vmem>>, vector<1x8x16xf32>
    %441 = vector.shape_cast %440 : vector<1x8x16xf32> to vector<8x16xf32>
    %442 = vector.broadcast %439 : f32 to vector<8x16xf32>
    %443 = arith.mulf %442, %441 : vector<8x16xf32>
    %444 = arith.addf %438, %443 : vector<8x16xf32>
    %c69 = arith.constant 69 : index
    %445 = memref.load %arg3[%c69] : memref<288xf32, #tpu.memory_space<smem>>
    %c3_233 = arith.constant 3 : index
    %c2_234 = arith.constant 2 : index
    %c0_235 = arith.constant 0 : index
    %446 = vector.load %arg6[%c3_233, %c2_234, %c0_235] : memref<4x10x18xf32, #tpu.memory_space<vmem>>, vector<1x8x16xf32>
    %447 = vector.shape_cast %446 : vector<1x8x16xf32> to vector<8x16xf32>
    %448 = vector.broadcast %445 : f32 to vector<8x16xf32>
    %449 = arith.mulf %448, %447 : vector<8x16xf32>
    %450 = arith.addf %444, %449 : vector<8x16xf32>
    %c70 = arith.constant 70 : index
    %451 = memref.load %arg3[%c70] : memref<288xf32, #tpu.memory_space<smem>>
    %c3_236 = arith.constant 3 : index
    %c2_237 = arith.constant 2 : index
    %c1_238 = arith.constant 1 : index
    %452 = vector.load %arg6[%c3_236, %c2_237, %c1_238] : memref<4x10x18xf32, #tpu.memory_space<vmem>>, vector<1x8x16xf32>
    %453 = vector.shape_cast %452 : vector<1x8x16xf32> to vector<8x16xf32>
    %454 = vector.broadcast %451 : f32 to vector<8x16xf32>
    %455 = arith.mulf %454, %453 : vector<8x16xf32>
    %456 = arith.addf %450, %455 : vector<8x16xf32>
    %c71 = arith.constant 71 : index
    %457 = memref.load %arg3[%c71] : memref<288xf32, #tpu.memory_space<smem>>
    %c3_239 = arith.constant 3 : index
    %c2_240 = arith.constant 2 : index
    %c2_241 = arith.constant 2 : index
    %458 = vector.load %arg6[%c3_239, %c2_240, %c2_241] : memref<4x10x18xf32, #tpu.memory_space<vmem>>, vector<1x8x16xf32>
    %459 = vector.shape_cast %458 : vector<1x8x16xf32> to vector<8x16xf32>
    %460 = vector.broadcast %457 : f32 to vector<8x16xf32>
    %461 = arith.mulf %460, %459 : vector<8x16xf32>
    %462 = arith.addf %456, %461 : vector<8x16xf32>
    %cst_242 = arith.constant 0.000000e+00 : f32
    %463 = vector.broadcast %cst_242 : f32 to vector<8x16xf32>
    %464 = arith.maximumf %462, %463 : vector<8x16xf32>
    %c0_243 = arith.constant 0 : index
    %c1_244 = arith.constant 1 : index
    %c0_245 = arith.constant 0 : index
    %c0_246 = arith.constant 0 : index
    %465 = vector.load %arg5[%c0_243, %c1_244, %c0_245, %c0_246] : memref<1x8x8x16xf32, #tpu.memory_space<vmem>>, vector<1x1x8x16xf32>
    %466 = vector.shape_cast %465 : vector<1x1x8x16xf32> to vector<8x16xf32>
    %467 = vector.shape_cast %464 : vector<8x16xf32> to vector<1x1x8x16xf32>
    tpu.vector_store %arg5[%c0_243, %c1_244, %c0_245, %c0_246], %467 {strides = array<i32>} : memref<1x8x8x16xf32, #tpu.memory_space<vmem>>, vector<1x1x8x16xf32>,
    %c2_247 = arith.constant 2 : index
    %468 = memref.load %arg4[%c2_247] : memref<8xf32, #tpu.memory_space<smem>>
    %469 = vector.broadcast %468 : f32 to vector<8x16xf32>
    %c72 = arith.constant 72 : index
    %470 = memref.load %arg3[%c72] : memref<288xf32, #tpu.memory_space<smem>>
    %c0_248 = arith.constant 0 : index
    %c0_249 = arith.constant 0 : index
    %c0_250 = arith.constant 0 : index
    %471 = vector.load %arg6[%c0_248, %c0_249, %c0_250] : memref<4x10x18xf32, #tpu.memory_space<vmem>>, vector<1x8x16xf32>
    %472 = vector.shape_cast %471 : vector<1x8x16xf32> to vector<8x16xf32>
    %473 = vector.broadcast %470 : f32 to vector<8x16xf32>
    %474 = arith.mulf %473, %472 : vector<8x16xf32>
    %475 = arith.addf %469, %474 : vector<8x16xf32>
    %c73 = arith.constant 73 : index
    %476 = memref.load %arg3[%c73] : memref<288xf32, #tpu.memory_space<smem>>
    %c0_251 = arith.constant 0 : index
    %c0_252 = arith.constant 0 : index
    %c1_253 = arith.constant 1 : index
    %477 = vector.load %arg6[%c0_251, %c0_252, %c1_253] : memref<4x10x18xf32, #tpu.memory_space<vmem>>, vector<1x8x16xf32>
    %478 = vector.shape_cast %477 : vector<1x8x16xf32> to vector<8x16xf32>
    %479 = vector.broadcast %476 : f32 to vector<8x16xf32>
    %480 = arith.mulf %479, %478 : vector<8x16xf32>
    %481 = arith.addf %475, %480 : vector<8x16xf32>
    %c74 = arith.constant 74 : index
    %482 = memref.load %arg3[%c74] : memref<288xf32, #tpu.memory_space<smem>>
    %c0_254 = arith.constant 0 : index
    %c0_255 = arith.constant 0 : index
    %c2_256 = arith.constant 2 : index
    %483 = vector.load %arg6[%c0_254, %c0_255, %c2_256] : memref<4x10x18xf32, #tpu.memory_space<vmem>>, vector<1x8x16xf32>
    %484 = vector.shape_cast %483 : vector<1x8x16xf32> to vector<8x16xf32>
    %485 = vector.broadcast %482 : f32 to vector<8x16xf32>
    %486 = arith.mulf %485, %484 : vector<8x16xf32>
    %487 = arith.addf %481, %486 : vector<8x16xf32>
    %c75 = arith.constant 75 : index
    %488 = memref.load %arg3[%c75] : memref<288xf32, #tpu.memory_space<smem>>
    %c0_257 = arith.constant 0 : index
    %c1_258 = arith.constant 1 : index
    %c0_259 = arith.constant 0 : index
    %489 = vector.load %arg6[%c0_257, %c1_258, %c0_259] : memref<4x10x18xf32, #tpu.memory_space<vmem>>, vector<1x8x16xf32>
    %490 = vector.shape_cast %489 : vector<1x8x16xf32> to vector<8x16xf32>
    %491 = vector.broadcast %488 : f32 to vector<8x16xf32>
    %492 = arith.mulf %491, %490 : vector<8x16xf32>
    %493 = arith.addf %487, %492 : vector<8x16xf32>
    %c76 = arith.constant 76 : index
    %494 = memref.load %arg3[%c76] : memref<288xf32, #tpu.memory_space<smem>>
    %c0_260 = arith.constant 0 : index
    %c1_261 = arith.constant 1 : index
    %c1_262 = arith.constant 1 : index
    %495 = vector.load %arg6[%c0_260, %c1_261, %c1_262] : memref<4x10x18xf32, #tpu.memory_space<vmem>>, vector<1x8x16xf32>
    %496 = vector.shape_cast %495 : vector<1x8x16xf32> to vector<8x16xf32>
    %497 = vector.broadcast %494 : f32 to vector<8x16xf32>
    %498 = arith.mulf %497, %496 : vector<8x16xf32>
    %499 = arith.addf %493, %498 : vector<8x16xf32>
    %c77 = arith.constant 77 : index
    %500 = memref.load %arg3[%c77] : memref<288xf32, #tpu.memory_space<smem>>
    %c0_263 = arith.constant 0 : index
    %c1_264 = arith.constant 1 : index
    %c2_265 = arith.constant 2 : index
    %501 = vector.load %arg6[%c0_263, %c1_264, %c2_265] : memref<4x10x18xf32, #tpu.memory_space<vmem>>, vector<1x8x16xf32>
    %502 = vector.shape_cast %501 : vector<1x8x16xf32> to vector<8x16xf32>
    %503 = vector.broadcast %500 : f32 to vector<8x16xf32>
    %504 = arith.mulf %503, %502 : vector<8x16xf32>
    %505 = arith.addf %499, %504 : vector<8x16xf32>
    %c78 = arith.constant 78 : index
    %506 = memref.load %arg3[%c78] : memref<288xf32, #tpu.memory_space<smem>>
    %c0_266 = arith.constant 0 : index
    %c2_267 = arith.constant 2 : index
    %c0_268 = arith.constant 0 : index
    %507 = vector.load %arg6[%c0_266, %c2_267, %c0_268] : memref<4x10x18xf32, #tpu.memory_space<vmem>>, vector<1x8x16xf32>
    %508 = vector.shape_cast %507 : vector<1x8x16xf32> to vector<8x16xf32>
    %509 = vector.broadcast %506 : f32 to vector<8x16xf32>
    %510 = arith.mulf %509, %508 : vector<8x16xf32>
    %511 = arith.addf %505, %510 : vector<8x16xf32>
    %c79 = arith.constant 79 : index
    %512 = memref.load %arg3[%c79] : memref<288xf32, #tpu.memory_space<smem>>
    %c0_269 = arith.constant 0 : index
    %c2_270 = arith.constant 2 : index
    %c1_271 = arith.constant 1 : index
    %513 = vector.load %arg6[%c0_269, %c2_270, %c1_271] : memref<4x10x18xf32, #tpu.memory_space<vmem>>, vector<1x8x16xf32>
    %514 = vector.shape_cast %513 : vector<1x8x16xf32> to vector<8x16xf32>
    %515 = vector.broadcast %512 : f32 to vector<8x16xf32>
    %516 = arith.mulf %515, %514 : vector<8x16xf32>
    %517 = arith.addf %511, %516 : vector<8x16xf32>
    %c80 = arith.constant 80 : index
    %518 = memref.load %arg3[%c80] : memref<288xf32, #tpu.memory_space<smem>>
    %c0_272 = arith.constant 0 : index
    %c2_273 = arith.constant 2 : index
    %c2_274 = arith.constant 2 : index
    %519 = vector.load %arg6[%c0_272, %c2_273, %c2_274] : memref<4x10x18xf32, #tpu.memory_space<vmem>>, vector<1x8x16xf32>
    %520 = vector.shape_cast %519 : vector<1x8x16xf32> to vector<8x16xf32>
    %521 = vector.broadcast %518 : f32 to vector<8x16xf32>
    %522 = arith.mulf %521, %520 : vector<8x16xf32>
    %523 = arith.addf %517, %522 : vector<8x16xf32>
    %c81 = arith.constant 81 : index
    %524 = memref.load %arg3[%c81] : memref<288xf32, #tpu.memory_space<smem>>
    %c1_275 = arith.constant 1 : index
    %c0_276 = arith.constant 0 : index
    %c0_277 = arith.constant 0 : index
    %525 = vector.load %arg6[%c1_275, %c0_276, %c0_277] : memref<4x10x18xf32, #tpu.memory_space<vmem>>, vector<1x8x16xf32>
    %526 = vector.shape_cast %525 : vector<1x8x16xf32> to vector<8x16xf32>
    %527 = vector.broadcast %524 : f32 to vector<8x16xf32>
    %528 = arith.mulf %527, %526 : vector<8x16xf32>
    %529 = arith.addf %523, %528 : vector<8x16xf32>
    %c82 = arith.constant 82 : index
    %530 = memref.load %arg3[%c82] : memref<288xf32, #tpu.memory_space<smem>>
    %c1_278 = arith.constant 1 : index
    %c0_279 = arith.constant 0 : index
    %c1_280 = arith.constant 1 : index
    %531 = vector.load %arg6[%c1_278, %c0_279, %c1_280] : memref<4x10x18xf32, #tpu.memory_space<vmem>>, vector<1x8x16xf32>
    %532 = vector.shape_cast %531 : vector<1x8x16xf32> to vector<8x16xf32>
    %533 = vector.broadcast %530 : f32 to vector<8x16xf32>
    %534 = arith.mulf %533, %532 : vector<8x16xf32>
    %535 = arith.addf %529, %534 : vector<8x16xf32>
    %c83 = arith.constant 83 : index
    %536 = memref.load %arg3[%c83] : memref<288xf32, #tpu.memory_space<smem>>
    %c1_281 = arith.constant 1 : index
    %c0_282 = arith.constant 0 : index
    %c2_283 = arith.constant 2 : index
    %537 = vector.load %arg6[%c1_281, %c0_282, %c2_283] : memref<4x10x18xf32, #tpu.memory_space<vmem>>, vector<1x8x16xf32>
    %538 = vector.shape_cast %537 : vector<1x8x16xf32> to vector<8x16xf32>
    %539 = vector.broadcast %536 : f32 to vector<8x16xf32>
    %540 = arith.mulf %539, %538 : vector<8x16xf32>
    %541 = arith.addf %535, %540 : vector<8x16xf32>
    %c84 = arith.constant 84 : index
    %542 = memref.load %arg3[%c84] : memref<288xf32, #tpu.memory_space<smem>>
    %c1_284 = arith.constant 1 : index
    %c1_285 = arith.constant 1 : index
    %c0_286 = arith.constant 0 : index
    %543 = vector.load %arg6[%c1_284, %c1_285, %c0_286] : memref<4x10x18xf32, #tpu.memory_space<vmem>>, vector<1x8x16xf32>
    %544 = vector.shape_cast %543 : vector<1x8x16xf32> to vector<8x16xf32>
    %545 = vector.broadcast %542 : f32 to vector<8x16xf32>
    %546 = arith.mulf %545, %544 : vector<8x16xf32>
    %547 = arith.addf %541, %546 : vector<8x16xf32>
    %c85 = arith.constant 85 : index
    %548 = memref.load %arg3[%c85] : memref<288xf32, #tpu.memory_space<smem>>
    %c1_287 = arith.constant 1 : index
    %c1_288 = arith.constant 1 : index
    %c1_289 = arith.constant 1 : index
    %549 = vector.load %arg6[%c1_287, %c1_288, %c1_289] : memref<4x10x18xf32, #tpu.memory_space<vmem>>, vector<1x8x16xf32>
    %550 = vector.shape_cast %549 : vector<1x8x16xf32> to vector<8x16xf32>
    %551 = vector.broadcast %548 : f32 to vector<8x16xf32>
    %552 = arith.mulf %551, %550 : vector<8x16xf32>
    %553 = arith.addf %547, %552 : vector<8x16xf32>
    %c86 = arith.constant 86 : index
    %554 = memref.load %arg3[%c86] : memref<288xf32, #tpu.memory_space<smem>>
    %c1_290 = arith.constant 1 : index
    %c1_291 = arith.constant 1 : index
    %c2_292 = arith.constant 2 : index
    %555 = vector.load %arg6[%c1_290, %c1_291, %c2_292] : memref<4x10x18xf32, #tpu.memory_space<vmem>>, vector<1x8x16xf32>
    %556 = vector.shape_cast %555 : vector<1x8x16xf32> to vector<8x16xf32>
    %557 = vector.broadcast %554 : f32 to vector<8x16xf32>
    %558 = arith.mulf %557, %556 : vector<8x16xf32>
    %559 = arith.addf %553, %558 : vector<8x16xf32>
    %c87 = arith.constant 87 : index
    %560 = memref.load %arg3[%c87] : memref<288xf32, #tpu.memory_space<smem>>
    %c1_293 = arith.constant 1 : index
    %c2_294 = arith.constant 2 : index
    %c0_295 = arith.constant 0 : index
    %561 = vector.load %arg6[%c1_293, %c2_294, %c0_295] : memref<4x10x18xf32, #tpu.memory_space<vmem>>, vector<1x8x16xf32>
    %562 = vector.shape_cast %561 : vector<1x8x16xf32> to vector<8x16xf32>
    %563 = vector.broadcast %560 : f32 to vector<8x16xf32>
    %564 = arith.mulf %563, %562 : vector<8x16xf32>
    %565 = arith.addf %559, %564 : vector<8x16xf32>
    %c88 = arith.constant 88 : index
    %566 = memref.load %arg3[%c88] : memref<288xf32, #tpu.memory_space<smem>>
    %c1_296 = arith.constant 1 : index
    %c2_297 = arith.constant 2 : index
    %c1_298 = arith.constant 1 : index
    %567 = vector.load %arg6[%c1_296, %c2_297, %c1_298] : memref<4x10x18xf32, #tpu.memory_space<vmem>>, vector<1x8x16xf32>
    %568 = vector.shape_cast %567 : vector<1x8x16xf32> to vector<8x16xf32>
    %569 = vector.broadcast %566 : f32 to vector<8x16xf32>
    %570 = arith.mulf %569, %568 : vector<8x16xf32>
    %571 = arith.addf %565, %570 : vector<8x16xf32>
    %c89 = arith.constant 89 : index
    %572 = memref.load %arg3[%c89] : memref<288xf32, #tpu.memory_space<smem>>
    %c1_299 = arith.constant 1 : index
    %c2_300 = arith.constant 2 : index
    %c2_301 = arith.constant 2 : index
    %573 = vector.load %arg6[%c1_299, %c2_300, %c2_301] : memref<4x10x18xf32, #tpu.memory_space<vmem>>, vector<1x8x16xf32>
    %574 = vector.shape_cast %573 : vector<1x8x16xf32> to vector<8x16xf32>
    %575 = vector.broadcast %572 : f32 to vector<8x16xf32>
    %576 = arith.mulf %575, %574 : vector<8x16xf32>
    %577 = arith.addf %571, %576 : vector<8x16xf32>
    %c90 = arith.constant 90 : index
    %578 = memref.load %arg3[%c90] : memref<288xf32, #tpu.memory_space<smem>>
    %c2_302 = arith.constant 2 : index
    %c0_303 = arith.constant 0 : index
    %c0_304 = arith.constant 0 : index
    %579 = vector.load %arg6[%c2_302, %c0_303, %c0_304] : memref<4x10x18xf32, #tpu.memory_space<vmem>>, vector<1x8x16xf32>
    %580 = vector.shape_cast %579 : vector<1x8x16xf32> to vector<8x16xf32>
    %581 = vector.broadcast %578 : f32 to vector<8x16xf32>
    %582 = arith.mulf %581, %580 : vector<8x16xf32>
    %583 = arith.addf %577, %582 : vector<8x16xf32>
    %c91 = arith.constant 91 : index
    %584 = memref.load %arg3[%c91] : memref<288xf32, #tpu.memory_space<smem>>
    %c2_305 = arith.constant 2 : index
    %c0_306 = arith.constant 0 : index
    %c1_307 = arith.constant 1 : index
    %585 = vector.load %arg6[%c2_305, %c0_306, %c1_307] : memref<4x10x18xf32, #tpu.memory_space<vmem>>, vector<1x8x16xf32>
    %586 = vector.shape_cast %585 : vector<1x8x16xf32> to vector<8x16xf32>
    %587 = vector.broadcast %584 : f32 to vector<8x16xf32>
    %588 = arith.mulf %587, %586 : vector<8x16xf32>
    %589 = arith.addf %583, %588 : vector<8x16xf32>
    %c92 = arith.constant 92 : index
    %590 = memref.load %arg3[%c92] : memref<288xf32, #tpu.memory_space<smem>>
    %c2_308 = arith.constant 2 : index
    %c0_309 = arith.constant 0 : index
    %c2_310 = arith.constant 2 : index
    %591 = vector.load %arg6[%c2_308, %c0_309, %c2_310] : memref<4x10x18xf32, #tpu.memory_space<vmem>>, vector<1x8x16xf32>
    %592 = vector.shape_cast %591 : vector<1x8x16xf32> to vector<8x16xf32>
    %593 = vector.broadcast %590 : f32 to vector<8x16xf32>
    %594 = arith.mulf %593, %592 : vector<8x16xf32>
    %595 = arith.addf %589, %594 : vector<8x16xf32>
    %c93 = arith.constant 93 : index
    %596 = memref.load %arg3[%c93] : memref<288xf32, #tpu.memory_space<smem>>
    %c2_311 = arith.constant 2 : index
    %c1_312 = arith.constant 1 : index
    %c0_313 = arith.constant 0 : index
    %597 = vector.load %arg6[%c2_311, %c1_312, %c0_313] : memref<4x10x18xf32, #tpu.memory_space<vmem>>, vector<1x8x16xf32>
    %598 = vector.shape_cast %597 : vector<1x8x16xf32> to vector<8x16xf32>
    %599 = vector.broadcast %596 : f32 to vector<8x16xf32>
    %600 = arith.mulf %599, %598 : vector<8x16xf32>
    %601 = arith.addf %595, %600 : vector<8x16xf32>
    %c94 = arith.constant 94 : index
    %602 = memref.load %arg3[%c94] : memref<288xf32, #tpu.memory_space<smem>>
    %c2_314 = arith.constant 2 : index
    %c1_315 = arith.constant 1 : index
    %c1_316 = arith.constant 1 : index
    %603 = vector.load %arg6[%c2_314, %c1_315, %c1_316] : memref<4x10x18xf32, #tpu.memory_space<vmem>>, vector<1x8x16xf32>
    %604 = vector.shape_cast %603 : vector<1x8x16xf32> to vector<8x16xf32>
    %605 = vector.broadcast %602 : f32 to vector<8x16xf32>
    %606 = arith.mulf %605, %604 : vector<8x16xf32>
    %607 = arith.addf %601, %606 : vector<8x16xf32>
    %c95 = arith.constant 95 : index
    %608 = memref.load %arg3[%c95] : memref<288xf32, #tpu.memory_space<smem>>
    %c2_317 = arith.constant 2 : index
    %c1_318 = arith.constant 1 : index
    %c2_319 = arith.constant 2 : index
    %609 = vector.load %arg6[%c2_317, %c1_318, %c2_319] : memref<4x10x18xf32, #tpu.memory_space<vmem>>, vector<1x8x16xf32>
    %610 = vector.shape_cast %609 : vector<1x8x16xf32> to vector<8x16xf32>
    %611 = vector.broadcast %608 : f32 to vector<8x16xf32>
    %612 = arith.mulf %611, %610 : vector<8x16xf32>
    %613 = arith.addf %607, %612 : vector<8x16xf32>
    %c96 = arith.constant 96 : index
    %614 = memref.load %arg3[%c96] : memref<288xf32, #tpu.memory_space<smem>>
    %c2_320 = arith.constant 2 : index
    %c2_321 = arith.constant 2 : index
    %c0_322 = arith.constant 0 : index
    %615 = vector.load %arg6[%c2_320, %c2_321, %c0_322] : memref<4x10x18xf32, #tpu.memory_space<vmem>>, vector<1x8x16xf32>
    %616 = vector.shape_cast %615 : vector<1x8x16xf32> to vector<8x16xf32>
    %617 = vector.broadcast %614 : f32 to vector<8x16xf32>
    %618 = arith.mulf %617, %616 : vector<8x16xf32>
    %619 = arith.addf %613, %618 : vector<8x16xf32>
    %c97 = arith.constant 97 : index
    %620 = memref.load %arg3[%c97] : memref<288xf32, #tpu.memory_space<smem>>
    %c2_323 = arith.constant 2 : index
    %c2_324 = arith.constant 2 : index
    %c1_325 = arith.constant 1 : index
    %621 = vector.load %arg6[%c2_323, %c2_324, %c1_325] : memref<4x10x18xf32, #tpu.memory_space<vmem>>, vector<1x8x16xf32>
    %622 = vector.shape_cast %621 : vector<1x8x16xf32> to vector<8x16xf32>
    %623 = vector.broadcast %620 : f32 to vector<8x16xf32>
    %624 = arith.mulf %623, %622 : vector<8x16xf32>
    %625 = arith.addf %619, %624 : vector<8x16xf32>
    %c98 = arith.constant 98 : index
    %626 = memref.load %arg3[%c98] : memref<288xf32, #tpu.memory_space<smem>>
    %c2_326 = arith.constant 2 : index
    %c2_327 = arith.constant 2 : index
    %c2_328 = arith.constant 2 : index
    %627 = vector.load %arg6[%c2_326, %c2_327, %c2_328] : memref<4x10x18xf32, #tpu.memory_space<vmem>>, vector<1x8x16xf32>
    %628 = vector.shape_cast %627 : vector<1x8x16xf32> to vector<8x16xf32>
    %629 = vector.broadcast %626 : f32 to vector<8x16xf32>
    %630 = arith.mulf %629, %628 : vector<8x16xf32>
    %631 = arith.addf %625, %630 : vector<8x16xf32>
    %c99 = arith.constant 99 : index
    %632 = memref.load %arg3[%c99] : memref<288xf32, #tpu.memory_space<smem>>
    %c3_329 = arith.constant 3 : index
    %c0_330 = arith.constant 0 : index
    %c0_331 = arith.constant 0 : index
    %633 = vector.load %arg6[%c3_329, %c0_330, %c0_331] : memref<4x10x18xf32, #tpu.memory_space<vmem>>, vector<1x8x16xf32>
    %634 = vector.shape_cast %633 : vector<1x8x16xf32> to vector<8x16xf32>
    %635 = vector.broadcast %632 : f32 to vector<8x16xf32>
    %636 = arith.mulf %635, %634 : vector<8x16xf32>
    %637 = arith.addf %631, %636 : vector<8x16xf32>
    %c100 = arith.constant 100 : index
    %638 = memref.load %arg3[%c100] : memref<288xf32, #tpu.memory_space<smem>>
    %c3_332 = arith.constant 3 : index
    %c0_333 = arith.constant 0 : index
    %c1_334 = arith.constant 1 : index
    %639 = vector.load %arg6[%c3_332, %c0_333, %c1_334] : memref<4x10x18xf32, #tpu.memory_space<vmem>>, vector<1x8x16xf32>
    %640 = vector.shape_cast %639 : vector<1x8x16xf32> to vector<8x16xf32>
    %641 = vector.broadcast %638 : f32 to vector<8x16xf32>
    %642 = arith.mulf %641, %640 : vector<8x16xf32>
    %643 = arith.addf %637, %642 : vector<8x16xf32>
    %c101 = arith.constant 101 : index
    %644 = memref.load %arg3[%c101] : memref<288xf32, #tpu.memory_space<smem>>
    %c3_335 = arith.constant 3 : index
    %c0_336 = arith.constant 0 : index
    %c2_337 = arith.constant 2 : index
    %645 = vector.load %arg6[%c3_335, %c0_336, %c2_337] : memref<4x10x18xf32, #tpu.memory_space<vmem>>, vector<1x8x16xf32>
    %646 = vector.shape_cast %645 : vector<1x8x16xf32> to vector<8x16xf32>
    %647 = vector.broadcast %644 : f32 to vector<8x16xf32>
    %648 = arith.mulf %647, %646 : vector<8x16xf32>
    %649 = arith.addf %643, %648 : vector<8x16xf32>
    %c102 = arith.constant 102 : index
    %650 = memref.load %arg3[%c102] : memref<288xf32, #tpu.memory_space<smem>>
    %c3_338 = arith.constant 3 : index
    %c1_339 = arith.constant 1 : index
    %c0_340 = arith.constant 0 : index
    %651 = vector.load %arg6[%c3_338, %c1_339, %c0_340] : memref<4x10x18xf32, #tpu.memory_space<vmem>>, vector<1x8x16xf32>
    %652 = vector.shape_cast %651 : vector<1x8x16xf32> to vector<8x16xf32>
    %653 = vector.broadcast %650 : f32 to vector<8x16xf32>
    %654 = arith.mulf %653, %652 : vector<8x16xf32>
    %655 = arith.addf %649, %654 : vector<8x16xf32>
    %c103 = arith.constant 103 : index
    %656 = memref.load %arg3[%c103] : memref<288xf32, #tpu.memory_space<smem>>
    %c3_341 = arith.constant 3 : index
    %c1_342 = arith.constant 1 : index
    %c1_343 = arith.constant 1 : index
    %657 = vector.load %arg6[%c3_341, %c1_342, %c1_343] : memref<4x10x18xf32, #tpu.memory_space<vmem>>, vector<1x8x16xf32>
    %658 = vector.shape_cast %657 : vector<1x8x16xf32> to vector<8x16xf32>
    %659 = vector.broadcast %656 : f32 to vector<8x16xf32>
    %660 = arith.mulf %659, %658 : vector<8x16xf32>
    %661 = arith.addf %655, %660 : vector<8x16xf32>
    %c104 = arith.constant 104 : index
    %662 = memref.load %arg3[%c104] : memref<288xf32, #tpu.memory_space<smem>>
    %c3_344 = arith.constant 3 : index
    %c1_345 = arith.constant 1 : index
    %c2_346 = arith.constant 2 : index
    %663 = vector.load %arg6[%c3_344, %c1_345, %c2_346] : memref<4x10x18xf32, #tpu.memory_space<vmem>>, vector<1x8x16xf32>
    %664 = vector.shape_cast %663 : vector<1x8x16xf32> to vector<8x16xf32>
    %665 = vector.broadcast %662 : f32 to vector<8x16xf32>
    %666 = arith.mulf %665, %664 : vector<8x16xf32>
    %667 = arith.addf %661, %666 : vector<8x16xf32>
    %c105 = arith.constant 105 : index
    %668 = memref.load %arg3[%c105] : memref<288xf32, #tpu.memory_space<smem>>
    %c3_347 = arith.constant 3 : index
    %c2_348 = arith.constant 2 : index
    %c0_349 = arith.constant 0 : index
    %669 = vector.load %arg6[%c3_347, %c2_348, %c0_349] : memref<4x10x18xf32, #tpu.memory_space<vmem>>, vector<1x8x16xf32>
    %670 = vector.shape_cast %669 : vector<1x8x16xf32> to vector<8x16xf32>
    %671 = vector.broadcast %668 : f32 to vector<8x16xf32>
    %672 = arith.mulf %671, %670 : vector<8x16xf32>
    %673 = arith.addf %667, %672 : vector<8x16xf32>
    %c106 = arith.constant 106 : index
    %674 = memref.load %arg3[%c106] : memref<288xf32, #tpu.memory_space<smem>>
    %c3_350 = arith.constant 3 : index
    %c2_351 = arith.constant 2 : index
    %c1_352 = arith.constant 1 : index
    %675 = vector.load %arg6[%c3_350, %c2_351, %c1_352] : memref<4x10x18xf32, #tpu.memory_space<vmem>>, vector<1x8x16xf32>
    %676 = vector.shape_cast %675 : vector<1x8x16xf32> to vector<8x16xf32>
    %677 = vector.broadcast %674 : f32 to vector<8x16xf32>
    %678 = arith.mulf %677, %676 : vector<8x16xf32>
    %679 = arith.addf %673, %678 : vector<8x16xf32>
    %c107 = arith.constant 107 : index
    %680 = memref.load %arg3[%c107] : memref<288xf32, #tpu.memory_space<smem>>
    %c3_353 = arith.constant 3 : index
    %c2_354 = arith.constant 2 : index
    %c2_355 = arith.constant 2 : index
    %681 = vector.load %arg6[%c3_353, %c2_354, %c2_355] : memref<4x10x18xf32, #tpu.memory_space<vmem>>, vector<1x8x16xf32>
    %682 = vector.shape_cast %681 : vector<1x8x16xf32> to vector<8x16xf32>
    %683 = vector.broadcast %680 : f32 to vector<8x16xf32>
    %684 = arith.mulf %683, %682 : vector<8x16xf32>
    %685 = arith.addf %679, %684 : vector<8x16xf32>
    %cst_356 = arith.constant 0.000000e+00 : f32
    %686 = vector.broadcast %cst_356 : f32 to vector<8x16xf32>
    %687 = arith.maximumf %685, %686 : vector<8x16xf32>
    %c0_357 = arith.constant 0 : index
    %c2_358 = arith.constant 2 : index
    %c0_359 = arith.constant 0 : index
    %c0_360 = arith.constant 0 : index
    %688 = vector.load %arg5[%c0_357, %c2_358, %c0_359, %c0_360] : memref<1x8x8x16xf32, #tpu.memory_space<vmem>>, vector<1x1x8x16xf32>
    %689 = vector.shape_cast %688 : vector<1x1x8x16xf32> to vector<8x16xf32>
    %690 = vector.shape_cast %687 : vector<8x16xf32> to vector<1x1x8x16xf32>
    tpu.vector_store %arg5[%c0_357, %c2_358, %c0_359, %c0_360], %690 {strides = array<i32>} : memref<1x8x8x16xf32, #tpu.memory_space<vmem>>, vector<1x1x8x16xf32>,
    %c3_361 = arith.constant 3 : index
    %691 = memref.load %arg4[%c3_361] : memref<8xf32, #tpu.memory_space<smem>>
    %692 = vector.broadcast %691 : f32 to vector<8x16xf32>
    %c108 = arith.constant 108 : index
    %693 = memref.load %arg3[%c108] : memref<288xf32, #tpu.memory_space<smem>>
    %c0_362 = arith.constant 0 : index
    %c0_363 = arith.constant 0 : index
    %c0_364 = arith.constant 0 : index
    %694 = vector.load %arg6[%c0_362, %c0_363, %c0_364] : memref<4x10x18xf32, #tpu.memory_space<vmem>>, vector<1x8x16xf32>
    %695 = vector.shape_cast %694 : vector<1x8x16xf32> to vector<8x16xf32>
    %696 = vector.broadcast %693 : f32 to vector<8x16xf32>
    %697 = arith.mulf %696, %695 : vector<8x16xf32>
    %698 = arith.addf %692, %697 : vector<8x16xf32>
    %c109 = arith.constant 109 : index
    %699 = memref.load %arg3[%c109] : memref<288xf32, #tpu.memory_space<smem>>
    %c0_365 = arith.constant 0 : index
    %c0_366 = arith.constant 0 : index
    %c1_367 = arith.constant 1 : index
    %700 = vector.load %arg6[%c0_365, %c0_366, %c1_367] : memref<4x10x18xf32, #tpu.memory_space<vmem>>, vector<1x8x16xf32>
    %701 = vector.shape_cast %700 : vector<1x8x16xf32> to vector<8x16xf32>
    %702 = vector.broadcast %699 : f32 to vector<8x16xf32>
    %703 = arith.mulf %702, %701 : vector<8x16xf32>
    %704 = arith.addf %698, %703 : vector<8x16xf32>
    %c110 = arith.constant 110 : index
    %705 = memref.load %arg3[%c110] : memref<288xf32, #tpu.memory_space<smem>>
    %c0_368 = arith.constant 0 : index
    %c0_369 = arith.constant 0 : index
    %c2_370 = arith.constant 2 : index
    %706 = vector.load %arg6[%c0_368, %c0_369, %c2_370] : memref<4x10x18xf32, #tpu.memory_space<vmem>>, vector<1x8x16xf32>
    %707 = vector.shape_cast %706 : vector<1x8x16xf32> to vector<8x16xf32>
    %708 = vector.broadcast %705 : f32 to vector<8x16xf32>
    %709 = arith.mulf %708, %707 : vector<8x16xf32>
    %710 = arith.addf %704, %709 : vector<8x16xf32>
    %c111 = arith.constant 111 : index
    %711 = memref.load %arg3[%c111] : memref<288xf32, #tpu.memory_space<smem>>
    %c0_371 = arith.constant 0 : index
    %c1_372 = arith.constant 1 : index
    %c0_373 = arith.constant 0 : index
    %712 = vector.load %arg6[%c0_371, %c1_372, %c0_373] : memref<4x10x18xf32, #tpu.memory_space<vmem>>, vector<1x8x16xf32>
    %713 = vector.shape_cast %712 : vector<1x8x16xf32> to vector<8x16xf32>
    %714 = vector.broadcast %711 : f32 to vector<8x16xf32>
    %715 = arith.mulf %714, %713 : vector<8x16xf32>
    %716 = arith.addf %710, %715 : vector<8x16xf32>
    %c112 = arith.constant 112 : index
    %717 = memref.load %arg3[%c112] : memref<288xf32, #tpu.memory_space<smem>>
    %c0_374 = arith.constant 0 : index
    %c1_375 = arith.constant 1 : index
    %c1_376 = arith.constant 1 : index
    %718 = vector.load %arg6[%c0_374, %c1_375, %c1_376] : memref<4x10x18xf32, #tpu.memory_space<vmem>>, vector<1x8x16xf32>
    %719 = vector.shape_cast %718 : vector<1x8x16xf32> to vector<8x16xf32>
    %720 = vector.broadcast %717 : f32 to vector<8x16xf32>
    %721 = arith.mulf %720, %719 : vector<8x16xf32>
    %722 = arith.addf %716, %721 : vector<8x16xf32>
    %c113 = arith.constant 113 : index
    %723 = memref.load %arg3[%c113] : memref<288xf32, #tpu.memory_space<smem>>
    %c0_377 = arith.constant 0 : index
    %c1_378 = arith.constant 1 : index
    %c2_379 = arith.constant 2 : index
    %724 = vector.load %arg6[%c0_377, %c1_378, %c2_379] : memref<4x10x18xf32, #tpu.memory_space<vmem>>, vector<1x8x16xf32>
    %725 = vector.shape_cast %724 : vector<1x8x16xf32> to vector<8x16xf32>
    %726 = vector.broadcast %723 : f32 to vector<8x16xf32>
    %727 = arith.mulf %726, %725 : vector<8x16xf32>
    %728 = arith.addf %722, %727 : vector<8x16xf32>
    %c114 = arith.constant 114 : index
    %729 = memref.load %arg3[%c114] : memref<288xf32, #tpu.memory_space<smem>>
    %c0_380 = arith.constant 0 : index
    %c2_381 = arith.constant 2 : index
    %c0_382 = arith.constant 0 : index
    %730 = vector.load %arg6[%c0_380, %c2_381, %c0_382] : memref<4x10x18xf32, #tpu.memory_space<vmem>>, vector<1x8x16xf32>
    %731 = vector.shape_cast %730 : vector<1x8x16xf32> to vector<8x16xf32>
    %732 = vector.broadcast %729 : f32 to vector<8x16xf32>
    %733 = arith.mulf %732, %731 : vector<8x16xf32>
    %734 = arith.addf %728, %733 : vector<8x16xf32>
    %c115 = arith.constant 115 : index
    %735 = memref.load %arg3[%c115] : memref<288xf32, #tpu.memory_space<smem>>
    %c0_383 = arith.constant 0 : index
    %c2_384 = arith.constant 2 : index
    %c1_385 = arith.constant 1 : index
    %736 = vector.load %arg6[%c0_383, %c2_384, %c1_385] : memref<4x10x18xf32, #tpu.memory_space<vmem>>, vector<1x8x16xf32>
    %737 = vector.shape_cast %736 : vector<1x8x16xf32> to vector<8x16xf32>
    %738 = vector.broadcast %735 : f32 to vector<8x16xf32>
    %739 = arith.mulf %738, %737 : vector<8x16xf32>
    %740 = arith.addf %734, %739 : vector<8x16xf32>
    %c116 = arith.constant 116 : index
    %741 = memref.load %arg3[%c116] : memref<288xf32, #tpu.memory_space<smem>>
    %c0_386 = arith.constant 0 : index
    %c2_387 = arith.constant 2 : index
    %c2_388 = arith.constant 2 : index
    %742 = vector.load %arg6[%c0_386, %c2_387, %c2_388] : memref<4x10x18xf32, #tpu.memory_space<vmem>>, vector<1x8x16xf32>
    %743 = vector.shape_cast %742 : vector<1x8x16xf32> to vector<8x16xf32>
    %744 = vector.broadcast %741 : f32 to vector<8x16xf32>
    %745 = arith.mulf %744, %743 : vector<8x16xf32>
    %746 = arith.addf %740, %745 : vector<8x16xf32>
    %c117 = arith.constant 117 : index
    %747 = memref.load %arg3[%c117] : memref<288xf32, #tpu.memory_space<smem>>
    %c1_389 = arith.constant 1 : index
    %c0_390 = arith.constant 0 : index
    %c0_391 = arith.constant 0 : index
    %748 = vector.load %arg6[%c1_389, %c0_390, %c0_391] : memref<4x10x18xf32, #tpu.memory_space<vmem>>, vector<1x8x16xf32>
    %749 = vector.shape_cast %748 : vector<1x8x16xf32> to vector<8x16xf32>
    %750 = vector.broadcast %747 : f32 to vector<8x16xf32>
    %751 = arith.mulf %750, %749 : vector<8x16xf32>
    %752 = arith.addf %746, %751 : vector<8x16xf32>
    %c118 = arith.constant 118 : index
    %753 = memref.load %arg3[%c118] : memref<288xf32, #tpu.memory_space<smem>>
    %c1_392 = arith.constant 1 : index
    %c0_393 = arith.constant 0 : index
    %c1_394 = arith.constant 1 : index
    %754 = vector.load %arg6[%c1_392, %c0_393, %c1_394] : memref<4x10x18xf32, #tpu.memory_space<vmem>>, vector<1x8x16xf32>
    %755 = vector.shape_cast %754 : vector<1x8x16xf32> to vector<8x16xf32>
    %756 = vector.broadcast %753 : f32 to vector<8x16xf32>
    %757 = arith.mulf %756, %755 : vector<8x16xf32>
    %758 = arith.addf %752, %757 : vector<8x16xf32>
    %c119 = arith.constant 119 : index
    %759 = memref.load %arg3[%c119] : memref<288xf32, #tpu.memory_space<smem>>
    %c1_395 = arith.constant 1 : index
    %c0_396 = arith.constant 0 : index
    %c2_397 = arith.constant 2 : index
    %760 = vector.load %arg6[%c1_395, %c0_396, %c2_397] : memref<4x10x18xf32, #tpu.memory_space<vmem>>, vector<1x8x16xf32>
    %761 = vector.shape_cast %760 : vector<1x8x16xf32> to vector<8x16xf32>
    %762 = vector.broadcast %759 : f32 to vector<8x16xf32>
    %763 = arith.mulf %762, %761 : vector<8x16xf32>
    %764 = arith.addf %758, %763 : vector<8x16xf32>
    %c120 = arith.constant 120 : index
    %765 = memref.load %arg3[%c120] : memref<288xf32, #tpu.memory_space<smem>>
    %c1_398 = arith.constant 1 : index
    %c1_399 = arith.constant 1 : index
    %c0_400 = arith.constant 0 : index
    %766 = vector.load %arg6[%c1_398, %c1_399, %c0_400] : memref<4x10x18xf32, #tpu.memory_space<vmem>>, vector<1x8x16xf32>
    %767 = vector.shape_cast %766 : vector<1x8x16xf32> to vector<8x16xf32>
    %768 = vector.broadcast %765 : f32 to vector<8x16xf32>
    %769 = arith.mulf %768, %767 : vector<8x16xf32>
    %770 = arith.addf %764, %769 : vector<8x16xf32>
    %c121 = arith.constant 121 : index
    %771 = memref.load %arg3[%c121] : memref<288xf32, #tpu.memory_space<smem>>
    %c1_401 = arith.constant 1 : index
    %c1_402 = arith.constant 1 : index
    %c1_403 = arith.constant 1 : index
    %772 = vector.load %arg6[%c1_401, %c1_402, %c1_403] : memref<4x10x18xf32, #tpu.memory_space<vmem>>, vector<1x8x16xf32>
    %773 = vector.shape_cast %772 : vector<1x8x16xf32> to vector<8x16xf32>
    %774 = vector.broadcast %771 : f32 to vector<8x16xf32>
    %775 = arith.mulf %774, %773 : vector<8x16xf32>
    %776 = arith.addf %770, %775 : vector<8x16xf32>
    %c122 = arith.constant 122 : index
    %777 = memref.load %arg3[%c122] : memref<288xf32, #tpu.memory_space<smem>>
    %c1_404 = arith.constant 1 : index
    %c1_405 = arith.constant 1 : index
    %c2_406 = arith.constant 2 : index
    %778 = vector.load %arg6[%c1_404, %c1_405, %c2_406] : memref<4x10x18xf32, #tpu.memory_space<vmem>>, vector<1x8x16xf32>
    %779 = vector.shape_cast %778 : vector<1x8x16xf32> to vector<8x16xf32>
    %780 = vector.broadcast %777 : f32 to vector<8x16xf32>
    %781 = arith.mulf %780, %779 : vector<8x16xf32>
    %782 = arith.addf %776, %781 : vector<8x16xf32>
    %c123 = arith.constant 123 : index
    %783 = memref.load %arg3[%c123] : memref<288xf32, #tpu.memory_space<smem>>
    %c1_407 = arith.constant 1 : index
    %c2_408 = arith.constant 2 : index
    %c0_409 = arith.constant 0 : index
    %784 = vector.load %arg6[%c1_407, %c2_408, %c0_409] : memref<4x10x18xf32, #tpu.memory_space<vmem>>, vector<1x8x16xf32>
    %785 = vector.shape_cast %784 : vector<1x8x16xf32> to vector<8x16xf32>
    %786 = vector.broadcast %783 : f32 to vector<8x16xf32>
    %787 = arith.mulf %786, %785 : vector<8x16xf32>
    %788 = arith.addf %782, %787 : vector<8x16xf32>
    %c124 = arith.constant 124 : index
    %789 = memref.load %arg3[%c124] : memref<288xf32, #tpu.memory_space<smem>>
    %c1_410 = arith.constant 1 : index
    %c2_411 = arith.constant 2 : index
    %c1_412 = arith.constant 1 : index
    %790 = vector.load %arg6[%c1_410, %c2_411, %c1_412] : memref<4x10x18xf32, #tpu.memory_space<vmem>>, vector<1x8x16xf32>
    %791 = vector.shape_cast %790 : vector<1x8x16xf32> to vector<8x16xf32>
    %792 = vector.broadcast %789 : f32 to vector<8x16xf32>
    %793 = arith.mulf %792, %791 : vector<8x16xf32>
    %794 = arith.addf %788, %793 : vector<8x16xf32>
    %c125 = arith.constant 125 : index
    %795 = memref.load %arg3[%c125] : memref<288xf32, #tpu.memory_space<smem>>
    %c1_413 = arith.constant 1 : index
    %c2_414 = arith.constant 2 : index
    %c2_415 = arith.constant 2 : index
    %796 = vector.load %arg6[%c1_413, %c2_414, %c2_415] : memref<4x10x18xf32, #tpu.memory_space<vmem>>, vector<1x8x16xf32>
    %797 = vector.shape_cast %796 : vector<1x8x16xf32> to vector<8x16xf32>
    %798 = vector.broadcast %795 : f32 to vector<8x16xf32>
    %799 = arith.mulf %798, %797 : vector<8x16xf32>
    %800 = arith.addf %794, %799 : vector<8x16xf32>
    %c126 = arith.constant 126 : index
    %801 = memref.load %arg3[%c126] : memref<288xf32, #tpu.memory_space<smem>>
    %c2_416 = arith.constant 2 : index
    %c0_417 = arith.constant 0 : index
    %c0_418 = arith.constant 0 : index
    %802 = vector.load %arg6[%c2_416, %c0_417, %c0_418] : memref<4x10x18xf32, #tpu.memory_space<vmem>>, vector<1x8x16xf32>
    %803 = vector.shape_cast %802 : vector<1x8x16xf32> to vector<8x16xf32>
    %804 = vector.broadcast %801 : f32 to vector<8x16xf32>
    %805 = arith.mulf %804, %803 : vector<8x16xf32>
    %806 = arith.addf %800, %805 : vector<8x16xf32>
    %c127 = arith.constant 127 : index
    %807 = memref.load %arg3[%c127] : memref<288xf32, #tpu.memory_space<smem>>
    %c2_419 = arith.constant 2 : index
    %c0_420 = arith.constant 0 : index
    %c1_421 = arith.constant 1 : index
    %808 = vector.load %arg6[%c2_419, %c0_420, %c1_421] : memref<4x10x18xf32, #tpu.memory_space<vmem>>, vector<1x8x16xf32>
    %809 = vector.shape_cast %808 : vector<1x8x16xf32> to vector<8x16xf32>
    %810 = vector.broadcast %807 : f32 to vector<8x16xf32>
    %811 = arith.mulf %810, %809 : vector<8x16xf32>
    %812 = arith.addf %806, %811 : vector<8x16xf32>
    %c128 = arith.constant 128 : index
    %813 = memref.load %arg3[%c128] : memref<288xf32, #tpu.memory_space<smem>>
    %c2_422 = arith.constant 2 : index
    %c0_423 = arith.constant 0 : index
    %c2_424 = arith.constant 2 : index
    %814 = vector.load %arg6[%c2_422, %c0_423, %c2_424] : memref<4x10x18xf32, #tpu.memory_space<vmem>>, vector<1x8x16xf32>
    %815 = vector.shape_cast %814 : vector<1x8x16xf32> to vector<8x16xf32>
    %816 = vector.broadcast %813 : f32 to vector<8x16xf32>
    %817 = arith.mulf %816, %815 : vector<8x16xf32>
    %818 = arith.addf %812, %817 : vector<8x16xf32>
    %c129 = arith.constant 129 : index
    %819 = memref.load %arg3[%c129] : memref<288xf32, #tpu.memory_space<smem>>
    %c2_425 = arith.constant 2 : index
    %c1_426 = arith.constant 1 : index
    %c0_427 = arith.constant 0 : index
    %820 = vector.load %arg6[%c2_425, %c1_426, %c0_427] : memref<4x10x18xf32, #tpu.memory_space<vmem>>, vector<1x8x16xf32>
    %821 = vector.shape_cast %820 : vector<1x8x16xf32> to vector<8x16xf32>
    %822 = vector.broadcast %819 : f32 to vector<8x16xf32>
    %823 = arith.mulf %822, %821 : vector<8x16xf32>
    %824 = arith.addf %818, %823 : vector<8x16xf32>
    %c130 = arith.constant 130 : index
    %825 = memref.load %arg3[%c130] : memref<288xf32, #tpu.memory_space<smem>>
    %c2_428 = arith.constant 2 : index
    %c1_429 = arith.constant 1 : index
    %c1_430 = arith.constant 1 : index
    %826 = vector.load %arg6[%c2_428, %c1_429, %c1_430] : memref<4x10x18xf32, #tpu.memory_space<vmem>>, vector<1x8x16xf32>
    %827 = vector.shape_cast %826 : vector<1x8x16xf32> to vector<8x16xf32>
    %828 = vector.broadcast %825 : f32 to vector<8x16xf32>
    %829 = arith.mulf %828, %827 : vector<8x16xf32>
    %830 = arith.addf %824, %829 : vector<8x16xf32>
    %c131 = arith.constant 131 : index
    %831 = memref.load %arg3[%c131] : memref<288xf32, #tpu.memory_space<smem>>
    %c2_431 = arith.constant 2 : index
    %c1_432 = arith.constant 1 : index
    %c2_433 = arith.constant 2 : index
    %832 = vector.load %arg6[%c2_431, %c1_432, %c2_433] : memref<4x10x18xf32, #tpu.memory_space<vmem>>, vector<1x8x16xf32>
    %833 = vector.shape_cast %832 : vector<1x8x16xf32> to vector<8x16xf32>
    %834 = vector.broadcast %831 : f32 to vector<8x16xf32>
    %835 = arith.mulf %834, %833 : vector<8x16xf32>
    %836 = arith.addf %830, %835 : vector<8x16xf32>
    %c132 = arith.constant 132 : index
    %837 = memref.load %arg3[%c132] : memref<288xf32, #tpu.memory_space<smem>>
    %c2_434 = arith.constant 2 : index
    %c2_435 = arith.constant 2 : index
    %c0_436 = arith.constant 0 : index
    %838 = vector.load %arg6[%c2_434, %c2_435, %c0_436] : memref<4x10x18xf32, #tpu.memory_space<vmem>>, vector<1x8x16xf32>
    %839 = vector.shape_cast %838 : vector<1x8x16xf32> to vector<8x16xf32>
    %840 = vector.broadcast %837 : f32 to vector<8x16xf32>
    %841 = arith.mulf %840, %839 : vector<8x16xf32>
    %842 = arith.addf %836, %841 : vector<8x16xf32>
    %c133 = arith.constant 133 : index
    %843 = memref.load %arg3[%c133] : memref<288xf32, #tpu.memory_space<smem>>
    %c2_437 = arith.constant 2 : index
    %c2_438 = arith.constant 2 : index
    %c1_439 = arith.constant 1 : index
    %844 = vector.load %arg6[%c2_437, %c2_438, %c1_439] : memref<4x10x18xf32, #tpu.memory_space<vmem>>, vector<1x8x16xf32>
    %845 = vector.shape_cast %844 : vector<1x8x16xf32> to vector<8x16xf32>
    %846 = vector.broadcast %843 : f32 to vector<8x16xf32>
    %847 = arith.mulf %846, %845 : vector<8x16xf32>
    %848 = arith.addf %842, %847 : vector<8x16xf32>
    %c134 = arith.constant 134 : index
    %849 = memref.load %arg3[%c134] : memref<288xf32, #tpu.memory_space<smem>>
    %c2_440 = arith.constant 2 : index
    %c2_441 = arith.constant 2 : index
    %c2_442 = arith.constant 2 : index
    %850 = vector.load %arg6[%c2_440, %c2_441, %c2_442] : memref<4x10x18xf32, #tpu.memory_space<vmem>>, vector<1x8x16xf32>
    %851 = vector.shape_cast %850 : vector<1x8x16xf32> to vector<8x16xf32>
    %852 = vector.broadcast %849 : f32 to vector<8x16xf32>
    %853 = arith.mulf %852, %851 : vector<8x16xf32>
    %854 = arith.addf %848, %853 : vector<8x16xf32>
    %c135 = arith.constant 135 : index
    %855 = memref.load %arg3[%c135] : memref<288xf32, #tpu.memory_space<smem>>
    %c3_443 = arith.constant 3 : index
    %c0_444 = arith.constant 0 : index
    %c0_445 = arith.constant 0 : index
    %856 = vector.load %arg6[%c3_443, %c0_444, %c0_445] : memref<4x10x18xf32, #tpu.memory_space<vmem>>, vector<1x8x16xf32>
    %857 = vector.shape_cast %856 : vector<1x8x16xf32> to vector<8x16xf32>
    %858 = vector.broadcast %855 : f32 to vector<8x16xf32>
    %859 = arith.mulf %858, %857 : vector<8x16xf32>
    %860 = arith.addf %854, %859 : vector<8x16xf32>
    %c136 = arith.constant 136 : index
    %861 = memref.load %arg3[%c136] : memref<288xf32, #tpu.memory_space<smem>>
    %c3_446 = arith.constant 3 : index
    %c0_447 = arith.constant 0 : index
    %c1_448 = arith.constant 1 : index
    %862 = vector.load %arg6[%c3_446, %c0_447, %c1_448] : memref<4x10x18xf32, #tpu.memory_space<vmem>>, vector<1x8x16xf32>
    %863 = vector.shape_cast %862 : vector<1x8x16xf32> to vector<8x16xf32>
    %864 = vector.broadcast %861 : f32 to vector<8x16xf32>
    %865 = arith.mulf %864, %863 : vector<8x16xf32>
    %866 = arith.addf %860, %865 : vector<8x16xf32>
    %c137 = arith.constant 137 : index
    %867 = memref.load %arg3[%c137] : memref<288xf32, #tpu.memory_space<smem>>
    %c3_449 = arith.constant 3 : index
    %c0_450 = arith.constant 0 : index
    %c2_451 = arith.constant 2 : index
    %868 = vector.load %arg6[%c3_449, %c0_450, %c2_451] : memref<4x10x18xf32, #tpu.memory_space<vmem>>, vector<1x8x16xf32>
    %869 = vector.shape_cast %868 : vector<1x8x16xf32> to vector<8x16xf32>
    %870 = vector.broadcast %867 : f32 to vector<8x16xf32>
    %871 = arith.mulf %870, %869 : vector<8x16xf32>
    %872 = arith.addf %866, %871 : vector<8x16xf32>
    %c138 = arith.constant 138 : index
    %873 = memref.load %arg3[%c138] : memref<288xf32, #tpu.memory_space<smem>>
    %c3_452 = arith.constant 3 : index
    %c1_453 = arith.constant 1 : index
    %c0_454 = arith.constant 0 : index
    %874 = vector.load %arg6[%c3_452, %c1_453, %c0_454] : memref<4x10x18xf32, #tpu.memory_space<vmem>>, vector<1x8x16xf32>
    %875 = vector.shape_cast %874 : vector<1x8x16xf32> to vector<8x16xf32>
    %876 = vector.broadcast %873 : f32 to vector<8x16xf32>
    %877 = arith.mulf %876, %875 : vector<8x16xf32>
    %878 = arith.addf %872, %877 : vector<8x16xf32>
    %c139 = arith.constant 139 : index
    %879 = memref.load %arg3[%c139] : memref<288xf32, #tpu.memory_space<smem>>
    %c3_455 = arith.constant 3 : index
    %c1_456 = arith.constant 1 : index
    %c1_457 = arith.constant 1 : index
    %880 = vector.load %arg6[%c3_455, %c1_456, %c1_457] : memref<4x10x18xf32, #tpu.memory_space<vmem>>, vector<1x8x16xf32>
    %881 = vector.shape_cast %880 : vector<1x8x16xf32> to vector<8x16xf32>
    %882 = vector.broadcast %879 : f32 to vector<8x16xf32>
    %883 = arith.mulf %882, %881 : vector<8x16xf32>
    %884 = arith.addf %878, %883 : vector<8x16xf32>
    %c140 = arith.constant 140 : index
    %885 = memref.load %arg3[%c140] : memref<288xf32, #tpu.memory_space<smem>>
    %c3_458 = arith.constant 3 : index
    %c1_459 = arith.constant 1 : index
    %c2_460 = arith.constant 2 : index
    %886 = vector.load %arg6[%c3_458, %c1_459, %c2_460] : memref<4x10x18xf32, #tpu.memory_space<vmem>>, vector<1x8x16xf32>
    %887 = vector.shape_cast %886 : vector<1x8x16xf32> to vector<8x16xf32>
    %888 = vector.broadcast %885 : f32 to vector<8x16xf32>
    %889 = arith.mulf %888, %887 : vector<8x16xf32>
    %890 = arith.addf %884, %889 : vector<8x16xf32>
    %c141 = arith.constant 141 : index
    %891 = memref.load %arg3[%c141] : memref<288xf32, #tpu.memory_space<smem>>
    %c3_461 = arith.constant 3 : index
    %c2_462 = arith.constant 2 : index
    %c0_463 = arith.constant 0 : index
    %892 = vector.load %arg6[%c3_461, %c2_462, %c0_463] : memref<4x10x18xf32, #tpu.memory_space<vmem>>, vector<1x8x16xf32>
    %893 = vector.shape_cast %892 : vector<1x8x16xf32> to vector<8x16xf32>
    %894 = vector.broadcast %891 : f32 to vector<8x16xf32>
    %895 = arith.mulf %894, %893 : vector<8x16xf32>
    %896 = arith.addf %890, %895 : vector<8x16xf32>
    %c142 = arith.constant 142 : index
    %897 = memref.load %arg3[%c142] : memref<288xf32, #tpu.memory_space<smem>>
    %c3_464 = arith.constant 3 : index
    %c2_465 = arith.constant 2 : index
    %c1_466 = arith.constant 1 : index
    %898 = vector.load %arg6[%c3_464, %c2_465, %c1_466] : memref<4x10x18xf32, #tpu.memory_space<vmem>>, vector<1x8x16xf32>
    %899 = vector.shape_cast %898 : vector<1x8x16xf32> to vector<8x16xf32>
    %900 = vector.broadcast %897 : f32 to vector<8x16xf32>
    %901 = arith.mulf %900, %899 : vector<8x16xf32>
    %902 = arith.addf %896, %901 : vector<8x16xf32>
    %c143 = arith.constant 143 : index
    %903 = memref.load %arg3[%c143] : memref<288xf32, #tpu.memory_space<smem>>
    %c3_467 = arith.constant 3 : index
    %c2_468 = arith.constant 2 : index
    %c2_469 = arith.constant 2 : index
    %904 = vector.load %arg6[%c3_467, %c2_468, %c2_469] : memref<4x10x18xf32, #tpu.memory_space<vmem>>, vector<1x8x16xf32>
    %905 = vector.shape_cast %904 : vector<1x8x16xf32> to vector<8x16xf32>
    %906 = vector.broadcast %903 : f32 to vector<8x16xf32>
    %907 = arith.mulf %906, %905 : vector<8x16xf32>
    %908 = arith.addf %902, %907 : vector<8x16xf32>
    %cst_470 = arith.constant 0.000000e+00 : f32
    %909 = vector.broadcast %cst_470 : f32 to vector<8x16xf32>
    %910 = arith.maximumf %908, %909 : vector<8x16xf32>
    %c0_471 = arith.constant 0 : index
    %c3_472 = arith.constant 3 : index
    %c0_473 = arith.constant 0 : index
    %c0_474 = arith.constant 0 : index
    %911 = vector.load %arg5[%c0_471, %c3_472, %c0_473, %c0_474] : memref<1x8x8x16xf32, #tpu.memory_space<vmem>>, vector<1x1x8x16xf32>
    %912 = vector.shape_cast %911 : vector<1x1x8x16xf32> to vector<8x16xf32>
    %913 = vector.shape_cast %910 : vector<8x16xf32> to vector<1x1x8x16xf32>
    tpu.vector_store %arg5[%c0_471, %c3_472, %c0_473, %c0_474], %913 {strides = array<i32>} : memref<1x8x8x16xf32, #tpu.memory_space<vmem>>, vector<1x1x8x16xf32>,
    %c4_475 = arith.constant 4 : index
    %914 = memref.load %arg4[%c4_475] : memref<8xf32, #tpu.memory_space<smem>>
    %915 = vector.broadcast %914 : f32 to vector<8x16xf32>
    %c144 = arith.constant 144 : index
    %916 = memref.load %arg3[%c144] : memref<288xf32, #tpu.memory_space<smem>>
    %c0_476 = arith.constant 0 : index
    %c0_477 = arith.constant 0 : index
    %c0_478 = arith.constant 0 : index
    %917 = vector.load %arg6[%c0_476, %c0_477, %c0_478] : memref<4x10x18xf32, #tpu.memory_space<vmem>>, vector<1x8x16xf32>
    %918 = vector.shape_cast %917 : vector<1x8x16xf32> to vector<8x16xf32>
    %919 = vector.broadcast %916 : f32 to vector<8x16xf32>
    %920 = arith.mulf %919, %918 : vector<8x16xf32>
    %921 = arith.addf %915, %920 : vector<8x16xf32>
    %c145 = arith.constant 145 : index
    %922 = memref.load %arg3[%c145] : memref<288xf32, #tpu.memory_space<smem>>
    %c0_479 = arith.constant 0 : index
    %c0_480 = arith.constant 0 : index
    %c1_481 = arith.constant 1 : index
    %923 = vector.load %arg6[%c0_479, %c0_480, %c1_481] : memref<4x10x18xf32, #tpu.memory_space<vmem>>, vector<1x8x16xf32>
    %924 = vector.shape_cast %923 : vector<1x8x16xf32> to vector<8x16xf32>
    %925 = vector.broadcast %922 : f32 to vector<8x16xf32>
    %926 = arith.mulf %925, %924 : vector<8x16xf32>
    %927 = arith.addf %921, %926 : vector<8x16xf32>
    %c146 = arith.constant 146 : index
    %928 = memref.load %arg3[%c146] : memref<288xf32, #tpu.memory_space<smem>>
    %c0_482 = arith.constant 0 : index
    %c0_483 = arith.constant 0 : index
    %c2_484 = arith.constant 2 : index
    %929 = vector.load %arg6[%c0_482, %c0_483, %c2_484] : memref<4x10x18xf32, #tpu.memory_space<vmem>>, vector<1x8x16xf32>
    %930 = vector.shape_cast %929 : vector<1x8x16xf32> to vector<8x16xf32>
    %931 = vector.broadcast %928 : f32 to vector<8x16xf32>
    %932 = arith.mulf %931, %930 : vector<8x16xf32>
    %933 = arith.addf %927, %932 : vector<8x16xf32>
    %c147 = arith.constant 147 : index
    %934 = memref.load %arg3[%c147] : memref<288xf32, #tpu.memory_space<smem>>
    %c0_485 = arith.constant 0 : index
    %c1_486 = arith.constant 1 : index
    %c0_487 = arith.constant 0 : index
    %935 = vector.load %arg6[%c0_485, %c1_486, %c0_487] : memref<4x10x18xf32, #tpu.memory_space<vmem>>, vector<1x8x16xf32>
    %936 = vector.shape_cast %935 : vector<1x8x16xf32> to vector<8x16xf32>
    %937 = vector.broadcast %934 : f32 to vector<8x16xf32>
    %938 = arith.mulf %937, %936 : vector<8x16xf32>
    %939 = arith.addf %933, %938 : vector<8x16xf32>
    %c148 = arith.constant 148 : index
    %940 = memref.load %arg3[%c148] : memref<288xf32, #tpu.memory_space<smem>>
    %c0_488 = arith.constant 0 : index
    %c1_489 = arith.constant 1 : index
    %c1_490 = arith.constant 1 : index
    %941 = vector.load %arg6[%c0_488, %c1_489, %c1_490] : memref<4x10x18xf32, #tpu.memory_space<vmem>>, vector<1x8x16xf32>
    %942 = vector.shape_cast %941 : vector<1x8x16xf32> to vector<8x16xf32>
    %943 = vector.broadcast %940 : f32 to vector<8x16xf32>
    %944 = arith.mulf %943, %942 : vector<8x16xf32>
    %945 = arith.addf %939, %944 : vector<8x16xf32>
    %c149 = arith.constant 149 : index
    %946 = memref.load %arg3[%c149] : memref<288xf32, #tpu.memory_space<smem>>
    %c0_491 = arith.constant 0 : index
    %c1_492 = arith.constant 1 : index
    %c2_493 = arith.constant 2 : index
    %947 = vector.load %arg6[%c0_491, %c1_492, %c2_493] : memref<4x10x18xf32, #tpu.memory_space<vmem>>, vector<1x8x16xf32>
    %948 = vector.shape_cast %947 : vector<1x8x16xf32> to vector<8x16xf32>
    %949 = vector.broadcast %946 : f32 to vector<8x16xf32>
    %950 = arith.mulf %949, %948 : vector<8x16xf32>
    %951 = arith.addf %945, %950 : vector<8x16xf32>
    %c150 = arith.constant 150 : index
    %952 = memref.load %arg3[%c150] : memref<288xf32, #tpu.memory_space<smem>>
    %c0_494 = arith.constant 0 : index
    %c2_495 = arith.constant 2 : index
    %c0_496 = arith.constant 0 : index
    %953 = vector.load %arg6[%c0_494, %c2_495, %c0_496] : memref<4x10x18xf32, #tpu.memory_space<vmem>>, vector<1x8x16xf32>
    %954 = vector.shape_cast %953 : vector<1x8x16xf32> to vector<8x16xf32>
    %955 = vector.broadcast %952 : f32 to vector<8x16xf32>
    %956 = arith.mulf %955, %954 : vector<8x16xf32>
    %957 = arith.addf %951, %956 : vector<8x16xf32>
    %c151 = arith.constant 151 : index
    %958 = memref.load %arg3[%c151] : memref<288xf32, #tpu.memory_space<smem>>
    %c0_497 = arith.constant 0 : index
    %c2_498 = arith.constant 2 : index
    %c1_499 = arith.constant 1 : index
    %959 = vector.load %arg6[%c0_497, %c2_498, %c1_499] : memref<4x10x18xf32, #tpu.memory_space<vmem>>, vector<1x8x16xf32>
    %960 = vector.shape_cast %959 : vector<1x8x16xf32> to vector<8x16xf32>
    %961 = vector.broadcast %958 : f32 to vector<8x16xf32>
    %962 = arith.mulf %961, %960 : vector<8x16xf32>
    %963 = arith.addf %957, %962 : vector<8x16xf32>
    %c152 = arith.constant 152 : index
    %964 = memref.load %arg3[%c152] : memref<288xf32, #tpu.memory_space<smem>>
    %c0_500 = arith.constant 0 : index
    %c2_501 = arith.constant 2 : index
    %c2_502 = arith.constant 2 : index
    %965 = vector.load %arg6[%c0_500, %c2_501, %c2_502] : memref<4x10x18xf32, #tpu.memory_space<vmem>>, vector<1x8x16xf32>
    %966 = vector.shape_cast %965 : vector<1x8x16xf32> to vector<8x16xf32>
    %967 = vector.broadcast %964 : f32 to vector<8x16xf32>
    %968 = arith.mulf %967, %966 : vector<8x16xf32>
    %969 = arith.addf %963, %968 : vector<8x16xf32>
    %c153 = arith.constant 153 : index
    %970 = memref.load %arg3[%c153] : memref<288xf32, #tpu.memory_space<smem>>
    %c1_503 = arith.constant 1 : index
    %c0_504 = arith.constant 0 : index
    %c0_505 = arith.constant 0 : index
    %971 = vector.load %arg6[%c1_503, %c0_504, %c0_505] : memref<4x10x18xf32, #tpu.memory_space<vmem>>, vector<1x8x16xf32>
    %972 = vector.shape_cast %971 : vector<1x8x16xf32> to vector<8x16xf32>
    %973 = vector.broadcast %970 : f32 to vector<8x16xf32>
    %974 = arith.mulf %973, %972 : vector<8x16xf32>
    %975 = arith.addf %969, %974 : vector<8x16xf32>
    %c154 = arith.constant 154 : index
    %976 = memref.load %arg3[%c154] : memref<288xf32, #tpu.memory_space<smem>>
    %c1_506 = arith.constant 1 : index
    %c0_507 = arith.constant 0 : index
    %c1_508 = arith.constant 1 : index
    %977 = vector.load %arg6[%c1_506, %c0_507, %c1_508] : memref<4x10x18xf32, #tpu.memory_space<vmem>>, vector<1x8x16xf32>
    %978 = vector.shape_cast %977 : vector<1x8x16xf32> to vector<8x16xf32>
    %979 = vector.broadcast %976 : f32 to vector<8x16xf32>
    %980 = arith.mulf %979, %978 : vector<8x16xf32>
    %981 = arith.addf %975, %980 : vector<8x16xf32>
    %c155 = arith.constant 155 : index
    %982 = memref.load %arg3[%c155] : memref<288xf32, #tpu.memory_space<smem>>
    %c1_509 = arith.constant 1 : index
    %c0_510 = arith.constant 0 : index
    %c2_511 = arith.constant 2 : index
    %983 = vector.load %arg6[%c1_509, %c0_510, %c2_511] : memref<4x10x18xf32, #tpu.memory_space<vmem>>, vector<1x8x16xf32>
    %984 = vector.shape_cast %983 : vector<1x8x16xf32> to vector<8x16xf32>
    %985 = vector.broadcast %982 : f32 to vector<8x16xf32>
    %986 = arith.mulf %985, %984 : vector<8x16xf32>
    %987 = arith.addf %981, %986 : vector<8x16xf32>
    %c156 = arith.constant 156 : index
    %988 = memref.load %arg3[%c156] : memref<288xf32, #tpu.memory_space<smem>>
    %c1_512 = arith.constant 1 : index
    %c1_513 = arith.constant 1 : index
    %c0_514 = arith.constant 0 : index
    %989 = vector.load %arg6[%c1_512, %c1_513, %c0_514] : memref<4x10x18xf32, #tpu.memory_space<vmem>>, vector<1x8x16xf32>
    %990 = vector.shape_cast %989 : vector<1x8x16xf32> to vector<8x16xf32>
    %991 = vector.broadcast %988 : f32 to vector<8x16xf32>
    %992 = arith.mulf %991, %990 : vector<8x16xf32>
    %993 = arith.addf %987, %992 : vector<8x16xf32>
    %c157 = arith.constant 157 : index
    %994 = memref.load %arg3[%c157] : memref<288xf32, #tpu.memory_space<smem>>
    %c1_515 = arith.constant 1 : index
    %c1_516 = arith.constant 1 : index
    %c1_517 = arith.constant 1 : index
    %995 = vector.load %arg6[%c1_515, %c1_516, %c1_517] : memref<4x10x18xf32, #tpu.memory_space<vmem>>, vector<1x8x16xf32>
    %996 = vector.shape_cast %995 : vector<1x8x16xf32> to vector<8x16xf32>
    %997 = vector.broadcast %994 : f32 to vector<8x16xf32>
    %998 = arith.mulf %997, %996 : vector<8x16xf32>
    %999 = arith.addf %993, %998 : vector<8x16xf32>
    %c158 = arith.constant 158 : index
    %1000 = memref.load %arg3[%c158] : memref<288xf32, #tpu.memory_space<smem>>
    %c1_518 = arith.constant 1 : index
    %c1_519 = arith.constant 1 : index
    %c2_520 = arith.constant 2 : index
    %1001 = vector.load %arg6[%c1_518, %c1_519, %c2_520] : memref<4x10x18xf32, #tpu.memory_space<vmem>>, vector<1x8x16xf32>
    %1002 = vector.shape_cast %1001 : vector<1x8x16xf32> to vector<8x16xf32>
    %1003 = vector.broadcast %1000 : f32 to vector<8x16xf32>
    %1004 = arith.mulf %1003, %1002 : vector<8x16xf32>
    %1005 = arith.addf %999, %1004 : vector<8x16xf32>
    %c159 = arith.constant 159 : index
    %1006 = memref.load %arg3[%c159] : memref<288xf32, #tpu.memory_space<smem>>
    %c1_521 = arith.constant 1 : index
    %c2_522 = arith.constant 2 : index
    %c0_523 = arith.constant 0 : index
    %1007 = vector.load %arg6[%c1_521, %c2_522, %c0_523] : memref<4x10x18xf32, #tpu.memory_space<vmem>>, vector<1x8x16xf32>
    %1008 = vector.shape_cast %1007 : vector<1x8x16xf32> to vector<8x16xf32>
    %1009 = vector.broadcast %1006 : f32 to vector<8x16xf32>
    %1010 = arith.mulf %1009, %1008 : vector<8x16xf32>
    %1011 = arith.addf %1005, %1010 : vector<8x16xf32>
    %c160 = arith.constant 160 : index
    %1012 = memref.load %arg3[%c160] : memref<288xf32, #tpu.memory_space<smem>>
    %c1_524 = arith.constant 1 : index
    %c2_525 = arith.constant 2 : index
    %c1_526 = arith.constant 1 : index
    %1013 = vector.load %arg6[%c1_524, %c2_525, %c1_526] : memref<4x10x18xf32, #tpu.memory_space<vmem>>, vector<1x8x16xf32>
    %1014 = vector.shape_cast %1013 : vector<1x8x16xf32> to vector<8x16xf32>
    %1015 = vector.broadcast %1012 : f32 to vector<8x16xf32>
    %1016 = arith.mulf %1015, %1014 : vector<8x16xf32>
    %1017 = arith.addf %1011, %1016 : vector<8x16xf32>
    %c161 = arith.constant 161 : index
    %1018 = memref.load %arg3[%c161] : memref<288xf32, #tpu.memory_space<smem>>
    %c1_527 = arith.constant 1 : index
    %c2_528 = arith.constant 2 : index
    %c2_529 = arith.constant 2 : index
    %1019 = vector.load %arg6[%c1_527, %c2_528, %c2_529] : memref<4x10x18xf32, #tpu.memory_space<vmem>>, vector<1x8x16xf32>
    %1020 = vector.shape_cast %1019 : vector<1x8x16xf32> to vector<8x16xf32>
    %1021 = vector.broadcast %1018 : f32 to vector<8x16xf32>
    %1022 = arith.mulf %1021, %1020 : vector<8x16xf32>
    %1023 = arith.addf %1017, %1022 : vector<8x16xf32>
    %c162 = arith.constant 162 : index
    %1024 = memref.load %arg3[%c162] : memref<288xf32, #tpu.memory_space<smem>>
    %c2_530 = arith.constant 2 : index
    %c0_531 = arith.constant 0 : index
    %c0_532 = arith.constant 0 : index
    %1025 = vector.load %arg6[%c2_530, %c0_531, %c0_532] : memref<4x10x18xf32, #tpu.memory_space<vmem>>, vector<1x8x16xf32>
    %1026 = vector.shape_cast %1025 : vector<1x8x16xf32> to vector<8x16xf32>
    %1027 = vector.broadcast %1024 : f32 to vector<8x16xf32>
    %1028 = arith.mulf %1027, %1026 : vector<8x16xf32>
    %1029 = arith.addf %1023, %1028 : vector<8x16xf32>
    %c163 = arith.constant 163 : index
    %1030 = memref.load %arg3[%c163] : memref<288xf32, #tpu.memory_space<smem>>
    %c2_533 = arith.constant 2 : index
    %c0_534 = arith.constant 0 : index
    %c1_535 = arith.constant 1 : index
    %1031 = vector.load %arg6[%c2_533, %c0_534, %c1_535] : memref<4x10x18xf32, #tpu.memory_space<vmem>>, vector<1x8x16xf32>
    %1032 = vector.shape_cast %1031 : vector<1x8x16xf32> to vector<8x16xf32>
    %1033 = vector.broadcast %1030 : f32 to vector<8x16xf32>
    %1034 = arith.mulf %1033, %1032 : vector<8x16xf32>
    %1035 = arith.addf %1029, %1034 : vector<8x16xf32>
    %c164 = arith.constant 164 : index
    %1036 = memref.load %arg3[%c164] : memref<288xf32, #tpu.memory_space<smem>>
    %c2_536 = arith.constant 2 : index
    %c0_537 = arith.constant 0 : index
    %c2_538 = arith.constant 2 : index
    %1037 = vector.load %arg6[%c2_536, %c0_537, %c2_538] : memref<4x10x18xf32, #tpu.memory_space<vmem>>, vector<1x8x16xf32>
    %1038 = vector.shape_cast %1037 : vector<1x8x16xf32> to vector<8x16xf32>
    %1039 = vector.broadcast %1036 : f32 to vector<8x16xf32>
    %1040 = arith.mulf %1039, %1038 : vector<8x16xf32>
    %1041 = arith.addf %1035, %1040 : vector<8x16xf32>
    %c165 = arith.constant 165 : index
    %1042 = memref.load %arg3[%c165] : memref<288xf32, #tpu.memory_space<smem>>
    %c2_539 = arith.constant 2 : index
    %c1_540 = arith.constant 1 : index
    %c0_541 = arith.constant 0 : index
    %1043 = vector.load %arg6[%c2_539, %c1_540, %c0_541] : memref<4x10x18xf32, #tpu.memory_space<vmem>>, vector<1x8x16xf32>
    %1044 = vector.shape_cast %1043 : vector<1x8x16xf32> to vector<8x16xf32>
    %1045 = vector.broadcast %1042 : f32 to vector<8x16xf32>
    %1046 = arith.mulf %1045, %1044 : vector<8x16xf32>
    %1047 = arith.addf %1041, %1046 : vector<8x16xf32>
    %c166 = arith.constant 166 : index
    %1048 = memref.load %arg3[%c166] : memref<288xf32, #tpu.memory_space<smem>>
    %c2_542 = arith.constant 2 : index
    %c1_543 = arith.constant 1 : index
    %c1_544 = arith.constant 1 : index
    %1049 = vector.load %arg6[%c2_542, %c1_543, %c1_544] : memref<4x10x18xf32, #tpu.memory_space<vmem>>, vector<1x8x16xf32>
    %1050 = vector.shape_cast %1049 : vector<1x8x16xf32> to vector<8x16xf32>
    %1051 = vector.broadcast %1048 : f32 to vector<8x16xf32>
    %1052 = arith.mulf %1051, %1050 : vector<8x16xf32>
    %1053 = arith.addf %1047, %1052 : vector<8x16xf32>
    %c167 = arith.constant 167 : index
    %1054 = memref.load %arg3[%c167] : memref<288xf32, #tpu.memory_space<smem>>
    %c2_545 = arith.constant 2 : index
    %c1_546 = arith.constant 1 : index
    %c2_547 = arith.constant 2 : index
    %1055 = vector.load %arg6[%c2_545, %c1_546, %c2_547] : memref<4x10x18xf32, #tpu.memory_space<vmem>>, vector<1x8x16xf32>
    %1056 = vector.shape_cast %1055 : vector<1x8x16xf32> to vector<8x16xf32>
    %1057 = vector.broadcast %1054 : f32 to vector<8x16xf32>
    %1058 = arith.mulf %1057, %1056 : vector<8x16xf32>
    %1059 = arith.addf %1053, %1058 : vector<8x16xf32>
    %c168 = arith.constant 168 : index
    %1060 = memref.load %arg3[%c168] : memref<288xf32, #tpu.memory_space<smem>>
    %c2_548 = arith.constant 2 : index
    %c2_549 = arith.constant 2 : index
    %c0_550 = arith.constant 0 : index
    %1061 = vector.load %arg6[%c2_548, %c2_549, %c0_550] : memref<4x10x18xf32, #tpu.memory_space<vmem>>, vector<1x8x16xf32>
    %1062 = vector.shape_cast %1061 : vector<1x8x16xf32> to vector<8x16xf32>
    %1063 = vector.broadcast %1060 : f32 to vector<8x16xf32>
    %1064 = arith.mulf %1063, %1062 : vector<8x16xf32>
    %1065 = arith.addf %1059, %1064 : vector<8x16xf32>
    %c169 = arith.constant 169 : index
    %1066 = memref.load %arg3[%c169] : memref<288xf32, #tpu.memory_space<smem>>
    %c2_551 = arith.constant 2 : index
    %c2_552 = arith.constant 2 : index
    %c1_553 = arith.constant 1 : index
    %1067 = vector.load %arg6[%c2_551, %c2_552, %c1_553] : memref<4x10x18xf32, #tpu.memory_space<vmem>>, vector<1x8x16xf32>
    %1068 = vector.shape_cast %1067 : vector<1x8x16xf32> to vector<8x16xf32>
    %1069 = vector.broadcast %1066 : f32 to vector<8x16xf32>
    %1070 = arith.mulf %1069, %1068 : vector<8x16xf32>
    %1071 = arith.addf %1065, %1070 : vector<8x16xf32>
    %c170 = arith.constant 170 : index
    %1072 = memref.load %arg3[%c170] : memref<288xf32, #tpu.memory_space<smem>>
    %c2_554 = arith.constant 2 : index
    %c2_555 = arith.constant 2 : index
    %c2_556 = arith.constant 2 : index
    %1073 = vector.load %arg6[%c2_554, %c2_555, %c2_556] : memref<4x10x18xf32, #tpu.memory_space<vmem>>, vector<1x8x16xf32>
    %1074 = vector.shape_cast %1073 : vector<1x8x16xf32> to vector<8x16xf32>
    %1075 = vector.broadcast %1072 : f32 to vector<8x16xf32>
    %1076 = arith.mulf %1075, %1074 : vector<8x16xf32>
    %1077 = arith.addf %1071, %1076 : vector<8x16xf32>
    %c171 = arith.constant 171 : index
    %1078 = memref.load %arg3[%c171] : memref<288xf32, #tpu.memory_space<smem>>
    %c3_557 = arith.constant 3 : index
    %c0_558 = arith.constant 0 : index
    %c0_559 = arith.constant 0 : index
    %1079 = vector.load %arg6[%c3_557, %c0_558, %c0_559] : memref<4x10x18xf32, #tpu.memory_space<vmem>>, vector<1x8x16xf32>
    %1080 = vector.shape_cast %1079 : vector<1x8x16xf32> to vector<8x16xf32>
    %1081 = vector.broadcast %1078 : f32 to vector<8x16xf32>
    %1082 = arith.mulf %1081, %1080 : vector<8x16xf32>
    %1083 = arith.addf %1077, %1082 : vector<8x16xf32>
    %c172 = arith.constant 172 : index
    %1084 = memref.load %arg3[%c172] : memref<288xf32, #tpu.memory_space<smem>>
    %c3_560 = arith.constant 3 : index
    %c0_561 = arith.constant 0 : index
    %c1_562 = arith.constant 1 : index
    %1085 = vector.load %arg6[%c3_560, %c0_561, %c1_562] : memref<4x10x18xf32, #tpu.memory_space<vmem>>, vector<1x8x16xf32>
    %1086 = vector.shape_cast %1085 : vector<1x8x16xf32> to vector<8x16xf32>
    %1087 = vector.broadcast %1084 : f32 to vector<8x16xf32>
    %1088 = arith.mulf %1087, %1086 : vector<8x16xf32>
    %1089 = arith.addf %1083, %1088 : vector<8x16xf32>
    %c173 = arith.constant 173 : index
    %1090 = memref.load %arg3[%c173] : memref<288xf32, #tpu.memory_space<smem>>
    %c3_563 = arith.constant 3 : index
    %c0_564 = arith.constant 0 : index
    %c2_565 = arith.constant 2 : index
    %1091 = vector.load %arg6[%c3_563, %c0_564, %c2_565] : memref<4x10x18xf32, #tpu.memory_space<vmem>>, vector<1x8x16xf32>
    %1092 = vector.shape_cast %1091 : vector<1x8x16xf32> to vector<8x16xf32>
    %1093 = vector.broadcast %1090 : f32 to vector<8x16xf32>
    %1094 = arith.mulf %1093, %1092 : vector<8x16xf32>
    %1095 = arith.addf %1089, %1094 : vector<8x16xf32>
    %c174 = arith.constant 174 : index
    %1096 = memref.load %arg3[%c174] : memref<288xf32, #tpu.memory_space<smem>>
    %c3_566 = arith.constant 3 : index
    %c1_567 = arith.constant 1 : index
    %c0_568 = arith.constant 0 : index
    %1097 = vector.load %arg6[%c3_566, %c1_567, %c0_568] : memref<4x10x18xf32, #tpu.memory_space<vmem>>, vector<1x8x16xf32>
    %1098 = vector.shape_cast %1097 : vector<1x8x16xf32> to vector<8x16xf32>
    %1099 = vector.broadcast %1096 : f32 to vector<8x16xf32>
    %1100 = arith.mulf %1099, %1098 : vector<8x16xf32>
    %1101 = arith.addf %1095, %1100 : vector<8x16xf32>
    %c175 = arith.constant 175 : index
    %1102 = memref.load %arg3[%c175] : memref<288xf32, #tpu.memory_space<smem>>
    %c3_569 = arith.constant 3 : index
    %c1_570 = arith.constant 1 : index
    %c1_571 = arith.constant 1 : index
    %1103 = vector.load %arg6[%c3_569, %c1_570, %c1_571] : memref<4x10x18xf32, #tpu.memory_space<vmem>>, vector<1x8x16xf32>
    %1104 = vector.shape_cast %1103 : vector<1x8x16xf32> to vector<8x16xf32>
    %1105 = vector.broadcast %1102 : f32 to vector<8x16xf32>
    %1106 = arith.mulf %1105, %1104 : vector<8x16xf32>
    %1107 = arith.addf %1101, %1106 : vector<8x16xf32>
    %c176 = arith.constant 176 : index
    %1108 = memref.load %arg3[%c176] : memref<288xf32, #tpu.memory_space<smem>>
    %c3_572 = arith.constant 3 : index
    %c1_573 = arith.constant 1 : index
    %c2_574 = arith.constant 2 : index
    %1109 = vector.load %arg6[%c3_572, %c1_573, %c2_574] : memref<4x10x18xf32, #tpu.memory_space<vmem>>, vector<1x8x16xf32>
    %1110 = vector.shape_cast %1109 : vector<1x8x16xf32> to vector<8x16xf32>
    %1111 = vector.broadcast %1108 : f32 to vector<8x16xf32>
    %1112 = arith.mulf %1111, %1110 : vector<8x16xf32>
    %1113 = arith.addf %1107, %1112 : vector<8x16xf32>
    %c177 = arith.constant 177 : index
    %1114 = memref.load %arg3[%c177] : memref<288xf32, #tpu.memory_space<smem>>
    %c3_575 = arith.constant 3 : index
    %c2_576 = arith.constant 2 : index
    %c0_577 = arith.constant 0 : index
    %1115 = vector.load %arg6[%c3_575, %c2_576, %c0_577] : memref<4x10x18xf32, #tpu.memory_space<vmem>>, vector<1x8x16xf32>
    %1116 = vector.shape_cast %1115 : vector<1x8x16xf32> to vector<8x16xf32>
    %1117 = vector.broadcast %1114 : f32 to vector<8x16xf32>
    %1118 = arith.mulf %1117, %1116 : vector<8x16xf32>
    %1119 = arith.addf %1113, %1118 : vector<8x16xf32>
    %c178 = arith.constant 178 : index
    %1120 = memref.load %arg3[%c178] : memref<288xf32, #tpu.memory_space<smem>>
    %c3_578 = arith.constant 3 : index
    %c2_579 = arith.constant 2 : index
    %c1_580 = arith.constant 1 : index
    %1121 = vector.load %arg6[%c3_578, %c2_579, %c1_580] : memref<4x10x18xf32, #tpu.memory_space<vmem>>, vector<1x8x16xf32>
    %1122 = vector.shape_cast %1121 : vector<1x8x16xf32> to vector<8x16xf32>
    %1123 = vector.broadcast %1120 : f32 to vector<8x16xf32>
    %1124 = arith.mulf %1123, %1122 : vector<8x16xf32>
    %1125 = arith.addf %1119, %1124 : vector<8x16xf32>
    %c179 = arith.constant 179 : index
    %1126 = memref.load %arg3[%c179] : memref<288xf32, #tpu.memory_space<smem>>
    %c3_581 = arith.constant 3 : index
    %c2_582 = arith.constant 2 : index
    %c2_583 = arith.constant 2 : index
    %1127 = vector.load %arg6[%c3_581, %c2_582, %c2_583] : memref<4x10x18xf32, #tpu.memory_space<vmem>>, vector<1x8x16xf32>
    %1128 = vector.shape_cast %1127 : vector<1x8x16xf32> to vector<8x16xf32>
    %1129 = vector.broadcast %1126 : f32 to vector<8x16xf32>
    %1130 = arith.mulf %1129, %1128 : vector<8x16xf32>
    %1131 = arith.addf %1125, %1130 : vector<8x16xf32>
    %cst_584 = arith.constant 0.000000e+00 : f32
    %1132 = vector.broadcast %cst_584 : f32 to vector<8x16xf32>
    %1133 = arith.maximumf %1131, %1132 : vector<8x16xf32>
    %c0_585 = arith.constant 0 : index
    %c4_586 = arith.constant 4 : index
    %c0_587 = arith.constant 0 : index
    %c0_588 = arith.constant 0 : index
    %1134 = vector.load %arg5[%c0_585, %c4_586, %c0_587, %c0_588] : memref<1x8x8x16xf32, #tpu.memory_space<vmem>>, vector<1x1x8x16xf32>
    %1135 = vector.shape_cast %1134 : vector<1x1x8x16xf32> to vector<8x16xf32>
    %1136 = vector.shape_cast %1133 : vector<8x16xf32> to vector<1x1x8x16xf32>
    tpu.vector_store %arg5[%c0_585, %c4_586, %c0_587, %c0_588], %1136 {strides = array<i32>} : memref<1x8x8x16xf32, #tpu.memory_space<vmem>>, vector<1x1x8x16xf32>,
    %c5_589 = arith.constant 5 : index
    %1137 = memref.load %arg4[%c5_589] : memref<8xf32, #tpu.memory_space<smem>>
    %1138 = vector.broadcast %1137 : f32 to vector<8x16xf32>
    %c180 = arith.constant 180 : index
    %1139 = memref.load %arg3[%c180] : memref<288xf32, #tpu.memory_space<smem>>
    %c0_590 = arith.constant 0 : index
    %c0_591 = arith.constant 0 : index
    %c0_592 = arith.constant 0 : index
    %1140 = vector.load %arg6[%c0_590, %c0_591, %c0_592] : memref<4x10x18xf32, #tpu.memory_space<vmem>>, vector<1x8x16xf32>
    %1141 = vector.shape_cast %1140 : vector<1x8x16xf32> to vector<8x16xf32>
    %1142 = vector.broadcast %1139 : f32 to vector<8x16xf32>
    %1143 = arith.mulf %1142, %1141 : vector<8x16xf32>
    %1144 = arith.addf %1138, %1143 : vector<8x16xf32>
    %c181 = arith.constant 181 : index
    %1145 = memref.load %arg3[%c181] : memref<288xf32, #tpu.memory_space<smem>>
    %c0_593 = arith.constant 0 : index
    %c0_594 = arith.constant 0 : index
    %c1_595 = arith.constant 1 : index
    %1146 = vector.load %arg6[%c0_593, %c0_594, %c1_595] : memref<4x10x18xf32, #tpu.memory_space<vmem>>, vector<1x8x16xf32>
    %1147 = vector.shape_cast %1146 : vector<1x8x16xf32> to vector<8x16xf32>
    %1148 = vector.broadcast %1145 : f32 to vector<8x16xf32>
    %1149 = arith.mulf %1148, %1147 : vector<8x16xf32>
    %1150 = arith.addf %1144, %1149 : vector<8x16xf32>
    %c182 = arith.constant 182 : index
    %1151 = memref.load %arg3[%c182] : memref<288xf32, #tpu.memory_space<smem>>
    %c0_596 = arith.constant 0 : index
    %c0_597 = arith.constant 0 : index
    %c2_598 = arith.constant 2 : index
    %1152 = vector.load %arg6[%c0_596, %c0_597, %c2_598] : memref<4x10x18xf32, #tpu.memory_space<vmem>>, vector<1x8x16xf32>
    %1153 = vector.shape_cast %1152 : vector<1x8x16xf32> to vector<8x16xf32>
    %1154 = vector.broadcast %1151 : f32 to vector<8x16xf32>
    %1155 = arith.mulf %1154, %1153 : vector<8x16xf32>
    %1156 = arith.addf %1150, %1155 : vector<8x16xf32>
    %c183 = arith.constant 183 : index
    %1157 = memref.load %arg3[%c183] : memref<288xf32, #tpu.memory_space<smem>>
    %c0_599 = arith.constant 0 : index
    %c1_600 = arith.constant 1 : index
    %c0_601 = arith.constant 0 : index
    %1158 = vector.load %arg6[%c0_599, %c1_600, %c0_601] : memref<4x10x18xf32, #tpu.memory_space<vmem>>, vector<1x8x16xf32>
    %1159 = vector.shape_cast %1158 : vector<1x8x16xf32> to vector<8x16xf32>
    %1160 = vector.broadcast %1157 : f32 to vector<8x16xf32>
    %1161 = arith.mulf %1160, %1159 : vector<8x16xf32>
    %1162 = arith.addf %1156, %1161 : vector<8x16xf32>
    %c184 = arith.constant 184 : index
    %1163 = memref.load %arg3[%c184] : memref<288xf32, #tpu.memory_space<smem>>
    %c0_602 = arith.constant 0 : index
    %c1_603 = arith.constant 1 : index
    %c1_604 = arith.constant 1 : index
    %1164 = vector.load %arg6[%c0_602, %c1_603, %c1_604] : memref<4x10x18xf32, #tpu.memory_space<vmem>>, vector<1x8x16xf32>
    %1165 = vector.shape_cast %1164 : vector<1x8x16xf32> to vector<8x16xf32>
    %1166 = vector.broadcast %1163 : f32 to vector<8x16xf32>
    %1167 = arith.mulf %1166, %1165 : vector<8x16xf32>
    %1168 = arith.addf %1162, %1167 : vector<8x16xf32>
    %c185 = arith.constant 185 : index
    %1169 = memref.load %arg3[%c185] : memref<288xf32, #tpu.memory_space<smem>>
    %c0_605 = arith.constant 0 : index
    %c1_606 = arith.constant 1 : index
    %c2_607 = arith.constant 2 : index
    %1170 = vector.load %arg6[%c0_605, %c1_606, %c2_607] : memref<4x10x18xf32, #tpu.memory_space<vmem>>, vector<1x8x16xf32>
    %1171 = vector.shape_cast %1170 : vector<1x8x16xf32> to vector<8x16xf32>
    %1172 = vector.broadcast %1169 : f32 to vector<8x16xf32>
    %1173 = arith.mulf %1172, %1171 : vector<8x16xf32>
    %1174 = arith.addf %1168, %1173 : vector<8x16xf32>
    %c186 = arith.constant 186 : index
    %1175 = memref.load %arg3[%c186] : memref<288xf32, #tpu.memory_space<smem>>
    %c0_608 = arith.constant 0 : index
    %c2_609 = arith.constant 2 : index
    %c0_610 = arith.constant 0 : index
    %1176 = vector.load %arg6[%c0_608, %c2_609, %c0_610] : memref<4x10x18xf32, #tpu.memory_space<vmem>>, vector<1x8x16xf32>
    %1177 = vector.shape_cast %1176 : vector<1x8x16xf32> to vector<8x16xf32>
    %1178 = vector.broadcast %1175 : f32 to vector<8x16xf32>
    %1179 = arith.mulf %1178, %1177 : vector<8x16xf32>
    %1180 = arith.addf %1174, %1179 : vector<8x16xf32>
    %c187 = arith.constant 187 : index
    %1181 = memref.load %arg3[%c187] : memref<288xf32, #tpu.memory_space<smem>>
    %c0_611 = arith.constant 0 : index
    %c2_612 = arith.constant 2 : index
    %c1_613 = arith.constant 1 : index
    %1182 = vector.load %arg6[%c0_611, %c2_612, %c1_613] : memref<4x10x18xf32, #tpu.memory_space<vmem>>, vector<1x8x16xf32>
    %1183 = vector.shape_cast %1182 : vector<1x8x16xf32> to vector<8x16xf32>
    %1184 = vector.broadcast %1181 : f32 to vector<8x16xf32>
    %1185 = arith.mulf %1184, %1183 : vector<8x16xf32>
    %1186 = arith.addf %1180, %1185 : vector<8x16xf32>
    %c188 = arith.constant 188 : index
    %1187 = memref.load %arg3[%c188] : memref<288xf32, #tpu.memory_space<smem>>
    %c0_614 = arith.constant 0 : index
    %c2_615 = arith.constant 2 : index
    %c2_616 = arith.constant 2 : index
    %1188 = vector.load %arg6[%c0_614, %c2_615, %c2_616] : memref<4x10x18xf32, #tpu.memory_space<vmem>>, vector<1x8x16xf32>
    %1189 = vector.shape_cast %1188 : vector<1x8x16xf32> to vector<8x16xf32>
    %1190 = vector.broadcast %1187 : f32 to vector<8x16xf32>
    %1191 = arith.mulf %1190, %1189 : vector<8x16xf32>
    %1192 = arith.addf %1186, %1191 : vector<8x16xf32>
    %c189 = arith.constant 189 : index
    %1193 = memref.load %arg3[%c189] : memref<288xf32, #tpu.memory_space<smem>>
    %c1_617 = arith.constant 1 : index
    %c0_618 = arith.constant 0 : index
    %c0_619 = arith.constant 0 : index
    %1194 = vector.load %arg6[%c1_617, %c0_618, %c0_619] : memref<4x10x18xf32, #tpu.memory_space<vmem>>, vector<1x8x16xf32>
    %1195 = vector.shape_cast %1194 : vector<1x8x16xf32> to vector<8x16xf32>
    %1196 = vector.broadcast %1193 : f32 to vector<8x16xf32>
    %1197 = arith.mulf %1196, %1195 : vector<8x16xf32>
    %1198 = arith.addf %1192, %1197 : vector<8x16xf32>
    %c190 = arith.constant 190 : index
    %1199 = memref.load %arg3[%c190] : memref<288xf32, #tpu.memory_space<smem>>
    %c1_620 = arith.constant 1 : index
    %c0_621 = arith.constant 0 : index
    %c1_622 = arith.constant 1 : index
    %1200 = vector.load %arg6[%c1_620, %c0_621, %c1_622] : memref<4x10x18xf32, #tpu.memory_space<vmem>>, vector<1x8x16xf32>
    %1201 = vector.shape_cast %1200 : vector<1x8x16xf32> to vector<8x16xf32>
    %1202 = vector.broadcast %1199 : f32 to vector<8x16xf32>
    %1203 = arith.mulf %1202, %1201 : vector<8x16xf32>
    %1204 = arith.addf %1198, %1203 : vector<8x16xf32>
    %c191 = arith.constant 191 : index
    %1205 = memref.load %arg3[%c191] : memref<288xf32, #tpu.memory_space<smem>>
    %c1_623 = arith.constant 1 : index
    %c0_624 = arith.constant 0 : index
    %c2_625 = arith.constant 2 : index
    %1206 = vector.load %arg6[%c1_623, %c0_624, %c2_625] : memref<4x10x18xf32, #tpu.memory_space<vmem>>, vector<1x8x16xf32>
    %1207 = vector.shape_cast %1206 : vector<1x8x16xf32> to vector<8x16xf32>
    %1208 = vector.broadcast %1205 : f32 to vector<8x16xf32>
    %1209 = arith.mulf %1208, %1207 : vector<8x16xf32>
    %1210 = arith.addf %1204, %1209 : vector<8x16xf32>
    %c192 = arith.constant 192 : index
    %1211 = memref.load %arg3[%c192] : memref<288xf32, #tpu.memory_space<smem>>
    %c1_626 = arith.constant 1 : index
    %c1_627 = arith.constant 1 : index
    %c0_628 = arith.constant 0 : index
    %1212 = vector.load %arg6[%c1_626, %c1_627, %c0_628] : memref<4x10x18xf32, #tpu.memory_space<vmem>>, vector<1x8x16xf32>
    %1213 = vector.shape_cast %1212 : vector<1x8x16xf32> to vector<8x16xf32>
    %1214 = vector.broadcast %1211 : f32 to vector<8x16xf32>
    %1215 = arith.mulf %1214, %1213 : vector<8x16xf32>
    %1216 = arith.addf %1210, %1215 : vector<8x16xf32>
    %c193 = arith.constant 193 : index
    %1217 = memref.load %arg3[%c193] : memref<288xf32, #tpu.memory_space<smem>>
    %c1_629 = arith.constant 1 : index
    %c1_630 = arith.constant 1 : index
    %c1_631 = arith.constant 1 : index
    %1218 = vector.load %arg6[%c1_629, %c1_630, %c1_631] : memref<4x10x18xf32, #tpu.memory_space<vmem>>, vector<1x8x16xf32>
    %1219 = vector.shape_cast %1218 : vector<1x8x16xf32> to vector<8x16xf32>
    %1220 = vector.broadcast %1217 : f32 to vector<8x16xf32>
    %1221 = arith.mulf %1220, %1219 : vector<8x16xf32>
    %1222 = arith.addf %1216, %1221 : vector<8x16xf32>
    %c194 = arith.constant 194 : index
    %1223 = memref.load %arg3[%c194] : memref<288xf32, #tpu.memory_space<smem>>
    %c1_632 = arith.constant 1 : index
    %c1_633 = arith.constant 1 : index
    %c2_634 = arith.constant 2 : index
    %1224 = vector.load %arg6[%c1_632, %c1_633, %c2_634] : memref<4x10x18xf32, #tpu.memory_space<vmem>>, vector<1x8x16xf32>
    %1225 = vector.shape_cast %1224 : vector<1x8x16xf32> to vector<8x16xf32>
    %1226 = vector.broadcast %1223 : f32 to vector<8x16xf32>
    %1227 = arith.mulf %1226, %1225 : vector<8x16xf32>
    %1228 = arith.addf %1222, %1227 : vector<8x16xf32>
    %c195 = arith.constant 195 : index
    %1229 = memref.load %arg3[%c195] : memref<288xf32, #tpu.memory_space<smem>>
    %c1_635 = arith.constant 1 : index
    %c2_636 = arith.constant 2 : index
    %c0_637 = arith.constant 0 : index
    %1230 = vector.load %arg6[%c1_635, %c2_636, %c0_637] : memref<4x10x18xf32, #tpu.memory_space<vmem>>, vector<1x8x16xf32>
    %1231 = vector.shape_cast %1230 : vector<1x8x16xf32> to vector<8x16xf32>
    %1232 = vector.broadcast %1229 : f32 to vector<8x16xf32>
    %1233 = arith.mulf %1232, %1231 : vector<8x16xf32>
    %1234 = arith.addf %1228, %1233 : vector<8x16xf32>
    %c196 = arith.constant 196 : index
    %1235 = memref.load %arg3[%c196] : memref<288xf32, #tpu.memory_space<smem>>
    %c1_638 = arith.constant 1 : index
    %c2_639 = arith.constant 2 : index
    %c1_640 = arith.constant 1 : index
    %1236 = vector.load %arg6[%c1_638, %c2_639, %c1_640] : memref<4x10x18xf32, #tpu.memory_space<vmem>>, vector<1x8x16xf32>
    %1237 = vector.shape_cast %1236 : vector<1x8x16xf32> to vector<8x16xf32>
    %1238 = vector.broadcast %1235 : f32 to vector<8x16xf32>
    %1239 = arith.mulf %1238, %1237 : vector<8x16xf32>
    %1240 = arith.addf %1234, %1239 : vector<8x16xf32>
    %c197 = arith.constant 197 : index
    %1241 = memref.load %arg3[%c197] : memref<288xf32, #tpu.memory_space<smem>>
    %c1_641 = arith.constant 1 : index
    %c2_642 = arith.constant 2 : index
    %c2_643 = arith.constant 2 : index
    %1242 = vector.load %arg6[%c1_641, %c2_642, %c2_643] : memref<4x10x18xf32, #tpu.memory_space<vmem>>, vector<1x8x16xf32>
    %1243 = vector.shape_cast %1242 : vector<1x8x16xf32> to vector<8x16xf32>
    %1244 = vector.broadcast %1241 : f32 to vector<8x16xf32>
    %1245 = arith.mulf %1244, %1243 : vector<8x16xf32>
    %1246 = arith.addf %1240, %1245 : vector<8x16xf32>
    %c198 = arith.constant 198 : index
    %1247 = memref.load %arg3[%c198] : memref<288xf32, #tpu.memory_space<smem>>
    %c2_644 = arith.constant 2 : index
    %c0_645 = arith.constant 0 : index
    %c0_646 = arith.constant 0 : index
    %1248 = vector.load %arg6[%c2_644, %c0_645, %c0_646] : memref<4x10x18xf32, #tpu.memory_space<vmem>>, vector<1x8x16xf32>
    %1249 = vector.shape_cast %1248 : vector<1x8x16xf32> to vector<8x16xf32>
    %1250 = vector.broadcast %1247 : f32 to vector<8x16xf32>
    %1251 = arith.mulf %1250, %1249 : vector<8x16xf32>
    %1252 = arith.addf %1246, %1251 : vector<8x16xf32>
    %c199 = arith.constant 199 : index
    %1253 = memref.load %arg3[%c199] : memref<288xf32, #tpu.memory_space<smem>>
    %c2_647 = arith.constant 2 : index
    %c0_648 = arith.constant 0 : index
    %c1_649 = arith.constant 1 : index
    %1254 = vector.load %arg6[%c2_647, %c0_648, %c1_649] : memref<4x10x18xf32, #tpu.memory_space<vmem>>, vector<1x8x16xf32>
    %1255 = vector.shape_cast %1254 : vector<1x8x16xf32> to vector<8x16xf32>
    %1256 = vector.broadcast %1253 : f32 to vector<8x16xf32>
    %1257 = arith.mulf %1256, %1255 : vector<8x16xf32>
    %1258 = arith.addf %1252, %1257 : vector<8x16xf32>
    %c200 = arith.constant 200 : index
    %1259 = memref.load %arg3[%c200] : memref<288xf32, #tpu.memory_space<smem>>
    %c2_650 = arith.constant 2 : index
    %c0_651 = arith.constant 0 : index
    %c2_652 = arith.constant 2 : index
    %1260 = vector.load %arg6[%c2_650, %c0_651, %c2_652] : memref<4x10x18xf32, #tpu.memory_space<vmem>>, vector<1x8x16xf32>
    %1261 = vector.shape_cast %1260 : vector<1x8x16xf32> to vector<8x16xf32>
    %1262 = vector.broadcast %1259 : f32 to vector<8x16xf32>
    %1263 = arith.mulf %1262, %1261 : vector<8x16xf32>
    %1264 = arith.addf %1258, %1263 : vector<8x16xf32>
    %c201 = arith.constant 201 : index
    %1265 = memref.load %arg3[%c201] : memref<288xf32, #tpu.memory_space<smem>>
    %c2_653 = arith.constant 2 : index
    %c1_654 = arith.constant 1 : index
    %c0_655 = arith.constant 0 : index
    %1266 = vector.load %arg6[%c2_653, %c1_654, %c0_655] : memref<4x10x18xf32, #tpu.memory_space<vmem>>, vector<1x8x16xf32>
    %1267 = vector.shape_cast %1266 : vector<1x8x16xf32> to vector<8x16xf32>
    %1268 = vector.broadcast %1265 : f32 to vector<8x16xf32>
    %1269 = arith.mulf %1268, %1267 : vector<8x16xf32>
    %1270 = arith.addf %1264, %1269 : vector<8x16xf32>
    %c202 = arith.constant 202 : index
    %1271 = memref.load %arg3[%c202] : memref<288xf32, #tpu.memory_space<smem>>
    %c2_656 = arith.constant 2 : index
    %c1_657 = arith.constant 1 : index
    %c1_658 = arith.constant 1 : index
    %1272 = vector.load %arg6[%c2_656, %c1_657, %c1_658] : memref<4x10x18xf32, #tpu.memory_space<vmem>>, vector<1x8x16xf32>
    %1273 = vector.shape_cast %1272 : vector<1x8x16xf32> to vector<8x16xf32>
    %1274 = vector.broadcast %1271 : f32 to vector<8x16xf32>
    %1275 = arith.mulf %1274, %1273 : vector<8x16xf32>
    %1276 = arith.addf %1270, %1275 : vector<8x16xf32>
    %c203 = arith.constant 203 : index
    %1277 = memref.load %arg3[%c203] : memref<288xf32, #tpu.memory_space<smem>>
    %c2_659 = arith.constant 2 : index
    %c1_660 = arith.constant 1 : index
    %c2_661 = arith.constant 2 : index
    %1278 = vector.load %arg6[%c2_659, %c1_660, %c2_661] : memref<4x10x18xf32, #tpu.memory_space<vmem>>, vector<1x8x16xf32>
    %1279 = vector.shape_cast %1278 : vector<1x8x16xf32> to vector<8x16xf32>
    %1280 = vector.broadcast %1277 : f32 to vector<8x16xf32>
    %1281 = arith.mulf %1280, %1279 : vector<8x16xf32>
    %1282 = arith.addf %1276, %1281 : vector<8x16xf32>
    %c204 = arith.constant 204 : index
    %1283 = memref.load %arg3[%c204] : memref<288xf32, #tpu.memory_space<smem>>
    %c2_662 = arith.constant 2 : index
    %c2_663 = arith.constant 2 : index
    %c0_664 = arith.constant 0 : index
    %1284 = vector.load %arg6[%c2_662, %c2_663, %c0_664] : memref<4x10x18xf32, #tpu.memory_space<vmem>>, vector<1x8x16xf32>
    %1285 = vector.shape_cast %1284 : vector<1x8x16xf32> to vector<8x16xf32>
    %1286 = vector.broadcast %1283 : f32 to vector<8x16xf32>
    %1287 = arith.mulf %1286, %1285 : vector<8x16xf32>
    %1288 = arith.addf %1282, %1287 : vector<8x16xf32>
    %c205 = arith.constant 205 : index
    %1289 = memref.load %arg3[%c205] : memref<288xf32, #tpu.memory_space<smem>>
    %c2_665 = arith.constant 2 : index
    %c2_666 = arith.constant 2 : index
    %c1_667 = arith.constant 1 : index
    %1290 = vector.load %arg6[%c2_665, %c2_666, %c1_667] : memref<4x10x18xf32, #tpu.memory_space<vmem>>, vector<1x8x16xf32>
    %1291 = vector.shape_cast %1290 : vector<1x8x16xf32> to vector<8x16xf32>
    %1292 = vector.broadcast %1289 : f32 to vector<8x16xf32>
    %1293 = arith.mulf %1292, %1291 : vector<8x16xf32>
    %1294 = arith.addf %1288, %1293 : vector<8x16xf32>
    %c206 = arith.constant 206 : index
    %1295 = memref.load %arg3[%c206] : memref<288xf32, #tpu.memory_space<smem>>
    %c2_668 = arith.constant 2 : index
    %c2_669 = arith.constant 2 : index
    %c2_670 = arith.constant 2 : index
    %1296 = vector.load %arg6[%c2_668, %c2_669, %c2_670] : memref<4x10x18xf32, #tpu.memory_space<vmem>>, vector<1x8x16xf32>
    %1297 = vector.shape_cast %1296 : vector<1x8x16xf32> to vector<8x16xf32>
    %1298 = vector.broadcast %1295 : f32 to vector<8x16xf32>
    %1299 = arith.mulf %1298, %1297 : vector<8x16xf32>
    %1300 = arith.addf %1294, %1299 : vector<8x16xf32>
    %c207 = arith.constant 207 : index
    %1301 = memref.load %arg3[%c207] : memref<288xf32, #tpu.memory_space<smem>>
    %c3_671 = arith.constant 3 : index
    %c0_672 = arith.constant 0 : index
    %c0_673 = arith.constant 0 : index
    %1302 = vector.load %arg6[%c3_671, %c0_672, %c0_673] : memref<4x10x18xf32, #tpu.memory_space<vmem>>, vector<1x8x16xf32>
    %1303 = vector.shape_cast %1302 : vector<1x8x16xf32> to vector<8x16xf32>
    %1304 = vector.broadcast %1301 : f32 to vector<8x16xf32>
    %1305 = arith.mulf %1304, %1303 : vector<8x16xf32>
    %1306 = arith.addf %1300, %1305 : vector<8x16xf32>
    %c208 = arith.constant 208 : index
    %1307 = memref.load %arg3[%c208] : memref<288xf32, #tpu.memory_space<smem>>
    %c3_674 = arith.constant 3 : index
    %c0_675 = arith.constant 0 : index
    %c1_676 = arith.constant 1 : index
    %1308 = vector.load %arg6[%c3_674, %c0_675, %c1_676] : memref<4x10x18xf32, #tpu.memory_space<vmem>>, vector<1x8x16xf32>
    %1309 = vector.shape_cast %1308 : vector<1x8x16xf32> to vector<8x16xf32>
    %1310 = vector.broadcast %1307 : f32 to vector<8x16xf32>
    %1311 = arith.mulf %1310, %1309 : vector<8x16xf32>
    %1312 = arith.addf %1306, %1311 : vector<8x16xf32>
    %c209 = arith.constant 209 : index
    %1313 = memref.load %arg3[%c209] : memref<288xf32, #tpu.memory_space<smem>>
    %c3_677 = arith.constant 3 : index
    %c0_678 = arith.constant 0 : index
    %c2_679 = arith.constant 2 : index
    %1314 = vector.load %arg6[%c3_677, %c0_678, %c2_679] : memref<4x10x18xf32, #tpu.memory_space<vmem>>, vector<1x8x16xf32>
    %1315 = vector.shape_cast %1314 : vector<1x8x16xf32> to vector<8x16xf32>
    %1316 = vector.broadcast %1313 : f32 to vector<8x16xf32>
    %1317 = arith.mulf %1316, %1315 : vector<8x16xf32>
    %1318 = arith.addf %1312, %1317 : vector<8x16xf32>
    %c210 = arith.constant 210 : index
    %1319 = memref.load %arg3[%c210] : memref<288xf32, #tpu.memory_space<smem>>
    %c3_680 = arith.constant 3 : index
    %c1_681 = arith.constant 1 : index
    %c0_682 = arith.constant 0 : index
    %1320 = vector.load %arg6[%c3_680, %c1_681, %c0_682] : memref<4x10x18xf32, #tpu.memory_space<vmem>>, vector<1x8x16xf32>
    %1321 = vector.shape_cast %1320 : vector<1x8x16xf32> to vector<8x16xf32>
    %1322 = vector.broadcast %1319 : f32 to vector<8x16xf32>
    %1323 = arith.mulf %1322, %1321 : vector<8x16xf32>
    %1324 = arith.addf %1318, %1323 : vector<8x16xf32>
    %c211 = arith.constant 211 : index
    %1325 = memref.load %arg3[%c211] : memref<288xf32, #tpu.memory_space<smem>>
    %c3_683 = arith.constant 3 : index
    %c1_684 = arith.constant 1 : index
    %c1_685 = arith.constant 1 : index
    %1326 = vector.load %arg6[%c3_683, %c1_684, %c1_685] : memref<4x10x18xf32, #tpu.memory_space<vmem>>, vector<1x8x16xf32>
    %1327 = vector.shape_cast %1326 : vector<1x8x16xf32> to vector<8x16xf32>
    %1328 = vector.broadcast %1325 : f32 to vector<8x16xf32>
    %1329 = arith.mulf %1328, %1327 : vector<8x16xf32>
    %1330 = arith.addf %1324, %1329 : vector<8x16xf32>
    %c212 = arith.constant 212 : index
    %1331 = memref.load %arg3[%c212] : memref<288xf32, #tpu.memory_space<smem>>
    %c3_686 = arith.constant 3 : index
    %c1_687 = arith.constant 1 : index
    %c2_688 = arith.constant 2 : index
    %1332 = vector.load %arg6[%c3_686, %c1_687, %c2_688] : memref<4x10x18xf32, #tpu.memory_space<vmem>>, vector<1x8x16xf32>
    %1333 = vector.shape_cast %1332 : vector<1x8x16xf32> to vector<8x16xf32>
    %1334 = vector.broadcast %1331 : f32 to vector<8x16xf32>
    %1335 = arith.mulf %1334, %1333 : vector<8x16xf32>
    %1336 = arith.addf %1330, %1335 : vector<8x16xf32>
    %c213 = arith.constant 213 : index
    %1337 = memref.load %arg3[%c213] : memref<288xf32, #tpu.memory_space<smem>>
    %c3_689 = arith.constant 3 : index
    %c2_690 = arith.constant 2 : index
    %c0_691 = arith.constant 0 : index
    %1338 = vector.load %arg6[%c3_689, %c2_690, %c0_691] : memref<4x10x18xf32, #tpu.memory_space<vmem>>, vector<1x8x16xf32>
    %1339 = vector.shape_cast %1338 : vector<1x8x16xf32> to vector<8x16xf32>
    %1340 = vector.broadcast %1337 : f32 to vector<8x16xf32>
    %1341 = arith.mulf %1340, %1339 : vector<8x16xf32>
    %1342 = arith.addf %1336, %1341 : vector<8x16xf32>
    %c214 = arith.constant 214 : index
    %1343 = memref.load %arg3[%c214] : memref<288xf32, #tpu.memory_space<smem>>
    %c3_692 = arith.constant 3 : index
    %c2_693 = arith.constant 2 : index
    %c1_694 = arith.constant 1 : index
    %1344 = vector.load %arg6[%c3_692, %c2_693, %c1_694] : memref<4x10x18xf32, #tpu.memory_space<vmem>>, vector<1x8x16xf32>
    %1345 = vector.shape_cast %1344 : vector<1x8x16xf32> to vector<8x16xf32>
    %1346 = vector.broadcast %1343 : f32 to vector<8x16xf32>
    %1347 = arith.mulf %1346, %1345 : vector<8x16xf32>
    %1348 = arith.addf %1342, %1347 : vector<8x16xf32>
    %c215 = arith.constant 215 : index
    %1349 = memref.load %arg3[%c215] : memref<288xf32, #tpu.memory_space<smem>>
    %c3_695 = arith.constant 3 : index
    %c2_696 = arith.constant 2 : index
    %c2_697 = arith.constant 2 : index
    %1350 = vector.load %arg6[%c3_695, %c2_696, %c2_697] : memref<4x10x18xf32, #tpu.memory_space<vmem>>, vector<1x8x16xf32>
    %1351 = vector.shape_cast %1350 : vector<1x8x16xf32> to vector<8x16xf32>
    %1352 = vector.broadcast %1349 : f32 to vector<8x16xf32>
    %1353 = arith.mulf %1352, %1351 : vector<8x16xf32>
    %1354 = arith.addf %1348, %1353 : vector<8x16xf32>
    %cst_698 = arith.constant 0.000000e+00 : f32
    %1355 = vector.broadcast %cst_698 : f32 to vector<8x16xf32>
    %1356 = arith.maximumf %1354, %1355 : vector<8x16xf32>
    %c0_699 = arith.constant 0 : index
    %c5_700 = arith.constant 5 : index
    %c0_701 = arith.constant 0 : index
    %c0_702 = arith.constant 0 : index
    %1357 = vector.load %arg5[%c0_699, %c5_700, %c0_701, %c0_702] : memref<1x8x8x16xf32, #tpu.memory_space<vmem>>, vector<1x1x8x16xf32>
    %1358 = vector.shape_cast %1357 : vector<1x1x8x16xf32> to vector<8x16xf32>
    %1359 = vector.shape_cast %1356 : vector<8x16xf32> to vector<1x1x8x16xf32>
    tpu.vector_store %arg5[%c0_699, %c5_700, %c0_701, %c0_702], %1359 {strides = array<i32>} : memref<1x8x8x16xf32, #tpu.memory_space<vmem>>, vector<1x1x8x16xf32>,
    %c6_703 = arith.constant 6 : index
    %1360 = memref.load %arg4[%c6_703] : memref<8xf32, #tpu.memory_space<smem>>
    %1361 = vector.broadcast %1360 : f32 to vector<8x16xf32>
    %c216 = arith.constant 216 : index
    %1362 = memref.load %arg3[%c216] : memref<288xf32, #tpu.memory_space<smem>>
    %c0_704 = arith.constant 0 : index
    %c0_705 = arith.constant 0 : index
    %c0_706 = arith.constant 0 : index
    %1363 = vector.load %arg6[%c0_704, %c0_705, %c0_706] : memref<4x10x18xf32, #tpu.memory_space<vmem>>, vector<1x8x16xf32>
    %1364 = vector.shape_cast %1363 : vector<1x8x16xf32> to vector<8x16xf32>
    %1365 = vector.broadcast %1362 : f32 to vector<8x16xf32>
    %1366 = arith.mulf %1365, %1364 : vector<8x16xf32>
    %1367 = arith.addf %1361, %1366 : vector<8x16xf32>
    %c217 = arith.constant 217 : index
    %1368 = memref.load %arg3[%c217] : memref<288xf32, #tpu.memory_space<smem>>
    %c0_707 = arith.constant 0 : index
    %c0_708 = arith.constant 0 : index
    %c1_709 = arith.constant 1 : index
    %1369 = vector.load %arg6[%c0_707, %c0_708, %c1_709] : memref<4x10x18xf32, #tpu.memory_space<vmem>>, vector<1x8x16xf32>
    %1370 = vector.shape_cast %1369 : vector<1x8x16xf32> to vector<8x16xf32>
    %1371 = vector.broadcast %1368 : f32 to vector<8x16xf32>
    %1372 = arith.mulf %1371, %1370 : vector<8x16xf32>
    %1373 = arith.addf %1367, %1372 : vector<8x16xf32>
    %c218 = arith.constant 218 : index
    %1374 = memref.load %arg3[%c218] : memref<288xf32, #tpu.memory_space<smem>>
    %c0_710 = arith.constant 0 : index
    %c0_711 = arith.constant 0 : index
    %c2_712 = arith.constant 2 : index
    %1375 = vector.load %arg6[%c0_710, %c0_711, %c2_712] : memref<4x10x18xf32, #tpu.memory_space<vmem>>, vector<1x8x16xf32>
    %1376 = vector.shape_cast %1375 : vector<1x8x16xf32> to vector<8x16xf32>
    %1377 = vector.broadcast %1374 : f32 to vector<8x16xf32>
    %1378 = arith.mulf %1377, %1376 : vector<8x16xf32>
    %1379 = arith.addf %1373, %1378 : vector<8x16xf32>
    %c219 = arith.constant 219 : index
    %1380 = memref.load %arg3[%c219] : memref<288xf32, #tpu.memory_space<smem>>
    %c0_713 = arith.constant 0 : index
    %c1_714 = arith.constant 1 : index
    %c0_715 = arith.constant 0 : index
    %1381 = vector.load %arg6[%c0_713, %c1_714, %c0_715] : memref<4x10x18xf32, #tpu.memory_space<vmem>>, vector<1x8x16xf32>
    %1382 = vector.shape_cast %1381 : vector<1x8x16xf32> to vector<8x16xf32>
    %1383 = vector.broadcast %1380 : f32 to vector<8x16xf32>
    %1384 = arith.mulf %1383, %1382 : vector<8x16xf32>
    %1385 = arith.addf %1379, %1384 : vector<8x16xf32>
    %c220 = arith.constant 220 : index
    %1386 = memref.load %arg3[%c220] : memref<288xf32, #tpu.memory_space<smem>>
    %c0_716 = arith.constant 0 : index
    %c1_717 = arith.constant 1 : index
    %c1_718 = arith.constant 1 : index
    %1387 = vector.load %arg6[%c0_716, %c1_717, %c1_718] : memref<4x10x18xf32, #tpu.memory_space<vmem>>, vector<1x8x16xf32>
    %1388 = vector.shape_cast %1387 : vector<1x8x16xf32> to vector<8x16xf32>
    %1389 = vector.broadcast %1386 : f32 to vector<8x16xf32>
    %1390 = arith.mulf %1389, %1388 : vector<8x16xf32>
    %1391 = arith.addf %1385, %1390 : vector<8x16xf32>
    %c221 = arith.constant 221 : index
    %1392 = memref.load %arg3[%c221] : memref<288xf32, #tpu.memory_space<smem>>
    %c0_719 = arith.constant 0 : index
    %c1_720 = arith.constant 1 : index
    %c2_721 = arith.constant 2 : index
    %1393 = vector.load %arg6[%c0_719, %c1_720, %c2_721] : memref<4x10x18xf32, #tpu.memory_space<vmem>>, vector<1x8x16xf32>
    %1394 = vector.shape_cast %1393 : vector<1x8x16xf32> to vector<8x16xf32>
    %1395 = vector.broadcast %1392 : f32 to vector<8x16xf32>
    %1396 = arith.mulf %1395, %1394 : vector<8x16xf32>
    %1397 = arith.addf %1391, %1396 : vector<8x16xf32>
    %c222 = arith.constant 222 : index
    %1398 = memref.load %arg3[%c222] : memref<288xf32, #tpu.memory_space<smem>>
    %c0_722 = arith.constant 0 : index
    %c2_723 = arith.constant 2 : index
    %c0_724 = arith.constant 0 : index
    %1399 = vector.load %arg6[%c0_722, %c2_723, %c0_724] : memref<4x10x18xf32, #tpu.memory_space<vmem>>, vector<1x8x16xf32>
    %1400 = vector.shape_cast %1399 : vector<1x8x16xf32> to vector<8x16xf32>
    %1401 = vector.broadcast %1398 : f32 to vector<8x16xf32>
    %1402 = arith.mulf %1401, %1400 : vector<8x16xf32>
    %1403 = arith.addf %1397, %1402 : vector<8x16xf32>
    %c223 = arith.constant 223 : index
    %1404 = memref.load %arg3[%c223] : memref<288xf32, #tpu.memory_space<smem>>
    %c0_725 = arith.constant 0 : index
    %c2_726 = arith.constant 2 : index
    %c1_727 = arith.constant 1 : index
    %1405 = vector.load %arg6[%c0_725, %c2_726, %c1_727] : memref<4x10x18xf32, #tpu.memory_space<vmem>>, vector<1x8x16xf32>
    %1406 = vector.shape_cast %1405 : vector<1x8x16xf32> to vector<8x16xf32>
    %1407 = vector.broadcast %1404 : f32 to vector<8x16xf32>
    %1408 = arith.mulf %1407, %1406 : vector<8x16xf32>
    %1409 = arith.addf %1403, %1408 : vector<8x16xf32>
    %c224 = arith.constant 224 : index
    %1410 = memref.load %arg3[%c224] : memref<288xf32, #tpu.memory_space<smem>>
    %c0_728 = arith.constant 0 : index
    %c2_729 = arith.constant 2 : index
    %c2_730 = arith.constant 2 : index
    %1411 = vector.load %arg6[%c0_728, %c2_729, %c2_730] : memref<4x10x18xf32, #tpu.memory_space<vmem>>, vector<1x8x16xf32>
    %1412 = vector.shape_cast %1411 : vector<1x8x16xf32> to vector<8x16xf32>
    %1413 = vector.broadcast %1410 : f32 to vector<8x16xf32>
    %1414 = arith.mulf %1413, %1412 : vector<8x16xf32>
    %1415 = arith.addf %1409, %1414 : vector<8x16xf32>
    %c225 = arith.constant 225 : index
    %1416 = memref.load %arg3[%c225] : memref<288xf32, #tpu.memory_space<smem>>
    %c1_731 = arith.constant 1 : index
    %c0_732 = arith.constant 0 : index
    %c0_733 = arith.constant 0 : index
    %1417 = vector.load %arg6[%c1_731, %c0_732, %c0_733] : memref<4x10x18xf32, #tpu.memory_space<vmem>>, vector<1x8x16xf32>
    %1418 = vector.shape_cast %1417 : vector<1x8x16xf32> to vector<8x16xf32>
    %1419 = vector.broadcast %1416 : f32 to vector<8x16xf32>
    %1420 = arith.mulf %1419, %1418 : vector<8x16xf32>
    %1421 = arith.addf %1415, %1420 : vector<8x16xf32>
    %c226 = arith.constant 226 : index
    %1422 = memref.load %arg3[%c226] : memref<288xf32, #tpu.memory_space<smem>>
    %c1_734 = arith.constant 1 : index
    %c0_735 = arith.constant 0 : index
    %c1_736 = arith.constant 1 : index
    %1423 = vector.load %arg6[%c1_734, %c0_735, %c1_736] : memref<4x10x18xf32, #tpu.memory_space<vmem>>, vector<1x8x16xf32>
    %1424 = vector.shape_cast %1423 : vector<1x8x16xf32> to vector<8x16xf32>
    %1425 = vector.broadcast %1422 : f32 to vector<8x16xf32>
    %1426 = arith.mulf %1425, %1424 : vector<8x16xf32>
    %1427 = arith.addf %1421, %1426 : vector<8x16xf32>
    %c227 = arith.constant 227 : index
    %1428 = memref.load %arg3[%c227] : memref<288xf32, #tpu.memory_space<smem>>
    %c1_737 = arith.constant 1 : index
    %c0_738 = arith.constant 0 : index
    %c2_739 = arith.constant 2 : index
    %1429 = vector.load %arg6[%c1_737, %c0_738, %c2_739] : memref<4x10x18xf32, #tpu.memory_space<vmem>>, vector<1x8x16xf32>
    %1430 = vector.shape_cast %1429 : vector<1x8x16xf32> to vector<8x16xf32>
    %1431 = vector.broadcast %1428 : f32 to vector<8x16xf32>
    %1432 = arith.mulf %1431, %1430 : vector<8x16xf32>
    %1433 = arith.addf %1427, %1432 : vector<8x16xf32>
    %c228 = arith.constant 228 : index
    %1434 = memref.load %arg3[%c228] : memref<288xf32, #tpu.memory_space<smem>>
    %c1_740 = arith.constant 1 : index
    %c1_741 = arith.constant 1 : index
    %c0_742 = arith.constant 0 : index
    %1435 = vector.load %arg6[%c1_740, %c1_741, %c0_742] : memref<4x10x18xf32, #tpu.memory_space<vmem>>, vector<1x8x16xf32>
    %1436 = vector.shape_cast %1435 : vector<1x8x16xf32> to vector<8x16xf32>
    %1437 = vector.broadcast %1434 : f32 to vector<8x16xf32>
    %1438 = arith.mulf %1437, %1436 : vector<8x16xf32>
    %1439 = arith.addf %1433, %1438 : vector<8x16xf32>
    %c229 = arith.constant 229 : index
    %1440 = memref.load %arg3[%c229] : memref<288xf32, #tpu.memory_space<smem>>
    %c1_743 = arith.constant 1 : index
    %c1_744 = arith.constant 1 : index
    %c1_745 = arith.constant 1 : index
    %1441 = vector.load %arg6[%c1_743, %c1_744, %c1_745] : memref<4x10x18xf32, #tpu.memory_space<vmem>>, vector<1x8x16xf32>
    %1442 = vector.shape_cast %1441 : vector<1x8x16xf32> to vector<8x16xf32>
    %1443 = vector.broadcast %1440 : f32 to vector<8x16xf32>
    %1444 = arith.mulf %1443, %1442 : vector<8x16xf32>
    %1445 = arith.addf %1439, %1444 : vector<8x16xf32>
    %c230 = arith.constant 230 : index
    %1446 = memref.load %arg3[%c230] : memref<288xf32, #tpu.memory_space<smem>>
    %c1_746 = arith.constant 1 : index
    %c1_747 = arith.constant 1 : index
    %c2_748 = arith.constant 2 : index
    %1447 = vector.load %arg6[%c1_746, %c1_747, %c2_748] : memref<4x10x18xf32, #tpu.memory_space<vmem>>, vector<1x8x16xf32>
    %1448 = vector.shape_cast %1447 : vector<1x8x16xf32> to vector<8x16xf32>
    %1449 = vector.broadcast %1446 : f32 to vector<8x16xf32>
    %1450 = arith.mulf %1449, %1448 : vector<8x16xf32>
    %1451 = arith.addf %1445, %1450 : vector<8x16xf32>
    %c231 = arith.constant 231 : index
    %1452 = memref.load %arg3[%c231] : memref<288xf32, #tpu.memory_space<smem>>
    %c1_749 = arith.constant 1 : index
    %c2_750 = arith.constant 2 : index
    %c0_751 = arith.constant 0 : index
    %1453 = vector.load %arg6[%c1_749, %c2_750, %c0_751] : memref<4x10x18xf32, #tpu.memory_space<vmem>>, vector<1x8x16xf32>
    %1454 = vector.shape_cast %1453 : vector<1x8x16xf32> to vector<8x16xf32>
    %1455 = vector.broadcast %1452 : f32 to vector<8x16xf32>
    %1456 = arith.mulf %1455, %1454 : vector<8x16xf32>
    %1457 = arith.addf %1451, %1456 : vector<8x16xf32>
    %c232 = arith.constant 232 : index
    %1458 = memref.load %arg3[%c232] : memref<288xf32, #tpu.memory_space<smem>>
    %c1_752 = arith.constant 1 : index
    %c2_753 = arith.constant 2 : index
    %c1_754 = arith.constant 1 : index
    %1459 = vector.load %arg6[%c1_752, %c2_753, %c1_754] : memref<4x10x18xf32, #tpu.memory_space<vmem>>, vector<1x8x16xf32>
    %1460 = vector.shape_cast %1459 : vector<1x8x16xf32> to vector<8x16xf32>
    %1461 = vector.broadcast %1458 : f32 to vector<8x16xf32>
    %1462 = arith.mulf %1461, %1460 : vector<8x16xf32>
    %1463 = arith.addf %1457, %1462 : vector<8x16xf32>
    %c233 = arith.constant 233 : index
    %1464 = memref.load %arg3[%c233] : memref<288xf32, #tpu.memory_space<smem>>
    %c1_755 = arith.constant 1 : index
    %c2_756 = arith.constant 2 : index
    %c2_757 = arith.constant 2 : index
    %1465 = vector.load %arg6[%c1_755, %c2_756, %c2_757] : memref<4x10x18xf32, #tpu.memory_space<vmem>>, vector<1x8x16xf32>
    %1466 = vector.shape_cast %1465 : vector<1x8x16xf32> to vector<8x16xf32>
    %1467 = vector.broadcast %1464 : f32 to vector<8x16xf32>
    %1468 = arith.mulf %1467, %1466 : vector<8x16xf32>
    %1469 = arith.addf %1463, %1468 : vector<8x16xf32>
    %c234 = arith.constant 234 : index
    %1470 = memref.load %arg3[%c234] : memref<288xf32, #tpu.memory_space<smem>>
    %c2_758 = arith.constant 2 : index
    %c0_759 = arith.constant 0 : index
    %c0_760 = arith.constant 0 : index
    %1471 = vector.load %arg6[%c2_758, %c0_759, %c0_760] : memref<4x10x18xf32, #tpu.memory_space<vmem>>, vector<1x8x16xf32>
    %1472 = vector.shape_cast %1471 : vector<1x8x16xf32> to vector<8x16xf32>
    %1473 = vector.broadcast %1470 : f32 to vector<8x16xf32>
    %1474 = arith.mulf %1473, %1472 : vector<8x16xf32>
    %1475 = arith.addf %1469, %1474 : vector<8x16xf32>
    %c235 = arith.constant 235 : index
    %1476 = memref.load %arg3[%c235] : memref<288xf32, #tpu.memory_space<smem>>
    %c2_761 = arith.constant 2 : index
    %c0_762 = arith.constant 0 : index
    %c1_763 = arith.constant 1 : index
    %1477 = vector.load %arg6[%c2_761, %c0_762, %c1_763] : memref<4x10x18xf32, #tpu.memory_space<vmem>>, vector<1x8x16xf32>
    %1478 = vector.shape_cast %1477 : vector<1x8x16xf32> to vector<8x16xf32>
    %1479 = vector.broadcast %1476 : f32 to vector<8x16xf32>
    %1480 = arith.mulf %1479, %1478 : vector<8x16xf32>
    %1481 = arith.addf %1475, %1480 : vector<8x16xf32>
    %c236 = arith.constant 236 : index
    %1482 = memref.load %arg3[%c236] : memref<288xf32, #tpu.memory_space<smem>>
    %c2_764 = arith.constant 2 : index
    %c0_765 = arith.constant 0 : index
    %c2_766 = arith.constant 2 : index
    %1483 = vector.load %arg6[%c2_764, %c0_765, %c2_766] : memref<4x10x18xf32, #tpu.memory_space<vmem>>, vector<1x8x16xf32>
    %1484 = vector.shape_cast %1483 : vector<1x8x16xf32> to vector<8x16xf32>
    %1485 = vector.broadcast %1482 : f32 to vector<8x16xf32>
    %1486 = arith.mulf %1485, %1484 : vector<8x16xf32>
    %1487 = arith.addf %1481, %1486 : vector<8x16xf32>
    %c237 = arith.constant 237 : index
    %1488 = memref.load %arg3[%c237] : memref<288xf32, #tpu.memory_space<smem>>
    %c2_767 = arith.constant 2 : index
    %c1_768 = arith.constant 1 : index
    %c0_769 = arith.constant 0 : index
    %1489 = vector.load %arg6[%c2_767, %c1_768, %c0_769] : memref<4x10x18xf32, #tpu.memory_space<vmem>>, vector<1x8x16xf32>
    %1490 = vector.shape_cast %1489 : vector<1x8x16xf32> to vector<8x16xf32>
    %1491 = vector.broadcast %1488 : f32 to vector<8x16xf32>
    %1492 = arith.mulf %1491, %1490 : vector<8x16xf32>
    %1493 = arith.addf %1487, %1492 : vector<8x16xf32>
    %c238 = arith.constant 238 : index
    %1494 = memref.load %arg3[%c238] : memref<288xf32, #tpu.memory_space<smem>>
    %c2_770 = arith.constant 2 : index
    %c1_771 = arith.constant 1 : index
    %c1_772 = arith.constant 1 : index
    %1495 = vector.load %arg6[%c2_770, %c1_771, %c1_772] : memref<4x10x18xf32, #tpu.memory_space<vmem>>, vector<1x8x16xf32>
    %1496 = vector.shape_cast %1495 : vector<1x8x16xf32> to vector<8x16xf32>
    %1497 = vector.broadcast %1494 : f32 to vector<8x16xf32>
    %1498 = arith.mulf %1497, %1496 : vector<8x16xf32>
    %1499 = arith.addf %1493, %1498 : vector<8x16xf32>
    %c239 = arith.constant 239 : index
    %1500 = memref.load %arg3[%c239] : memref<288xf32, #tpu.memory_space<smem>>
    %c2_773 = arith.constant 2 : index
    %c1_774 = arith.constant 1 : index
    %c2_775 = arith.constant 2 : index
    %1501 = vector.load %arg6[%c2_773, %c1_774, %c2_775] : memref<4x10x18xf32, #tpu.memory_space<vmem>>, vector<1x8x16xf32>
    %1502 = vector.shape_cast %1501 : vector<1x8x16xf32> to vector<8x16xf32>
    %1503 = vector.broadcast %1500 : f32 to vector<8x16xf32>
    %1504 = arith.mulf %1503, %1502 : vector<8x16xf32>
    %1505 = arith.addf %1499, %1504 : vector<8x16xf32>
    %c240 = arith.constant 240 : index
    %1506 = memref.load %arg3[%c240] : memref<288xf32, #tpu.memory_space<smem>>
    %c2_776 = arith.constant 2 : index
    %c2_777 = arith.constant 2 : index
    %c0_778 = arith.constant 0 : index
    %1507 = vector.load %arg6[%c2_776, %c2_777, %c0_778] : memref<4x10x18xf32, #tpu.memory_space<vmem>>, vector<1x8x16xf32>
    %1508 = vector.shape_cast %1507 : vector<1x8x16xf32> to vector<8x16xf32>
    %1509 = vector.broadcast %1506 : f32 to vector<8x16xf32>
    %1510 = arith.mulf %1509, %1508 : vector<8x16xf32>
    %1511 = arith.addf %1505, %1510 : vector<8x16xf32>
    %c241 = arith.constant 241 : index
    %1512 = memref.load %arg3[%c241] : memref<288xf32, #tpu.memory_space<smem>>
    %c2_779 = arith.constant 2 : index
    %c2_780 = arith.constant 2 : index
    %c1_781 = arith.constant 1 : index
    %1513 = vector.load %arg6[%c2_779, %c2_780, %c1_781] : memref<4x10x18xf32, #tpu.memory_space<vmem>>, vector<1x8x16xf32>
    %1514 = vector.shape_cast %1513 : vector<1x8x16xf32> to vector<8x16xf32>
    %1515 = vector.broadcast %1512 : f32 to vector<8x16xf32>
    %1516 = arith.mulf %1515, %1514 : vector<8x16xf32>
    %1517 = arith.addf %1511, %1516 : vector<8x16xf32>
    %c242 = arith.constant 242 : index
    %1518 = memref.load %arg3[%c242] : memref<288xf32, #tpu.memory_space<smem>>
    %c2_782 = arith.constant 2 : index
    %c2_783 = arith.constant 2 : index
    %c2_784 = arith.constant 2 : index
    %1519 = vector.load %arg6[%c2_782, %c2_783, %c2_784] : memref<4x10x18xf32, #tpu.memory_space<vmem>>, vector<1x8x16xf32>
    %1520 = vector.shape_cast %1519 : vector<1x8x16xf32> to vector<8x16xf32>
    %1521 = vector.broadcast %1518 : f32 to vector<8x16xf32>
    %1522 = arith.mulf %1521, %1520 : vector<8x16xf32>
    %1523 = arith.addf %1517, %1522 : vector<8x16xf32>
    %c243 = arith.constant 243 : index
    %1524 = memref.load %arg3[%c243] : memref<288xf32, #tpu.memory_space<smem>>
    %c3_785 = arith.constant 3 : index
    %c0_786 = arith.constant 0 : index
    %c0_787 = arith.constant 0 : index
    %1525 = vector.load %arg6[%c3_785, %c0_786, %c0_787] : memref<4x10x18xf32, #tpu.memory_space<vmem>>, vector<1x8x16xf32>
    %1526 = vector.shape_cast %1525 : vector<1x8x16xf32> to vector<8x16xf32>
    %1527 = vector.broadcast %1524 : f32 to vector<8x16xf32>
    %1528 = arith.mulf %1527, %1526 : vector<8x16xf32>
    %1529 = arith.addf %1523, %1528 : vector<8x16xf32>
    %c244 = arith.constant 244 : index
    %1530 = memref.load %arg3[%c244] : memref<288xf32, #tpu.memory_space<smem>>
    %c3_788 = arith.constant 3 : index
    %c0_789 = arith.constant 0 : index
    %c1_790 = arith.constant 1 : index
    %1531 = vector.load %arg6[%c3_788, %c0_789, %c1_790] : memref<4x10x18xf32, #tpu.memory_space<vmem>>, vector<1x8x16xf32>
    %1532 = vector.shape_cast %1531 : vector<1x8x16xf32> to vector<8x16xf32>
    %1533 = vector.broadcast %1530 : f32 to vector<8x16xf32>
    %1534 = arith.mulf %1533, %1532 : vector<8x16xf32>
    %1535 = arith.addf %1529, %1534 : vector<8x16xf32>
    %c245 = arith.constant 245 : index
    %1536 = memref.load %arg3[%c245] : memref<288xf32, #tpu.memory_space<smem>>
    %c3_791 = arith.constant 3 : index
    %c0_792 = arith.constant 0 : index
    %c2_793 = arith.constant 2 : index
    %1537 = vector.load %arg6[%c3_791, %c0_792, %c2_793] : memref<4x10x18xf32, #tpu.memory_space<vmem>>, vector<1x8x16xf32>
    %1538 = vector.shape_cast %1537 : vector<1x8x16xf32> to vector<8x16xf32>
    %1539 = vector.broadcast %1536 : f32 to vector<8x16xf32>
    %1540 = arith.mulf %1539, %1538 : vector<8x16xf32>
    %1541 = arith.addf %1535, %1540 : vector<8x16xf32>
    %c246 = arith.constant 246 : index
    %1542 = memref.load %arg3[%c246] : memref<288xf32, #tpu.memory_space<smem>>
    %c3_794 = arith.constant 3 : index
    %c1_795 = arith.constant 1 : index
    %c0_796 = arith.constant 0 : index
    %1543 = vector.load %arg6[%c3_794, %c1_795, %c0_796] : memref<4x10x18xf32, #tpu.memory_space<vmem>>, vector<1x8x16xf32>
    %1544 = vector.shape_cast %1543 : vector<1x8x16xf32> to vector<8x16xf32>
    %1545 = vector.broadcast %1542 : f32 to vector<8x16xf32>
    %1546 = arith.mulf %1545, %1544 : vector<8x16xf32>
    %1547 = arith.addf %1541, %1546 : vector<8x16xf32>
    %c247 = arith.constant 247 : index
    %1548 = memref.load %arg3[%c247] : memref<288xf32, #tpu.memory_space<smem>>
    %c3_797 = arith.constant 3 : index
    %c1_798 = arith.constant 1 : index
    %c1_799 = arith.constant 1 : index
    %1549 = vector.load %arg6[%c3_797, %c1_798, %c1_799] : memref<4x10x18xf32, #tpu.memory_space<vmem>>, vector<1x8x16xf32>
    %1550 = vector.shape_cast %1549 : vector<1x8x16xf32> to vector<8x16xf32>
    %1551 = vector.broadcast %1548 : f32 to vector<8x16xf32>
    %1552 = arith.mulf %1551, %1550 : vector<8x16xf32>
    %1553 = arith.addf %1547, %1552 : vector<8x16xf32>
    %c248 = arith.constant 248 : index
    %1554 = memref.load %arg3[%c248] : memref<288xf32, #tpu.memory_space<smem>>
    %c3_800 = arith.constant 3 : index
    %c1_801 = arith.constant 1 : index
    %c2_802 = arith.constant 2 : index
    %1555 = vector.load %arg6[%c3_800, %c1_801, %c2_802] : memref<4x10x18xf32, #tpu.memory_space<vmem>>, vector<1x8x16xf32>
    %1556 = vector.shape_cast %1555 : vector<1x8x16xf32> to vector<8x16xf32>
    %1557 = vector.broadcast %1554 : f32 to vector<8x16xf32>
    %1558 = arith.mulf %1557, %1556 : vector<8x16xf32>
    %1559 = arith.addf %1553, %1558 : vector<8x16xf32>
    %c249 = arith.constant 249 : index
    %1560 = memref.load %arg3[%c249] : memref<288xf32, #tpu.memory_space<smem>>
    %c3_803 = arith.constant 3 : index
    %c2_804 = arith.constant 2 : index
    %c0_805 = arith.constant 0 : index
    %1561 = vector.load %arg6[%c3_803, %c2_804, %c0_805] : memref<4x10x18xf32, #tpu.memory_space<vmem>>, vector<1x8x16xf32>
    %1562 = vector.shape_cast %1561 : vector<1x8x16xf32> to vector<8x16xf32>
    %1563 = vector.broadcast %1560 : f32 to vector<8x16xf32>
    %1564 = arith.mulf %1563, %1562 : vector<8x16xf32>
    %1565 = arith.addf %1559, %1564 : vector<8x16xf32>
    %c250 = arith.constant 250 : index
    %1566 = memref.load %arg3[%c250] : memref<288xf32, #tpu.memory_space<smem>>
    %c3_806 = arith.constant 3 : index
    %c2_807 = arith.constant 2 : index
    %c1_808 = arith.constant 1 : index
    %1567 = vector.load %arg6[%c3_806, %c2_807, %c1_808] : memref<4x10x18xf32, #tpu.memory_space<vmem>>, vector<1x8x16xf32>
    %1568 = vector.shape_cast %1567 : vector<1x8x16xf32> to vector<8x16xf32>
    %1569 = vector.broadcast %1566 : f32 to vector<8x16xf32>
    %1570 = arith.mulf %1569, %1568 : vector<8x16xf32>
    %1571 = arith.addf %1565, %1570 : vector<8x16xf32>
    %c251 = arith.constant 251 : index
    %1572 = memref.load %arg3[%c251] : memref<288xf32, #tpu.memory_space<smem>>
    %c3_809 = arith.constant 3 : index
    %c2_810 = arith.constant 2 : index
    %c2_811 = arith.constant 2 : index
    %1573 = vector.load %arg6[%c3_809, %c2_810, %c2_811] : memref<4x10x18xf32, #tpu.memory_space<vmem>>, vector<1x8x16xf32>
    %1574 = vector.shape_cast %1573 : vector<1x8x16xf32> to vector<8x16xf32>
    %1575 = vector.broadcast %1572 : f32 to vector<8x16xf32>
    %1576 = arith.mulf %1575, %1574 : vector<8x16xf32>
    %1577 = arith.addf %1571, %1576 : vector<8x16xf32>
    %cst_812 = arith.constant 0.000000e+00 : f32
    %1578 = vector.broadcast %cst_812 : f32 to vector<8x16xf32>
    %1579 = arith.maximumf %1577, %1578 : vector<8x16xf32>
    %c0_813 = arith.constant 0 : index
    %c6_814 = arith.constant 6 : index
    %c0_815 = arith.constant 0 : index
    %c0_816 = arith.constant 0 : index
    %1580 = vector.load %arg5[%c0_813, %c6_814, %c0_815, %c0_816] : memref<1x8x8x16xf32, #tpu.memory_space<vmem>>, vector<1x1x8x16xf32>
    %1581 = vector.shape_cast %1580 : vector<1x1x8x16xf32> to vector<8x16xf32>
    %1582 = vector.shape_cast %1579 : vector<8x16xf32> to vector<1x1x8x16xf32>
    tpu.vector_store %arg5[%c0_813, %c6_814, %c0_815, %c0_816], %1582 {strides = array<i32>} : memref<1x8x8x16xf32, #tpu.memory_space<vmem>>, vector<1x1x8x16xf32>,
    %c7_817 = arith.constant 7 : index
    %1583 = memref.load %arg4[%c7_817] : memref<8xf32, #tpu.memory_space<smem>>
    %1584 = vector.broadcast %1583 : f32 to vector<8x16xf32>
    %c252 = arith.constant 252 : index
    %1585 = memref.load %arg3[%c252] : memref<288xf32, #tpu.memory_space<smem>>
    %c0_818 = arith.constant 0 : index
    %c0_819 = arith.constant 0 : index
    %c0_820 = arith.constant 0 : index
    %1586 = vector.load %arg6[%c0_818, %c0_819, %c0_820] : memref<4x10x18xf32, #tpu.memory_space<vmem>>, vector<1x8x16xf32>
    %1587 = vector.shape_cast %1586 : vector<1x8x16xf32> to vector<8x16xf32>
    %1588 = vector.broadcast %1585 : f32 to vector<8x16xf32>
    %1589 = arith.mulf %1588, %1587 : vector<8x16xf32>
    %1590 = arith.addf %1584, %1589 : vector<8x16xf32>
    %c253 = arith.constant 253 : index
    %1591 = memref.load %arg3[%c253] : memref<288xf32, #tpu.memory_space<smem>>
    %c0_821 = arith.constant 0 : index
    %c0_822 = arith.constant 0 : index
    %c1_823 = arith.constant 1 : index
    %1592 = vector.load %arg6[%c0_821, %c0_822, %c1_823] : memref<4x10x18xf32, #tpu.memory_space<vmem>>, vector<1x8x16xf32>
    %1593 = vector.shape_cast %1592 : vector<1x8x16xf32> to vector<8x16xf32>
    %1594 = vector.broadcast %1591 : f32 to vector<8x16xf32>
    %1595 = arith.mulf %1594, %1593 : vector<8x16xf32>
    %1596 = arith.addf %1590, %1595 : vector<8x16xf32>
    %c254 = arith.constant 254 : index
    %1597 = memref.load %arg3[%c254] : memref<288xf32, #tpu.memory_space<smem>>
    %c0_824 = arith.constant 0 : index
    %c0_825 = arith.constant 0 : index
    %c2_826 = arith.constant 2 : index
    %1598 = vector.load %arg6[%c0_824, %c0_825, %c2_826] : memref<4x10x18xf32, #tpu.memory_space<vmem>>, vector<1x8x16xf32>
    %1599 = vector.shape_cast %1598 : vector<1x8x16xf32> to vector<8x16xf32>
    %1600 = vector.broadcast %1597 : f32 to vector<8x16xf32>
    %1601 = arith.mulf %1600, %1599 : vector<8x16xf32>
    %1602 = arith.addf %1596, %1601 : vector<8x16xf32>
    %c255 = arith.constant 255 : index
    %1603 = memref.load %arg3[%c255] : memref<288xf32, #tpu.memory_space<smem>>
    %c0_827 = arith.constant 0 : index
    %c1_828 = arith.constant 1 : index
    %c0_829 = arith.constant 0 : index
    %1604 = vector.load %arg6[%c0_827, %c1_828, %c0_829] : memref<4x10x18xf32, #tpu.memory_space<vmem>>, vector<1x8x16xf32>
    %1605 = vector.shape_cast %1604 : vector<1x8x16xf32> to vector<8x16xf32>
    %1606 = vector.broadcast %1603 : f32 to vector<8x16xf32>
    %1607 = arith.mulf %1606, %1605 : vector<8x16xf32>
    %1608 = arith.addf %1602, %1607 : vector<8x16xf32>
    %c256 = arith.constant 256 : index
    %1609 = memref.load %arg3[%c256] : memref<288xf32, #tpu.memory_space<smem>>
    %c0_830 = arith.constant 0 : index
    %c1_831 = arith.constant 1 : index
    %c1_832 = arith.constant 1 : index
    %1610 = vector.load %arg6[%c0_830, %c1_831, %c1_832] : memref<4x10x18xf32, #tpu.memory_space<vmem>>, vector<1x8x16xf32>
    %1611 = vector.shape_cast %1610 : vector<1x8x16xf32> to vector<8x16xf32>
    %1612 = vector.broadcast %1609 : f32 to vector<8x16xf32>
    %1613 = arith.mulf %1612, %1611 : vector<8x16xf32>
    %1614 = arith.addf %1608, %1613 : vector<8x16xf32>
    %c257 = arith.constant 257 : index
    %1615 = memref.load %arg3[%c257] : memref<288xf32, #tpu.memory_space<smem>>
    %c0_833 = arith.constant 0 : index
    %c1_834 = arith.constant 1 : index
    %c2_835 = arith.constant 2 : index
    %1616 = vector.load %arg6[%c0_833, %c1_834, %c2_835] : memref<4x10x18xf32, #tpu.memory_space<vmem>>, vector<1x8x16xf32>
    %1617 = vector.shape_cast %1616 : vector<1x8x16xf32> to vector<8x16xf32>
    %1618 = vector.broadcast %1615 : f32 to vector<8x16xf32>
    %1619 = arith.mulf %1618, %1617 : vector<8x16xf32>
    %1620 = arith.addf %1614, %1619 : vector<8x16xf32>
    %c258 = arith.constant 258 : index
    %1621 = memref.load %arg3[%c258] : memref<288xf32, #tpu.memory_space<smem>>
    %c0_836 = arith.constant 0 : index
    %c2_837 = arith.constant 2 : index
    %c0_838 = arith.constant 0 : index
    %1622 = vector.load %arg6[%c0_836, %c2_837, %c0_838] : memref<4x10x18xf32, #tpu.memory_space<vmem>>, vector<1x8x16xf32>
    %1623 = vector.shape_cast %1622 : vector<1x8x16xf32> to vector<8x16xf32>
    %1624 = vector.broadcast %1621 : f32 to vector<8x16xf32>
    %1625 = arith.mulf %1624, %1623 : vector<8x16xf32>
    %1626 = arith.addf %1620, %1625 : vector<8x16xf32>
    %c259 = arith.constant 259 : index
    %1627 = memref.load %arg3[%c259] : memref<288xf32, #tpu.memory_space<smem>>
    %c0_839 = arith.constant 0 : index
    %c2_840 = arith.constant 2 : index
    %c1_841 = arith.constant 1 : index
    %1628 = vector.load %arg6[%c0_839, %c2_840, %c1_841] : memref<4x10x18xf32, #tpu.memory_space<vmem>>, vector<1x8x16xf32>
    %1629 = vector.shape_cast %1628 : vector<1x8x16xf32> to vector<8x16xf32>
    %1630 = vector.broadcast %1627 : f32 to vector<8x16xf32>
    %1631 = arith.mulf %1630, %1629 : vector<8x16xf32>
    %1632 = arith.addf %1626, %1631 : vector<8x16xf32>
    %c260 = arith.constant 260 : index
    %1633 = memref.load %arg3[%c260] : memref<288xf32, #tpu.memory_space<smem>>
    %c0_842 = arith.constant 0 : index
    %c2_843 = arith.constant 2 : index
    %c2_844 = arith.constant 2 : index
    %1634 = vector.load %arg6[%c0_842, %c2_843, %c2_844] : memref<4x10x18xf32, #tpu.memory_space<vmem>>, vector<1x8x16xf32>
    %1635 = vector.shape_cast %1634 : vector<1x8x16xf32> to vector<8x16xf32>
    %1636 = vector.broadcast %1633 : f32 to vector<8x16xf32>
    %1637 = arith.mulf %1636, %1635 : vector<8x16xf32>
    %1638 = arith.addf %1632, %1637 : vector<8x16xf32>
    %c261 = arith.constant 261 : index
    %1639 = memref.load %arg3[%c261] : memref<288xf32, #tpu.memory_space<smem>>
    %c1_845 = arith.constant 1 : index
    %c0_846 = arith.constant 0 : index
    %c0_847 = arith.constant 0 : index
    %1640 = vector.load %arg6[%c1_845, %c0_846, %c0_847] : memref<4x10x18xf32, #tpu.memory_space<vmem>>, vector<1x8x16xf32>
    %1641 = vector.shape_cast %1640 : vector<1x8x16xf32> to vector<8x16xf32>
    %1642 = vector.broadcast %1639 : f32 to vector<8x16xf32>
    %1643 = arith.mulf %1642, %1641 : vector<8x16xf32>
    %1644 = arith.addf %1638, %1643 : vector<8x16xf32>
    %c262 = arith.constant 262 : index
    %1645 = memref.load %arg3[%c262] : memref<288xf32, #tpu.memory_space<smem>>
    %c1_848 = arith.constant 1 : index
    %c0_849 = arith.constant 0 : index
    %c1_850 = arith.constant 1 : index
    %1646 = vector.load %arg6[%c1_848, %c0_849, %c1_850] : memref<4x10x18xf32, #tpu.memory_space<vmem>>, vector<1x8x16xf32>
    %1647 = vector.shape_cast %1646 : vector<1x8x16xf32> to vector<8x16xf32>
    %1648 = vector.broadcast %1645 : f32 to vector<8x16xf32>
    %1649 = arith.mulf %1648, %1647 : vector<8x16xf32>
    %1650 = arith.addf %1644, %1649 : vector<8x16xf32>
    %c263 = arith.constant 263 : index
    %1651 = memref.load %arg3[%c263] : memref<288xf32, #tpu.memory_space<smem>>
    %c1_851 = arith.constant 1 : index
    %c0_852 = arith.constant 0 : index
    %c2_853 = arith.constant 2 : index
    %1652 = vector.load %arg6[%c1_851, %c0_852, %c2_853] : memref<4x10x18xf32, #tpu.memory_space<vmem>>, vector<1x8x16xf32>
    %1653 = vector.shape_cast %1652 : vector<1x8x16xf32> to vector<8x16xf32>
    %1654 = vector.broadcast %1651 : f32 to vector<8x16xf32>
    %1655 = arith.mulf %1654, %1653 : vector<8x16xf32>
    %1656 = arith.addf %1650, %1655 : vector<8x16xf32>
    %c264 = arith.constant 264 : index
    %1657 = memref.load %arg3[%c264] : memref<288xf32, #tpu.memory_space<smem>>
    %c1_854 = arith.constant 1 : index
    %c1_855 = arith.constant 1 : index
    %c0_856 = arith.constant 0 : index
    %1658 = vector.load %arg6[%c1_854, %c1_855, %c0_856] : memref<4x10x18xf32, #tpu.memory_space<vmem>>, vector<1x8x16xf32>
    %1659 = vector.shape_cast %1658 : vector<1x8x16xf32> to vector<8x16xf32>
    %1660 = vector.broadcast %1657 : f32 to vector<8x16xf32>
    %1661 = arith.mulf %1660, %1659 : vector<8x16xf32>
    %1662 = arith.addf %1656, %1661 : vector<8x16xf32>
    %c265 = arith.constant 265 : index
    %1663 = memref.load %arg3[%c265] : memref<288xf32, #tpu.memory_space<smem>>
    %c1_857 = arith.constant 1 : index
    %c1_858 = arith.constant 1 : index
    %c1_859 = arith.constant 1 : index
    %1664 = vector.load %arg6[%c1_857, %c1_858, %c1_859] : memref<4x10x18xf32, #tpu.memory_space<vmem>>, vector<1x8x16xf32>
    %1665 = vector.shape_cast %1664 : vector<1x8x16xf32> to vector<8x16xf32>
    %1666 = vector.broadcast %1663 : f32 to vector<8x16xf32>
    %1667 = arith.mulf %1666, %1665 : vector<8x16xf32>
    %1668 = arith.addf %1662, %1667 : vector<8x16xf32>
    %c266 = arith.constant 266 : index
    %1669 = memref.load %arg3[%c266] : memref<288xf32, #tpu.memory_space<smem>>
    %c1_860 = arith.constant 1 : index
    %c1_861 = arith.constant 1 : index
    %c2_862 = arith.constant 2 : index
    %1670 = vector.load %arg6[%c1_860, %c1_861, %c2_862] : memref<4x10x18xf32, #tpu.memory_space<vmem>>, vector<1x8x16xf32>
    %1671 = vector.shape_cast %1670 : vector<1x8x16xf32> to vector<8x16xf32>
    %1672 = vector.broadcast %1669 : f32 to vector<8x16xf32>
    %1673 = arith.mulf %1672, %1671 : vector<8x16xf32>
    %1674 = arith.addf %1668, %1673 : vector<8x16xf32>
    %c267 = arith.constant 267 : index
    %1675 = memref.load %arg3[%c267] : memref<288xf32, #tpu.memory_space<smem>>
    %c1_863 = arith.constant 1 : index
    %c2_864 = arith.constant 2 : index
    %c0_865 = arith.constant 0 : index
    %1676 = vector.load %arg6[%c1_863, %c2_864, %c0_865] : memref<4x10x18xf32, #tpu.memory_space<vmem>>, vector<1x8x16xf32>
    %1677 = vector.shape_cast %1676 : vector<1x8x16xf32> to vector<8x16xf32>
    %1678 = vector.broadcast %1675 : f32 to vector<8x16xf32>
    %1679 = arith.mulf %1678, %1677 : vector<8x16xf32>
    %1680 = arith.addf %1674, %1679 : vector<8x16xf32>
    %c268 = arith.constant 268 : index
    %1681 = memref.load %arg3[%c268] : memref<288xf32, #tpu.memory_space<smem>>
    %c1_866 = arith.constant 1 : index
    %c2_867 = arith.constant 2 : index
    %c1_868 = arith.constant 1 : index
    %1682 = vector.load %arg6[%c1_866, %c2_867, %c1_868] : memref<4x10x18xf32, #tpu.memory_space<vmem>>, vector<1x8x16xf32>
    %1683 = vector.shape_cast %1682 : vector<1x8x16xf32> to vector<8x16xf32>
    %1684 = vector.broadcast %1681 : f32 to vector<8x16xf32>
    %1685 = arith.mulf %1684, %1683 : vector<8x16xf32>
    %1686 = arith.addf %1680, %1685 : vector<8x16xf32>
    %c269 = arith.constant 269 : index
    %1687 = memref.load %arg3[%c269] : memref<288xf32, #tpu.memory_space<smem>>
    %c1_869 = arith.constant 1 : index
    %c2_870 = arith.constant 2 : index
    %c2_871 = arith.constant 2 : index
    %1688 = vector.load %arg6[%c1_869, %c2_870, %c2_871] : memref<4x10x18xf32, #tpu.memory_space<vmem>>, vector<1x8x16xf32>
    %1689 = vector.shape_cast %1688 : vector<1x8x16xf32> to vector<8x16xf32>
    %1690 = vector.broadcast %1687 : f32 to vector<8x16xf32>
    %1691 = arith.mulf %1690, %1689 : vector<8x16xf32>
    %1692 = arith.addf %1686, %1691 : vector<8x16xf32>
    %c270 = arith.constant 270 : index
    %1693 = memref.load %arg3[%c270] : memref<288xf32, #tpu.memory_space<smem>>
    %c2_872 = arith.constant 2 : index
    %c0_873 = arith.constant 0 : index
    %c0_874 = arith.constant 0 : index
    %1694 = vector.load %arg6[%c2_872, %c0_873, %c0_874] : memref<4x10x18xf32, #tpu.memory_space<vmem>>, vector<1x8x16xf32>
    %1695 = vector.shape_cast %1694 : vector<1x8x16xf32> to vector<8x16xf32>
    %1696 = vector.broadcast %1693 : f32 to vector<8x16xf32>
    %1697 = arith.mulf %1696, %1695 : vector<8x16xf32>
    %1698 = arith.addf %1692, %1697 : vector<8x16xf32>
    %c271 = arith.constant 271 : index
    %1699 = memref.load %arg3[%c271] : memref<288xf32, #tpu.memory_space<smem>>
    %c2_875 = arith.constant 2 : index
    %c0_876 = arith.constant 0 : index
    %c1_877 = arith.constant 1 : index
    %1700 = vector.load %arg6[%c2_875, %c0_876, %c1_877] : memref<4x10x18xf32, #tpu.memory_space<vmem>>, vector<1x8x16xf32>
    %1701 = vector.shape_cast %1700 : vector<1x8x16xf32> to vector<8x16xf32>
    %1702 = vector.broadcast %1699 : f32 to vector<8x16xf32>
    %1703 = arith.mulf %1702, %1701 : vector<8x16xf32>
    %1704 = arith.addf %1698, %1703 : vector<8x16xf32>
    %c272 = arith.constant 272 : index
    %1705 = memref.load %arg3[%c272] : memref<288xf32, #tpu.memory_space<smem>>
    %c2_878 = arith.constant 2 : index
    %c0_879 = arith.constant 0 : index
    %c2_880 = arith.constant 2 : index
    %1706 = vector.load %arg6[%c2_878, %c0_879, %c2_880] : memref<4x10x18xf32, #tpu.memory_space<vmem>>, vector<1x8x16xf32>
    %1707 = vector.shape_cast %1706 : vector<1x8x16xf32> to vector<8x16xf32>
    %1708 = vector.broadcast %1705 : f32 to vector<8x16xf32>
    %1709 = arith.mulf %1708, %1707 : vector<8x16xf32>
    %1710 = arith.addf %1704, %1709 : vector<8x16xf32>
    %c273 = arith.constant 273 : index
    %1711 = memref.load %arg3[%c273] : memref<288xf32, #tpu.memory_space<smem>>
    %c2_881 = arith.constant 2 : index
    %c1_882 = arith.constant 1 : index
    %c0_883 = arith.constant 0 : index
    %1712 = vector.load %arg6[%c2_881, %c1_882, %c0_883] : memref<4x10x18xf32, #tpu.memory_space<vmem>>, vector<1x8x16xf32>
    %1713 = vector.shape_cast %1712 : vector<1x8x16xf32> to vector<8x16xf32>
    %1714 = vector.broadcast %1711 : f32 to vector<8x16xf32>
    %1715 = arith.mulf %1714, %1713 : vector<8x16xf32>
    %1716 = arith.addf %1710, %1715 : vector<8x16xf32>
    %c274 = arith.constant 274 : index
    %1717 = memref.load %arg3[%c274] : memref<288xf32, #tpu.memory_space<smem>>
    %c2_884 = arith.constant 2 : index
    %c1_885 = arith.constant 1 : index
    %c1_886 = arith.constant 1 : index
    %1718 = vector.load %arg6[%c2_884, %c1_885, %c1_886] : memref<4x10x18xf32, #tpu.memory_space<vmem>>, vector<1x8x16xf32>
    %1719 = vector.shape_cast %1718 : vector<1x8x16xf32> to vector<8x16xf32>
    %1720 = vector.broadcast %1717 : f32 to vector<8x16xf32>
    %1721 = arith.mulf %1720, %1719 : vector<8x16xf32>
    %1722 = arith.addf %1716, %1721 : vector<8x16xf32>
    %c275 = arith.constant 275 : index
    %1723 = memref.load %arg3[%c275] : memref<288xf32, #tpu.memory_space<smem>>
    %c2_887 = arith.constant 2 : index
    %c1_888 = arith.constant 1 : index
    %c2_889 = arith.constant 2 : index
    %1724 = vector.load %arg6[%c2_887, %c1_888, %c2_889] : memref<4x10x18xf32, #tpu.memory_space<vmem>>, vector<1x8x16xf32>
    %1725 = vector.shape_cast %1724 : vector<1x8x16xf32> to vector<8x16xf32>
    %1726 = vector.broadcast %1723 : f32 to vector<8x16xf32>
    %1727 = arith.mulf %1726, %1725 : vector<8x16xf32>
    %1728 = arith.addf %1722, %1727 : vector<8x16xf32>
    %c276 = arith.constant 276 : index
    %1729 = memref.load %arg3[%c276] : memref<288xf32, #tpu.memory_space<smem>>
    %c2_890 = arith.constant 2 : index
    %c2_891 = arith.constant 2 : index
    %c0_892 = arith.constant 0 : index
    %1730 = vector.load %arg6[%c2_890, %c2_891, %c0_892] : memref<4x10x18xf32, #tpu.memory_space<vmem>>, vector<1x8x16xf32>
    %1731 = vector.shape_cast %1730 : vector<1x8x16xf32> to vector<8x16xf32>
    %1732 = vector.broadcast %1729 : f32 to vector<8x16xf32>
    %1733 = arith.mulf %1732, %1731 : vector<8x16xf32>
    %1734 = arith.addf %1728, %1733 : vector<8x16xf32>
    %c277 = arith.constant 277 : index
    %1735 = memref.load %arg3[%c277] : memref<288xf32, #tpu.memory_space<smem>>
    %c2_893 = arith.constant 2 : index
    %c2_894 = arith.constant 2 : index
    %c1_895 = arith.constant 1 : index
    %1736 = vector.load %arg6[%c2_893, %c2_894, %c1_895] : memref<4x10x18xf32, #tpu.memory_space<vmem>>, vector<1x8x16xf32>
    %1737 = vector.shape_cast %1736 : vector<1x8x16xf32> to vector<8x16xf32>
    %1738 = vector.broadcast %1735 : f32 to vector<8x16xf32>
    %1739 = arith.mulf %1738, %1737 : vector<8x16xf32>
    %1740 = arith.addf %1734, %1739 : vector<8x16xf32>
    %c278 = arith.constant 278 : index
    %1741 = memref.load %arg3[%c278] : memref<288xf32, #tpu.memory_space<smem>>
    %c2_896 = arith.constant 2 : index
    %c2_897 = arith.constant 2 : index
    %c2_898 = arith.constant 2 : index
    %1742 = vector.load %arg6[%c2_896, %c2_897, %c2_898] : memref<4x10x18xf32, #tpu.memory_space<vmem>>, vector<1x8x16xf32>
    %1743 = vector.shape_cast %1742 : vector<1x8x16xf32> to vector<8x16xf32>
    %1744 = vector.broadcast %1741 : f32 to vector<8x16xf32>
    %1745 = arith.mulf %1744, %1743 : vector<8x16xf32>
    %1746 = arith.addf %1740, %1745 : vector<8x16xf32>
    %c279 = arith.constant 279 : index
    %1747 = memref.load %arg3[%c279] : memref<288xf32, #tpu.memory_space<smem>>
    %c3_899 = arith.constant 3 : index
    %c0_900 = arith.constant 0 : index
    %c0_901 = arith.constant 0 : index
    %1748 = vector.load %arg6[%c3_899, %c0_900, %c0_901] : memref<4x10x18xf32, #tpu.memory_space<vmem>>, vector<1x8x16xf32>
    %1749 = vector.shape_cast %1748 : vector<1x8x16xf32> to vector<8x16xf32>
    %1750 = vector.broadcast %1747 : f32 to vector<8x16xf32>
    %1751 = arith.mulf %1750, %1749 : vector<8x16xf32>
    %1752 = arith.addf %1746, %1751 : vector<8x16xf32>
    %c280 = arith.constant 280 : index
    %1753 = memref.load %arg3[%c280] : memref<288xf32, #tpu.memory_space<smem>>
    %c3_902 = arith.constant 3 : index
    %c0_903 = arith.constant 0 : index
    %c1_904 = arith.constant 1 : index
    %1754 = vector.load %arg6[%c3_902, %c0_903, %c1_904] : memref<4x10x18xf32, #tpu.memory_space<vmem>>, vector<1x8x16xf32>
    %1755 = vector.shape_cast %1754 : vector<1x8x16xf32> to vector<8x16xf32>
    %1756 = vector.broadcast %1753 : f32 to vector<8x16xf32>
    %1757 = arith.mulf %1756, %1755 : vector<8x16xf32>
    %1758 = arith.addf %1752, %1757 : vector<8x16xf32>
    %c281 = arith.constant 281 : index
    %1759 = memref.load %arg3[%c281] : memref<288xf32, #tpu.memory_space<smem>>
    %c3_905 = arith.constant 3 : index
    %c0_906 = arith.constant 0 : index
    %c2_907 = arith.constant 2 : index
    %1760 = vector.load %arg6[%c3_905, %c0_906, %c2_907] : memref<4x10x18xf32, #tpu.memory_space<vmem>>, vector<1x8x16xf32>
    %1761 = vector.shape_cast %1760 : vector<1x8x16xf32> to vector<8x16xf32>
    %1762 = vector.broadcast %1759 : f32 to vector<8x16xf32>
    %1763 = arith.mulf %1762, %1761 : vector<8x16xf32>
    %1764 = arith.addf %1758, %1763 : vector<8x16xf32>
    %c282 = arith.constant 282 : index
    %1765 = memref.load %arg3[%c282] : memref<288xf32, #tpu.memory_space<smem>>
    %c3_908 = arith.constant 3 : index
    %c1_909 = arith.constant 1 : index
    %c0_910 = arith.constant 0 : index
    %1766 = vector.load %arg6[%c3_908, %c1_909, %c0_910] : memref<4x10x18xf32, #tpu.memory_space<vmem>>, vector<1x8x16xf32>
    %1767 = vector.shape_cast %1766 : vector<1x8x16xf32> to vector<8x16xf32>
    %1768 = vector.broadcast %1765 : f32 to vector<8x16xf32>
    %1769 = arith.mulf %1768, %1767 : vector<8x16xf32>
    %1770 = arith.addf %1764, %1769 : vector<8x16xf32>
    %c283 = arith.constant 283 : index
    %1771 = memref.load %arg3[%c283] : memref<288xf32, #tpu.memory_space<smem>>
    %c3_911 = arith.constant 3 : index
    %c1_912 = arith.constant 1 : index
    %c1_913 = arith.constant 1 : index
    %1772 = vector.load %arg6[%c3_911, %c1_912, %c1_913] : memref<4x10x18xf32, #tpu.memory_space<vmem>>, vector<1x8x16xf32>
    %1773 = vector.shape_cast %1772 : vector<1x8x16xf32> to vector<8x16xf32>
    %1774 = vector.broadcast %1771 : f32 to vector<8x16xf32>
    %1775 = arith.mulf %1774, %1773 : vector<8x16xf32>
    %1776 = arith.addf %1770, %1775 : vector<8x16xf32>
    %c284 = arith.constant 284 : index
    %1777 = memref.load %arg3[%c284] : memref<288xf32, #tpu.memory_space<smem>>
    %c3_914 = arith.constant 3 : index
    %c1_915 = arith.constant 1 : index
    %c2_916 = arith.constant 2 : index
    %1778 = vector.load %arg6[%c3_914, %c1_915, %c2_916] : memref<4x10x18xf32, #tpu.memory_space<vmem>>, vector<1x8x16xf32>
    %1779 = vector.shape_cast %1778 : vector<1x8x16xf32> to vector<8x16xf32>
    %1780 = vector.broadcast %1777 : f32 to vector<8x16xf32>
    %1781 = arith.mulf %1780, %1779 : vector<8x16xf32>
    %1782 = arith.addf %1776, %1781 : vector<8x16xf32>
    %c285 = arith.constant 285 : index
    %1783 = memref.load %arg3[%c285] : memref<288xf32, #tpu.memory_space<smem>>
    %c3_917 = arith.constant 3 : index
    %c2_918 = arith.constant 2 : index
    %c0_919 = arith.constant 0 : index
    %1784 = vector.load %arg6[%c3_917, %c2_918, %c0_919] : memref<4x10x18xf32, #tpu.memory_space<vmem>>, vector<1x8x16xf32>
    %1785 = vector.shape_cast %1784 : vector<1x8x16xf32> to vector<8x16xf32>
    %1786 = vector.broadcast %1783 : f32 to vector<8x16xf32>
    %1787 = arith.mulf %1786, %1785 : vector<8x16xf32>
    %1788 = arith.addf %1782, %1787 : vector<8x16xf32>
    %c286 = arith.constant 286 : index
    %1789 = memref.load %arg3[%c286] : memref<288xf32, #tpu.memory_space<smem>>
    %c3_920 = arith.constant 3 : index
    %c2_921 = arith.constant 2 : index
    %c1_922 = arith.constant 1 : index
    %1790 = vector.load %arg6[%c3_920, %c2_921, %c1_922] : memref<4x10x18xf32, #tpu.memory_space<vmem>>, vector<1x8x16xf32>
    %1791 = vector.shape_cast %1790 : vector<1x8x16xf32> to vector<8x16xf32>
    %1792 = vector.broadcast %1789 : f32 to vector<8x16xf32>
    %1793 = arith.mulf %1792, %1791 : vector<8x16xf32>
    %1794 = arith.addf %1788, %1793 : vector<8x16xf32>
    %c287 = arith.constant 287 : index
    %1795 = memref.load %arg3[%c287] : memref<288xf32, #tpu.memory_space<smem>>
    %c3_923 = arith.constant 3 : index
    %c2_924 = arith.constant 2 : index
    %c2_925 = arith.constant 2 : index
    %1796 = vector.load %arg6[%c3_923, %c2_924, %c2_925] : memref<4x10x18xf32, #tpu.memory_space<vmem>>, vector<1x8x16xf32>
    %1797 = vector.shape_cast %1796 : vector<1x8x16xf32> to vector<8x16xf32>
    %1798 = vector.broadcast %1795 : f32 to vector<8x16xf32>
    %1799 = arith.mulf %1798, %1797 : vector<8x16xf32>
    %1800 = arith.addf %1794, %1799 : vector<8x16xf32>
    %cst_926 = arith.constant 0.000000e+00 : f32
    %1801 = vector.broadcast %cst_926 : f32 to vector<8x16xf32>
    %1802 = arith.maximumf %1800, %1801 : vector<8x16xf32>
    %c0_927 = arith.constant 0 : index
    %c7_928 = arith.constant 7 : index
    %c0_929 = arith.constant 0 : index
    %c0_930 = arith.constant 0 : index
    %1803 = vector.load %arg5[%c0_927, %c7_928, %c0_929, %c0_930] : memref<1x8x8x16xf32, #tpu.memory_space<vmem>>, vector<1x1x8x16xf32>
    %1804 = vector.shape_cast %1803 : vector<1x1x8x16xf32> to vector<8x16xf32>
    %1805 = vector.shape_cast %1802 : vector<8x16xf32> to vector<1x1x8x16xf32>
    tpu.vector_store %arg5[%c0_927, %c7_928, %c0_929, %c0_930], %1805 {strides = array<i32>} : memref<1x8x8x16xf32, #tpu.memory_space<vmem>>, vector<1x1x8x16xf32>,
    return
  }
  func.func @transform_0(%arg0: i32, %arg1: i32) -> (i32, i32, i32, i32) {
    %c0_i32 = arith.constant 0 : i32
    %c0_i32_0 = arith.constant 0 : i32
    %c0_i32_1 = arith.constant 0 : i32
    %c0_i32_2 = arith.constant 0 : i32
    return %arg0, %c0_i32, %c0_i32_0, %c0_i32_1 : i32, i32, i32, i32
  }
  func.func @transform_1(%arg0: i32, %arg1: i32) -> i32 {
    %c0_i32 = arith.constant 0 : i32
    %c0_i32_0 = arith.constant 0 : i32
    return %c0_i32 : i32
  }
  func.func @transform_2(%arg0: i32, %arg1: i32) -> i32 {
    %c0_i32 = arith.constant 0 : i32
    %c0_i32_0 = arith.constant 0 : i32
    return %c0_i32 : i32
  }
  func.func @transform_3(%arg0: i32, %arg1: i32) -> (i32, i32, i32, i32) {
    %c0_i32 = arith.constant 0 : i32
    %c0_i32_0 = arith.constant 0 : i32
    %c0_i32_1 = arith.constant 0 : i32
    return %arg0, %c0_i32, %arg1, %c0_i32_0 : i32, i32, i32, i32
  }
}

</mosaic_0001>

<bundles_post_ra>
// kernel: squeeze.1
= control target key start
LH: loop header
LB: loop body
LE: loop exit
PB: predicated region body
PF: predicated region fallthrough
CT: control target
= control target key end

     0   :  { %vm167_vm0 = vcmask 7168   ;;  %s962_s7 = smov 121   ;;  %s963_s8 = smov 124   ;;  %vm171_vm1 = vcmask 15360   ;;  %vm161_vm2 = vcmask 23552   ;;  %vm174_vm3 = vcmask 1048568   ;;  %s1170_s0 = inlined_call_operand.vmem [shape: f32[8,4,1,3,3], index: 0, kind: input, shape index: {}]   ;;  %s1171_s1 = inlined_call_operand.vmem [shape: f32[288], index: 1, kind: output, shape index: {}]  }
   0x1   :  { %v840_v0 = vld [vmem:[%s1170_s0 + $0x6c] sm:$0xf]  ;;  %v839_v1 = vld [vmem:[%s1170_s0 + $0x70] sm:$0xf]  ;;  %v854_v2 = vld [vmem:[%s1170_s0 + $0x34] sm:$0xf] }
   0x2   :  { %28 = vst [vmem:[#allocation1 + $0xd8] sm:$0xf] %v840_v0  ;;  %23 = vst [vmem:[#allocation1 + $0xe0] sm:$0xf] %v839_v1  ;;  %v853_v3 = vld [vmem:[%s1170_s0 + $0x38] sm:$0xf] }
   0x3   :  { %98 = vst [vmem:[#allocation1 + $0x68] sm:$0xf] %v854_v2  ;;  %v855_v4 = vld [vmem:[%s1170_s0 + $0x30] sm:$0xf]  ;;  %93 = vst [vmem:[#allocation1 + $0x70] sm:$0xf] %v853_v3 }
   0x4   :  { %103 = vst [vmem:[#allocation1 + $0x60] sm:$0xf] %v855_v4  ;;  %v841_v5 = vld [vmem:[%s1170_s0 + $0x68] sm:$0xf]  ;;  %v856_v6 = vld [vmem:[%s1170_s0 + $0x2c] sm:$0xf] }
   0x5   :  { %33 = vst [vmem:[#allocation1 + $0xd0] sm:$0xf] %v841_v5  ;;  %108 = vst [vmem:[#allocation1 + $0x58] sm:$0xf] %v856_v6  ;;  %v842_v7 = vld [vmem:[%s1170_s0 + $0x64] sm:$0xf] }
   0x6   :  { %v857_v8 = vld [vmem:[%s1170_s0 + $0x28] sm:$0xf]  ;;  %38 = vst [vmem:[#allocation1 + $0xc8] sm:$0xf] %v842_v7  ;;  %v843_v9 = vld [vmem:[%s1170_s0 + $0x60] sm:$0xf] }
   0x7   :  { %113 = vst [vmem:[#allocation1 + $0x50] sm:$0xf] %v857_v8  ;;  %v858_v10 = vld [vmem:[%s1170_s0 + $0x24] sm:$0xf]  ;;  %43 = vst [vmem:[#allocation1 + $0xc0] sm:$0xf] %v843_v9 }
   0x8   :  { %118 = vst [vmem:[#allocation1 + $0x48] sm:$0xf] %v858_v10  ;;  %v844_v11 = vld [vmem:[%s1170_s0 + $0x5c] sm:$0xf]  ;;  %v859_v12 = vld [vmem:[%s1170_s0 + $0x20] sm:$0xf] }
   0x9   :  { %48 = vst [vmem:[#allocation1 + $0xb8] sm:$0xf] %v844_v11  ;;  %123 = vst [vmem:[#allocation1 + $0x40] sm:$0xf] %v859_v12  ;;  %v845_v13 = vld [vmem:[%s1170_s0 + $0x58] sm:$0xf] }
   0xa   :  { %v860_v14 = vld [vmem:[%s1170_s0 + $0x1c] sm:$0xf]  ;;  %v204_v15 = vld [vmem:[#allocation1 + $0xda] sm:$0x1]   ;;  %v191_v16 = vld [vmem:[#allocation1 + $0xe0] sm:$0x1]  }
   0xb   :  { %v164_v17 = vld [vmem:[#allocation1 + $0xe1] sm:$0x1]   ;;  %53 = vst [vmem:[#allocation1 + $0xb0] sm:$0xf] %v845_v13  ;;  %128 = vst [vmem:[#allocation1 + $0x38] sm:$0xf] %v860_v14  ;;  %205 = vrot.lane.b32.xlu0 %v204_v15, %s962_s7  ;;  %192 = vrot.lane.b32.xlu1 %v191_v16, %s963_s8 }
   0xc   :  { %v166_v18 = vld [vmem:[#allocation1 + $0xe1] sm:$0x1]   ;;  %v198_v20 = vld [vmem:[#allocation1 + $0x6a] sm:$0x1]   ;;  %v178_v21 = vld [vmem:[#allocation1 + $0x70] sm:$0x1]  }
   0xd   :  { %v168_v19 = vsel %vm167_vm0, %v166_v18, %v164_v17  ;;  %v180_v22 = vld [vmem:[#allocation1 + $0x70] sm:$0x1]   ;;  %s964_s9 = smov 127   ;;  %s965_s10 = smov 123   ;;  %v211_v24 = vld [vmem:[#allocation1 + $0x69] sm:$0x1]  }
   0xe   :  { %v182_v23 = vsel %vm171_vm1, %v180_v22, %v178_v21  ;;  %s966_s11 = smov 126   ;;  %s967_s12 = smov 120   ;;  %v217_v25 = vld [vmem:[#allocation1 + $0xd9] sm:$0x1]   ;;  %v224_v26 = vld [vmem:[#allocation1 + $0x68] sm:$0x1]  }
   0xf   :  { %169 = vrot.lane.b32.xlu0 %v168_v19, %s964_s9  ;;  %199 = vrot.lane.b32.xlu1 %v198_v20, %s965_s10  ;;  %s968_s13 = smov 118   ;;  %s969_s14 = smov 117   ;;  %v230_v27 = vld [vmem:[#allocation1 + $0xd8] sm:$0x1]   ;;  %v237_v28 = vld [vmem:[#allocation1 + $0x62] sm:$0x1]  }
  0x10   :  { %s970_s15 = smov 115   ;;  %s971_s16 = smov 114   ;;  %v243_v29 = vld [vmem:[#allocation1 + $0xd2] sm:$0x1]   ;;  %v250_v30 = vld [vmem:[#allocation1 + $0x61] sm:$0x1]  }
  0x11   :  { %v846_v31 = vld [vmem:[%s1170_s0 + $0x54] sm:$0xf]  ;;  %v861_v32 = vld [vmem:[%s1170_s0 + $0x18] sm:$0xf]  ;;  %v847_v33 = vld [vmem:[%s1170_s0 + $0x50] sm:$0xf] }
  0x12   :  { %58 = vst [vmem:[#allocation1 + $0xa8] sm:$0xf] %v846_v31  ;;  %133 = vst [vmem:[#allocation1 + $0x30] sm:$0xf] %v861_v32  ;;  %v862_v34 = vld [vmem:[%s1170_s0 + $0x14] sm:$0xf] }
  0x13   :  { %183 = vrot.lane.b32.xlu0 %v182_v23, %s966_s11  ;;  %212 = vrot.lane.b32.xlu1 %v211_v24, %s967_s12  ;;  %s972_s25 = smov 112   ;;  %s973_s26 = smov 111   ;;  %v256_v35 = vld [vmem:[#allocation1 + $0xd1] sm:$0x1]   ;;  %63 = vst [vmem:[#allocation1 + $0xa0] sm:$0xf] %v847_v33 }
  0x14   :  { %138 = vst [vmem:[#allocation1 + $0x28] sm:$0xf] %v862_v34  ;;  %v848_v36 = vld [vmem:[%s1170_s0 + $0x4c] sm:$0xf]  ;;  %v263_v37 = vld [vmem:[#allocation1 + $0x60] sm:$0x1]  }
  0x15   :  { %68 = vst [vmem:[#allocation1 + $0x98] sm:$0xf] %v848_v36  ;;  %v863_v38 = vld [vmem:[%s1170_s0 + $0x10] sm:$0xf]  ;;  %v849_v39 = vld [vmem:[%s1170_s0 + $0x48] sm:$0xf] }
  0x16   :  { %143 = vst [vmem:[#allocation1 + $0x20] sm:$0xf] %v863_v38  ;;  %73 = vst [vmem:[#allocation1 + $0x90] sm:$0xf] %v849_v39  ;;  %v158_v40 = vld [vmem:[%s1170_s0] sm:$0xf] }
  0x17   :  { %218 = vrot.lane.b32.xlu0 %v217_v25, %s968_s13  ;;  %225 = vrot.lane.b32.xlu1 %v224_v26, %s969_s14  ;;  %159 = vst [vmem:[#allocation1] sm:$0xf] %v158_v40  ;;  %s974_s6 = smov 109   ;;  %s975_s7 = smov 108   ;;  %v864_v41 = vld [vmem:[%s1170_s0 + $0xc] sm:$0xf] }
  0x18   :  { %v850_v42 = vld [vmem:[%s1170_s0 + $0x44] sm:$0xf]  ;;  %v269_v43 = vld [vmem:[#allocation1 + $0xd0] sm:$0x1]   ;;  %v276_v44 = vld [vmem:[#allocation1 + $0x5a] sm:$0x1]  }
  0x19   :  { %148 = vst [vmem:[#allocation1 + $0x18] sm:$0xf] %v864_v41  ;;  %78 = vst [vmem:[#allocation1 + $0x88] sm:$0xf] %v850_v42  ;;  %s976_s12 = smov 106   ;;  %s977_s13 = smov 105  }
  0x1a   :  { %v282_v45 = vld [vmem:[#allocation1 + $0xca] sm:$0x1]   ;;  %v289_v46 = vld [vmem:[#allocation1 + $0x59] sm:$0x1]   ;;  %s978_s14 = smov 103   ;;  %s980_s18 = smov 100  }
  0x1b   :  { %231 = vrot.lane.b32.xlu0 %v230_v27, %s970_s15  ;;  %238 = vrot.lane.b32.xlu1 %v237_v28, %s971_s16  ;;  %s979_s15 = smov 102   ;;  %v295_v48 = vld [vmem:[#allocation1 + $0xc9] sm:$0x1]   ;;  %v302_v49 = vld [vmem:[#allocation1 + $0x58] sm:$0x1]   ;;  %s981_s19 = smov 99  }
  0x1c   :  { %v836_v50 = vld [vmem:[%s1170_s0 + $0x7c] sm:$0xf]  ;;  %v308_v51 = vld [vmem:[#allocation1 + $0xc8] sm:$0x1]   ;;  %v315_v52 = vld [vmem:[#allocation1 + $0x52] sm:$0x1]  }
  0x1d   :  { %8 = vst [vmem:[#allocation1 + $0xf8] sm:$0xf] %v836_v50  ;;  %v865_v53 = vld [vmem:[%s1170_s0 + $0x8] sm:$0xf]  ;;  %v851_v54 = vld [vmem:[%s1170_s0 + $0x40] sm:$0xf] }
  0x1e   :  { %v160_v47 = vld [vmem:[#allocation1] sm:$0x1]   ;;  %153 = vst [vmem:[#allocation1 + $0x10] sm:$0xf] %v865_v53  ;;  %s982_s24 = smov 97   ;;  %s984_s30 = smov 94  }
  0x1f   :  { %244 = vrot.lane.b32.xlu0 %v243_v29, %s972_s25  ;;  %251 = vrot.lane.b32.xlu1 %v250_v30, %s973_s26  ;;  %162 = vst.msk [vmem:[#allocation0] sm:$0x1] %vm161_vm2, %v160_v47   ;;  %s983_s25 = smov 96   ;;  %83 = vst [vmem:[#allocation1 + $0x80] sm:$0xf] %v851_v54  ;;  %s985_s2 = smov 93  }
  0x20   :  { %v837_v55 = vld [vmem:[%s1170_s0 + $0x78] sm:$0xf]  ;;  %v321_v56 = vld [vmem:[#allocation1 + $0xc2] sm:$0x1]   ;;  %v866_v58 = vld [vmem:[%s1170_s0 + $0x4] sm:$0xf] }
  0x21   :  { %v328_v57 = vld [vmem:[#allocation1 + $0x51] sm:$0x1]   ;;  %13 = vst [vmem:[#allocation1 + $0xf0] sm:$0xf] %v837_v55  ;;  %157 = vst [vmem:[#allocation1 + $0x8] sm:$0xf] %v866_v58 }
  0x22   :  { %v334_v59 = vld [vmem:[#allocation1 + $0xc1] sm:$0x1]   ;;  %v852_v60 = vld [vmem:[%s1170_s0 + $0x3c] sm:$0xf]  ;;  %v341_v61 = vld [vmem:[#allocation1 + $0x50] sm:$0x1]  }
  0x23   :  { %257 = vrot.lane.b32.xlu0 %v256_v35, %s974_s6  ;;  %264 = vrot.lane.b32.xlu1 %v263_v37, %s975_s7  ;;  %88 = vst [vmem:[#allocation1 + $0x78] sm:$0xf] %v852_v60  ;;  %v838_v62 = vld [vmem:[%s1170_s0 + $0x74] sm:$0xf]  ;;  %s986_s0 = smov 91   ;;  %s987_s7 = smov 90  }
  0x24   :  { %18 = vst [vmem:[#allocation1 + $0xe8] sm:$0xf] %v838_v62  ;;  %v347_v63 = vld [vmem:[#allocation1 + $0xc0] sm:$0x1]   ;;  %v354_v0 = vld [vmem:[#allocation1 + $0x4a] sm:$0x1]  }
  0x25   :  { %s988_s8 = smov 88   ;;  %s989_s9 = smov 87   ;;  %v360_v1 = vld [vmem:[#allocation1 + $0xba] sm:$0x1]   ;;  %v367_v2 = vld [vmem:[#allocation1 + $0x49] sm:$0x1]  }
  0x26   :  { %s990_s10 = smov 85   ;;  %s991_s11 = smov 84   ;;  %v373_v3 = vld [vmem:[#allocation1 + $0xb9] sm:$0x1]   ;;  %v380_v4 = vld [vmem:[#allocation1 + $0x48] sm:$0x1]  }
  0x27   :  { %270 = vrot.lane.b32.xlu0 %v269_v43, %s976_s12  ;;  %277 = vrot.lane.b32.xlu1 %v276_v44, %s977_s13  ;;  %s992_s12 = smov 82   ;;  %s993_s13 = smov 81   ;;  %v386_v5 = vld [vmem:[#allocation1 + $0xb8] sm:$0x1]   ;;  %v393_v6 = vld [vmem:[#allocation1 + $0x42] sm:$0x1]  }
  0x28   :  { %v399_v7 = vld [vmem:[#allocation1 + $0xb2] sm:$0x1]   ;;  %v406_v8 = vld [vmem:[#allocation1 + $0x41] sm:$0x1]   ;;  %s996_s16 = smov 76   ;;  %s997_s17 = smov 75  }
  0x29   :  { %v412_v9 = vld [vmem:[#allocation1 + $0xb1] sm:$0x1]   ;;  %v419_v10 = vld [vmem:[#allocation1 + $0x40] sm:$0x1]   ;;  %v425_v11 = vld [vmem:[#allocation1 + $0xb0] sm:$0x1]  }
  0x2a   :  { %v432_v12 = vld [vmem:[#allocation1 + $0x3a] sm:$0x1]   ;;  %s1000_s20 = smov 70   ;;  %s1001_s21 = smov 69   ;;  %v438_v13 = vld [vmem:[#allocation1 + $0xaa] sm:$0x1]  }
  0x2b   :  { %283 = vrot.lane.b32.xlu0 %v282_v45, %s978_s14  ;;  %290 = vrot.lane.b32.xlu1 %v289_v46, %s979_s15  ;;  %s994_s14 = smov 79   ;;  %s995_s15 = smov 78   ;;  %v445_v14 = vld [vmem:[#allocation1 + $0x39] sm:$0x1]   ;;  %v451_v15 = vld [vmem:[#allocation1 + $0xa9] sm:$0x1]  }
  0x2c   :  { %s1002_s22 = smov 67   ;;  %s1003_s23 = smov 66   ;;  %v458_v16 = vld [vmem:[#allocation1 + $0x38] sm:$0x1]   ;;  %v464_v17 = vld [vmem:[#allocation1 + $0xa8] sm:$0x1]  }
  0x2d   :  { %v471_v18 = vld [vmem:[#allocation1 + $0x32] sm:$0x1]   ;;  %s1006_s26 = smov 61   ;;  %s1007_s27 = smov 60   ;;  %v477_v19 = vld [vmem:[#allocation1 + $0xa2] sm:$0x1]  }
  0x2e   :  { %v484_v20 = vld [vmem:[#allocation1 + $0x31] sm:$0x1]   ;;  %s1008_s28 = smov 58   ;;  %s1009_s29 = smov 57   ;;  %v490_v21 = vld [vmem:[#allocation1 + $0xa1] sm:$0x1]  }
  0x2f   :  { %296 = vrot.lane.b32.xlu0 %v295_v48, %s980_s18  ;;  %303 = vrot.lane.b32.xlu1 %v302_v49, %s981_s19  ;;  %s998_s18 = smov 73   ;;  %s999_s19 = smov 72   ;;  %v497_v22 = vld [vmem:[#allocation1 + $0x30] sm:$0x1]   ;;  %v503_v23 = vld [vmem:[#allocation1 + $0xa0] sm:$0x1]  }
  0x30   :  { %v510_v24 = vld [vmem:[#allocation1 + $0x2a] sm:$0x1]   ;;  %s1012_s3 = smov 52   ;;  %s1013_s4 = smov 51   ;;  %v516_v25 = vld [vmem:[#allocation1 + $0x9a] sm:$0x1]  }
  0x31   :  { %v523_v26 = vld [vmem:[#allocation1 + $0x29] sm:$0x1]   ;;  %s1014_s5 = smov 49   ;;  %s1015_s6 = smov 48   ;;  %v529_v27 = vld [vmem:[#allocation1 + $0x99] sm:$0x1]  }
  0x32   :  { %v536_v28 = vld [vmem:[#allocation1 + $0x28] sm:$0x1]   ;;  %v542_v29 = vld [vmem:[#allocation1 + $0x98] sm:$0x1]   ;;  %v549_v30 = vld [vmem:[#allocation1 + $0x22] sm:$0x1]  }
  0x33   :  { %309 = vrot.lane.b32.xlu0 %v308_v51, %s982_s24  ;;  %316 = vrot.lane.b32.xlu1 %v315_v52, %s983_s25  ;;  %s1004_s24 = smov 64   ;;  %s1005_s25 = smov 63   ;;  %v555_v31 = vld [vmem:[#allocation1 + $0x92] sm:$0x1]   ;;  %v562_v32 = vld [vmem:[#allocation1 + $0x21] sm:$0x1]  }
  0x34   :  { %v568_v35 = vld [vmem:[#allocation1 + $0x91] sm:$0x1]   ;;  %v575_v36 = vld [vmem:[#allocation1 + $0x20] sm:$0x1]   ;;  %vm194_vm4 = vcmask 1040352   ;;  %vm201_vm5 = vcmask 1032152  }
  0x35   :  { %vm188_vm6 = vcmask 1048560   ;;  %v581_v39 = vld [vmem:[#allocation1 + $0x90] sm:$0x1]   ;;  %v588_v40 = vld [vmem:[#allocation1 + $0x1a] sm:$0x1]   ;;  %vm207_vm7 = vcmask 1015752  }
  0x36   :  { %vm214_vm8 = vcmask 1007552   ;;  %vm220_vm9 = vcmask 991152   ;;  %vm227_vm10 = vcmask 982952   ;;  %v594_v43 = vld [vmem:[#allocation1 + $0x8a] sm:$0x1]   ;;  %vm233_vm11 = vcmask 966552  }
  0x37   :  { %322 = vrot.lane.b32.xlu0 %v321_v56, %s984_s30  ;;  %329 = vrot.lane.b32.xlu1 %v328_v57, %s985_s2  ;;  %s1010_s30 = smov 55   ;;  %s1011_s2 = smov 54   ;;  %v601_v44 = vld [vmem:[#allocation1 + $0x19] sm:$0x1]   ;;  %vm240_vm12 = vcmask 958352   ;;  %vm246_vm13 = vcmask 941952  }
  0x38   :  { %v607_v47 = vld [vmem:[#allocation1 + $0xfa] sm:$0x1]   ;;  %v614_v48 = vld [vmem:[#allocation1 + $0x89] sm:$0x1]   ;;  %vm253_vm14 = vcmask 933752   ;;  %vm259_vm15 = vcmask 917352  }
  0x39   :  { %v621_v51 = vld [vmem:[#allocation1 + $0x18] sm:$0x1]   ;;  %v627_v52 = vld [vmem:[#allocation1 + $0xf9] sm:$0x1]   ;;  %v634_v55 = vld [vmem:[#allocation1 + $0x88] sm:$0x1]  }
  0x3a   :  { %v641_v56 = vld [vmem:[#allocation1 + $0x12] sm:$0x1]   ;;  %vm279_vm2 = vcmask 884552   ;;  %v654_v60 = vld [vmem:[#allocation1 + $0x82] sm:$0x1]  }
  0x3b   :  { %335 = vrot.lane.b32.xlu0 %v334_v59, %s986_s0  ;;  %342 = vrot.lane.b32.xlu1 %v341_v61, %s987_s7  ;;  %s1016_s0 = smov 46   ;;  %s1017_s7 = smov 45   ;;  %v647_v59 = vld [vmem:[#allocation1 + $0xf8] sm:$0x1]  }
  0x3f   :  { %348 = vrot.lane.b32.xlu0 %v347_v63, %s988_s8  ;;  %355 = vrot.lane.b32.xlu1 %v354_v0, %s989_s9  ;;  %s1018_s8 = smov 43   ;;  %s1019_s9 = smov 42   ;;  %v661_v63 = vld [vmem:[#allocation1 + $0x11] sm:$0x1]   ;;  %v667_v0 = vld [vmem:[#allocation1 + $0xf2] sm:$0x1]  }
  0x43   :  { %361 = vrot.lane.b32.xlu0 %v360_v1, %s990_s10  ;;  %368 = vrot.lane.b32.xlu1 %v367_v2, %s991_s11  ;;  %s1020_s10 = smov 40   ;;  %s1021_s11 = smov 39  }
  0x47   :  { %374 = vrot.lane.b32.xlu0 %v373_v3, %s992_s12  ;;  %381 = vrot.lane.b32.xlu1 %v380_v4, %s993_s13  ;;  %s1022_s12 = smov 37   ;;  %s1023_s13 = smov 36   ;;  %v674_v3 = vld [vmem:[#allocation1 + $0x81] sm:$0x1]   ;;  %v681_v4 = vld [vmem:[#allocation1 + $0x10] sm:$0x1]  }
  0x4b   :  { %387 = vrot.lane.b32.xlu0 %v386_v5, %s994_s14  ;;  %394 = vrot.lane.b32.xlu1 %v393_v6, %s995_s15  ;;  %s1024_s14 = smov 34   ;;  %s1025_s15 = smov 33  }
  0x4f   :  { %400 = vrot.lane.b32.xlu0 %v399_v7, %s996_s16  ;;  %407 = vrot.lane.b32.xlu1 %v406_v8, %s997_s17  ;;  %s1026_s16 = smov 31   ;;  %s1027_s17 = smov 30   ;;  %v687_v7 = vld [vmem:[#allocation1 + $0xf1] sm:$0x1]   ;;  %v694_v8 = vld [vmem:[#allocation1 + $0x80] sm:$0x1]  }
  0x53   :  { %413 = vrot.lane.b32.xlu0 %v412_v9, %s998_s18  ;;  %420 = vrot.lane.b32.xlu1 %v419_v10, %s999_s19  ;;  %s1028_s18 = smov 29   ;;  %s1029_s19 = smov 28  }
  0x57   :  { %426 = vrot.lane.b32.xlu0 %v425_v11, %s1000_s20  ;;  %433 = vrot.lane.b32.xlu1 %v432_v12, %s1001_s21  ;;  %s1030_s20 = smov 27   ;;  %s1031_s21 = smov 26   ;;  %v701_v11 = vld [vmem:[#allocation1 + $0xa] sm:$0x1]   ;;  %v707_v12 = vld [vmem:[#allocation1 + $0xf0] sm:$0x1]  }
  0x5b   :  { %439 = vrot.lane.b32.xlu0 %v438_v13, %s1002_s22  ;;  %446 = vrot.lane.b32.xlu1 %v445_v14, %s1003_s23  ;;  %s1032_s22 = smov 25   ;;  %s1033_s23 = smov 24  }
  0x5f   :  { %452 = vrot.lane.b32.xlu0 %v451_v15, %s1004_s24  ;;  %459 = vrot.lane.b32.xlu1 %v458_v16, %s1005_s25  ;;  %s1034_s24 = smov 23   ;;  %s1035_s25 = smov 22   ;;  %v714_v15 = vld [vmem:[#allocation1 + $0x7a] sm:$0x1]   ;;  %v721_v16 = vld [vmem:[#allocation1 + $0x9] sm:$0x1]  }
  0x63   :  { %465 = vrot.lane.b32.xlu0 %v464_v17, %s1006_s26  ;;  %472 = vrot.lane.b32.xlu1 %v471_v18, %s1007_s27  ;;  %s1036_s26 = smov 21   ;;  %s1037_s27 = smov 20  }
  0x67   :  { %478 = vrot.lane.b32.xlu0 %v477_v19, %s1008_s28  ;;  %485 = vrot.lane.b32.xlu1 %v484_v20, %s1009_s29  ;;  %s1038_s28 = smov 19   ;;  %s1039_s29 = smov 18   ;;  %v727_v19 = vld [vmem:[#allocation1 + $0xea] sm:$0x1]   ;;  %v734_v20 = vld [vmem:[#allocation1 + $0x79] sm:$0x1]  }
  0x6b   :  { %491 = vrot.lane.b32.xlu0 %v490_v21, %s1010_s30  ;;  %498 = vrot.lane.b32.xlu1 %v497_v22, %s1011_s2  ;;  %s1040_s30 = smov 17   ;;  %s1041_s2 = smov 16  }
  0x6f   :  { %504 = vrot.lane.b32.xlu0 %v503_v23, %s1012_s3  ;;  %511 = vrot.lane.b32.xlu1 %v510_v24, %s1013_s4  ;;  %s1042_s3 = smov 15   ;;  %s1043_s4 = smov 14   ;;  %v741_v23 = vld [vmem:[#allocation1 + $0x8] sm:$0x1]   ;;  %v747_v24 = vld [vmem:[#allocation1 + $0xe9] sm:$0x1]  }
  0x73   :  { %517 = vrot.lane.b32.xlu0 %v516_v25, %s1014_s5  ;;  %524 = vrot.lane.b32.xlu1 %v523_v26, %s1015_s6  ;;  %s1044_s5 = smov 13   ;;  %s1045_s6 = smov 12  }
  0x77   :  { %530 = vrot.lane.b32.xlu0 %v529_v27, %s1016_s0  ;;  %537 = vrot.lane.b32.xlu1 %v536_v28, %s1017_s7  ;;  %s1046_s0 = smov 11   ;;  %s1047_s7 = smov 10   ;;  %v754_v27 = vld [vmem:[#allocation1 + $0x78] sm:$0x1]   ;;  %v761_v28 = vld [vmem:[#allocation1 + $0x2] sm:$0x1]  }
  0x7b   :  { %543 = vrot.lane.b32.xlu0 %v542_v29, %s1018_s8  ;;  %550 = vrot.lane.b32.xlu1 %v549_v30, %s1019_s9  ;;  %s1048_s8 = smov 9   ;;  %s1049_s9 = smov 8  }
  0x7d   :  { %v206_v33 = vpop.permute.xlu0 %205   ;;  %v193_v34 = vpop.permute.xlu1 %192  }
  0x7f   :  { %556 = vrot.lane.b32.xlu0 %v555_v31, %s1020_s10  ;;  %563 = vrot.lane.b32.xlu1 %v562_v32, %s1021_s11  ;;  %s1050_s10 = smov 7   ;;  %s1051_s11 = smov 6   ;;  %v767_v31 = vld [vmem:[#allocation1 + $0xe8] sm:$0x1]   ;;  %v774_v32 = vld [vmem:[#allocation1 + $0x72] sm:$0x1]  }
  0x81   :  { %v170_v37 = vpop.permute.xlu0 %169   ;;  %v200_v38 = vpop.permute.xlu1 %199  }
  0x82   :  { %173 = vst.msk [vmem:[#allocation0 + $0x2] sm:$0x1] %vm171_vm1, %v170_v37   ;;  %vm272_vm1 = vcmask 892752  }
  0x83   :  { %176 = vst.msk [vmem:[#allocation0 + $0x1] sm:$0x1] %vm174_vm3, %v170_v37   ;;  %569 = vrot.lane.b32.xlu0 %v568_v35, %s1022_s12  ;;  %576 = vrot.lane.b32.xlu1 %v575_v36, %s1023_s13  ;;  %vm285_vm3 = vcmask 868152   ;;  %s1052_s12 = smov 5   ;;  %s1053_s13 = smov 4  }
  0x84   :  { %v781_v35 = vld [vmem:[#allocation1 + $0x1] sm:$0x1]   ;;  %v787_v36 = vld [vmem:[#allocation1 + $0xe2] sm:$0x1]  }
  0x85   :  { %v184_v41 = vpop.permute.xlu0 %183   ;;  %v213_v42 = vpop.permute.xlu1 %212  }
  0x86   :  { %187 = vst.msk [vmem:[#allocation0 + $0x1] sm:$0x1] %vm167_vm0, %v184_v41   ;;  %vm266_vm0 = vcmask 909152  }
  0x87   :  { %189 = vst.msk [vmem:[#allocation0] sm:$0x1] %vm188_vm6, %v184_v41   ;;  %582 = vrot.lane.b32.xlu0 %v581_v39, %s1024_s14  ;;  %589 = vrot.lane.b32.xlu1 %v588_v40, %s1025_s15  ;;  %vm305_vm6 = vcmask 835352   ;;  %s1054_s14 = smov 3   ;;  %s1055_s15 = smov 2  }
  0x88   :  { %196 = vst.msk [vmem:[#allocation0 + $0x1] sm:$0x1] %vm194_vm4, %v193_v34   ;;  %vm292_vm4 = vcmask 859952   ;;  %v794_v39 = vld [vmem:[#allocation1 + $0x71] sm:$0x1]  }
  0x89   :  { %202 = vst.msk [vmem:[#allocation0] sm:$0x1] %vm201_vm5, %v200_v38   ;;  %v219_v45 = vpop.permute.xlu0 %218   ;;  %v226_v46 = vpop.permute.xlu1 %225   ;;  %vm298_vm5 = vcmask 843552  }
  0x8a   :  { %209 = vst.msk [vmem:[#allocation0 + $0x1] sm:$0x1] %vm207_vm7, %v206_v33   ;;  %vm311_vm7 = vcmask 818952  }
  0x8b   :  { %215 = vst.msk [vmem:[#allocation0] sm:$0x1] %vm214_vm8, %v213_v42   ;;  %595 = vrot.lane.b32.xlu0 %v594_v43, %s1026_s16  ;;  %602 = vrot.lane.b32.xlu1 %v601_v44, %s1027_s17  ;;  %vm318_vm8 = vcmask 810752   ;;  %s1056_s16 = smov 1  }
  0x8c   :  { %222 = vst.msk [vmem:[#allocation0 + $0x1] sm:$0x1] %vm220_vm9, %v219_v45   ;;  %vm324_vm9 = vcmask 794352  }
  0x8d   :  { %228 = vst.msk [vmem:[#allocation0] sm:$0x1] %vm227_vm10, %v226_v46   ;;  %v232_v49 = vpop.permute.xlu0 %231   ;;  %v239_v50 = vpop.permute.xlu1 %238   ;;  %vm331_vm10 = vcmask 786152  }
  0x8e   :  { %235 = vst.msk [vmem:[#allocation0 + $0x1] sm:$0x1] %vm233_vm11, %v232_v49   ;;  %vm337_vm11 = vcmask 769752  }
  0x8f   :  { %241 = vst.msk [vmem:[#allocation0] sm:$0x1] %vm240_vm12, %v239_v50   ;;  %608 = vrot.lane.b32.xlu0 %v607_v47, %s1028_s18  ;;  %615 = vrot.lane.b32.xlu1 %v614_v48, %s1029_s19  ;;  %vm344_vm12 = vcmask 761552  }
  0x91   :  { %v245_v53 = vpop.permute.xlu0 %244   ;;  %v252_v54 = vpop.permute.xlu1 %251  }
  0x92   :  { %248 = vst.msk [vmem:[#allocation0 + $0x1] sm:$0x1] %vm246_vm13, %v245_v53   ;;  %vm350_vm13 = vcmask 745152  }
  0x93   :  { %254 = vst.msk [vmem:[#allocation0] sm:$0x1] %vm253_vm14, %v252_v54   ;;  %622 = vrot.lane.b32.xlu0 %v621_v51, %s1030_s20  ;;  %628 = vrot.lane.b32.xlu1 %v627_v52, %s1031_s21  ;;  %vm357_vm14 = vcmask 736952  }
  0x95   :  { %v258_v57 = vpop.permute.xlu0 %257   ;;  %v265_v58 = vpop.permute.xlu1 %264  }
  0x96   :  { %261 = vst.msk [vmem:[#allocation0 + $0x1] sm:$0x1] %vm259_vm15, %v258_v57   ;;  %vm363_vm15 = vcmask 720552  }
  0x97   :  { %267 = vst.msk [vmem:[#allocation0] sm:$0x1] %vm266_vm0, %v265_v58   ;;  %635 = vrot.lane.b32.xlu0 %v634_v55, %s1032_s22  ;;  %642 = vrot.lane.b32.xlu1 %v641_v56, %s1033_s23  ;;  %vm370_vm0 = vcmask 712352  }
  0x99   :  { %v271_v61 = vpop.permute.xlu0 %270   ;;  %v278_v62 = vpop.permute.xlu1 %277  }
  0x9a   :  { %274 = vst.msk [vmem:[#allocation0 + $0x1] sm:$0x1] %vm272_vm1, %v271_v61   ;;  %vm376_vm1 = vcmask 695952  }
  0x9b   :  { %280 = vst.msk [vmem:[#allocation0] sm:$0x1] %vm279_vm2, %v278_v62   ;;  %648 = vrot.lane.b32.xlu0 %v647_v59, %s1034_s24  ;;  %655 = vrot.lane.b32.xlu1 %v654_v60, %s1035_s25  ;;  %vm383_vm2 = vcmask 687752  }
  0x9d   :  { %v284_v1 = vpop.permute.xlu0 %283   ;;  %v291_v2 = vpop.permute.xlu1 %290  }
  0x9e   :  { %287 = vst.msk [vmem:[#allocation0 + $0x1] sm:$0x1] %vm285_vm3, %v284_v1   ;;  %vm389_vm3 = vcmask 671352  }
  0x9f   :  { %293 = vst.msk [vmem:[#allocation0] sm:$0x1] %vm292_vm4, %v291_v2   ;;  %662 = vrot.lane.b32.xlu0 %v661_v63, %s1036_s26  ;;  %668 = vrot.lane.b32.xlu1 %v667_v0, %s1037_s27  ;;  %vm396_vm4 = vcmask 663152  }
  0xa1   :  { %v297_v5 = vpop.permute.xlu0 %296   ;;  %v304_v6 = vpop.permute.xlu1 %303  }
  0xa2   :  { %300 = vst.msk [vmem:[#allocation0 + $0x1] sm:$0x1] %vm298_vm5, %v297_v5   ;;  %vm402_vm5 = vcmask 646752  }
  0xa3   :  { %306 = vst.msk [vmem:[#allocation0] sm:$0x1] %vm305_vm6, %v304_v6   ;;  %675 = vrot.lane.b32.xlu0 %v674_v3, %s1038_s28  ;;  %682 = vrot.lane.b32.xlu1 %v681_v4, %s1039_s29  ;;  %vm409_vm6 = vcmask 638552  }
  0xa5   :  { %v310_v9 = vpop.permute.xlu0 %309   ;;  %v317_v10 = vpop.permute.xlu1 %316  }
  0xa6   :  { %313 = vst.msk [vmem:[#allocation0 + $0x1] sm:$0x1] %vm311_vm7, %v310_v9   ;;  %vm415_vm7 = vcmask 622152  }
  0xa7   :  { %319 = vst.msk [vmem:[#allocation0] sm:$0x1] %vm318_vm8, %v317_v10   ;;  %688 = vrot.lane.b32.xlu0 %v687_v7, %s1040_s30  ;;  %695 = vrot.lane.b32.xlu1 %v694_v8, %s1041_s2  ;;  %vm422_vm8 = vcmask 613952  }
  0xa9   :  { %v323_v13 = vpop.permute.xlu0 %322   ;;  %v330_v14 = vpop.permute.xlu1 %329  }
  0xaa   :  { %326 = vst.msk [vmem:[#allocation0 + $0x1] sm:$0x1] %vm324_vm9, %v323_v13   ;;  %vm428_vm9 = vcmask 597552  }
  0xab   :  { %332 = vst.msk [vmem:[#allocation0] sm:$0x1] %vm331_vm10, %v330_v14   ;;  %702 = vrot.lane.b32.xlu0 %v701_v11, %s1042_s3  ;;  %708 = vrot.lane.b32.xlu1 %v707_v12, %s1043_s4  ;;  %vm435_vm10 = vcmask 589352  }
  0xad   :  { %v336_v17 = vpop.permute.xlu0 %335   ;;  %v343_v18 = vpop.permute.xlu1 %342  }
  0xae   :  { %339 = vst.msk [vmem:[#allocation0 + $0x1] sm:$0x1] %vm337_vm11, %v336_v17   ;;  %vm441_vm11 = vcmask 572952  }
  0xaf   :  { %345 = vst.msk [vmem:[#allocation0] sm:$0x1] %vm344_vm12, %v343_v18   ;;  %715 = vrot.lane.b32.xlu0 %v714_v15, %s1044_s5  ;;  %722 = vrot.lane.b32.xlu1 %v721_v16, %s1045_s6  ;;  %vm448_vm12 = vcmask 564752  }
  0xb1   :  { %v349_v21 = vpop.permute.xlu0 %348   ;;  %v356_v22 = vpop.permute.xlu1 %355  }
  0xb2   :  { %352 = vst.msk [vmem:[#allocation0 + $0x1] sm:$0x1] %vm350_vm13, %v349_v21   ;;  %vm454_vm13 = vcmask 548352  }
  0xb3   :  { %358 = vst.msk [vmem:[#allocation0] sm:$0x1] %vm357_vm14, %v356_v22   ;;  %728 = vrot.lane.b32.xlu0 %v727_v19, %s1046_s0  ;;  %735 = vrot.lane.b32.xlu1 %v734_v20, %s1047_s7  ;;  %vm461_vm14 = vcmask 540152  }
  0xb5   :  { %v362_v25 = vpop.permute.xlu0 %361   ;;  %v369_v26 = vpop.permute.xlu1 %368  }
  0xb6   :  { %365 = vst.msk [vmem:[#allocation0 + $0x1] sm:$0x1] %vm363_vm15, %v362_v25   ;;  %vm467_vm15 = vcmask 523752  }
  0xb7   :  { %371 = vst.msk [vmem:[#allocation0] sm:$0x1] %vm370_vm0, %v369_v26   ;;  %742 = vrot.lane.b32.xlu0 %v741_v23, %s1048_s8  ;;  %748 = vrot.lane.b32.xlu1 %v747_v24, %s1049_s9  ;;  %vm474_vm0 = vcmask 515552  }
  0xb9   :  { %v375_v29 = vpop.permute.xlu0 %374   ;;  %v382_v30 = vpop.permute.xlu1 %381  }
  0xba   :  { %378 = vst.msk [vmem:[#allocation0 + $0x1] sm:$0x1] %vm376_vm1, %v375_v29   ;;  %vm480_vm1 = vcmask 499152  }
  0xbb   :  { %384 = vst.msk [vmem:[#allocation0] sm:$0x1] %vm383_vm2, %v382_v30   ;;  %755 = vrot.lane.b32.xlu0 %v754_v27, %s1050_s10  ;;  %762 = vrot.lane.b32.xlu1 %v761_v28, %s1051_s11  ;;  %vm487_vm2 = vcmask 490952  }
  0xbd   :  { %v388_v33 = vpop.permute.xlu0 %387   ;;  %v395_v34 = vpop.permute.xlu1 %394  }
  0xbe   :  { %391 = vst.msk [vmem:[#allocation0 + $0x1] sm:$0x1] %vm389_vm3, %v388_v33   ;;  %vm493_vm3 = vcmask 474552  }
  0xbf   :  { %397 = vst.msk [vmem:[#allocation0] sm:$0x1] %vm396_vm4, %v395_v34   ;;  %768 = vrot.lane.b32.xlu0 %v767_v31, %s1052_s12  ;;  %775 = vrot.lane.b32.xlu1 %v774_v32, %s1053_s13  ;;  %vm500_vm4 = vcmask 466352  }
  0xc1   :  { %v401_v37 = vpop.permute.xlu0 %400   ;;  %v408_v38 = vpop.permute.xlu1 %407  }
  0xc2   :  { %404 = vst.msk [vmem:[#allocation0 + $0x1] sm:$0x1] %vm402_vm5, %v401_v37   ;;  %vm506_vm5 = vcmask 449952  }
  0xc3   :  { %410 = vst.msk [vmem:[#allocation0] sm:$0x1] %vm409_vm6, %v408_v38   ;;  %782 = vrot.lane.b32.xlu0 %v781_v35, %s1054_s14  ;;  %788 = vrot.lane.b32.xlu1 %v787_v36, %s1055_s15  ;;  %vm513_vm6 = vcmask 441752  }
  0xc5   :  { %v414_v40 = vpop.permute.xlu0 %413   ;;  %v421_v41 = vpop.permute.xlu1 %420  }
  0xc6   :  { %417 = vst.msk [vmem:[#allocation0 + $0x1] sm:$0x1] %vm415_vm7, %v414_v40   ;;  %vm519_vm7 = vcmask 425352  }
  0xc7   :  { %423 = vst.msk [vmem:[#allocation0] sm:$0x1] %vm422_vm8, %v421_v41   ;;  %795 = vrot.lane.b32.xlu0 %v794_v39, %s1056_s16  ;;  %vm526_vm8 = vcmask 417152  }
  0xc9   :  { %v427_v42 = vpop.permute.xlu0 %426   ;;  %v434_v43 = vpop.permute.xlu1 %433  }
  0xca   :  { %430 = vst.msk [vmem:[#allocation0 + $0x1] sm:$0x1] %vm428_vm9, %v427_v42   ;;  %vm532_vm9 = vcmask 400752  }
  0xcb   :  { %436 = vst.msk [vmem:[#allocation0] sm:$0x1] %vm435_vm10, %v434_v43   ;;  %vm539_vm10 = vcmask 392552  }
  0xcd   :  { %v440_v44 = vpop.permute.xlu0 %439   ;;  %v447_v45 = vpop.permute.xlu1 %446  }
  0xce   :  { %443 = vst.msk [vmem:[#allocation0 + $0x1] sm:$0x1] %vm441_vm11, %v440_v44   ;;  %vm545_vm11 = vcmask 376152  }
  0xcf   :  { %449 = vst.msk [vmem:[#allocation0] sm:$0x1] %vm448_vm12, %v447_v45   ;;  %vm552_vm12 = vcmask 367952  }
  0xd1   :  { %v453_v46 = vpop.permute.xlu0 %452   ;;  %v460_v47 = vpop.permute.xlu1 %459  }
  0xd2   :  { %456 = vst.msk [vmem:[#allocation0 + $0x1] sm:$0x1] %vm454_vm13, %v453_v46   ;;  %vm558_vm13 = vcmask 351552  }
  0xd3   :  { %462 = vst.msk [vmem:[#allocation0] sm:$0x1] %vm461_vm14, %v460_v47   ;;  %vm565_vm14 = vcmask 343352  }
  0xd5   :  { %v466_v48 = vpop.permute.xlu0 %465   ;;  %v473_v49 = vpop.permute.xlu1 %472  }
  0xd6   :  { %469 = vst.msk [vmem:[#allocation0 + $0x1] sm:$0x1] %vm467_vm15, %v466_v48   ;;  %vm571_vm15 = vcmask 326952  }
  0xd7   :  { %475 = vst.msk [vmem:[#allocation0] sm:$0x1] %vm474_vm0, %v473_v49   ;;  %vm578_vm0 = vcmask 318752  }
  0xd9   :  { %v479_v50 = vpop.permute.xlu0 %478   ;;  %v486_v51 = vpop.permute.xlu1 %485  }
  0xda   :  { %482 = vst.msk [vmem:[#allocation0 + $0x1] sm:$0x1] %vm480_vm1, %v479_v50   ;;  %vm584_vm1 = vcmask 302352  }
  0xdb   :  { %488 = vst.msk [vmem:[#allocation0] sm:$0x1] %vm487_vm2, %v486_v51   ;;  %vm591_vm2 = vcmask 294152  }
  0xdd   :  { %v492_v52 = vpop.permute.xlu0 %491   ;;  %v499_v53 = vpop.permute.xlu1 %498  }
  0xde   :  { %495 = vst.msk [vmem:[#allocation0 + $0x1] sm:$0x1] %vm493_vm3, %v492_v52   ;;  %vm597_vm3 = vcmask 277752  }
  0xdf   :  { %501 = vst.msk [vmem:[#allocation0] sm:$0x1] %vm500_vm4, %v499_v53   ;;  %vm604_vm4 = vcmask 269552  }
  0xe1   :  { %v505_v54 = vpop.permute.xlu0 %504   ;;  %v512_v55 = vpop.permute.xlu1 %511  }
  0xe2   :  { %508 = vst.msk [vmem:[#allocation0 + $0x1] sm:$0x1] %vm506_vm5, %v505_v54   ;;  %vm610_vm5 = vcmask 261352  }
  0xe3   :  { %514 = vst.msk [vmem:[#allocation0] sm:$0x1] %vm513_vm6, %v512_v55   ;;  %vm617_vm6 = vcmask 253152  }
  0xe5   :  { %v518_v56 = vpop.permute.xlu0 %517   ;;  %v525_v57 = vpop.permute.xlu1 %524  }
  0xe6   :  { %521 = vst.msk [vmem:[#allocation0 + $0x1] sm:$0x1] %vm519_vm7, %v518_v56   ;;  %vm624_vm7 = vcmask 244952  }
  0xe7   :  { %527 = vst.msk [vmem:[#allocation0] sm:$0x1] %vm526_vm8, %v525_v57   ;;  %vm630_vm8 = vcmask 236752  }
  0xe9   :  { %v531_v58 = vpop.permute.xlu0 %530   ;;  %v538_v59 = vpop.permute.xlu1 %537  }
  0xea   :  { %534 = vst.msk [vmem:[#allocation0 + $0x1] sm:$0x1] %vm532_vm9, %v531_v58   ;;  %vm637_vm9 = vcmask 228552  }
  0xeb   :  { %540 = vst.msk [vmem:[#allocation0] sm:$0x1] %vm539_vm10, %v538_v59   ;;  %vm644_vm10 = vcmask 220352  }
  0xed   :  { %v544_v60 = vpop.permute.xlu0 %543   ;;  %v551_v61 = vpop.permute.xlu1 %550  }
  0xee   :  { %547 = vst.msk [vmem:[#allocation0 + $0x1] sm:$0x1] %vm545_vm11, %v544_v60   ;;  %vm650_vm11 = vcmask 212152  }
  0xef   :  { %553 = vst.msk [vmem:[#allocation0] sm:$0x1] %vm552_vm12, %v551_v61   ;;  %vm657_vm12 = vcmask 203952  }
  0xf1   :  { %v557_v62 = vpop.permute.xlu0 %556   ;;  %v564_v63 = vpop.permute.xlu1 %563  }
  0xf2   :  { %560 = vst.msk [vmem:[#allocation0 + $0x1] sm:$0x1] %vm558_vm13, %v557_v62   ;;  %vm664_vm13 = vcmask 195752  }
  0xf3   :  { %566 = vst.msk [vmem:[#allocation0] sm:$0x1] %vm565_vm14, %v564_v63   ;;  %vm670_vm14 = vcmask 187552  }
  0xf5   :  { %v570_v0 = vpop.permute.xlu0 %569   ;;  %v577_v1 = vpop.permute.xlu1 %576  }
  0xf6   :  { %573 = vst.msk [vmem:[#allocation0 + $0x1] sm:$0x1] %vm571_vm15, %v570_v0   ;;  %vm677_vm15 = vcmask 179352  }
  0xf7   :  { %579 = vst.msk [vmem:[#allocation0] sm:$0x1] %vm578_vm0, %v577_v1   ;;  %vm684_vm0 = vcmask 171152  }
  0xf9   :  { %v583_v2 = vpop.permute.xlu0 %582   ;;  %v590_v3 = vpop.permute.xlu1 %589  }
  0xfa   :  { %586 = vst.msk [vmem:[#allocation0 + $0x1] sm:$0x1] %vm584_vm1, %v583_v2   ;;  %vm690_vm1 = vcmask 162952  }
  0xfb   :  { %592 = vst.msk [vmem:[#allocation0] sm:$0x1] %vm591_vm2, %v590_v3   ;;  %vm697_vm2 = vcmask 154752  }
  0xfd   :  { %v596_v4 = vpop.permute.xlu0 %595   ;;  %v603_v5 = vpop.permute.xlu1 %602  }
  0xfe   :  { %599 = vst.msk [vmem:[#allocation0 + $0x1] sm:$0x1] %vm597_vm3, %v596_v4   ;;  %vm704_vm3 = vcmask 146552  }
  0xff   :  { %605 = vst.msk [vmem:[#allocation0] sm:$0x1] %vm604_vm4, %v603_v5   ;;  %vm710_vm4 = vcmask 138352  }
 0x101   :  { %v609_v6 = vpop.permute.xlu0 %608   ;;  %v616_v7 = vpop.permute.xlu1 %615  }
 0x102   :  { %612 = vst.msk [vmem:[#allocation0 + $0x2] sm:$0x1] %vm610_vm5, %v609_v6   ;;  %vm717_vm5 = vcmask 130152  }
 0x103   :  { %619 = vst.msk [vmem:[#allocation0 + $0x1] sm:$0x1] %vm617_vm6, %v616_v7   ;;  %vm724_vm6 = vcmask 121952  }
 0x105   :  { %v623_v8 = vpop.permute.xlu0 %622   ;;  %v629_v9 = vpop.permute.xlu1 %628  }
 0x106   :  { %625 = vst.msk [vmem:[#allocation0] sm:$0x1] %vm624_vm7, %v623_v8   ;;  %vm730_vm7 = vcmask 113752  }
 0x107   :  { %632 = vst.msk [vmem:[#allocation0 + $0x2] sm:$0x1] %vm630_vm8, %v629_v9   ;;  %vm737_vm8 = vcmask 105552  }
 0x109   :  { %v636_v10 = vpop.permute.xlu0 %635   ;;  %v643_v11 = vpop.permute.xlu1 %642  }
 0x10a   :  { %639 = vst.msk [vmem:[#allocation0 + $0x1] sm:$0x1] %vm637_vm9, %v636_v10   ;;  %vm744_vm9 = vcmask 97352  }
 0x10b   :  { %645 = vst.msk [vmem:[#allocation0] sm:$0x1] %vm644_vm10, %v643_v11   ;;  %vm750_vm10 = vcmask 89152  }
 0x10d   :  { %v649_v12 = vpop.permute.xlu0 %648   ;;  %v656_v13 = vpop.permute.xlu1 %655  }
 0x10e   :  { %652 = vst.msk [vmem:[#allocation0 + $0x2] sm:$0x1] %vm650_vm11, %v649_v12   ;;  %vm757_vm11 = vcmask 80952  }
 0x10f   :  { %659 = vst.msk [vmem:[#allocation0 + $0x1] sm:$0x1] %vm657_vm12, %v656_v13   ;;  %vm764_vm12 = vcmask 72752  }
 0x111   :  { %v663_v14 = vpop.permute.xlu0 %662   ;;  %v669_v15 = vpop.permute.xlu1 %668  }
 0x112   :  { %665 = vst.msk [vmem:[#allocation0] sm:$0x1] %vm664_vm13, %v663_v14   ;;  %vm770_vm13 = vcmask 64552  }
 0x113   :  { %672 = vst.msk [vmem:[#allocation0 + $0x2] sm:$0x1] %vm670_vm14, %v669_v15   ;;  %vm777_vm14 = vcmask 56352  }
 0x115   :  { %v676_v16 = vpop.permute.xlu0 %675   ;;  %v683_v17 = vpop.permute.xlu1 %682  }
 0x116   :  { %679 = vst.msk [vmem:[#allocation0 + $0x1] sm:$0x1] %vm677_vm15, %v676_v16   ;;  %vm784_vm15 = vcmask 48152  }
 0x117   :  { %685 = vst.msk [vmem:[#allocation0] sm:$0x1] %vm684_vm0, %v683_v17   ;;  %vm790_vm0 = vcmask 39952  }
 0x119   :  { %v689_v18 = vpop.permute.xlu0 %688   ;;  %v696_v19 = vpop.permute.xlu1 %695  }
 0x11a   :  { %692 = vst.msk [vmem:[#allocation0 + $0x2] sm:$0x1] %vm690_vm1, %v689_v18   ;;  %vm797_vm1 = vcmask 31752  }
 0x11b   :  { %699 = vst.msk [vmem:[#allocation0 + $0x1] sm:$0x1] %vm697_vm2, %v696_v19  }
 0x11d   :  { %v703_v20 = vpop.permute.xlu0 %702   ;;  %v709_v21 = vpop.permute.xlu1 %708  }
 0x11e   :  { %705 = vst.msk [vmem:[#allocation0] sm:$0x1] %vm704_vm3, %v703_v20  }
 0x11f   :  { %712 = vst.msk [vmem:[#allocation0 + $0x2] sm:$0x1] %vm710_vm4, %v709_v21  }
 0x121   :  { %v716_v22 = vpop.permute.xlu0 %715   ;;  %v723_v23 = vpop.permute.xlu1 %722  }
 0x122   :  { %719 = vst.msk [vmem:[#allocation0 + $0x1] sm:$0x1] %vm717_vm5, %v716_v22  }
 0x123   :  { %725 = vst.msk [vmem:[#allocation0] sm:$0x1] %vm724_vm6, %v723_v23  }
 0x125   :  { %v729_v24 = vpop.permute.xlu0 %728   ;;  %v736_v25 = vpop.permute.xlu1 %735  }
 0x126   :  { %732 = vst.msk [vmem:[#allocation0 + $0x2] sm:$0x1] %vm730_vm7, %v729_v24  }
 0x127   :  { %739 = vst.msk [vmem:[#allocation0 + $0x1] sm:$0x1] %vm737_vm8, %v736_v25  }
 0x129   :  { %v743_v26 = vpop.permute.xlu0 %742   ;;  %v749_v27 = vpop.permute.xlu1 %748  }
 0x12a   :  { %745 = vst.msk [vmem:[#allocation0] sm:$0x1] %vm744_vm9, %v743_v26  }
 0x12b   :  { %752 = vst.msk [vmem:[#allocation0 + $0x2] sm:$0x1] %vm750_vm10, %v749_v27  }
 0x12d   :  { %v756_v28 = vpop.permute.xlu0 %755   ;;  %v763_v29 = vpop.permute.xlu1 %762  }
 0x12e   :  { %759 = vst.msk [vmem:[#allocation0 + $0x1] sm:$0x1] %vm757_vm11, %v756_v28  }
 0x12f   :  { %765 = vst.msk [vmem:[#allocation0] sm:$0x1] %vm764_vm12, %v763_v29  }
 0x131   :  { %v769_v30 = vpop.permute.xlu0 %768   ;;  %v776_v31 = vpop.permute.xlu1 %775  }
 0x132   :  { %772 = vst.msk [vmem:[#allocation0 + $0x2] sm:$0x1] %vm770_vm13, %v769_v30  }
 0x133   :  { %779 = vst.msk [vmem:[#allocation0 + $0x1] sm:$0x1] %vm777_vm14, %v776_v31  }
 0x135   :  { %v783_v32 = vpop.permute.xlu0 %782   ;;  %v789_v33 = vpop.permute.xlu1 %788  }
 0x136   :  { %785 = vst.msk [vmem:[#allocation0] sm:$0x1] %vm784_vm15, %v783_v32  }
 0x137   :  { %792 = vst.msk [vmem:[#allocation0 + $0x2] sm:$0x1] %vm790_vm0, %v789_v33  }
 0x139   :  { %v796_v34 = vpop.permute.xlu0 %795  }
 0x13a   :  { %799 = vst.msk [vmem:[#allocation0 + $0x1] sm:$0x1] %vm797_vm1, %v796_v34  }
 0x141   :  { %v803_v35 = vld [vmem:[#allocation0] sm:$0xf] }
 0x142   :  { %805 = vst [vmem:[%s1171_s1] sm:$0xf] %v803_v35 }

// kernel: single_slice_3d_wrapper_forward.1
= control target key start
LH: loop header
LB: loop body
LE: loop exit
PB: predicated region body
PF: predicated region fallthrough
CT: control target
= control target key end

     0   :  { %8 = vsyncpa [#allocation5], 0  ;;  %s4694_s0 = inlined_call_operand.vmem [shape: f32[2,4,16,16], index: 0, kind: input, shape index: {}]   ;;  %s4695_s1 = inlined_call_operand.vmem [shape: f32[288], index: 1, kind: input, shape index: {}]   ;;  %s4696_s2 = inlined_call_operand.vmem [shape: f32[8], index: 2, kind: input, shape index: {}]   ;;  %s4697_s3 = inlined_call_operand.hbm [shape: f32[2,8,16,16], index: 3, kind: output, shape index: {}]  }
   0x1   :  { %9 = vsyncpa [#allocation7], 0 }
   0x2   :  { %10 = vsyncpa [#allocation4], 0 }
   0x3   :  { %12 = vsyncpa [#allocation4 + $0x1], 0  ;;  %s3139_s12 = smov 0   ;;  %s3141_s13 = smov 0  }
   0x4   :  { %s3143_s14 = smov 0   ;;  %s3145_s15 = smov 0  }
   0x5   :  { %s3147_s16 = smov 0   ;;  %s3149_s17 = smov 0  }
   0x6   :  { %s3151_s18 = smov 0   ;;  %s3153_s19 = smov 0  }
   0x7 LB: > { %s2514_s20 = sadd.s32 4294967295, %s3103_s19   ;;  %s2515_s21 = sadd.s32 4294967294, %s3103_s19   ;;  %s3103_s19 = sphi %s3153_s19, %s18_s19   ;;  %s3099_s18 = sphi %s3151_s18, %s4719_s18   ;;  %s3095_s17 = sphi %s3149_s17, %s4718_s17   ;;  %s3091_s16 = sphi %s3147_s16, %s4717_s16   ;;  %s3087_s15 = sphi %s3145_s15, %s4716_s15   ;;  %s3083_s14 = sphi %s3143_s14, %s4715_s14   ;;  %s3079_s13 = sphi %s3141_s13, %s4714_s13   ;;  %s3075_s12 = sphi %s3139_s12, %s4713_s12  }
   0x8   : > { %s27_s22 = sadd.s32 1, %s3095_s17  ;;  %s30_s23 = sadd.s32 1, %s3099_s18 }
   0x9   : > { %p28_p0 = scmp.ge.s32.totalorder %s27_s22, 2  ;;  %s107_s24 = sadd.s32 1, %s3083_s14 }
   0xa   : > { %p117_p1 = scmp.ne.s32.totalorder %s3083_s14, %s3079_s13  ;;  %p118_p2 = scmp.eq.s32.totalorder %s2514_s20, 3 }
   0xb   : > { %s4721_s22 = smov (%p28_p0, %s27_s22), 0  ;;  %s4723_s23 = smov (!%p28_p0, %s30_s23), %s3099_s18 }
   0xc   : > { %s103_s25 = ssub.s32 %s3095_s17, %s4721_s22  ;;  %p3191_p3 = por %p118_p2, %p117_p1 }
   0xd   : > { %p32_p4 = scmp.ge.s32.totalorder %s4723_s23, 2  ;;  %p123_p5 = scmp.ne.s32.totalorder %s3079_s13, %s3075_s12 }
   0xe   : > { %s4703_s26 = scalar_select %p3191_p3, 1, 0 }
   0xf   : > { %p124_p6 = scmp.eq.s32.totalorder %s2515_s21, 3  ;;  %p2516_p7 = scmp.ge.s32.totalorder %s3103_s19, 1 }
  0x10   : > { %s4725_s23 = smov (%p32_p4, %s4723_s23), 0  ;;  %p131_p9 = scmp.lt.s32.totalorder %s3103_s19, 5 }
  0x11   : > { %p3200_p8 = por %p124_p6, %p123_p5  ;;  %s102_s28 = ssub.s32 %s3099_s18, %s4725_s23 }
  0x12   : > { %s104_s29 = sor.u32 %s103_s25, %s102_s28  ;;  %p3207_p10 = pnand %p2516_p7, %p131_p9 }
  0x13   : > { %s4704_s27 = scalar_select %p3200_p8, 1, 0 }
  0x14   : > { %s4705_s30 = scalar_select %p3207_p10, 1, 0 }
  0x15   : > { %p105_p11 = scmp.eq.s32.totalorder %s104_s29, 0  ;;  %p3211_p12 = scmp.eq.s32.totalorder %s2514_s20, 0 }
  0x16   : > { %p2854_p13 = pneg %p3207_p10  ;;  %s144_s7 = sshll.u32 %s4695_s1, 4  ;;  %s145_s7 = int_to_ptr.vmem [resolvable:$true] %s144_s7 }
  0x17   : > { %s4706_s4 = scalar_select %p3211_p12, 1, 0 }
  0x18   : > { %s3221_s8 = scalar_select %p105_p11, %s3083_s14, %s107_s24  }
  0x19   : > { %p3225_p0 = pnand %p3211_p12, %p2854_p13  ;;  %s155_s20 = sshll.u32 %s4696_s2, 4  ;;  %s156_s20 = int_to_ptr.vmem [resolvable:$true] %s155_s20 }
  0x1a   : > { %s2971_s21 = scalar_lea.vmem %s145_s7, 48  ;;  %s2978_s24 = scalar_lea.vmem %s145_s7, 64 }
  0x1b   : > { %p2972_p1 = scmp.ne.s32.totalorder %s145_s7, %s2971_s21  ;;  %p2973_p2 = pneg %p3225_p0 }
  0x1c   : > { %p2979_p6 = scmp.lt.s32.totalorder %s145_s7, %s145_s7  ;;  %p2980_p7 = scmp.lt.s32.totalorder %s2978_s24, %s2971_s21 }
  0x1d   : > { %p2974_p4 = pnand %p2973_p2, %p2972_p1 }
  0x1e   : > { %p2981_p9 = por %p2980_p7, %p2979_p6 }
  0x1f   : > { %p2975_p5 = pneg %p2974_p4 }
  0x21   : > { %p2982_p11 = pnand %p2981_p9, %p2975_p5 }
  0x23   : > { %2985 = shalt.err (!%p2982_p11)
}
  0x24   : > { %s3105_s25 = smov [#allocation3]   ;;  %s2986_s28 = scalar_lea.vmem %s156_s20, 16 }
  0x25   : > { %2857 = dma.vmem_to_smem (!%p3225_p0), %s145_s7, 48, %s3105_s25, [#allocation5]  }
  0x26   : > { %p2987_p13 = scmp.ne.s32.totalorder %s156_s20, %s2986_s28  ;;  %p2994_p12 = scmp.lt.s32.totalorder %s156_s20, %s156_s20 }
  0x27   : > { %p2995_p1 = scmp.lt.s32.totalorder %s2986_s28, %s2986_s28 }
  0x28   : > { %p2989_p8 = pnand %p2987_p13, %p2973_p2 }
  0x29   : > { %p2996_p4 = por %p2995_p1, %p2994_p12 }
  0x2a   : > { %p2990_p3 = pneg %p2989_p8 }
  0x2c   : > { %p2997_p10 = pnand %p2996_p4, %p2990_p3 }
  0x2e   : > { %3000 = shalt.err (!%p2997_p10)
}
  0x2f   : > { %s3106_s29 = smov [#allocation6]   ;;  %p4708_p5 = scmp.ne.s32.totalorder %s4705_s30, 0 }
  0x30   : > { %2860 = dma.vmem_to_smem (!%p3225_p0), %s156_s20, 16, %s3106_s29, [#allocation7]  }
  0x31   : > { %176 = sbr.rel (%p4708_p5) target bundleno = 971 (0x3cb), region = 32  ;;  %p4709_p6 = scmp.ne.s32.totalorder (!%p4708_p5), %s4706_s4, 0 }
  0x38   : > { %3062 = dma.done.wait (%p4709_p6), [#allocation5], 48  }
  0x39   : > { %3064 = vsyncadd (%p4709_p6), [#allocation5], 4294967248 }
  0x3a   : > { %3066 = dma.done.wait (%p4709_p6), [#allocation7], 16  }
  0x3b   : > { %3068 = vsyncadd (%p4709_p6), [#allocation7], 4294967280 }
  0x3c   : > { %186 = sfence }
  0x3d   : > { %p205_p3 = scmp.lt.s32.totalorder %s3091_s16, 1  ;;  %vm211_vm0 = vcmask 7168   ;;  %vm213_vm1 = vcmask 1024   ;;  %vm221_vm2 = vcmask 146568   ;;  %v3107_v0 = vmov 0.0   ;;  %s4702_s30 = sand.u32 1, %s3079_s13  }
  0x3e   : > { %217 = vst.msk [vmem:[#allocation2 + $0x20] sm:$0xff] %vm211_vm0, %v3107_v0  ;;  %vm223_vm3 = vcmask 140424   ;;  %212 = vst.msk [vmem:[#allocation2] sm:$0xff] %vm211_vm0, %v3107_v0  ;;  %s2526_s5 = sshll.u32 %s3087_s15, 3  ;;  %s2523_s6 = sshll.u32 %s4702_s30, 6  ;;  %vm252_vm4 = vcmask 138248  }
  0x3f   : > { %218 = vst.msk [vmem:[#allocation2 + $0x28] sm:$0x3] %vm213_vm1, %v3107_v0  ;;  %214 = vst.msk [vmem:[#allocation2 + $0x8] sm:$0x3] %vm213_vm1, %v3107_v0  ;;  %s206_s4 = scalar_select %p205_p3, %s3091_s16, 1 }
  0x40   : > { %215 = vst.msk [vmem:[#allocation2 + $0x10] sm:$0xff] %vm211_vm0, %v3107_v0  ;;  %219 = vst.msk [vmem:[#allocation2 + $0x30] sm:$0xff] %vm211_vm0, %v3107_v0  ;;  %s3108_s21 = smov 1   ;;  %s3284_s24 = scalar_lea.vmem [#allocation8], %s2523_s6 }
  0x41   : > { %216 = vst.msk [vmem:[#allocation2 + $0x18] sm:$0x3] %vm213_vm1, %v3107_v0  ;;  %220 = vst.msk [vmem:[#allocation2 + $0x38] sm:$0x3] %vm213_vm1, %v3107_v0  ;;  %s2843_s7 = sshll.u32 %s206_s4, 6  ;;  %p2527_p8 = scmp.ne.s32.totalorder %s3087_s15, 0 }
  0x42   : > { %227 = vst.msk [vmem:[#allocation2 + $0x20] sm:$0xff] %vm221_vm2, %v3107_v0  ;;  %222 = vst.msk [vmem:[#allocation2] sm:$0xff] %vm221_vm2, %v3107_v0  ;;  %s3273_s11 = scalar_lea.vmem %s4694_s0, %s2843_s7  ;;  %vm261_vm5 = vcmask (!%p2527_p8), 131080   ;;  %v3109_v9 = vmov (!%p2527_p8), 0.0  }
  0x43   : > { %228 = vst.msk [vmem:[#allocation2 + $0x28] sm:$0x3] %vm223_vm3, %v3107_v0  ;;  %224 = vst.msk [vmem:[#allocation2 + $0x8] sm:$0x3] %vm223_vm3, %v3107_v0  ;;  %s3278_s20 = scalar_lea.vmem %s3273_s11, %s2526_s5 }
  0x44   : > { %225 = vst.msk [vmem:[#allocation2 + $0x10] sm:$0xff] %vm221_vm2, %v3107_v0  ;;  %229 = vst.msk [vmem:[#allocation2 + $0x30] sm:$0xff] %vm221_vm2, %v3107_v0  ;;  %v234_v1 = vld [vmem:[%s3278_s20 + $0x20] sm:$0xff]  ;;  %v235_v3 = vld [vmem:[%s3278_s20 + $0x30] sm:$0xff] }
  0x45   : > { %226 = vst.msk [vmem:[#allocation2 + $0x18] sm:$0x3] %vm223_vm3, %v3107_v0  ;;  %230 = vst.msk [vmem:[#allocation2 + $0x38] sm:$0x3] %vm223_vm3, %v3107_v0  ;;  %v232_v2 = vld [vmem:[%s3278_s20] sm:$0xff]  ;;  %244 = vrot.lane.b32.xlu1 %v234_v1, %s3108_s21  ;;  %v233_v4 = vld [vmem:[%s3278_s20 + $0x10] sm:$0xff] }
  0x46   : > { %240 = vrot.lane.b32.xlu0 %v232_v2, %s3108_s21  ;;  %262 = vst.msk [vmem:[#allocation2] sm:$0x1] (!%p2527_p8), %vm261_vm5, %v3109_v9  ;;  %263 = vst.msk [vmem:[#allocation2 + $0x10] sm:$0x1] (!%p2527_p8), %vm261_vm5, %v3109_v9 }
  0x47   : > { %264 = vst.msk [vmem:[#allocation2 + $0x20] sm:$0x1] (!%p2527_p8), %vm261_vm5, %v3109_v9  ;;  %265 = vst.msk [vmem:[#allocation2 + $0x30] sm:$0x1] (!%p2527_p8), %vm261_vm5, %v3109_v9 }
  0x49   : > { %246 = vrot.lane.b32.xlu1 %v235_v3, %s3108_s21 }
  0x4a   : > { %242 = vrot.lane.b32.xlu0 %v233_v4, %s3108_s21 }
  0xb7   : > { %v245_v5 = vpop.permute.xlu1 %244  ;;  %260 = sbr.rel (%p2527_p8) target bundleno = 190 (0xbe), region = 44 }
  0xb8   : > { %v241_v6 = vpop.permute.xlu0 %240  ;;  %255 = vst.msk [vmem:[#allocation2 + $0x21] sm:$0xff] %vm252_vm4, %v245_v5 }
  0xb9   : > { %253 = vst.msk [vmem:[#allocation2 + $0x1] sm:$0xff] %vm252_vm4, %v241_v6 }
  0xbb   : > { %v247_v7 = vpop.permute.xlu1 %246 }
  0xbc   : > { %v243_v8 = vpop.permute.xlu0 %242  ;;  %256 = vst.msk [vmem:[#allocation2 + $0x31] sm:$0xff] %vm252_vm4, %v247_v7 }
  0xbd   : > { %254 = vst.msk [vmem:[#allocation2 + $0x11] sm:$0xff] %vm252_vm4, %v243_v8 }
  0xbe PF: > { %p2528_p10 = scmp.le.s32.totalorder %s3087_s15, 0 }
  0xbf   : > { %s2529_s25 = sadd.s32 (!%p2528_p10), 4294967295, %s2526_s5  ;;  %s3110_s29 = smov (!%p2528_p10), 1   ;;  %vm292_vm6 = vcmask (!%p2528_p10), 131080  }
  0xc0   : > { %269 = sbr.rel (%p2528_p10) target bundleno = 315 (0x13b), region = 48  ;;  %s271_s28 = scalar_lea.vmem (!%p2528_p10), %s3273_s11, %s2529_s25 }
  0xc1   : > { %v274_v10 = vld [vmem:[%s271_s28 + $0x20] sm:$0x1] (!%p2528_p10)  ;;  %v275_v12 = vld [vmem:[%s271_s28 + $0x30] sm:$0x1] (!%p2528_p10) }
  0xc2   : > { %v272_v11 = vld [vmem:[%s271_s28] sm:$0x1] (!%p2528_p10)  ;;  %284 = vrot.lane.b32.xlu1 (!%p2528_p10), %v274_v10, %s3110_s29  ;;  %v273_v13 = vld [vmem:[%s271_s28 + $0x10] sm:$0x1] (!%p2528_p10) }
  0xc3   : > { %280 = vrot.lane.b32.xlu0 (!%p2528_p10), %v272_v11, %s3110_s29 }
  0xc6   : > { %286 = vrot.lane.b32.xlu1 (!%p2528_p10), %v275_v12, %s3110_s29 }
  0xc7   : > { %282 = vrot.lane.b32.xlu0 %v273_v13, %s3110_s29 }
 0x134   : > { %v285_v14 = vpop.permute.xlu1 %284 }
 0x135   : > { %v281_v15 = vpop.permute.xlu0 %280  ;;  %295 = vst.msk [vmem:[#allocation2 + $0x20] sm:$0x1] %vm292_vm6, %v285_v14 }
 0x136   : > { %293 = vst.msk [vmem:[#allocation2] sm:$0x1] %vm292_vm6, %v281_v15 }
 0x138   : > { %v287_v16 = vpop.permute.xlu1 %286 }
 0x139   : > { %v283_v17 = vpop.permute.xlu0 %282  ;;  %296 = vst.msk [vmem:[#allocation2 + $0x30] sm:$0x1] %vm292_vm6, %v287_v16 }
 0x13a   : > { %294 = vst.msk [vmem:[#allocation2 + $0x10] sm:$0x1] %vm292_vm6, %v283_v17 }
 0x13b PF: > { %p2530_p12 = scmp.ne.s32.totalorder %s3087_s15, 1 }
 0x13c   : > { %vm301_vm7 = vcmask (!%p2530_p12), 131080   ;;  %v3111_v18 = vmov (!%p2530_p12), 0.0  }
 0x13d   : > { %300 = sbr.rel (%p2530_p12) target bundleno = 324 (0x144), region = 52  ;;  %302 = vst.msk [vmem:[#allocation2 + $0x9] sm:$0x1] (!%p2530_p12), %vm301_vm7, %v3111_v18  ;;  %303 = vst.msk [vmem:[#allocation2 + $0x19] sm:$0x1] (!%p2530_p12), %vm301_vm7, %v3111_v18 }
 0x13e   : > { %304 = vst.msk [vmem:[#allocation2 + $0x29] sm:$0x1] (!%p2530_p12), %vm301_vm7, %v3111_v18  ;;  %305 = vst.msk [vmem:[#allocation2 + $0x39] sm:$0x1] (!%p2530_p12), %vm301_vm7, %v3111_v18 }
 0x144 PF: > { %p2531_p0 = scmp.ge.s32.totalorder %s3087_s15, 1 }
 0x145   : > { %v2535_v19 = vld [vmem:[%s3278_s20 + $0x28] sm:$0x1] (!%p2531_p0)  ;;  %s3112_s4 = smov (!%p2531_p0), 1   ;;  %v2536_v21 = vld [vmem:[%s3278_s20 + $0x38] sm:$0x1] (!%p2531_p0)  ;;  %vm332_vm8 = vcmask (!%p2531_p0), 131080  }
 0x146   : > { %309 = sbr.rel (%p2531_p0) target bundleno = 447 (0x1bf), region = 56  ;;  %v2533_v20 = vld [vmem:[%s3278_s20 + $0x8] sm:$0x1] (!%p2531_p0)  ;;  %324 = vrot.lane.b32.xlu1 (!%p2531_p0), %v2535_v19, %s3112_s4  ;;  %v2534_v22 = vld [vmem:[%s3278_s20 + $0x18] sm:$0x1] (!%p2531_p0) }
 0x147   : > { %320 = vrot.lane.b32.xlu0 (!%p2531_p0), %v2533_v20, %s3112_s4 }
 0x14a   : > { %326 = vrot.lane.b32.xlu1 (!%p2531_p0), %v2536_v21, %s3112_s4 }
 0x14b   : > { %322 = vrot.lane.b32.xlu0 (!%p2531_p0), %v2534_v22, %s3112_s4 }
 0x1b8   : > { %v325_v23 = vpop.permute.xlu1 %324 }
 0x1b9   : > { %v321_v24 = vpop.permute.xlu0 %320  ;;  %335 = vst.msk [vmem:[#allocation2 + $0x29] sm:$0x1] %vm332_vm8, %v325_v23 }
 0x1ba   : > { %333 = vst.msk [vmem:[#allocation2 + $0x9] sm:$0x1] %vm332_vm8, %v321_v24 }
 0x1bc   : > { %v327_v25 = vpop.permute.xlu1 %326 }
 0x1bd   : > { %v323_v26 = vpop.permute.xlu0 %322  ;;  %336 = vst.msk [vmem:[#allocation2 + $0x39] sm:$0x1] %vm332_vm8, %v327_v25 }
 0x1be   : > { %334 = vst.msk [vmem:[#allocation2 + $0x19] sm:$0x1] %vm332_vm8, %v323_v26 }
 0x1bf PF: > { %s2540_s5 = sld [smem:[#allocation3 + $0x4]]  ;;  %s2537_s6 = sld [smem:[#allocation3 + $0x1]]  ;;  %v3297_v27 = vld [vmem:[#allocation2 + $0x1] sm:$0xff]  ;;  %v3313_v42 = vld [vmem:[#allocation2 + $0x10] sm:$0xff]  ;;  %vm595_vm9 = vcmask 130048  }
 0x1c0   : > { %s2541_s7 = sld [smem:[#allocation3 + $0x5]]  ;;  %s2538_s9 = sld [smem:[#allocation3 + $0x2]]  ;;  %v3299_v28 = vld [vmem:[#allocation2] sm:$0xff]  ;;  %v3319_v47 = vld [vmem:[#allocation2 + $0x11] sm:$0xff] }
 0x1c1   : > { %s2544_s10 = sld [smem:[#allocation3 + $0x8]]  ;;  %s2543_s11 = sld [smem:[#allocation3 + $0x7]]  ;;  %v3307_v37 = vld [vmem:[#allocation2 + $0x2] sm:$0xff]  ;;  %v3349_v8 = vld [vmem:[#allocation2 + $0x30] sm:$0xff] }
 0x1c2   : > { %s2547_s20 = sld [smem:[#allocation3 + $0xb]]  ;;  %s2546_s21 = sld [smem:[#allocation3 + $0xa]]  ;;  %v3331_v57 = vld [vmem:[#allocation2 + $0x20] sm:$0xff]  ;;  %v3355_v13 = vld [vmem:[#allocation2 + $0x31] sm:$0xff] }
 0x1c3   : > { %s3113_s25 = smov 127   ;;  %s2550_s28 = sld [smem:[#allocation3 + $0xe]]  ;;  %v3337_v62 = vld [vmem:[#allocation2 + $0x21] sm:$0xff] }
 0x1c4   : > { %s2549_s29 = sld [smem:[#allocation3 + $0xd]]  ;;  %s3114_s4 = smov 126   ;;  %v3343_v3 = vld [vmem:[#allocation2 + $0x22] sm:$0xff]  ;;  %v3361_v18 = vld [vmem:[#allocation2 + $0x32] sm:$0xff] }
 0x1c5   : > { %v366_v29 = vstv %s2540_s5  ;;  %v345_v31 = vstv %s2537_s6  ;;  %s2553_s5 = sld [smem:[#allocation3 + $0x11]]  ;;  %s2552_s6 = sld [smem:[#allocation3 + $0x10]]  ;;  %v3325_v52 = vld [vmem:[#allocation2 + $0x12] sm:$0xff] }
 0x1c6   : > { %v367_v30 = vmul.f32 %v366_v29, %v3297_v27  ;;  %v346_v32 = vmul.f32 %v345_v31, %v3299_v28  ;;  %v374_v33 = vstv %s2541_s7  ;;  %v353_v34 = vstv %s2538_s9  ;;  %s2556_s7 = sld [smem:[#allocation3 + $0x14]]  ;;  %s2555_s9 = sld [smem:[#allocation3 + $0x13]] }
 0x1c7   : > { %v375_v35 = vmul.f32 %v374_v33, %v3297_v27  ;;  %v354_v36 = vmul.f32 %v353_v34, %v3299_v28  ;;  %v395_v38 = vstv %s2544_s10  ;;  %v387_v39 = vstv %s2543_s11  ;;  %s2559_s10 = sld [smem:[#allocation3 + $0x17]]  ;;  %s2558_s11 = sld [smem:[#allocation3 + $0x16]] }
 0x1c8   : > { %369 = vrot.lane.b32.xlu1 %v367_v30, %s3113_s25  ;;  %348 = vrot.lane.b32.xlu0 %v346_v32, %s3113_s25  ;;  %v396_v40 = vmul.f32 %v395_v38, %v3307_v37  ;;  %v388_v41 = vmul.f32 %v387_v39, %v3307_v37  ;;  %v417_v43 = vstv %s2547_s20  ;;  %v409_v44 = vstv %s2546_s21  ;;  %s2562_s20 = sld [smem:[#allocation3 + $0x1a]]  ;;  %s2561_s21 = sld [smem:[#allocation3 + $0x19]] }
 0x1c9   : > { %v418_v45 = vmul.f32 %v417_v43, %v3313_v42  ;;  %v410_v46 = vmul.f32 %v409_v44, %v3313_v42  ;;  %v438_v48 = vstv %s2550_s28  ;;  %s2565_s28 = sld [smem:[#allocation3 + $0x1d]]  ;;  %s3431_s30 = sld [smem:[#allocation3 + $0x3]] }
 0x1ca   : > { %v430_v49 = vstv %s2549_s29  ;;  %v439_v50 = vmul.f32 %v438_v48, %v3319_v47  ;;  %s2564_s29 = sld [smem:[#allocation3 + $0x1c]]  ;;  %p4711_p7 = scmp.ne.s32.totalorder %s4703_s26, 0 }
 0x1cb   : > { %v431_v51 = vmul.f32 %v430_v49, %v3319_v47  ;;  %v459_v53 = vstv %s2553_s5  ;;  %v451_v54 = vstv %s2552_s6  ;;  %s2568_s5 = sld [smem:[#allocation3 + $0x20]]  ;;  %s2567_s6 = sld [smem:[#allocation3 + $0x1f]] }
 0x1cc   : > { %377 = vrot.lane.b32.xlu1 %v375_v35, %s3114_s4  ;;  %356 = vrot.lane.b32.xlu0 %v354_v36, %s3114_s4  ;;  %v460_v55 = vmul.f32 %v459_v53, %v3325_v52  ;;  %v452_v56 = vmul.f32 %v451_v54, %v3325_v52  ;;  %v481_v58 = vstv %s2556_s7  ;;  %v473_v59 = vstv %s2555_s9  ;;  %s2571_s7 = sld [smem:[#allocation3 + $0x23]]  ;;  %s2570_s9 = sld [smem:[#allocation3 + $0x22]] }
 0x1cd   : > { %v482_v60 = vmul.f32 %v481_v58, %v3331_v57  ;;  %v474_v61 = vmul.f32 %v473_v59, %v3331_v57  ;;  %v502_v63 = vstv %s2559_s10  ;;  %v494_v0 = vstv %s2558_s11  ;;  %s2575_s10 = sld [smem:[#allocation3 + $0x26]]  ;;  %s2574_s11 = sld [smem:[#allocation3 + $0x25]] }
 0x1ce   : > { %v503_v1 = vmul.f32 %v502_v63, %v3337_v62  ;;  %v495_v2 = vmul.f32 %v494_v0, %v3337_v62  ;;  %v523_v4 = vstv %s2562_s20  ;;  %v515_v5 = vstv %s2561_s21  ;;  %s2578_s20 = sld [smem:[#allocation3 + $0x29]]  ;;  %s2577_s21 = sld [smem:[#allocation3 + $0x28]] }
 0x1cf   : > { %v524_v6 = vmul.f32 %v523_v4, %v3343_v3  ;;  %v516_v7 = vmul.f32 %v515_v5, %v3343_v3  ;;  %v545_v9 = vstv %s2565_s28  ;;  %s2581_s28 = sld [smem:[#allocation3 + $0x2c]] }
 0x1d0   : > { %398 = vrot.lane.b32.xlu1 %v396_v40, %s3114_s4  ;;  %390 = vrot.lane.b32.xlu0 %v388_v41, %s3113_s25  ;;  %v537_v10 = vstv %s2564_s29  ;;  %v546_v11 = vmul.f32 %v545_v9, %v3349_v8  ;;  %s2580_s29 = sld [smem:[#allocation3 + $0x2b]] }
 0x1d1   : > { %v538_v12 = vmul.f32 %v537_v10, %v3349_v8  ;;  %v566_v14 = vstv %s2568_s5  ;;  %v558_v15 = vstv %s2567_s6  ;;  %s2584_s5 = sld [smem:[#allocation3 + $0x2f]]  ;;  %s2583_s6 = sld [smem:[#allocation3 + $0x2e]] }
 0x1d2   : > { %v567_v16 = vmul.f32 %v566_v14, %v3355_v13  ;;  %v559_v17 = vmul.f32 %v558_v15, %v3355_v13  ;;  %v587_v19 = vstv %s2571_s7  ;;  %v579_v20 = vstv %s2570_s9  ;;  %s2587_s7 = sld [smem:[#allocation3 + $0x32]]  ;;  %s2586_s9 = sld [smem:[#allocation3 + $0x31]] }
 0x1d3   : > { %v588_v21 = vmul.f32 %v587_v19, %v3361_v18  ;;  %v580_v22 = vmul.f32 %v579_v20, %v3361_v18  ;;  %v613_v23 = vstv %s2575_s10  ;;  %v605_v24 = vstv %s2574_s11  ;;  %s2590_s10 = sld [smem:[#allocation3 + $0x35]]  ;;  %s2589_s11 = sld [smem:[#allocation3 + $0x34]] }
 0x1d4   : > { %420 = vrot.lane.b32.xlu1 %v418_v45, %s3114_s4  ;;  %412 = vrot.lane.b32.xlu0 %v410_v46, %s3113_s25  ;;  %v614_v25 = vmul.f32 %v613_v23, %v3299_v28  ;;  %v606_v26 = vmul.f32 %v605_v24, %v3299_v28  ;;  %v634_v29 = vstv %s2578_s20  ;;  %v626_v30 = vstv %s2577_s21  ;;  %s2593_s20 = sld [smem:[#allocation3 + $0x38]]  ;;  %s2592_s21 = sld [smem:[#allocation3 + $0x37]] }
 0x1d5   : > { %v635_v31 = vmul.f32 %v634_v29, %v3297_v27  ;;  %v627_v32 = vmul.f32 %v626_v30, %v3297_v27  ;;  %v655_v33 = vstv %s2581_s28  ;;  %s2596_s28 = sld [smem:[#allocation3 + $0x3b]] }
 0x1d6   : > { %v647_v34 = vstv %s2580_s29  ;;  %v656_v35 = vmul.f32 %v655_v33, %v3307_v37  ;;  %s2595_s29 = sld [smem:[#allocation3 + $0x3a]] }
 0x1d7   : > { %v648_v36 = vmul.f32 %v647_v34, %v3307_v37  ;;  %v676_v38 = vstv %s2584_s5  ;;  %v668_v39 = vstv %s2583_s6  ;;  %s2599_s5 = sld [smem:[#allocation3 + $0x3e]]  ;;  %s2598_s6 = sld [smem:[#allocation3 + $0x3d]] }
 0x1d8   : > { %441 = vrot.lane.b32.xlu1 %v439_v50, %s3114_s4  ;;  %433 = vrot.lane.b32.xlu0 %v431_v51, %s3113_s25  ;;  %v677_v40 = vmul.f32 %v676_v38, %v3313_v42  ;;  %v669_v41 = vmul.f32 %v668_v39, %v3313_v42  ;;  %v697_v43 = vstv %s2587_s7  ;;  %v689_v44 = vstv %s2586_s9  ;;  %s2602_s7 = sld [smem:[#allocation3 + $0x41]]  ;;  %s2601_s9 = sld [smem:[#allocation3 + $0x40]] }
 0x1d9   : > { %v698_v45 = vmul.f32 %v697_v43, %v3319_v47  ;;  %v690_v46 = vmul.f32 %v689_v44, %v3319_v47  ;;  %v718_v48 = vstv %s2590_s10  ;;  %v710_v49 = vstv %s2589_s11  ;;  %s2605_s10 = sld [smem:[#allocation3 + $0x44]]  ;;  %s2604_s11 = sld [smem:[#allocation3 + $0x43]] }
 0x1da   : > { %v719_v50 = vmul.f32 %v718_v48, %v3325_v52  ;;  %v711_v51 = vmul.f32 %v710_v49, %v3325_v52  ;;  %v739_v53 = vstv %s2593_s20  ;;  %v731_v54 = vstv %s2592_s21  ;;  %s2608_s20 = sld [smem:[#allocation3 + $0x47]]  ;;  %s2607_s21 = sld [smem:[#allocation3 + $0x46]] }
 0x1db   : > { %v760_v58 = vstv %s2596_s28  ;;  %s2613_s28 = sld [smem:[#allocation3 + $0x4a]] }
 0x1dc   : > { %462 = vrot.lane.b32.xlu1 %v460_v55, %s3114_s4  ;;  %454 = vrot.lane.b32.xlu0 %v452_v56, %s3113_s25  ;;  %v740_v55 = vmul.f32 %v739_v53, %v3331_v57  ;;  %v732_v56 = vmul.f32 %v731_v54, %v3331_v57  ;;  %v752_v59 = vstv %s2595_s29  ;;  %s2612_s29 = sld [smem:[#allocation3 + $0x49]] }
 0x1dd   : > { %v781_v63 = vstv %s2599_s5  ;;  %v773_v0 = vstv %s2598_s6  ;;  %s2616_s5 = sld [smem:[#allocation3 + $0x4d]]  ;;  %s2615_s6 = sld [smem:[#allocation3 + $0x4c]] }
 0x1de   : > { %v802_v4 = vstv %s2602_s7  ;;  %v794_v5 = vstv %s2601_s9  ;;  %s2619_s7 = sld [smem:[#allocation3 + $0x50]]  ;;  %s2618_s9 = sld [smem:[#allocation3 + $0x4f]] }
 0x1df   : > { %v823_v9 = vstv %s2605_s10  ;;  %v815_v10 = vstv %s2604_s11  ;;  %s2622_s10 = sld [smem:[#allocation3 + $0x53]]  ;;  %s2621_s11 = sld [smem:[#allocation3 + $0x52]] }
 0x1e0   : > { %484 = vrot.lane.b32.xlu1 %v482_v60, %s3114_s4  ;;  %476 = vrot.lane.b32.xlu0 %v474_v61, %s3113_s25  ;;  %v761_v60 = vmul.f32 %v760_v58, %v3337_v62  ;;  %v753_v61 = vmul.f32 %v752_v59, %v3337_v62  ;;  %v844_v14 = vstv %s2608_s20  ;;  %v836_v15 = vstv %s2607_s21  ;;  %s2625_s20 = sld [smem:[#allocation3 + $0x56]]  ;;  %s2624_s21 = sld [smem:[#allocation3 + $0x55]] }
 0x1e1   : > { %v870_v19 = vstv %s2613_s28  ;;  %s339_s28 = sld [smem:[#allocation3]]  ;;  %v362_v58 = vstv %s3431_s30  ;;  %s3462_s30 = sld [smem:[#allocation3 + $0x64]] }
 0x1e2   : > { %v862_v20 = vstv %s2612_s29  ;;  %s2628_s29 = sld [smem:[#allocation3 + $0x59]] }
 0x1e3   : > { %v891_v23 = vstv %s2616_s5  ;;  %v883_v24 = vstv %s2615_s6  ;;  %s2627_s5 = sld [smem:[#allocation3 + $0x58]] }
 0x1e4   : > { %505 = vrot.lane.b32.xlu1 %v503_v1, %s3114_s4  ;;  %497 = vrot.lane.b32.xlu0 %v495_v2, %s3113_s25  ;;  %v782_v1 = vmul.f32 %v781_v63, %v3343_v3  ;;  %v774_v2 = vmul.f32 %v773_v0, %v3343_v3  ;;  %v912_v29 = vstv %s2619_s7  ;;  %v904_v30 = vstv %s2618_s9  ;;  %s337_s6 = sld [smem:[#allocation6]]  ;;  %s2631_s7 = sld [smem:[#allocation3 + $0x5c]] }
 0x1e5   : > { %v933_v33 = vstv %s2622_s10  ;;  %v925_v34 = vstv %s2621_s11  ;;  %s2630_s9 = sld [smem:[#allocation3 + $0x5b]]  ;;  %s3437_s10 = sld [smem:[#allocation3 + $0x5f]] }
 0x1e6   : > { %v954_v38 = vstv %s2625_s20  ;;  %v946_v39 = vstv %s2624_s21  ;;  %s3440_s11 = sld [smem:[#allocation3 + $0x5e]]  ;;  %s3448_s21 = sld [smem:[#allocation3 + $0x62]] }
 0x1e7   : > { %v947_v43 = vmul.f32 %v946_v39, %v3319_v47  ;;  %s3446_s20 = sld [smem:[#allocation3 + $0x6]] }
 0x1e8   : > { %526 = vrot.lane.b32.xlu1 %v524_v6, %s3114_s4  ;;  %518 = vrot.lane.b32.xlu0 %v516_v7, %s3113_s25  ;;  %v803_v6 = vmul.f32 %v802_v4, %v3349_v8  ;;  %v795_v7 = vmul.f32 %v794_v5, %v3349_v8  ;;  %v975_v44 = vstv %s2628_s29  ;;  %s3458_s29 = sld [smem:[#allocation3 + $0x65]] }
 0x1e9   : > { %v976_v49 = vmul.f32 %v975_v44, %v3325_v52 }
 0x1ea   : > { %v338_v48 = vstv %s337_s6  ;;  %s3472_s6 = sld [smem:[#allocation3 + $0x68]] }
 0x1ec   : > { %548 = vrot.lane.b32.xlu1 %v546_v11, %s3114_s4  ;;  %540 = vrot.lane.b32.xlu0 %v538_v12, %s3113_s25  ;;  %v824_v11 = vmul.f32 %v823_v9, %v3355_v13  ;;  %v816_v12 = vmul.f32 %v815_v10, %v3355_v13  ;;  %v1038_v10 = vstv %s3448_s21  ;;  %s3500_s21 = sld [smem:[#allocation3 + $0x6d]] }
 0x1f0   : > { %569 = vrot.lane.b32.xlu1 %v567_v16, %s3114_s4  ;;  %561 = vrot.lane.b32.xlu0 %v559_v17, %s3113_s25  ;;  %v845_v16 = vmul.f32 %v844_v14, %v3361_v18  ;;  %v837_v17 = vmul.f32 %v836_v15, %v3361_v18 }
 0x1f4   : > { %590 = vrot.lane.b32.xlu1 %v588_v21, %s3114_s4  ;;  %582 = vrot.lane.b32.xlu0 %v580_v22, %s3113_s25  ;;  %v871_v21 = vmul.f32 %v870_v19, %v3299_v28  ;;  %v863_v22 = vmul.f32 %v862_v20, %v3299_v28  ;;  %v1039_v19 = vmul.f32 %v1038_v10, %v3343_v3 }
 0x1f8   : > { %616 = vrot.lane.b32.xlu1 %v614_v25, %s3114_s4  ;;  %608 = vrot.lane.b32.xlu0 %v606_v26, %s3113_s25  ;;  %v892_v25 = vmul.f32 %v891_v23, %v3297_v27  ;;  %v884_v26 = vmul.f32 %v883_v24, %v3297_v27  ;;  %v1051_v24 = vstv %s3462_s30  ;;  %s3513_s30 = sld [smem:[#allocation3 + $0x70]] }
 0x1fc   : > { %637 = vrot.lane.b32.xlu1 %v635_v31, %s3114_s4  ;;  %629 = vrot.lane.b32.xlu0 %v627_v32, %s3113_s25  ;;  %v913_v31 = vmul.f32 %v912_v29, %v3307_v37  ;;  %v905_v32 = vmul.f32 %v904_v30, %v3307_v37 }
 0x200   : > { %658 = vrot.lane.b32.xlu1 %v656_v35, %s3114_s4  ;;  %650 = vrot.lane.b32.xlu0 %v648_v36, %s3113_s25  ;;  %v934_v35 = vmul.f32 %v933_v33, %v3313_v42  ;;  %v926_v36 = vmul.f32 %v925_v34, %v3313_v42 }
 0x204   : > { %679 = vrot.lane.b32.xlu1 %v677_v40, %s3114_s4  ;;  %671 = vrot.lane.b32.xlu0 %v669_v41, %s3113_s25  ;;  %v341_v40 = vstv %s339_s28  ;;  %v955_v41 = vmul.f32 %v954_v38, %v3319_v47  ;;  %s3450_s28 = sld [smem:[#allocation3 + $0x61]] }
 0x208   : > { %700 = vrot.lane.b32.xlu1 %v698_v45, %s3114_s4  ;;  %692 = vrot.lane.b32.xlu0 %v690_v46, %s3113_s25  ;;  %v342_v45 = vmul.f32 %v341_v40, %v3299_v28  ;;  %v967_v46 = vstv %s2627_s5  ;;  %s3464_s5 = sld [smem:[#allocation3 + $0x9]] }
 0x20a   : > { %v343_v54 = vadd.f32 %v342_v45, %v338_v48  ;;  %v1030_v14 = vstv %s3450_s28  ;;  %s3502_s28 = sld [smem:[#allocation3 + $0xf]] }
 0x20b   : > { %v1031_v20 = vmul.f32 %v1030_v14, %v3343_v3 }
 0x20c   : > { %721 = vrot.lane.b32.xlu1 %v719_v50, %s3114_s4  ;;  %713 = vrot.lane.b32.xlu0 %v711_v51, %s3113_s25  ;;  %v968_v50 = vmul.f32 %v967_v46, %v3325_v52  ;;  %v996_v51 = vstv %s2631_s7  ;;  %s3475_s7 = sld [smem:[#allocation3 + $0x67]] }
 0x20d   : > { %v997_v59 = vmul.f32 %v996_v51, %v3331_v57 }
 0x210   : > { %742 = vrot.lane.b32.xlu1 %v740_v55, %s3114_s4  ;;  %734 = vrot.lane.b32.xlu0 %v732_v56, %s3113_s25  ;;  %v988_v55 = vstv %s2630_s9  ;;  %s3482_s9 = sld [smem:[#allocation3 + $0xc]] }
 0x214   : > { %763 = vrot.lane.b32.xlu1 %v761_v60, %s3114_s4  ;;  %755 = vrot.lane.b32.xlu0 %v753_v61, %s3113_s25  ;;  %v989_v60 = vmul.f32 %v988_v55, %v3331_v57  ;;  %v1017_v61 = vstv %s3437_s10  ;;  %s3485_s10 = sld [smem:[#allocation3 + $0x6b]] }
 0x218   : > { %784 = vrot.lane.b32.xlu1 %v782_v1, %s3114_s4  ;;  %776 = vrot.lane.b32.xlu0 %v774_v2, %s3113_s25  ;;  %v363_v1 = vmul.f32 %v362_v58, %v3297_v27  ;;  %v1009_v2 = vstv %s3440_s11  ;;  %s3488_s11 = sld [smem:[#allocation3 + $0x6a]] }
 0x219   : > { %v1010_v9 = vmul.f32 %v1009_v2, %v3337_v62 }
 0x21a   : > { %v1101_v44 = vstv %s3485_s10  ;;  %s3542_s10 = sld [smem:[#allocation3 + $0x76]] }
 0x21c   : > { %805 = vrot.lane.b32.xlu1 %v803_v6, %s3114_s4  ;;  %797 = vrot.lane.b32.xlu0 %v795_v7, %s3113_s25  ;;  %v1018_v6 = vmul.f32 %v1017_v61, %v3337_v62  ;;  %v383_v7 = vstv %s3446_s20  ;;  %s3496_s20 = sld [smem:[#allocation3 + $0x6e]] }
 0x21e   : > { %v1093_v48 = vstv %s3488_s11  ;;  %s3544_s11 = sld [smem:[#allocation3 + $0x15]] }
 0x220   : > { %826 = vrot.lane.b32.xlu1 %v824_v11, %s3114_s4  ;;  %818 = vrot.lane.b32.xlu0 %v816_v12, %s3113_s25 }
 0x222   : > { %v1127_v55 = vstv %s3496_s20  ;;  %s3554_s20 = sld [smem:[#allocation3 + $0x7a]] }
 0x224   : > { %847 = vrot.lane.b32.xlu1 %v845_v16, %s3114_s4  ;;  %839 = vrot.lane.b32.xlu0 %v837_v17, %s3113_s25  ;;  %v384_v17 = vmul.f32 %v383_v7, %v3307_v37  ;;  %v1140_v7 = vstv %s3513_s30  ;;  %s3573_s30 = sld [smem:[#allocation6 + $0x1]] }
 0x225   : > { %v1141_v14 = vmul.f32 %v1140_v7, %v3297_v27 }
 0x228   : > { %873 = vrot.lane.b32.xlu1 %v871_v21, %s3114_s4  ;;  %865 = vrot.lane.b32.xlu0 %v863_v22, %s3113_s25  ;;  %v1059_v21 = vstv %s3458_s29  ;;  %s3510_s29 = sld [smem:[#allocation3 + $0x71]] }
 0x229   : > { %v1060_v30 = vmul.f32 %v1059_v21, %v3349_v8 }
 0x22c   : > { %894 = vrot.lane.b32.xlu1 %v892_v25, %s3114_s4  ;;  %886 = vrot.lane.b32.xlu0 %v884_v26, %s3113_s25  ;;  %v405_v25 = vstv %s3464_s5  ;;  %s3519_s5 = sld [smem:[#allocation3 + $0x12]] }
 0x22d   : > { %v406_v34 = vmul.f32 %v405_v25, %v3313_v42 }
 0x22e   : > { %v1148_v2 = vstv %s3510_s29  ;;  %s3566_s29 = sld [smem:[#allocation3 + $0x18]] }
 0x230   : > { %915 = vrot.lane.b32.xlu1 %v913_v31, %s3114_s4  ;;  %907 = vrot.lane.b32.xlu0 %v905_v32, %s3113_s25  ;;  %v1052_v31 = vmul.f32 %v1051_v24, %v3349_v8  ;;  %v1080_v32 = vstv %s3472_s6  ;;  %s3523_s6 = sld [smem:[#allocation3 + $0x74]] }
 0x231   : > { %v1081_v40 = vmul.f32 %v1080_v32, %v3355_v13 }
 0x234   : > { %936 = vrot.lane.b32.xlu1 %v934_v35, %s3114_s4  ;;  %928 = vrot.lane.b32.xlu0 %v926_v36, %s3113_s25  ;;  %v1072_v36 = vstv %s3475_s7  ;;  %s3528_s7 = sld [smem:[#allocation3 + $0x73]] }
 0x238   : > { %957 = vrot.lane.b32.xlu1 %v955_v41, %s3114_s4  ;;  %949 = vrot.lane.b32.xlu0 %v947_v43, %s3113_s25  ;;  %v426_v41 = vstv %s3482_s9  ;;  %v1073_v43 = vmul.f32 %v1072_v36, %v3355_v13  ;;  %s3536_s9 = sld [smem:[#allocation3 + $0x77]]  ;;  %v1211_v36 = vstv %s3554_s20  ;;  %s3614_s20 = sld [smem:[#allocation3 + $0x83]] }
 0x239   : > { %v427_v51 = vmul.f32 %v426_v41, %v3319_v47 }
 0x23a   : > { %v370_v53 = vpop.permute.xlu1 %369  ;;  %v349_v56 = vpop.permute.xlu0 %348 }
 0x23b   : > { %v351_v63 = vadd.f32 %v349_v56, %v343_v54  ;;  %v1094_v54 = vmul.f32 %v1093_v48, %v3361_v18 }
 0x23c   : > { %978 = vrot.lane.b32.xlu1 %v976_v49, %s3114_s4  ;;  %970 = vrot.lane.b32.xlu0 %v968_v50, %s3113_s25 }
 0x23e   : > { %v378_v0 = vpop.permute.xlu1 %377  ;;  %v357_v4 = vpop.permute.xlu0 %356  ;;  %v1190_v25 = vstv %s3536_s9  ;;  %s3593_s9 = sld [smem:[#allocation3 + $0x80]] }
 0x23f   : > { %v359_v5 = vadd.f32 %v357_v4, %v351_v63 }
 0x240   : > { %999 = vrot.lane.b32.xlu1 %v997_v59, %s3114_s4  ;;  %991 = vrot.lane.b32.xlu0 %v989_v60, %s3113_s25  ;;  %v1119_v59 = vstv %s3500_s21  ;;  %v447_v60 = vstv %s3502_s28  ;;  %s3556_s21 = sld [smem:[#allocation3 + $0x24]]  ;;  %s3561_s28 = sld [smem:[#allocation3 + $0x79]] }
 0x241   : > { %v364_v11 = vadd.f32 %v363_v1, %v359_v5  ;;  %v1120_v1 = vmul.f32 %v1119_v59, %v3299_v28  ;;  %v448_v5 = vmul.f32 %v447_v60, %v3325_v52 }
 0x242   : > { %v399_v12 = vpop.permute.xlu1 %398  ;;  %v391_v15 = vpop.permute.xlu0 %390 }
 0x243   : > { %v372_v16 = vadd.f32 %v370_v53, %v364_v11  ;;  %v1102_v53 = vmul.f32 %v1101_v44, %v3361_v18  ;;  %v1149_v11 = vmul.f32 %v1148_v2, %v3297_v27 }
 0x244   : > { %1020 = vrot.lane.b32.xlu1 %v1018_v6, %s3114_s4  ;;  %1012 = vrot.lane.b32.xlu0 %v1010_v9, %s3113_s25 }
 0x245   : > { %v380_v22 = vadd.f32 %v378_v0, %v372_v16  ;;  %v1128_v0 = vmul.f32 %v1127_v55, %v3299_v28 }
 0x246   : > { %v421_v23 = vpop.permute.xlu1 %420  ;;  %v413_v26 = vpop.permute.xlu0 %412 }
 0x247   : > { %v385_v29 = vadd.f32 %v384_v17, %v380_v22 }
 0x248   : > { %1041 = vrot.lane.b32.xlu1 %v1039_v19, %s3114_s4  ;;  %1033 = vrot.lane.b32.xlu0 %v1031_v20, %s3113_s25  ;;  %v1161_v19 = vstv %s3528_s7  ;;  %s3591_s7 = sld [smem:[#allocation3 + $0x27]] }
 0x249   : > { %v393_v33 = vadd.f32 %v391_v15, %v385_v29  ;;  %v1169_v15 = vstv %s3523_s6  ;;  %v1162_v24 = vmul.f32 %v1161_v19, %v3307_v37  ;;  %s3580_s6 = sld [smem:[#allocation3 + $0x7c]] }
 0x24a   : > { %v442_v35 = vpop.permute.xlu1 %441  ;;  %v434_v38 = vpop.permute.xlu0 %433 }
 0x24b   : > { %v401_v39 = vadd.f32 %v399_v12, %v393_v33  ;;  %v469_v12 = vstv %s3519_s5  ;;  %s3575_s5 = sld [smem:[#allocation3 + $0x7d]] }
 0x24c   : > { %1062 = vrot.lane.b32.xlu1 %v1060_v30, %s3114_s4  ;;  %1054 = vrot.lane.b32.xlu0 %v1052_v31, %s3113_s25  ;;  %v470_v22 = vmul.f32 %v469_v12, %v3331_v57  ;;  %v1182_v30 = vstv %s3542_s10  ;;  %v490_v31 = vstv %s3544_s11  ;;  %s3599_s10 = sld [smem:[#allocation3 + $0x7f]]  ;;  %s3601_s11 = sld [smem:[#allocation3 + $0x1b]] }
 0x24d   : > { %v407_v45 = vadd.f32 %v406_v34, %v401_v39  ;;  %v1191_v34 = vmul.f32 %v1190_v25, %v3313_v42 }
 0x24e   : > { %v463_v46 = vpop.permute.xlu1 %462  ;;  %v455_v49 = vpop.permute.xlu0 %454 }
 0x24f   : > { %v415_v50 = vadd.f32 %v413_v26, %v407_v45 }
 0x250   : > { %1083 = vrot.lane.b32.xlu1 %v1081_v40, %s3114_s4  ;;  %1075 = vrot.lane.b32.xlu0 %v1073_v43, %s3113_s25  ;;  %v491_v40 = vmul.f32 %v490_v31, %v3337_v62  ;;  %v1203_v43 = vstv %s3561_s28  ;;  %s3623_s28 = sld [smem:[#allocation3 + $0x2a]] }
 0x251   : > { %v423_v56 = vadd.f32 %v421_v23, %v415_v50  ;;  %v1170_v23 = vmul.f32 %v1169_v15, %v3307_v37  ;;  %v1204_v50 = vmul.f32 %v1203_v43, %v3319_v47  ;;  %v1274_v15 = vstv %s3614_s20  ;;  %s3671_s20 = sld [smem:[#allocation3 + $0x8b]] }
 0x252   : > { %v3525_v58 = vpop.permute.xlu1 %484  ;;  %v477_v61 = vpop.permute.xlu0 %476  ;;  %v533_v7 = vstv %s3601_s11  ;;  %s3667_s11 = sld [smem:[#allocation3 + $0x8c]] }
 0x253   : > { %v428_v63 = vadd.f32 %v427_v51, %v423_v56  ;;  %v598_v51 = vstv %s3573_s30  ;;  %v1224_v56 = vstv %s3580_s6  ;;  %s3635_s30 = sld [smem:[#allocation3 + $0x86]]  ;;  %s3648_s6 = sld [smem:[#allocation3 + $0x2d]]  ;;  %v534_v19 = vmul.f32 %v533_v7, %v3349_v8 }
 0x254   : > { %1104 = vrot.lane.b32.xlu1 %v1102_v53, %s3114_s4  ;;  %1096 = vrot.lane.b32.xlu0 %v1094_v54, %s3113_s25  ;;  %v1232_v53 = vstv %s3575_s5  ;;  %s3639_s5 = sld [smem:[#allocation3 + $0x85]] }
 0x255   : > { %v436_v4 = vadd.f32 %v434_v38, %v428_v63  ;;  %v601_v38 = vstv %s3556_s21  ;;  %s3619_s21 = sld [smem:[#allocation3 + $0x82]]  ;;  %v1225_v63 = vmul.f32 %v1224_v56, %v3325_v52 }
 0x256   : > { %v3539_v6 = vpop.permute.xlu1 %505  ;;  %v3546_v9 = vpop.permute.xlu0 %497  ;;  %v602_v48 = vmul.f32 %v601_v38, %v3299_v28 }
 0x257   : > { %v444_v10 = vadd.f32 %v442_v35, %v436_v4  ;;  %v1183_v35 = vmul.f32 %v1182_v30, %v3313_v42 }
 0x258   : > { %1130 = vrot.lane.b32.xlu1 %v1128_v0, %s3114_s4  ;;  %1122 = vrot.lane.b32.xlu0 %v1120_v1, %s3113_s25  ;;  %v603_v60 = vadd.f32 %v602_v48, %v598_v51  ;;  %v622_v0 = vstv %s3591_s7  ;;  %v1253_v1 = vstv %s3593_s9  ;;  %s3650_s7 = sld [smem:[#allocation3 + $0x89]]  ;;  %s3655_s9 = sld [smem:[#allocation3 + $0x88]] }
 0x259   : > { %v449_v16 = vadd.f32 %v448_v5, %v444_v10  ;;  %v1245_v5 = vstv %s3599_s10  ;;  %v623_v12 = vmul.f32 %v622_v0, %v3297_v27  ;;  %s3657_s10 = sld [smem:[#allocation3 + $0x21]]  ;;  %v1295_v31 = vstv %s3635_s30  ;;  %s3695_s30 = sld [smem:[#allocation3 + $0x33]] }
 0x25a   : > { %v3558_v17 = vpop.permute.xlu1 %526  ;;  %v3563_v20 = vpop.permute.xlu0 %518  ;;  %v1296_v43 = vmul.f32 %v1295_v31, %v3343_v3  ;;  %v1329_v0 = vstv %s3671_s20  ;;  %s3735_s20 = sld [smem:[#allocation3 + $0x97]] }
 0x25b   : > { %v457_v21 = vadd.f32 %v455_v49, %v449_v16  ;;  %v511_v49 = vstv %s3566_s29  ;;  %s3629_s29 = sld [smem:[#allocation3 + $0x1e]]  ;;  %v1266_v27 = vstv %s3619_s21  ;;  %s3673_s21 = sld [smem:[#allocation3 + $0x30]] }
 0x25c   : > { %1151 = vrot.lane.b32.xlu1 %v1149_v11, %s3114_s4  ;;  %1143 = vrot.lane.b32.xlu0 %v1141_v14, %s3113_s25  ;;  %v512_v59 = vmul.f32 %v511_v49, %v3343_v3  ;;  %v1254_v14 = vmul.f32 %v1253_v1, %v3331_v57  ;;  %v1267_v30 = vmul.f32 %v1266_v27, %v3337_v62 }
 0x25d   : > { %v465_v26 = vadd.f32 %v463_v46, %v457_v21  ;;  %v1212_v46 = vmul.f32 %v1211_v36, %v3319_v47  ;;  %v1287_v36 = vstv %s3639_s5  ;;  %s3698_s5 = sld [smem:[#allocation3 + $0x92]] }
 0x25e   : > { %v3577_v29 = vpop.permute.xlu1 %548  ;;  %v3583_v32 = vpop.permute.xlu0 %540 }
 0x25f   : > { %v471_v33 = vadd.f32 %v470_v22, %v465_v26  ;;  %v575_v51 = vstv %s3657_s10  ;;  %s3718_s10 = sld [smem:[#allocation3 + $0x36]] }
 0x260   : > { %1172 = vrot.lane.b32.xlu1 %v1170_v23, %s3114_s4  ;;  %1164 = vrot.lane.b32.xlu0 %v1162_v24, %s3113_s25  ;;  %v643_v23 = vstv %s3623_s28  ;;  %s3683_s28 = sld [smem:[#allocation3 + $0x8f]] }
 0x261   : > { %v479_v39 = vadd.f32 %v477_v61, %v471_v33  ;;  %v1233_v61 = vmul.f32 %v1232_v53, %v3325_v52  ;;  %v554_v26 = vstv %s3629_s29  ;;  %s3687_s29 = sld [smem:[#allocation3 + $0x8e]]  ;;  %v685_v1 = vstv %s3673_s21  ;;  %s3741_s21 = sld [smem:[#allocation3 + $0x39]] }
 0x262   : > { %v3596_v41 = vpop.permute.xlu1 %569  ;;  %v3603_v44 = vpop.permute.xlu0 %561 }
 0x263   : > { %v487_v45 = vadd.f32 %v3525_v58, %v479_v39  ;;  %v555_v39 = vmul.f32 %v554_v26, %v3355_v13  ;;  %v3744_v26 = vld [vmem:[#allocation2 + $0x1] sm:$0xff] }
 0x264   : > { %1193 = vrot.lane.b32.xlu1 %v1191_v34, %s3114_s4  ;;  %1185 = vrot.lane.b32.xlu0 %v1183_v35, %s3113_s25 }
 0x265   : > { %v492_v54 = vadd.f32 %v491_v40, %v487_v45  ;;  %v1288_v45 = vmul.f32 %v1287_v36, %v3343_v3 }
 0x266   : > { %v3616_v55 = vpop.permute.xlu1 %590  ;;  %v3621_v58 = vpop.permute.xlu0 %582  ;;  %v1358_v7 = vstv %s3683_s28  ;;  %s3747_s28 = sld [smem:[#allocation3 + $0x9b]] }
 0x267   : > { %v500_v28 = vadd.f32 %v3546_v9, %v492_v54 }
 0x268   : > { %1214 = vrot.lane.b32.xlu1 %v1212_v46, %s3114_s4  ;;  %1206 = vrot.lane.b32.xlu0 %v1204_v50, %s3113_s25  ;;  %v1316_v46 = vstv %s3650_s7  ;;  %v1308_v50 = vstv %s3655_s9  ;;  %s3712_s7 = sld [smem:[#allocation3 + $0x95]]  ;;  %s3716_s9 = sld [smem:[#allocation3 + $0x94]] }
 0x269   : > { %v508_v2 = vadd.f32 %v3539_v6, %v500_v28  ;;  %v1246_v6 = vmul.f32 %v1245_v5, %v3331_v57  ;;  %v1317_v3 = vmul.f32 %v1316_v46, %v3349_v8  ;;  %v1418_v46 = vstv %s3735_s20  ;;  %s3804_s20 = sld [smem:[#allocation3 + $0x3f]] }
 0x26a   : > { %v617_v4 = vpop.permute.xlu1 %616  ;;  %v609_v9 = vpop.permute.xlu0 %608 }
 0x26b   : > { %v513_v10 = vadd.f32 %v512_v59, %v508_v2  ;;  %v611_v11 = vadd.f32 %v609_v9, %v603_v60  ;;  %v1337_v59 = vstv %s3667_s11  ;;  %s3729_s11 = sld [smem:[#allocation3 + $0x98]] }
 0x26c   : > { %1235 = vrot.lane.b32.xlu1 %v1233_v61, %s3114_s4  ;;  %1227 = vrot.lane.b32.xlu0 %v1225_v63, %s3113_s25  ;;  %v576_v61 = vmul.f32 %v575_v51, %v3361_v18  ;;  %v1338_v5 = vmul.f32 %v1337_v59, %v3355_v13 }
 0x26d   : > { %v521_v16 = vadd.f32 %v3563_v20, %v513_v10  ;;  %v619_v21 = vadd.f32 %v617_v4, %v611_v11  ;;  %v1275_v20 = vmul.f32 %v1274_v15, %v3337_v62  ;;  %v686_v11 = vmul.f32 %v685_v1, %v3319_v47 }
 0x26e   : > { %v638_v22 = vpop.permute.xlu1 %637  ;;  %v630_v57 = vpop.permute.xlu0 %629 }
 0x26f   : > { %v529_v24 = vadd.f32 %v3558_v17, %v521_v16  ;;  %v624_v25 = vadd.f32 %v623_v12, %v619_v21  ;;  %v644_v17 = vmul.f32 %v643_v23, %v3307_v37  ;;  %v664_v37 = vstv %s3648_s6  ;;  %s3703_s6 = sld [smem:[#allocation3 + $0x91]] }
 0x270   : > { %1256 = vrot.lane.b32.xlu1 %v1254_v14, %s3114_s4  ;;  %1248 = vrot.lane.b32.xlu0 %v1246_v6, %s3113_s25  ;;  %v665_v28 = vmul.f32 %v664_v37, %v3313_v42  ;;  %v706_v16 = vstv %s3695_s30  ;;  %v1384_v21 = vstv %s3698_s5  ;;  %s3766_s30 = sld [smem:[#allocation3 + $0x9e]]  ;;  %s3768_s5 = sld [smem:[#allocation3 + $0x48]] }
 0x271   : > { %v535_v33 = vadd.f32 %v534_v19, %v529_v24  ;;  %v632_v34 = vadd.f32 %v630_v57, %v624_v25  ;;  %v3726_v19 = vld [vmem:[#allocation2] sm:$0xff]  ;;  %v707_v25 = vmul.f32 %v706_v16, %v3325_v52 }
 0x272   : > { %v659_v35 = vpop.permute.xlu1 %658  ;;  %v651_v38 = vpop.permute.xlu0 %650  ;;  %v3841_v16 = vld [vmem:[#allocation2 + $0x22] sm:$0xff] }
 0x273   : > { %v543_v62 = vadd.f32 %v3583_v32, %v535_v33  ;;  %v640_v40 = vadd.f32 %v638_v22, %v632_v34  ;;  %v1397_v33 = vstv %s3716_s9  ;;  %v727_v34 = vstv %s3718_s10  ;;  %s3790_s9 = sld [smem:[#allocation6 + $0x2]]  ;;  %s3792_s10 = sld [smem:[#allocation3 + $0xa1]] }
 0x274   : > { %1277 = vrot.lane.b32.xlu1 %v1275_v20, %s3114_s4  ;;  %1269 = vrot.lane.b32.xlu0 %v1267_v30, %s3113_s25  ;;  %v1405_v30 = vstv %s3712_s7  ;;  %s3778_s7 = sld [smem:[#allocation3 + $0x3c]] }
 0x275   : > { %v551_v48 = vadd.f32 %v3577_v29, %v543_v62  ;;  %v645_v49 = vadd.f32 %v644_v17, %v640_v40  ;;  %v1309_v29 = vmul.f32 %v1308_v50, %v3349_v8  ;;  %v1376_v57 = vstv %s3703_s6  ;;  %v3763_v62 = vld [vmem:[#allocation2 + $0x2] sm:$0xff]  ;;  %s3776_s6 = sld [smem:[#allocation3 + $0x9d]] }
 0x276   : > { %v680_v32 = vpop.permute.xlu1 %679  ;;  %v672_v53 = vpop.permute.xlu0 %671  ;;  %v1377_v20 = vmul.f32 %v1376_v57, %v3726_v19  ;;  %v1406_v36 = vmul.f32 %v1405_v30, %v3744_v26  ;;  %v748_v50 = vstv %s3741_s21  ;;  %v1419_v51 = vmul.f32 %v1418_v46, %v3763_v62  ;;  %s3814_s21 = sld [smem:[#allocation3 + $0x4b]]  ;;  %v3883_v46 = vld [vmem:[#allocation2 + $0x21] sm:$0xff] }
 0x277   : > { %v556_v54 = vadd.f32 %v555_v39, %v551_v48  ;;  %v653_v56 = vadd.f32 %v651_v38, %v645_v49  ;;  %v1398_v38 = vmul.f32 %v1397_v33, %v3744_v26  ;;  %v1426_v39 = vstv %s3729_s11  ;;  %s3797_s11 = sld [smem:[#allocation3 + $0xa0]]  ;;  %v3870_v33 = vld [vmem:[#allocation2 + $0x30] sm:$0xff] }
 0x278   : > { %1298 = vrot.lane.b32.xlu1 %v1296_v43, %s3114_s4  ;;  %1290 = vrot.lane.b32.xlu0 %v1288_v45, %s3113_s25  ;;  %v3770_v43 = vld [vmem:[#allocation2 + $0x20] sm:$0xff]  ;;  %v1468_v1 = vstv %s3766_s30  ;;  %s3838_s30 = sld [smem:[#allocation3 + $0xa7]]  ;;  %v790_v57 = vstv %s3804_s20  ;;  %s3886_s20 = sld [smem:[#allocation3 + $0x51]] }
 0x279   : > { %v564_v60 = vadd.f32 %v3603_v44, %v556_v54  ;;  %v661_v63 = vadd.f32 %v659_v35, %v653_v56  ;;  %v1330_v44 = vmul.f32 %v1329_v0, %v3355_v13  ;;  %v1359_v13 = vmul.f32 %v1358_v7, %v3361_v18  ;;  %v3810_v0 = vld [vmem:[#allocation2 + $0x11] sm:$0xff] }
 0x27a   : > { %v701_v42 = vpop.permute.xlu1 %700  ;;  %v693_v2 = vpop.permute.xlu0 %692  ;;  %v728_v37 = vmul.f32 %v3770_v43, %v727_v34  ;;  %v1447_v54 = vstv %s3747_s28  ;;  %s3816_s28 = sld [smem:[#allocation3 + $0xa4]]  ;;  %v791_v34 = vmul.f32 %v3870_v33, %v790_v57  ;;  %v1560_v57 = vld [vmem:[#allocation2 + $0x30] sm:$0xff] }
 0x27b   : > { %v572_v8 = vadd.f32 %v3596_v41, %v564_v60  ;;  %v666_v4 = vadd.f32 %v665_v28, %v661_v63  ;;  %v1350_v41 = vstv %s3687_s29  ;;  %s3754_s29 = sld [smem:[#allocation3 + $0x9a]]  ;;  %v3801_v60 = vld [vmem:[#allocation2 + $0x21] sm:$0xff] }
 0x27c   : > { %1319 = vrot.lane.b32.xlu1 %v1317_v3, %s3114_s4  ;;  %1311 = vrot.lane.b32.xlu0 %v1309_v29, %s3113_s25  ;;  %v1351_v47 = vmul.f32 %v1350_v41, %v3361_v18 }
 0x27d   : > { %v577_v9 = vadd.f32 %v576_v61, %v572_v8  ;;  %v674_v10 = vadd.f32 %v672_v53, %v666_v4  ;;  %v3787_v53 = vld [vmem:[#allocation2 + $0x10] sm:$0xff]  ;;  %v749_v61 = vmul.f32 %v3801_v60, %v748_v50 }
 0x27e   : > { %v722_v12 = vpop.permute.xlu1 %721  ;;  %v714_v14 = vpop.permute.xlu0 %713  ;;  %v1448_v63 = vmul.f32 %v1447_v54, %v3787_v53 }
 0x27f   : > { %v585_v6 = vadd.f32 %v3621_v58, %v577_v9  ;;  %v682_v15 = vadd.f32 %v680_v32, %v674_v10  ;;  %v1427_v32 = vmul.f32 %v1426_v39, %v3763_v62  ;;  %v1469_v10 = vmul.f32 %v1468_v1, %v3810_v0 }
 0x280   : > { %1340 = vrot.lane.b32.xlu1 %v1338_v5, %s3114_s4  ;;  %1332 = vrot.lane.b32.xlu0 %v1330_v44, %s3113_s25  ;;  %v1460_v5 = vstv %s3776_s6  ;;  %v769_v44 = vstv %s3778_s7  ;;  %s3849_s6 = sld [smem:[#allocation3 + $0xa6]] }
 0x281   : > { %v593_v22 = vadd.f32 %v3616_v55, %v585_v6  ;;  %v687_v27 = vadd.f32 %v686_v11, %v682_v15  ;;  %v1385_v55 = vmul.f32 %v1384_v21, %v3726_v19  ;;  %v1439_v3 = vstv %s3754_s29  ;;  %s3822_s29 = sld [smem:[#allocation3 + $0xa3]]  ;;  %v3829_v11 = vld [vmem:[#allocation2] sm:$0xff]  ;;  %v3835_v6 = vld [vmem:[#allocation2 + $0x12] sm:$0xff]  ;;  %s3853_s7 = sld [smem:[#allocation3 + $0x4e]] }
 0x282   : > { %v3732_v58 = vpop.permute.xlu1 %742  ;;  %v735_v23 = vpop.permute.xlu0 %734  ;;  %v1461_v41 = vmul.f32 %v1460_v5, %v3810_v0  ;;  %v1489_v15 = vstv %s3792_s10  ;;  %s3868_s10 = sld [smem:[#allocation3 + $0xa9]] }
 0x283   : > { %v594_v24 = vmax.f32 %v593_v22, 0.0  ;;  %v695_v18 = vadd.f32 %v693_v2, %v687_v27  ;;  %v858_v2 = vstv %s3768_s5  ;;  %s3844_s5 = sld [smem:[#allocation3 + $0x42]]  ;;  %v1481_v22 = vstv %s3797_s11  ;;  %s3874_s11 = sld [smem:[#allocation3 + $0x45]] }
 0x284   : > { %1361 = vrot.lane.b32.xlu1 %v1359_v13, %s3114_s4  ;;  %1353 = vrot.lane.b32.xlu0 %v1351_v47, %s3113_s25  ;;  %v770_v47 = vmul.f32 %v3841_v16, %v769_v44 }
 0x285   : > { %596 = vst.msk [vmem:[%s3284_s24] sm:$0xff] %vm595_vm9, %v594_v24  ;;  %v703_v31 = vadd.f32 %v701_v42, %v695_v18  ;;  %v1440_v42 = vmul.f32 %v1439_v3, %v3787_v53  ;;  %v1490_v24 = vmul.f32 %v1489_v15, %v3835_v6  ;;  %v1482_v18 = vmul.f32 %v1481_v22, %v3835_v6 }
 0x286   : > { %v3751_v52 = vpop.permute.xlu1 %763  ;;  %v3757_v35 = vpop.permute.xlu0 %755  ;;  %v1523_v54 = vstv %s3849_s6  ;;  %v921_v22 = vstv %s3886_s20  ;;  %s3925_s6 = sld [smem:[#allocation3 + $0xb3]]  ;;  %s3952_s20 = sld [smem:[#allocation3 + $0xb9]] }
 0x287   : > { %v708_v17 = vadd.f32 %v707_v25, %v703_v31  ;;  %v879_v25 = vstv %s3814_s21  ;;  %s3888_s21 = sld [smem:[#allocation3 + $0xad]]  ;;  %v900_v3 = vstv %s3853_s7  ;;  %v1524_v1 = vmul.f32 %v1523_v54, %v3883_v46  ;;  %s3928_s7 = sld [smem:[#allocation3 + $0xb2]] }
 0x288   : > { %1387 = vrot.lane.b32.xlu1 %v1385_v55, %s3114_s4  ;;  %1379 = vrot.lane.b32.xlu0 %v1377_v20, %s3113_s25  ;;  %v3862_v55 = vld [vmem:[#allocation2 + $0x20] sm:$0xff]  ;;  %v1510_v20 = vstv %s3816_s28  ;;  %s3893_s28 = sld [smem:[#allocation3 + $0xac]] }
 0x289   : > { %v716_v40 = vadd.f32 %v714_v14, %v708_v17  ;;  %v855_v14 = vstv %s3790_s9  ;;  %s3865_s9 = sld [smem:[#allocation3 + $0xaa]] }
 0x28a   : > { %v3773_v45 = vpop.permute.xlu1 %784  ;;  %v3780_v48 = vpop.permute.xlu0 %776 }
 0x28b   : > { %v724_v49 = vadd.f32 %v722_v12, %v716_v40  ;;  %v859_v12 = vmul.f32 %v3829_v11, %v858_v2  ;;  %v1511_v40 = vmul.f32 %v1510_v20, %v3862_v55  ;;  %v3903_v2 = vld [vmem:[#allocation2 + $0x22] sm:$0xff]  ;;  %v3930_v20 = vld [vmem:[#allocation2 + $0x32] sm:$0xff] }
 0x28c   : > { %1408 = vrot.lane.b32.xlu1 %v1406_v36, %s3114_s4  ;;  %1400 = vrot.lane.b32.xlu0 %v1398_v38, %s3113_s25  ;;  %v3877_v38 = vld [vmem:[#allocation2 + $0x1] sm:$0xff] }
 0x28d   : > { %v729_v56 = vadd.f32 %v728_v37, %v724_v49  ;;  %v880_v39 = vmul.f32 %v3877_v38, %v879_v25 }
 0x28e   : > { %v3794_v28 = vpop.permute.xlu1 %805  ;;  %v3799_v29 = vpop.permute.xlu0 %797 }
 0x28f   : > { %v737_v59 = vadd.f32 %v735_v23, %v729_v56  ;;  %v860_v23 = vadd.f32 %v859_v12, %v855_v14 }
 0x290   : > { %1429 = vrot.lane.b32.xlu1 %v1427_v32, %s3114_s4  ;;  %1421 = vrot.lane.b32.xlu0 %v1419_v51, %s3113_s25  ;;  %v811_v32 = vstv %s3844_s5  ;;  %s3915_s5 = sld [smem:[#allocation3 + $0x54]] }
 0x291   : > { %v745_v8 = vadd.f32 %v3732_v58, %v737_v59 }
 0x292   : > { %v3819_v4 = vpop.permute.xlu1 %826  ;;  %v3825_v7 = vpop.permute.xlu0 %818 }
 0x293   : > { %v750_v9 = vadd.f32 %v749_v61, %v745_v8  ;;  %v1552_v8 = vstv %s3865_s9  ;;  %s3939_s9 = sld [smem:[#allocation3 + $0x57]] }
 0x294   : > { %1450 = vrot.lane.b32.xlu1 %v1448_v63, %s3114_s4  ;;  %1442 = vrot.lane.b32.xlu0 %v1440_v42, %s3113_s25  ;;  %v3898_v42 = vld [vmem:[#allocation2 + $0x31] sm:$0xff] }
 0x295   : > { %v758_v13 = vadd.f32 %v3757_v35, %v750_v9 }
 0x296   : > { %v3846_v21 = vpop.permute.xlu1 %847  ;;  %v3851_v27 = vpop.permute.xlu0 %839 }
 0x297   : > { %v766_v58 = vadd.f32 %v3751_v52, %v758_v13  ;;  %v1502_v52 = vstv %s3822_s29  ;;  %s3906_s29 = sld [smem:[#allocation3 + $0xb0]]  ;;  %v832_v13 = vstv %s3874_s11  ;;  %s3946_s11 = sld [smem:[#allocation3 + $0xb5]] }
 0x298   : > { %1471 = vrot.lane.b32.xlu1 %v1469_v10, %s3114_s4  ;;  %1463 = vrot.lane.b32.xlu0 %v1461_v41, %s3113_s25  ;;  %v1503_v37 = vmul.f32 %v1502_v52, %v3862_v55  ;;  %v3909_v10 = vld [vmem:[#allocation2 + $0x2] sm:$0xff]  ;;  %v1544_v41 = vstv %s3868_s10  ;;  %s3942_s10 = sld [smem:[#allocation3 + $0xb6]] }
 0x299   : > { %v771_v30 = vadd.f32 %v770_v47, %v766_v58  ;;  %v901_v12 = vmul.f32 %v3909_v10, %v900_v3  ;;  %v1545_v58 = vmul.f32 %v1544_v41, %v3903_v2 }
 0x29a   : > { %v874_v31 = vpop.permute.xlu1 %873  ;;  %v866_v35 = vpop.permute.xlu0 %865 }
 0x29b   : > { %v779_v17 = vadd.f32 %v3780_v48, %v771_v30  ;;  %v868_v36 = vadd.f32 %v866_v35, %v860_v23  ;;  %v1531_v48 = vstv %s3838_s30  ;;  %s3913_s30 = sld [smem:[#allocation3 + $0xaf]]  ;;  %v1573_v23 = vstv %s3888_s21  ;;  %v3934_v35 = vld [vmem:[#allocation2 + $0x10] sm:$0xff]  ;;  %s3959_s21 = sld [smem:[#allocation3 + $0xb8]] }
 0x29c   : > { %1492 = vrot.lane.b32.xlu1 %v1490_v24, %s3114_s4  ;;  %1484 = vrot.lane.b32.xlu0 %v1482_v18, %s3113_s25  ;;  %v1532_v63 = vmul.f32 %v1531_v48, %v3883_v46  ;;  %v833_v30 = vmul.f32 %v3930_v20, %v832_v13 }
 0x29d   : > { %v787_v49 = vadd.f32 %v3773_v45, %v779_v17  ;;  %v876_v50 = vadd.f32 %v874_v31, %v868_v36  ;;  %v812_v45 = vmul.f32 %v3898_v42, %v811_v32  ;;  %v922_v17 = vmul.f32 %v3934_v35, %v921_v22 }
 0x29e   : > { %v895_v51 = vpop.permute.xlu1 %894  ;;  %v887_v56 = vpop.permute.xlu0 %886  ;;  %v1574_v36 = vmul.f32 %v1573_v23, %v1560_v57  ;;  %v1641_v13 = vstv %s3942_s10  ;;  %v3975_v23 = vld [vmem:[#allocation2 + $0x12] sm:$0xff]  ;;  %s4000_s10 = sld [smem:[#allocation3 + $0x6c]] }
 0x29f   : > { %v792_v59 = vadd.f32 %v791_v34, %v787_v49  ;;  %v881_v61 = vadd.f32 %v880_v39, %v876_v50  ;;  %v942_v50 = vstv %s3915_s5  ;;  %s3981_s5 = sld [smem:[#allocation3 + $0x5d]] }
 0x2a0   : > { %1513 = vrot.lane.b32.xlu1 %v1511_v40, %s3114_s4  ;;  %1505 = vrot.lane.b32.xlu0 %v1503_v37, %s3113_s25  ;;  %v1581_v40 = vld [vmem:[#allocation2 + $0x31] sm:$0xff]  ;;  %v1594_v37 = vstv %s3906_s29  ;;  %s3968_s29 = sld [smem:[#allocation3 + $0xbc]] }
 0x2a1   : > { %v800_v5 = vadd.f32 %v3799_v29, %v792_v59  ;;  %v889_v44 = vadd.f32 %v887_v56, %v881_v61  ;;  %v1553_v29 = vmul.f32 %v1552_v8, %v3903_v2  ;;  %v1586_v32 = vstv %s3913_s30  ;;  %v1602_v61 = vld [vmem:[#allocation2 + $0x32] sm:$0xff]  ;;  %s3971_s30 = sld [smem:[#allocation3 + $0xbb]] }
 0x2a2   : > { %v916_v9 = vpop.permute.xlu1 %915  ;;  %v908_v14 = vpop.permute.xlu0 %907  ;;  %v1595_v3 = vmul.f32 %v1594_v37, %v1581_v40  ;;  %v1587_v59 = vmul.f32 %v1586_v32, %v1581_v40 }
 0x2a3   : > { %v808_v15 = vadd.f32 %v3794_v28, %v800_v5  ;;  %v897_v47 = vadd.f32 %v895_v51, %v889_v44  ;;  %v1565_v28 = vstv %s3893_s28  ;;  %v1607_v44 = vstv %s3928_s7  ;;  %s3961_s28 = sld [smem:[#allocation3 + $0x5a]]  ;;  %s3990_s7 = sld [smem:[#allocation3 + $0xbe]] }
 0x2a4   : > { %1534 = vrot.lane.b32.xlu1 %v1532_v63, %s3114_s4  ;;  %1526 = vrot.lane.b32.xlu0 %v1524_v1, %s3113_s25  ;;  %v1566_v39 = vmul.f32 %v1565_v28, %v1560_v57  ;;  %v1615_v63 = vstv %s3925_s6  ;;  %v3955_v1 = vld [vmem:[#allocation2 + $0x11] sm:$0xff]  ;;  %v1662_v28 = vstv %s3952_s20  ;;  %s3985_s6 = sld [smem:[#allocation3 + $0xd9]]  ;;  %s4008_s20 = sld [smem:[#allocation3 + $0x60]] }
 0x2a5   : > { %v813_v24 = vadd.f32 %v812_v45, %v808_v15  ;;  %v902_v18 = vadd.f32 %v901_v12, %v897_v47  ;;  %v943_v8 = vmul.f32 %v3955_v1, %v942_v50  ;;  %v1608_v15 = vmul.f32 %v1607_v44, %v1602_v61 }
 0x2a6   : > { %v937_v25 = vpop.permute.xlu1 %936  ;;  %v929_v31 = vpop.permute.xlu0 %928  ;;  %v1683_v37 = vstv %s3968_s29  ;;  %s4025_s29 = sld [smem:[#allocation3 + $0xfe]] }
 0x2a7   : > { %v821_v52 = vadd.f32 %v3825_v7, %v813_v24  ;;  %v910_v34 = vadd.f32 %v908_v14, %v902_v18  ;;  %v963_v14 = vstv %s3939_s9  ;;  %v1642_v18 = vmul.f32 %v1641_v13, %v3726_v19  ;;  %s3998_s9 = sld [smem:[#allocation3 + $0xda]] }
 0x2a8   : > { %1555 = vrot.lane.b32.xlu1 %v1553_v29, %s3114_s4  ;;  %1547 = vrot.lane.b32.xlu0 %v1545_v58, %s3113_s25  ;;  %v1633_v58 = vstv %s3946_s11  ;;  %v964_v24 = vmul.f32 %v3975_v23, %v963_v14  ;;  %v1675_v32 = vstv %s3971_s30  ;;  %s4006_s11 = sld [smem:[#allocation3 + $0xfd]]  ;;  %s4030_s30 = sld [smem:[#allocation3 + $0x63]] }
 0x2a9   : > { %v829_v7 = vadd.f32 %v3819_v4, %v821_v52  ;;  %v918_v48 = vadd.f32 %v916_v9, %v910_v34  ;;  %v1654_v52 = vstv %s3959_s21  ;;  %v984_v34 = vstv %s3961_s28  ;;  %s4018_s21 = sld [smem:[#allocation6 + $0x3]]  ;;  %s4020_s28 = sld [smem:[#allocation3 + $0xdc]] }
 0x2aa   : > { %v958_v49 = vpop.permute.xlu1 %957  ;;  %v950_v51 = vpop.permute.xlu0 %949  ;;  %v1655_v40 = vmul.f32 %v1654_v52, %v3744_v26  ;;  %v1026_v13 = vstv %s4008_s20  ;;  %s4069_s20 = sld [smem:[#allocation3 + $0x72]] }
 0x2ab   : > { %v834_v54 = vadd.f32 %v833_v30, %v829_v7  ;;  %v923_v56 = vadd.f32 %v922_v17, %v918_v48  ;;  %v985_v48 = vmul.f32 %v3770_v43, %v984_v34 }
 0x2ac   : > { %1576 = vrot.lane.b32.xlu1 %v1574_v36, %s3114_s4  ;;  %1568 = vrot.lane.b32.xlu0 %v1566_v39, %s3113_s25  ;;  %v1663_v39 = vmul.f32 %v1662_v28, %v3744_v26 }
 0x2ad   : > { %v842_v4 = vadd.f32 %v3851_v27, %v834_v54  ;;  %v931_v45 = vadd.f32 %v929_v31, %v923_v56  ;;  %v1616_v27 = vmul.f32 %v1615_v63, %v1602_v61  ;;  %v1684_v54 = vmul.f32 %v1683_v37, %v3763_v62 }
 0x2ae   : > { %v979_v5 = vpop.permute.xlu1 %978  ;;  %v971_v9 = vpop.permute.xlu0 %970  ;;  %v1005_v56 = vstv %s3981_s5  ;;  %s4038_s5 = sld [smem:[#allocation3 + $0x6f]]  ;;  %v1047_v34 = vstv %s4030_s30  ;;  %s4094_s30 = sld [smem:[#allocation3 + $0x75]] }
 0x2af   : > { %v850_v12 = vadd.f32 %v3846_v21, %v842_v4  ;;  %v939_v41 = vadd.f32 %v937_v25, %v931_v45  ;;  %v1634_v25 = vmul.f32 %v1633_v58, %v3726_v19  ;;  %v1696_v4 = vstv %s3990_s7  ;;  %s4045_s7 = sld [smem:[#allocation3 + $0x100]] }
 0x2b0   : > { %1597 = vrot.lane.b32.xlu1 %v1595_v3, %s3114_s4  ;;  %1589 = vrot.lane.b32.xlu0 %v1587_v59, %s3113_s25  ;;  %v1676_v3 = vmul.f32 %v1675_v32, %v3763_v62  ;;  %v1890_v59 = vstv %s3985_s6  ;;  %s4040_s6 = sld [smem:[#allocation3 + $0xdd]] }
 0x2b1   : > { %v851_v47 = vmax.f32 %v850_v12, 0.0  ;;  %v944_v29 = vadd.f32 %v943_v8, %v939_v41  ;;  %v1891_v44 = vmul.f32 %v1890_v59, %v3726_v19  ;;  %v1898_v12 = vstv %s3998_s9  ;;  %s4057_s9 = sld [smem:[#allocation3 + $0xdf]] }
 0x2b2   : > { %v1000_v22 = vpop.permute.xlu1 %999  ;;  %v992_v21 = vpop.permute.xlu0 %991  ;;  %v1115_v41 = vstv %s4000_s10  ;;  %v1899_v58 = vmul.f32 %v1898_v12, %v3726_v19  ;;  %s4060_s10 = sld [smem:[#allocation3 + $0x66]]  ;;  %v1157_v12 = vstv %s4069_s20  ;;  %s4130_s20 = sld [smem:[#allocation3 + $0xe3]] }
 0x2b3   : > { %2609 = vst.msk [vmem:[%s3284_s24 + $0x8] sm:$0xff] %vm595_vm9, %v851_v47  ;;  %v952_v57 = vadd.f32 %v950_v51, %v944_v29 }
 0x2b4   : > { %1618 = vrot.lane.b32.xlu1 %v1616_v27, %s3114_s4  ;;  %1610 = vrot.lane.b32.xlu0 %v1608_v15, %s3113_s25  ;;  %v2147_v15 = vstv %s4006_s11  ;;  %s4065_s11 = sld [smem:[#allocation3 + $0x101]] }
 0x2b5   : > { %v960_v30 = vadd.f32 %v958_v49, %v952_v57  ;;  %v1112_v57 = vstv %s4018_s21  ;;  %s4079_s21 = sld [smem:[#allocation3 + $0xe0]]  ;;  %v2168_v32 = vstv %s4045_s7  ;;  %s4110_s7 = sld [smem:[#allocation3 + $0xbf]] }
 0x2b6   : > { %v3987_v31 = vpop.permute.xlu1 %1020  ;;  %v1013_v17 = vpop.permute.xlu0 %1012  ;;  %v1919_v37 = vstv %s4040_s6  ;;  %s4101_s6 = sld [smem:[#allocation3 + $0x104]] }
 0x2b7   : > { %v965_v36 = vadd.f32 %v964_v24, %v960_v30  ;;  %v1911_v24 = vstv %s4020_s28  ;;  %v2155_v30 = vstv %s4025_s29  ;;  %s4082_s28 = sld [smem:[#allocation3 + $0x103]]  ;;  %s4086_s29 = sld [smem:[#allocation3 + $0x69]]  ;;  %v1920_v59 = vmul.f32 %v1919_v37, %v3744_v26 }
 0x2b8   : > { %1644 = vrot.lane.b32.xlu1 %v1642_v18, %s3114_s4  ;;  %1636 = vrot.lane.b32.xlu0 %v1634_v25, %s3113_s25  ;;  %v1027_v25 = vmul.f32 %v3841_v16, %v1026_v13 }
 0x2b9   : > { %v973_v7 = vadd.f32 %v971_v9, %v965_v36  ;;  %v1697_v9 = vmul.f32 %v1696_v4, %v3787_v53  ;;  %v1912_v36 = vmul.f32 %v1911_v24, %v3744_v26  ;;  %v1932_v4 = vstv %s4057_s9  ;;  %s4115_s9 = sld [smem:[#allocation3 + $0x106]] }
 0x2ba   : > { %v4003_v49 = vpop.permute.xlu1 %1041  ;;  %v4010_v50 = vpop.permute.xlu0 %1033 }
 0x2bb   : > { %v981_v51 = vadd.f32 %v979_v5, %v973_v7  ;;  %v1006_v5 = vmul.f32 %v3801_v60, %v1005_v56 }
 0x2bc   : > { %1665 = vrot.lane.b32.xlu1 %v1663_v39, %s3114_s4  ;;  %1657 = vrot.lane.b32.xlu0 %v1655_v40, %s3113_s25  ;;  %v2156_v39 = vmul.f32 %v2155_v30, %v3726_v19  ;;  %v1136_v40 = vstv %s4038_s5  ;;  %s4096_s5 = sld [smem:[#allocation3 + $0xe2]]  ;;  %v2197_v37 = vstv %s4101_s6  ;;  %s4161_s6 = sld [smem:[#allocation3 + $0x7e]] }
 0x2bd   : > { %v986_v61 = vadd.f32 %v985_v48, %v981_v51  ;;  %v2189_v24 = vstv %s4082_s28  ;;  %v1089_v30 = vstv %s4086_s29  ;;  %s4142_s28 = sld [smem:[#allocation3 + $0xe5]]  ;;  %s4146_s29 = sld [smem:[#allocation3 + $0xc1]] }
 0x2be   : > { %v4022_v63 = vpop.permute.xlu1 %1062  ;;  %v4027_v45 = vpop.permute.xlu0 %1054 }
 0x2bf   : > { %v994_v8 = vadd.f32 %v992_v21, %v986_v61  ;;  %v1116_v21 = vmul.f32 %v3829_v11, %v1115_v41  ;;  %v2169_v61 = vmul.f32 %v2168_v32, %v3744_v26 }
 0x2c0   : > { %1686 = vrot.lane.b32.xlu1 %v1684_v54, %s3114_s4  ;;  %1678 = vrot.lane.b32.xlu0 %v1676_v3, %s3113_s25  ;;  %v1137_v3 = vmul.f32 %v3877_v38, %v1136_v40 }
 0x2c1   : > { %v1002_v27 = vadd.f32 %v1000_v22, %v994_v8  ;;  %v2148_v22 = vmul.f32 %v2147_v15, %v3726_v19  ;;  %v1068_v8 = vstv %s4060_s10  ;;  %v1933_v15 = vmul.f32 %v1932_v4, %v3763_v62  ;;  %s4117_s10 = sld [smem:[#allocation3 + $0x78]] }
 0x2c2   : > { %v4042_v14 = vpop.permute.xlu1 %1083  ;;  %v4048_v47 = vpop.permute.xlu0 %1075  ;;  %v1069_v13 = vmul.f32 %v3898_v42, %v1068_v8 }
 0x2c3   : > { %v1007_v29 = vadd.f32 %v1006_v5, %v1002_v27 }
 0x2c4   : > { %1893 = vrot.lane.b32.xlu1 %v1891_v44, %s3113_s25  ;;  %1699 = vrot.lane.b32.xlu0 %v1697_v9, %s3113_s25  ;;  %v2176_v9 = vstv %s4065_s11  ;;  %s4127_s11 = sld [smem:[#allocation3 + $0x107]] }
 0x2c5   : > { %v1015_v18 = vadd.f32 %v1013_v17, %v1007_v29  ;;  %v1117_v17 = vadd.f32 %v1116_v21, %v1112_v57  ;;  %v1940_v29 = vstv %s4079_s21  ;;  %v1158_v57 = vmul.f32 %v3909_v10, %v1157_v12  ;;  %s4139_s21 = sld [smem:[#allocation3 + $0x7b]] }
 0x2c6   : > { %v4062_v28 = vpop.permute.xlu1 %1104  ;;  %v4067_v11 = vpop.permute.xlu0 %1096  ;;  %v2190_v10 = vmul.f32 %v2189_v24, %v3763_v62  ;;  %v1717_v24 = vstv %s4146_s29  ;;  %s4206_s29 = sld [smem:[#allocation3 + $0x10c]] }
 0x2c7   : > { %v1023_v52 = vadd.f32 %v3987_v31, %v1015_v18  ;;  %v1048_v31 = vmul.f32 %v3870_v33, %v1047_v34  ;;  %v1178_v34 = vstv %s4094_s30  ;;  %s4154_s30 = sld [smem:[#allocation3 + $0xc2]] }
 0x2c8   : > { %1901 = vrot.lane.b32.xlu1 %v1899_v58, %s3114_s4  ;;  %2150 = vrot.lane.b32.xlu0 %v2148_v22, %s3113_s25 }
 0x2c9   : > { %v1028_v7 = vadd.f32 %v1027_v25, %v1023_v52 }
 0x2ca   : > { %v1131_v48 = vpop.permute.xlu1 %1130  ;;  %v1123_v51 = vpop.permute.xlu0 %1122 }
 0x2cb   : > { %v1036_v54 = vadd.f32 %v4010_v50, %v1028_v7  ;;  %v1125_v56 = vadd.f32 %v1123_v51, %v1117_v17  ;;  %v1953_v17 = vstv %s4096_s5  ;;  %s4159_s5 = sld [smem:[#allocation3 + $0x109]] }
 0x2cc   : > { %1914 = vrot.lane.b32.xlu1 %v1912_v36, %s3113_s25  ;;  %2158 = vrot.lane.b32.xlu0 %v2156_v39, %s3114_s4  ;;  %v1954_v51 = vmul.f32 %v1953_v17, %v3787_v53 }
 0x2cd   : > { %v1044_v50 = vadd.f32 %v4003_v49, %v1036_v54  ;;  %v1133_v5 = vadd.f32 %v1131_v48, %v1125_v56  ;;  %v2177_v49 = vmul.f32 %v2176_v9, %v3744_v26  ;;  %v2198_v54 = vmul.f32 %v2197_v37, %v3763_v62 }
 0x2ce   : > { %v1152_v44 = vpop.permute.xlu1 %1151  ;;  %v1144_v38 = vpop.permute.xlu0 %1143  ;;  %v1704_v56 = vstv %s4110_s7  ;;  %s4170_s7 = sld [smem:[#allocation3 + $0x10a]] }
 0x2cf   : > { %v1049_v41 = vadd.f32 %v1048_v31, %v1044_v50  ;;  %v1138_v27 = vadd.f32 %v1137_v3, %v1133_v5  ;;  %v1179_v31 = vmul.f32 %v3934_v35, %v1178_v34  ;;  %v1199_v35 = vstv %s4117_s10  ;;  %s4181_s10 = sld [smem:[#allocation3 + $0x81]] }
 0x2d0   : > { %1922 = vrot.lane.b32.xlu1 %v1920_v59, %s3114_s4  ;;  %2171 = vrot.lane.b32.xlu0 %v2169_v61, %s3113_s25  ;;  %v2210_v61 = vstv %s4115_s9  ;;  %v1705_v5 = vmul.f32 %v1704_v56, %v3787_v53  ;;  %v1200_v12 = vmul.f32 %v3955_v1, %v1199_v35  ;;  %s4173_s9 = sld [smem:[#allocation3 + $0xe6]] }
 0x2d1   : > { %v1057_v58 = vadd.f32 %v4027_v45, %v1049_v41  ;;  %v1146_v21 = vadd.f32 %v1144_v38, %v1138_v27  ;;  %v1941_v45 = vmul.f32 %v1940_v29, %v3763_v62  ;;  %v1961_v27 = vstv %s4130_s20  ;;  %s4190_s20 = sld [smem:[#allocation3 + $0xc4]] }
 0x2d2   : > { %v1173_v22 = vpop.permute.xlu1 %1172  ;;  %v1165_v18 = vpop.permute.xlu0 %1164  ;;  %v1962_v1 = vmul.f32 %v1961_v27, %v3787_v53 }
 0x2d3   : > { %v1065_v25 = vadd.f32 %v4022_v63, %v1057_v58  ;;  %v1154_v52 = vadd.f32 %v1152_v44, %v1146_v21  ;;  %v1090_v63 = vmul.f32 %v3930_v20, %v1089_v30  ;;  %v2211_v44 = vmul.f32 %v2210_v61, %v3787_v53 }
 0x2d4   : > { %1935 = vrot.lane.b32.xlu1 %v1933_v15, %s3113_s25  ;;  %2179 = vrot.lane.b32.xlu0 %v2177_v49, %s3114_s4  ;;  %v1974_v58 = vstv %s4142_s28  ;;  %v1718_v30 = vmul.f32 %v1717_v24, %v3810_v0  ;;  %v2239_v37 = vstv %s4170_s7  ;;  %s4200_s28 = sld [smem:[#allocation3 + $0x90]]  ;;  %s4225_s7 = sld [smem:[#allocation3 + $0xe9]] }
 0x2d5   : > { %v1070_v36 = vadd.f32 %v1069_v13, %v1065_v25  ;;  %v1159_v39 = vadd.f32 %v1158_v57, %v1154_v52  ;;  %v1725_v52 = vstv %s4154_s30  ;;  %s4208_s30 = sld [smem:[#allocation3 + $0x84]]  ;;  %v1262_v56 = vstv %s4181_s10  ;;  %s4238_s10 = sld [smem:[#allocation3 + $0x93]] }
 0x2d6   : > { %v1194_v40 = vpop.permute.xlu1 %1193  ;;  %v1186_v7 = vpop.permute.xlu0 %1185 }
 0x2d7   : > { %v1078_v48 = vadd.f32 %v4048_v47, %v1070_v36  ;;  %v1167_v32 = vadd.f32 %v1165_v18, %v1159_v39  ;;  %v1726_v39 = vmul.f32 %v1725_v52, %v3810_v0  ;;  %v1738_v61 = vstv %s4190_s20  ;;  %s4245_s20 = sld [smem:[#allocation3 + $0xc7]] }
 0x2d8   : > { %1943 = vrot.lane.b32.xlu1 %v1941_v45, %s3114_s4  ;;  %2192 = vrot.lane.b32.xlu0 %v2190_v10, %s3113_s25  ;;  %v2231_v10 = vstv %s4159_s5  ;;  %s4218_s5 = sld [smem:[#allocation6 + $0x4]] }
 0x2d9   : > { %v1086_v3 = vadd.f32 %v4042_v14, %v1078_v48  ;;  %v1175_v47 = vadd.f32 %v1173_v22, %v1167_v32  ;;  %v2218_v14 = vstv %s4127_s11  ;;  %s4185_s11 = sld [smem:[#allocation3 + $0xe8]]  ;;  %v1982_v32 = vstv %s4173_s9  ;;  %s4230_s9 = sld [smem:[#allocation3 + $0x87]] }
 0x2da   : > { %v1215_v59 = vpop.permute.xlu1 %1214  ;;  %v1207_v4 = vpop.permute.xlu0 %1206  ;;  %v2219_v29 = vmul.f32 %v2218_v14, %v3787_v53  ;;  %v1975_v53 = vmul.f32 %v1974_v58, %v3810_v0 }
 0x2db   : > { %v1091_v50 = vadd.f32 %v1090_v63, %v1086_v3  ;;  %v1180_v8 = vadd.f32 %v1179_v31, %v1175_v47 }
 0x2dc   : > { %1956 = vrot.lane.b32.xlu1 %v1954_v51, %s3113_s25  ;;  %2200 = vrot.lane.b32.xlu0 %v2198_v54, %s3114_s4  ;;  %v2240_v54 = vmul.f32 %v2239_v37, %v3810_v0 }
 0x2dd   : > { %v1099_v9 = vadd.f32 %v4067_v11, %v1091_v50  ;;  %v1188_v38 = vadd.f32 %v1186_v7, %v1180_v8  ;;  %v1220_v11 = vstv %s4139_s21  ;;  %s4198_s21 = sld [smem:[#allocation3 + $0xc5]]  ;;  %v1739_v8 = vmul.f32 %v1738_v61, %v3835_v6 }
 0x2de   : > { %v1236_v41 = vpop.permute.xlu1 %1235  ;;  %v1228_v15 = vpop.permute.xlu0 %1227  ;;  %v1221_v25 = vmul.f32 %v3975_v23, %v1220_v11  ;;  %v1241_v23 = vstv %s4161_s6  ;;  %s4220_s6 = sld [smem:[#allocation3 + $0x10d]]  ;;  %v1759_v52 = vstv %s4245_s20  ;;  %s4310_s20 = sld [smem:[#allocation3 + $0xcb]] }
 0x2df   : > { %v1107_v13 = vadd.f32 %v4062_v28, %v1099_v9  ;;  %v1196_v49 = vadd.f32 %v1194_v40, %v1188_v38  ;;  %v2232_v40 = vmul.f32 %v2231_v10, %v3810_v0  ;;  %v1242_v7 = vmul.f32 %v3770_v43, %v1241_v23 }
 0x2e0   : > { %1707 = vrot.lane.b32.xlu1 %v1705_v5, %s3114_s4  ;;  %2213 = vrot.lane.b32.xlu0 %v2211_v44, %s3113_s25  ;;  %v1983_v43 = vmul.f32 %v1982_v32, %v3810_v0  ;;  %v1995_v3 = vstv %s4185_s11  ;;  %v1263_v0 = vmul.f32 %v3801_v60, %v1262_v56  ;;  %v1372_v44 = vstv %s4200_s28  ;;  %s4240_s11 = sld [smem:[#allocation3 + $0xeb]]  ;;  %s4260_s28 = sld [smem:[#allocation3 + $0x8a]] }
 0x2e1   : > { %v1108_v21 = vmax.f32 %v1107_v13, 0.0  ;;  %v1201_v22 = vadd.f32 %v1200_v12, %v1196_v49  ;;  %v1996_v50 = vmul.f32 %v1995_v3, %v3835_v6  ;;  %v2252_v9 = vstv %s4206_s29  ;;  %s4265_s29 = sld [smem:[#allocation3 + $0x10f]] }
 0x2e2   : > { %v1257_v57 = vpop.permute.xlu1 %1256  ;;  %v1249_v28 = vpop.permute.xlu0 %1248  ;;  %v1283_v38 = vstv %s4208_s30  ;;  %v2253_v13 = vmul.f32 %v2252_v9, %v3835_v6  ;;  %v1369_v49 = vstv %s4218_s5  ;;  %s4269_s30 = sld [smem:[#allocation3 + $0x96]]  ;;  %s4279_s5 = sld [smem:[#allocation3 + $0x110]] }
 0x2e3   : > { %2647 = vst.msk [vmem:[%s3284_s24 + $0x10] sm:$0xff] %vm595_vm9, %v1108_v21  ;;  %v1209_v18 = vadd.f32 %v1207_v4, %v1201_v22  ;;  %v1746_v5 = vstv %s4198_s21  ;;  %s4257_s21 = sld [smem:[#allocation3 + $0xc8]]  ;;  %v2003_v21 = vstv %s4225_s7  ;;  %s4286_s7 = sld [smem:[#allocation3 + $0x8d]] }
 0x2e4   : > { %2221 = vrot.lane.b32.xlu1 %v2219_v29, %s3114_s4  ;;  %1964 = vrot.lane.b32.xlu0 %v1962_v1, %s3114_s4  ;;  %v1747_v27 = vmul.f32 %v1746_v5, %v3835_v6  ;;  %v2260_v29 = vstv %s4220_s6  ;;  %v1284_v1 = vmul.f32 %v3841_v16, %v1283_v38  ;;  %s4282_s6 = sld [smem:[#allocation3 + $0xec]] }
 0x2e5   : > { %v1217_v45 = vadd.f32 %v1215_v59, %v1209_v18  ;;  %v2261_v16 = vmul.f32 %v2260_v29, %v3835_v6  ;;  %v1393_v18 = vstv %s4238_s10  ;;  %s4296_s10 = sld [smem:[#allocation3 + $0xee]]  ;;  %v4334_v29 = vld [vmem:[#allocation2 + $0x10] sm:$0xff] }
 0x2e6   : > { %v4187_v34 = vpop.permute.xlu1 %1277  ;;  %v1270_v17 = vpop.permute.xlu0 %1269  ;;  %v1394_v23 = vmul.f32 %v1393_v18, %v3744_v26 }
 0x2e7   : > { %v1222_v36 = vadd.f32 %v1221_v25, %v1217_v45  ;;  %v2016_v25 = vstv %s4240_s11  ;;  %s4301_s11 = sld [smem:[#allocation3 + $0xca]] }
 0x2e8   : > { %1977 = vrot.lane.b32.xlu1 %v1975_v53, %s3113_s25  ;;  %1720 = vrot.lane.b32.xlu0 %v1718_v30, %s3113_s25  ;;  %v1414_v32 = vstv %s4269_s30  ;;  %s4330_s30 = sld [smem:[#allocation3 + $0xef]] }
 0x2e9   : > { %v1230_v63 = vadd.f32 %v1228_v15, %v1222_v36  ;;  %v1373_v15 = vmul.f32 %v1372_v44, %v3726_v19  ;;  %v1760_v36 = vmul.f32 %v1759_v52, %v3862_v55 }
 0x2ea   : > { %v4203_v48 = vpop.permute.xlu1 %1298  ;;  %v4210_v31 = vpop.permute.xlu0 %1290 }
 0x2eb   : > { %v1238_v51 = vadd.f32 %v1236_v41, %v1230_v63  ;;  %v1374_v24 = vadd.f32 %v1373_v15, %v1369_v49 }
 0x2ec   : > { %1728 = vrot.lane.b32.xlu1 %v1726_v39, %s3114_s4  ;;  %2234 = vrot.lane.b32.xlu0 %v2232_v40, %s3113_s25  ;;  %v1767_v39 = vstv %s4257_s21  ;;  %v1325_v40 = vstv %s4260_s28  ;;  %s4315_s21 = sld [smem:[#allocation3 + $0x112]]  ;;  %s4317_s28 = sld [smem:[#allocation3 + $0x9c]] }
 0x2ed   : > { %v1243_v47 = vadd.f32 %v1242_v7, %v1238_v51  ;;  %v2273_v7 = vstv %s4265_s29  ;;  %v1326_v56 = vmul.f32 %v3898_v42, %v1325_v40  ;;  %s4327_s29 = sld [smem:[#allocation3 + $0x113]] }
 0x2ee   : > { %v4222_v59 = vpop.permute.xlu1 %1319  ;;  %v4227_v35 = vpop.permute.xlu0 %1311 }
 0x2ef   : > { %v1251_v4 = vadd.f32 %v1249_v28, %v1243_v47  ;;  %v2004_v28 = vmul.f32 %v2003_v21, %v3835_v6 }
 0x2f0   : > { %2242 = vrot.lane.b32.xlu1 %v2240_v54, %s3114_s4  ;;  %1985 = vrot.lane.b32.xlu0 %v1983_v43, %s3114_s4  ;;  %v1768_v54 = vmul.f32 %v1767_v39, %v3862_v55  ;;  %v2281_v43 = vstv %s4279_s5  ;;  %s4341_s5 = sld [smem:[#allocation3 + $0x9f]] }
 0x2f1   : > { %v1259_v14 = vadd.f32 %v1257_v57, %v1251_v4  ;;  %v1304_v57 = vstv %s4230_s9  ;;  %s4294_s9 = sld [smem:[#allocation3 + $0x99]]  ;;  %v1415_v4 = vmul.f32 %v1414_v32, %v3763_v62 }
 0x2f2   : > { %v4242_v60 = vpop.permute.xlu1 %1340  ;;  %v4248_v12 = vpop.permute.xlu0 %1332  ;;  %v1305_v45 = vmul.f32 %v3870_v33, %v1304_v57  ;;  %v2294_v57 = vstv %s4315_s21  ;;  %s4379_s21 = sld [smem:[#allocation3 + $0xf2]] }
 0x2f3   : > { %v1264_v41 = vadd.f32 %v1263_v0, %v1259_v14  ;;  %v2024_v0 = vstv %s4282_s6  ;;  %v2037_v14 = vstv %s4296_s10  ;;  %s4344_s6 = sld [smem:[#allocation3 + $0xf1]]  ;;  %s4363_s10 = sld [smem:[#allocation3 + $0x115]] }
 0x2f4   : > { %1998 = vrot.lane.b32.xlu1 %v1996_v50, %s3113_s25  ;;  %1741 = vrot.lane.b32.xlu0 %v1739_v8, %s3113_s25  ;;  %v1346_v8 = vstv %s4286_s7  ;;  %v2025_v62 = vmul.f32 %v2024_v0, %v3862_v55  ;;  %s4348_s7 = sld [smem:[#allocation3 + $0xcd]] }
 0x2f5   : > { %v1272_v11 = vadd.f32 %v1270_v17, %v1264_v41  ;;  %v2017_v17 = vmul.f32 %v2016_v25, %v3862_v55 }
 0x2f6   : > { %v4262_v58 = vpop.permute.xlu1 %1361  ;;  %v4267_v19 = vpop.permute.xlu0 %1353  ;;  %v1477_v39 = vstv %s4341_s5  ;;  %s4406_s5 = sld [smem:[#allocation3 + $0xd1]] }
 0x2f7   : > { %v1280_v22 = vadd.f32 %v4187_v34, %v1272_v11  ;;  %v1435_v44 = vstv %s4294_s9  ;;  %v2038_v11 = vmul.f32 %v2037_v14, %v3883_v46  ;;  %s4356_s9 = sld [smem:[#allocation3 + $0xce]] }
 0x2f8   : > { %1749 = vrot.lane.b32.xlu1 %v1747_v27, %s3114_s4  ;;  %2255 = vrot.lane.b32.xlu0 %v2253_v13, %s3113_s25  ;;  %v1780_v27 = vstv %s4301_s11  ;;  %s4365_s11 = sld [smem:[#allocation3 + $0xa2]] }
 0x2f9   : > { %v1285_v53 = vadd.f32 %v1284_v1, %v1280_v22  ;;  %v1781_v1 = vmul.f32 %v1780_v27, %v3883_v46  ;;  %v2058_v40 = vstv %s4344_s6  ;;  %s4408_s6 = sld [smem:[#allocation3 + $0xb4]] }
 0x2fa   : > { %v1388_v30 = vpop.permute.xlu1 %1387  ;;  %v1380_v34 = vpop.permute.xlu0 %1379 }
 0x2fb   : > { %v1293_v10 = vadd.f32 %v4210_v31, %v1285_v53  ;;  %v1382_v6 = vadd.f32 %v1380_v34, %v1374_v24  ;;  %v1456_v24 = vstv %s4317_s28  ;;  %v2295_v53 = vmul.f32 %v2294_v57, %v3883_v46  ;;  %s4389_s28 = sld [smem:[#allocation3 + $0xa5]] }
 0x2fc   : > { %2263 = vrot.lane.b32.xlu1 %v2261_v16, %s3114_s4  ;;  %2006 = vrot.lane.b32.xlu0 %v2004_v28, %s3114_s4 }
 0x2fd   : > { %v1301_v33 = vadd.f32 %v4203_v48, %v1293_v10  ;;  %v1390_v37 = vadd.f32 %v1388_v30, %v1382_v6  ;;  %v2274_v48 = vmul.f32 %v2273_v7, %v3862_v55  ;;  %v2045_v6 = vstv %s4330_s30  ;;  %s4398_s30 = sld [smem:[#allocation3 + $0xd0]] }
 0x2fe   : > { %v1409_v63 = vpop.permute.xlu1 %1408  ;;  %v1401_v26 = vpop.permute.xlu0 %1400 }
 0x2ff   : > { %v1306_v31 = vadd.f32 %v1305_v45, %v1301_v33  ;;  %v1395_v51 = vadd.f32 %v1394_v23, %v1390_v37  ;;  %v4359_v45 = vld [vmem:[#allocation2 + $0x11] sm:$0xff]  ;;  %v2046_v33 = vmul.f32 %v2045_v6, %v3883_v46  ;;  %v1629_v57 = vstv %s4408_s6  ;;  %s4479_s6 = sld [smem:[#allocation3 + $0xae]] }
 0x300   : > { %2019 = vrot.lane.b32.xlu1 %v2017_v17, %s3113_s25  ;;  %1762 = vrot.lane.b32.xlu0 %v1760_v36, %s3113_s25  ;;  %v1457_v34 = vmul.f32 %v4359_v45, %v1456_v24 }
 0x301   : > { %v1314_v3 = vadd.f32 %v4227_v35, %v1306_v31  ;;  %v1403_v47 = vadd.f32 %v1401_v26, %v1395_v51  ;;  %v2282_v35 = vmul.f32 %v2281_v43, %v3862_v55  ;;  %v1436_v55 = vmul.f32 %v4334_v29, %v1435_v44  ;;  %v4383_v31 = vld [vmem:[#allocation2 + $0x12] sm:$0xff] }
 0x302   : > { %v1430_v61 = vpop.permute.xlu1 %1429  ;;  %v1422_v42 = vpop.permute.xlu0 %1421  ;;  %v1801_v26 = vstv %s4348_s7  ;;  %v2059_v51 = vmul.f32 %v2058_v40, %v3903_v2  ;;  %s4416_s7 = sld [smem:[#allocation3 + $0x118]] }
 0x303   : > { %v1322_v50 = vadd.f32 %v4222_v59, %v1314_v3  ;;  %v1411_v5 = vadd.f32 %v1409_v63, %v1403_v47  ;;  %v1347_v59 = vmul.f32 %v3930_v20, %v1346_v8  ;;  %v1788_v20 = vstv %s4310_s20  ;;  %s4374_s20 = sld [smem:[#allocation3 + $0x116]] }
 0x304   : > { %1770 = vrot.lane.b32.xlu1 %v1768_v54, %s3114_s4  ;;  %2276 = vrot.lane.b32.xlu0 %v2274_v48, %s3113_s25  ;;  %v1789_v25 = vmul.f32 %v1788_v20, %v3883_v46  ;;  %v1802_v54 = vmul.f32 %v1801_v26, %v3903_v2  ;;  %v2315_v3 = vstv %s4363_s10  ;;  %v1498_v47 = vstv %s4365_s11  ;;  %s4430_s10 = sld [smem:[#allocation6 + $0x5]]  ;;  %s4432_s11 = sld [smem:[#allocation3 + $0x119]] }
 0x305   : > { %v1327_v9 = vadd.f32 %v1326_v56, %v1322_v50  ;;  %v1416_v38 = vadd.f32 %v1415_v4, %v1411_v5  ;;  %v1809_v56 = vstv %s4356_s9  ;;  %v4410_v5 = vld [vmem:[#allocation2 + $0x20] sm:$0xff]  ;;  %s4418_s9 = sld [smem:[#allocation3 + $0xa8]] }
 0x306   : > { %v1451_v41 = vpop.permute.xlu1 %1450  ;;  %v1443_v15 = vpop.permute.xlu0 %1442  ;;  %v1810_v0 = vmul.f32 %v1809_v56, %v3903_v2 }
 0x307   : > { %v1335_v13 = vadd.f32 %v4248_v12, %v1327_v9  ;;  %v1424_v49 = vadd.f32 %v1422_v42, %v1416_v38  ;;  %v2316_v42 = vmul.f32 %v2315_v3, %v3903_v2 }
 0x308   : > { %2284 = vrot.lane.b32.xlu1 %v2282_v35, %s3114_s4  ;;  %2027 = vrot.lane.b32.xlu0 %v2025_v62, %s3114_s4  ;;  %v1499_v35 = vmul.f32 %v4410_v5, %v1498_v47  ;;  %v2066_v62 = vstv %s4379_s21  ;;  %s4444_s21 = sld [smem:[#allocation3 + $0xab]] }
 0x309   : > { %v1343_v12 = vadd.f32 %v4242_v60, %v1335_v13  ;;  %v1432_v21 = vadd.f32 %v1430_v61, %v1424_v49  ;;  %v2302_v60 = vstv %s4327_s29  ;;  %s4393_s29 = sld [smem:[#allocation3 + $0xf4]]  ;;  %v2323_v50 = vstv %s4374_s20  ;;  %s4437_s20 = sld [smem:[#allocation3 + $0xf5]] }
 0x30a   : > { %v1472_v22 = vpop.permute.xlu1 %1471  ;;  %v1464_v16 = vpop.permute.xlu0 %1463  ;;  %v2324_v38 = vmul.f32 %v2323_v50, %v3903_v2  ;;  %v2067_v27 = vmul.f32 %v2066_v62, %v3903_v2  ;;  %v4441_v2 = vld [vmem:[#allocation2 + $0x21] sm:$0xff]  ;;  %v2344_v6 = vstv %s4432_s11  ;;  %s4503_s11 = sld [smem:[#allocation3 + $0xf8]]  ;;  %v1582_v62 = vstv %s4479_s6 }
 0x30b   : > { %v1348_v28 = vadd.f32 %v1347_v59, %v1343_v12  ;;  %v1437_v18 = vadd.f32 %v1436_v55, %v1432_v21  ;;  %v4427_v59 = vld [vmem:[#allocation2 + $0x30] sm:$0xff]  ;;  %v1822_v55 = vstv %s4398_s30  ;;  %s4460_s30 = sld [smem:[#allocation3 + $0xd3]]  ;;  %s4545_s6 = sld [smem:[#allocation3 + $0xd8]] }
 0x30c   : > { %2040 = vrot.lane.b32.xlu1 %v2038_v11, %s3113_s25  ;;  %1783 = vrot.lane.b32.xlu0 %v1781_v1, %s3113_s25  ;;  %v1823_v21 = vmul.f32 %v4427_v59, %v1822_v55 }
 0x30d   : > { %v1356_v30 = vadd.f32 %v4267_v19, %v1348_v28  ;;  %v1445_v52 = vadd.f32 %v1443_v15, %v1437_v18  ;;  %v2303_v19 = vmul.f32 %v2302_v60, %v3883_v46  ;;  %v1478_v46 = vmul.f32 %v4383_v31, %v1477_v39 }
 0x30e   : > { %v1493_v10 = vpop.permute.xlu1 %1492  ;;  %v1485_v23 = vpop.permute.xlu0 %1484  ;;  %v2336_v28 = vstv %s4416_s7  ;;  %v1540_v18 = vstv %s4418_s9  ;;  %s4484_s7 = sld [smem:[#allocation3 + $0x11b]]  ;;  %s4488_s9 = sld [smem:[#allocation3 + $0xba]] }
 0x30f   : > { %v1364_v17 = vadd.f32 %v4262_v58, %v1356_v30  ;;  %v1453_v36 = vadd.f32 %v1451_v41, %v1445_v52  ;;  %v1519_v41 = vstv %s4389_s28  ;;  %v2079_v15 = vstv %s4393_s29  ;;  %s4452_s28 = sld [smem:[#allocation3 + $0xb7]]  ;;  %v4467_v30 = vld [vmem:[#allocation2] sm:$0xff] }
 0x310   : > { %1791 = vrot.lane.b32.xlu1 %v1789_v25, %s3114_s4  ;;  %2297 = vrot.lane.b32.xlu0 %v2295_v53, %s3113_s25  ;;  %v1520_v20 = vmul.f32 %v4441_v2, %v1519_v41  ;;  %v2080_v12 = vmul.f32 %v2079_v15, %v4427_v59  ;;  %s4454_s29 = sld [smem:[#allocation3 + $0xf7]]  ;;  %v1630_v52 = vmul.f32 %v4467_v30, %v1629_v57  ;;  %v2087_v39 = vstv %s4437_s20  ;;  %s4506_s20 = sld [smem:[#allocation3 + $0xb1]] }
 0x311   : > { %v1365_v37 = vmax.f32 %v1364_v17, 0.0  ;;  %v1458_v63 = vadd.f32 %v1457_v34, %v1453_v36  ;;  %v2337_v34 = vmul.f32 %v2336_v28, %v4427_v59  ;;  %v4476_v17 = vld [vmem:[#allocation2 + $0x22] sm:$0xff]  ;;  %v2088_v26 = vmul.f32 %v2087_v39, %v4427_v59 }
 0x312   : > { %v4376_v7 = vpop.permute.xlu1 %1513  ;;  %v1506_v58 = vpop.permute.xlu0 %1505  ;;  %v1541_v36 = vmul.f32 %v4476_v17, %v1540_v18  ;;  %v1843_v56 = vstv %s4460_s30  ;;  %s4531_s30 = sld [smem:[#allocation3 + $0xd7]]  ;;  %v2108_v18 = vstv %s4503_s11  ;;  %s2766_s11 = sld [smem:[#allocation3 + $0xdb]] }
 0x313   : > { %2685 = vst.msk [vmem:[%s3284_s24 + $0x18] sm:$0xff] %vm595_vm9, %v1365_v37  ;;  %v1466_v32 = vadd.f32 %v1464_v16, %v1458_v63  ;;  %v1561_v37 = vstv %s4444_s21  ;;  %s4516_s21 = sld [smem:[#allocation3 + $0xbd]] }
 0x314   : > { %2305 = vrot.lane.b32.xlu1 %v2303_v19, %s3114_s4  ;;  %2048 = vrot.lane.b32.xlu0 %v2046_v33, %s3114_s4 }
 0x315   : > { %v1474_v48 = vadd.f32 %v1472_v22, %v1466_v32  ;;  %v1830_v22 = vstv %s4406_s5  ;;  %s4474_s5 = sld [smem:[#allocation3 + $0xd4]]  ;;  %v4497_v32 = vld [vmem:[#allocation2 + $0x31] sm:$0xff] }
 0x316   : > { %v4395_v43 = vpop.permute.xlu1 %1534  ;;  %v1527_v61 = vpop.permute.xlu0 %1526  ;;  %v1831_v60 = vmul.f32 %v4427_v59, %v1830_v22  ;;  %v1844_v50 = vmul.f32 %v4497_v32, %v1843_v56 }
 0x317   : > { %v1479_v4 = vadd.f32 %v1478_v46, %v1474_v48  ;;  %v2100_v46 = vstv %s4454_s29  ;;  %v2966_v48 = vld [vmem:[#allocation2 + $0x30] sm:$0xff]  ;;  %s4523_s29 = sld [smem:[#allocation3 + $0xd6]] }
 0x318   : > { %2061 = vrot.lane.b32.xlu1 %v2059_v51, %s3113_s25  ;;  %1804 = vrot.lane.b32.xlu0 %v1802_v54, %s3113_s25 }
 0x319   : > { %v1487_v8 = vadd.f32 %v1485_v23, %v1479_v4  ;;  %v4509_v4 = vld [vmem:[#allocation2 + $0x1] sm:$0xff] }
 0x31a   : > { %v4413_v44 = vpop.permute.xlu1 %1555  ;;  %v4420_v14 = vpop.permute.xlu0 %1547 }
 0x31b   : > { %v1495_v9 = vadd.f32 %v1493_v10, %v1487_v8  ;;  %v1626_v10 = vstv %s4430_s10  ;;  %s4500_s10 = sld [smem:[#allocation3 + $0x11c]]  ;;  %v1851_v8 = vstv %s4474_s5  ;;  %s4538_s5 = sld [smem:[#allocation3 + $0x11e]] }
 0x31c   : > { %1812 = vrot.lane.b32.xlu1 %v1810_v0, %s3114_s4  ;;  %2318 = vrot.lane.b32.xlu0 %v2316_v42, %s3113_s25  ;;  %v1631_v63 = vadd.f32 %v1630_v52, %v1626_v10  ;;  %v2101_v42 = vmul.f32 %v2100_v46, %v4497_v32  ;;  %v1852_v55 = vmul.f32 %v4497_v32, %v1851_v8  ;;  %v1603_v52 = vstv %s4506_s20  ;;  %s2801_s20 = sld [smem:[#allocation3 + $0xfc]] }
 0x31d   : > { %v1500_v13 = vadd.f32 %v1499_v35, %v1495_v9  ;;  %v1692_v10 = vstv %s4516_s21  ;;  %v1886_v8 = vstv %s4545_s6  ;;  %s2800_s21 = sld [smem:[#allocation6 + $0x7]] }
 0x31e   : > { %v4434_v49 = vpop.permute.xlu1 %1576  ;;  %v4439_v11 = vpop.permute.xlu0 %1568  ;;  %s2778_s6 = sld [smem:[#allocation3 + $0xe7]] }
 0x31f   : > { %v1508_v1 = vadd.f32 %v1506_v58, %v1500_v13  ;;  %v1650_v58 = vstv %s4452_s28  ;;  %s4518_s28 = sld [smem:[#allocation3 + $0xfa]] }
 0x320   : > { %2326 = vrot.lane.b32.xlu1 %v2324_v38, %s3114_s4  ;;  %2069 = vrot.lane.b32.xlu0 %v2067_v27, %s3114_s4  ;;  %v1651_v0 = vmul.f32 %v4509_v4, %v1650_v58  ;;  %v2357_v38 = vstv %s4484_s7  ;;  %v1671_v27 = vstv %s4488_s9  ;;  %s4552_s7 = sld [smem:[#allocation3 + $0x11f]]  ;;  %s4555_s9 = sld [smem:[#allocation3 + $0xfb]] }
 0x321   : > { %v1516_v24 = vadd.f32 %v4376_v7, %v1508_v1  ;;  %v2345_v7 = vmul.f32 %v2344_v6, %v4427_v59  ;;  %v2968_v1 = vld [vmem:[#allocation2 + $0x31] sm:$0xff]  ;;  %v2109_v6 = vmul.f32 %v2108_v18, %v4497_v32 }
 0x322   : > { %v4457_v16 = vpop.permute.xlu1 %1597  ;;  %v4463_v25 = vpop.permute.xlu0 %1589 }
 0x323   : > { %v1521_v53 = vadd.f32 %v1520_v20, %v1516_v24  ;;  %v1583_v20 = vmul.f32 %v2968_v1, %v1582_v62  ;;  %v4534_v24 = vld [vmem:[#allocation2 + $0x2] sm:$0xff] }
 0x324   : > { %2082 = vrot.lane.b32.xlu1 %v2080_v12, %s3113_s25  ;;  %1825 = vrot.lane.b32.xlu0 %v1823_v21, %s3113_s25  ;;  %v2365_v12 = vstv %s4500_s10  ;;  %v1672_v28 = vmul.f32 %v4534_v24, %v1671_v27  ;;  %s4561_s10 = sld [smem:[#allocation6 + $0x6]] }
 0x325   : > { %v1529_v23 = vadd.f32 %v1527_v61, %v1521_v53 }
 0x326   : > { %v4481_v19 = vpop.permute.xlu1 %1618  ;;  %v4486_v33 = vpop.permute.xlu0 %1610  ;;  %v2386_v62 = vstv %s4552_s7  ;;  %s2737_s7 = sld [smem:[#allocation3 + $0xc0]] }
 0x327   : > { %v1537_v40 = vadd.f32 %v4395_v43, %v1529_v23  ;;  %v1562_v43 = vmul.f32 %v2966_v48, %v1561_v37  ;;  %v4549_v23 = vld [vmem:[#allocation2 + $0x32] sm:$0xff]  ;;  %v1864_v37 = vstv %s4523_s29  ;;  %v1872_v48 = vstv %s4531_s30  ;;  %s2807_s29 = sld [smem:[#allocation3 + $0x102]]  ;;  %s2775_s30 = sld [smem:[#allocation3 + $0xe4]] }
 0x328   : > { %1833 = vrot.lane.b32.xlu1 %v1831_v60, %s3114_s4  ;;  %2339 = vrot.lane.b32.xlu0 %v2337_v34, %s3113_s25  ;;  %v1865_v56 = vmul.f32 %v4549_v23, %v1864_v37 }
 0x329   : > { %v1542_v51 = vadd.f32 %v1541_v36, %v1537_v40  ;;  %v2121_v36 = vstv %s4518_s28  ;;  %s2769_s28 = sld [smem:[#allocation3 + $0xde]] }
 0x32a   : > { %v1645_v54 = vpop.permute.xlu1 %1644  ;;  %v1637_v3 = vpop.permute.xlu0 %1636 }
 0x32b   : > { %v1550_v47 = vadd.f32 %v4420_v14, %v1542_v51  ;;  %v1639_v61 = vadd.f32 %v1637_v3, %v1631_v63  ;;  %v2970_v63 = vld [vmem:[#allocation2 + $0x32] sm:$0xff]  ;;  %v1693_v51 = vmul.f32 %v4334_v29, %v1692_v10 }
 0x32c   : > { %2347 = vrot.lane.b32.xlu1 %v2345_v7, %s3114_s4  ;;  %2090 = vrot.lane.b32.xlu0 %v2088_v26, %s3114_s4  ;;  %v1604_v7 = vmul.f32 %v2970_v63, %v1603_v52  ;;  %v2143_v52 = vstv %s2801_s20  ;;  %s2816_s20 = sld [smem:[#allocation3 + $0x10b]] }
 0x32d   : > { %v1558_v35 = vadd.f32 %v4413_v44, %v1550_v47  ;;  %v1647_v14 = vadd.f32 %v1645_v54, %v1639_v61  ;;  %v2358_v44 = vmul.f32 %v2357_v38, %v4497_v32  ;;  %v2122_v54 = vmul.f32 %v2121_v36, %v4549_v23 }
 0x32e   : > { %v1666_v9 = vpop.permute.xlu1 %1665  ;;  %v1658_v41 = vpop.permute.xlu0 %1657  ;;  %v2378_v47 = vstv %s4538_s5  ;;  %v2129_v38 = vstv %s4555_s9  ;;  %v2144_v10 = vmul.f32 %v4467_v30, %v2143_v52  ;;  %v2140_v36 = vstv %s2800_s21  ;;  %s2810_s5 = sld [smem:[#allocation3 + $0x105]]  ;;  %s2813_s9 = sld [smem:[#allocation3 + $0x108]] }
 0x32f   : > { %v1563_v15 = vadd.f32 %v1562_v43, %v1558_v35  ;;  %v1652_v13 = vadd.f32 %v1651_v0, %v1647_v14  ;;  %v2379_v35 = vmul.f32 %v2378_v47, %v4549_v23  ;;  %s2743_s21 = sld [smem:[#allocation3 + $0xc6]] }
 0x330   : > { %2103 = vrot.lane.b32.xlu1 %v2101_v42, %s3113_s25  ;;  %1846 = vrot.lane.b32.xlu0 %v1844_v50, %s3113_s25  ;;  %v1873_v50 = vmul.f32 %v4549_v23, %v1872_v48  ;;  %v2145_v63 = vadd.f32 %v2144_v10, %v2140_v36 }
 0x331   : > { %v1571_v21 = vadd.f32 %v4439_v11, %v1563_v15  ;;  %v1660_v22 = vadd.f32 %v1658_v41, %v1652_v13  ;;  %v2366_v11 = vmul.f32 %v2365_v12, %v4497_v32  ;;  %v1887_v15 = vmul.f32 %v4467_v30, %v1886_v8 }
 0x332   : > { %v1687_v57 = vpop.permute.xlu1 %1686  ;;  %v1679_v53 = vpop.permute.xlu0 %1678  ;;  %v2387_v13 = vmul.f32 %v2386_v62, %v4549_v23  ;;  %v2185_v62 = vstv %s2807_s29  ;;  %s2822_s29 = sld [smem:[#allocation3 + $0x111]] }
 0x333   : > { %v1579_v60 = vadd.f32 %v4434_v49, %v1571_v21  ;;  %v1668_v34 = vadd.f32 %v1666_v9, %v1660_v22  ;;  %v1907_v21 = vstv %s2766_s11  ;;  %s2781_s11 = sld [smem:[#allocation3 + $0xea]] }
 0x334   : > { %1854 = vrot.lane.b32.xlu1 %v1852_v55, %s3114_s4  ;;  %2360 = vrot.lane.b32.xlu0 %v2358_v44, %s3113_s25  ;;  %v1883_v55 = vstv %s4561_s10  ;;  %v1908_v18 = vmul.f32 %v4509_v4, %v1907_v21  ;;  %s2740_s10 = sld [smem:[#allocation3 + $0xc3]] }
 0x335   : > { %v1584_v39 = vadd.f32 %v1583_v20, %v1579_v60  ;;  %v1673_v49 = vadd.f32 %v1672_v28, %v1668_v34  ;;  %v1888_v12 = vadd.f32 %v1887_v15, %v1883_v55 }
 0x336   : > { %v1894_v40 = vpop.permute.xlu1 %1893  ;;  %v1700_v26 = vpop.permute.xlu0 %1699 }
 0x337   : > { %v1592_v58 = vadd.f32 %v4463_v25, %v1584_v39  ;;  %v1681_v46 = vadd.f32 %v1679_v53, %v1673_v49  ;;  %v1928_v39 = vstv %s2769_s28  ;;  %s2784_s28 = sld [smem:[#allocation3 + $0xed]] }
 0x338   : > { %2368 = vrot.lane.b32.xlu1 %v2366_v11, %s3114_s4  ;;  %2111 = vrot.lane.b32.xlu0 %v2109_v6, %s3114_s4 }
 0x339   : > { %v1600_v43 = vadd.f32 %v4457_v16, %v1592_v58  ;;  %v1689_v25 = vadd.f32 %v1687_v57, %v1681_v46  ;;  %v1896_v57 = vadd.f32 %v1894_v40, %v1888_v12  ;;  %v2206_v12 = vstv %s2810_s5  ;;  %s2749_s5 = sld [smem:[#allocation3 + $0xcc]] }
 0x33a   : > { %v1902_v3 = vpop.permute.xlu1 %1901  ;;  %v2151_v61 = vpop.permute.xlu0 %2150 }
 0x33b   : > { %v1605_v0 = vadd.f32 %v1604_v7, %v1600_v43  ;;  %v1694_v42 = vadd.f32 %v1693_v51, %v1689_v25  ;;  %v1904_v28 = vadd.f32 %v1902_v3, %v1896_v57  ;;  %v2153_v51 = vadd.f32 %v2151_v61, %v2145_v63 }
 0x33c   : > { %2124 = vrot.lane.b32.xlu1 %v2122_v54, %s3113_s25  ;;  %1867 = vrot.lane.b32.xlu0 %v1865_v56, %s3113_s25 }
 0x33d   : > { %v1613_v16 = vadd.f32 %v4486_v33, %v1605_v0  ;;  %v4575_v14 = vadd.f32 %v1700_v26, %v1694_v42  ;;  %v2130_v33 = vmul.f32 %v2129_v38, %v4549_v23  ;;  %v1909_v34 = vadd.f32 %v1908_v18, %v1904_v28 }
 0x33e   : > { %v1915_v9 = vpop.permute.xlu1 %1914  ;;  %v2159_v41 = vpop.permute.xlu0 %2158  ;;  %v1929_v26 = vmul.f32 %v4534_v24, %v1928_v39  ;;  %v1991_v18 = vstv %s2778_s6  ;;  %s2825_s6 = sld [smem:[#allocation3 + $0x114]] }
 0x33f   : > { %v1621_v27 = vadd.f32 %v4481_v19, %v1613_v16  ;;  %v1917_v49 = vadd.f32 %v1915_v9, %v1909_v34  ;;  %v2161_v48 = vadd.f32 %v2159_v41, %v2153_v51  ;;  %v1713_v34 = vstv %s2737_s7  ;;  %s2790_s7 = sld [smem:[#allocation3 + $0xf3]] }
 0x340   : > { %1875 = vrot.lane.b32.xlu1 %v1873_v50, %s3114_s4  ;;  %2381 = vrot.lane.b32.xlu0 %v2379_v35, %s3113_s25  ;;  %s2804_s25 = sld [smem:[#allocation3 + $0xff]]  ;;  %v1992_v36 = vmul.f32 %v4383_v31, %v1991_v18 }
 0x341   : > { %v1622_v1 = vmax.f32 %v1621_v27, 0.0  ;;  %v1970_v27 = vstv %s2775_s30  ;;  %s2787_s30 = sld [smem:[#allocation3 + $0xf0]] }
 0x342   : > { %v1923_v20 = vpop.permute.xlu1 %1922  ;;  %v2172_v44 = vpop.permute.xlu0 %2171 }
 0x343   : > { %2723 = vst.msk [vmem:[%s3284_s24 + $0x20] sm:$0xff] %vm595_vm9, %v1622_v1  ;;  %v1925_v7 = vadd.f32 %v1923_v20, %v1917_v49  ;;  %v1971_v20 = vmul.f32 %v4359_v45, %v1970_v27  ;;  %v1714_v49 = vmul.f32 %v4359_v45, %v1713_v34 }
 0x344   : > { %2389 = vrot.lane.b32.xlu1 %v2387_v13, %s3114_s4  ;;  %2132 = vrot.lane.b32.xlu0 %v2130_v33, %s3114_s4  ;;  %s2772_s4 = sld [smem:[#allocation3 + $0xe1]] }
 0x345   : > { %v1930_v56 = vadd.f32 %v1929_v26, %v1925_v7 }
 0x346   : > { %v1936_v19 = vpop.permute.xlu1 %1935  ;;  %v2180_v22 = vpop.permute.xlu0 %2179  ;;  %v2164_v58 = vstv %s2804_s25  ;;  %s2819_s25 = sld [smem:[#allocation3 + $0x10e]] }
 0x347   : > { %v2165_v30 = vmul.f32 %v4509_v4, %v2164_v58  ;;  %v1938_v47 = vadd.f32 %v1936_v19, %v1930_v56  ;;  %v2186_v4 = vmul.f32 %v4534_v24, %v2185_v62  ;;  %v2207_v24 = vmul.f32 %v4334_v29, %v2206_v12 }
 0x349   : > { %v2166_v0 = vadd.f32 %v2165_v30, %v2161_v48  ;;  %v1734_v48 = vstv %s2740_s10  ;;  %s2828_s10 = sld [smem:[#allocation3 + $0x117]] }
 0x34a   : > { %v1944_v53 = vpop.permute.xlu1 %1943  ;;  %v2193_v60 = vpop.permute.xlu0 %2192  ;;  %v1949_v25 = vstv %s2772_s4  ;;  %s2746_s4 = sld [smem:[#allocation3 + $0xc9]] }
 0x34b   : > { %v1946_v42 = vadd.f32 %v1944_v53, %v1938_v47  ;;  %v1950_v50 = vmul.f32 %v4334_v29, %v1949_v25  ;;  %v2174_v61 = vadd.f32 %v2172_v44, %v2166_v0  ;;  %v1735_v0 = vmul.f32 %v4383_v31, %v1734_v48 }
 0x34d   : > { %v1951_v16 = vadd.f32 %v1950_v50, %v1946_v42  ;;  %v2182_v38 = vadd.f32 %v2180_v22, %v2174_v61 }
 0x34e   : > { %v1957_v11 = vpop.permute.xlu1 %1956  ;;  %v2201_v6 = vpop.permute.xlu0 %2200 }
 0x34f   : > { %v1959_v15 = vadd.f32 %v1957_v11, %v1951_v16  ;;  %v2187_v55 = vadd.f32 %v2186_v4, %v2182_v38 }
 0x351   : > { %v2195_v44 = vadd.f32 %v2193_v60, %v2187_v55 }
 0x352   : > { %v1708_v37 = vpop.permute.xlu1 %1707  ;;  %v2214_v40 = vpop.permute.xlu0 %2213 }
 0x353   : > { %v2203_v22 = vadd.f32 %v2201_v6, %v2195_v44  ;;  %v1710_v60 = vadd.f32 %v1708_v37, %v4575_v14  ;;  %v2227_v6 = vstv %s2813_s9  ;;  %v2269_v44 = vstv %s2819_s25  ;;  %s2752_s9 = sld [smem:[#allocation3 + $0xcf]]  ;;  %s2796_s25 = sld [smem:[#allocation3 + $0xf9]] }
 0x355   : > { %v2208_v11 = vadd.f32 %v2207_v24, %v2203_v22  ;;  %v1715_v51 = vadd.f32 %v1714_v49, %v1710_v60  ;;  %v2054_v49 = vstv %s2787_s30 }
 0x356   : > { %v2222_v46 = vpop.permute.xlu1 %2221  ;;  %v1965_v54 = vpop.permute.xlu0 %1964 }
 0x357   : > { %v1967_v1 = vadd.f32 %v1965_v54, %v1959_v15  ;;  %v2216_v29 = vadd.f32 %v2214_v40, %v2208_v11  ;;  %v2228_v54 = vmul.f32 %v4359_v45, %v2227_v6  ;;  %v2248_v40 = vstv %s2816_s20  ;;  %s2793_s20 = sld [smem:[#allocation3 + $0xf6]] }
 0x359   : > { %v1972_v57 = vadd.f32 %v1971_v20, %v1967_v1  ;;  %v2224_v58 = vadd.f32 %v2222_v46, %v2216_v29  ;;  %v2033_v1 = vstv %s2784_s28  ;;  %s2758_s28 = sld [smem:[#allocation3 + $0xd5]] }
 0x35a   : > { %v1978_v43 = vpop.permute.xlu1 %1977  ;;  %v1721_v3 = vpop.permute.xlu0 %1720 }
 0x35b   : > { %v1980_v52 = vadd.f32 %v1978_v43, %v1972_v57  ;;  %v1723_v30 = vadd.f32 %v1721_v3, %v1715_v51  ;;  %v2012_v43 = vstv %s2781_s11  ;;  %v2229_v37 = vadd.f32 %v2228_v54, %v2224_v58  ;;  %s2755_s11 = sld [smem:[#allocation3 + $0xd2]] }
 0x35c   : > { %v2013_v46 = vmul.f32 %v4410_v5, %v2012_v43  ;;  %v2249_v3 = vmul.f32 %v4383_v31, %v2248_v40  ;;  %v2034_v31 = vmul.f32 %v4441_v2, %v2033_v1  ;;  %v2055_v51 = vmul.f32 %v4476_v17, %v2054_v49 }
 0x35e   : > { %v1729_v8 = vpop.permute.xlu1 %1728  ;;  %v4594_v35 = vpop.permute.xlu0 %2234 }
 0x35f   : > { %v1731_v14 = vadd.f32 %v1729_v8, %v1723_v30  ;;  %v2237_v45 = vadd.f32 %v4594_v35, %v2229_v37  ;;  %v1755_v8 = vstv %s2743_s21  ;;  %v2311_v37 = vstv %s2825_s6  ;;  %s2831_s21 = sld [smem:[#allocation3 + $0x11a]]  ;;  %s2411_s6 = sshll.u32 %s3284_s24, 4  ;;  %s4634_s6 = int_to_ptr.vmem [resolvable:$true] %s2411_s6 }
 0x360   : > { %v1756_v55 = vmul.f32 %v4410_v5, %v1755_v8  ;;  %v2312_v40 = vmul.f32 %v4476_v17, %v2311_v37  ;;  %v1860_v49 = vstv %s2758_s28 }
 0x361   : > { %v1736_v16 = vadd.f32 %v1735_v0, %v1731_v14 }
 0x362   : > { %v2243_v9 = vpop.permute.xlu1 %2242  ;;  %v1986_v41 = vpop.permute.xlu0 %1985 }
 0x363   : > { %v1988_v10 = vadd.f32 %v1986_v41, %v1980_v52  ;;  %v2245_v61 = vadd.f32 %v2243_v9, %v2237_v45 }
 0x365   : > { %v1993_v7 = vadd.f32 %v1992_v36, %v1988_v10 }
 0x366   : > { %v1999_v13 = vpop.permute.xlu1 %1998  ;;  %v1742_v33 = vpop.permute.xlu0 %1741 }
 0x367   : > { %v2001_v25 = vadd.f32 %v1999_v13, %v1993_v7  ;;  %v1744_v41 = vadd.f32 %v1742_v33, %v1736_v16  ;;  %v2250_v13 = vadd.f32 %v2249_v3, %v2245_v61  ;;  %v2270_v33 = vmul.f32 %v4410_v5, %v2269_v44 }
 0x36a   : > { %v1750_v19 = vpop.permute.xlu1 %1749  ;;  %v2256_v21 = vpop.permute.xlu0 %2255 }
 0x36b   : > { %v1752_v15 = vadd.f32 %v1750_v19, %v1744_v41  ;;  %v2258_v35 = vadd.f32 %v2256_v21, %v2250_v13  ;;  %v1776_v19 = vstv %s2746_s4  ;;  %s2834_s4 = sld [smem:[#allocation3 + $0x11d]] }
 0x36c   : > { %v1777_v36 = vmul.f32 %v4441_v2, %v1776_v19 }
 0x36d   : > { %v1757_v24 = vadd.f32 %v1756_v55, %v1752_v15  ;;  %v2332_v15 = vstv %s2828_s10 }
 0x36e   : > { %v2264_v28 = vpop.permute.xlu1 %2263  ;;  %v2007_v53 = vpop.permute.xlu0 %2006 }
 0x36f   : > { %v2009_v50 = vadd.f32 %v2007_v53, %v2001_v25  ;;  %v2266_v22 = vadd.f32 %v2264_v28, %v2258_v35  ;;  %v1839_v35 = vstv %s2755_s11  ;;  %s3001_s11 = scalar_lea.vmem %s4634_s6, 1024 }
 0x370   : > { %p3002_p2 = scmp.ne.s32.totalorder %s4634_s6, %s3001_s11 }
 0x371   : > { %v2014_v4 = vadd.f32 %v2013_v46, %v2009_v50  ;;  %v2271_v10 = vadd.f32 %v2270_v33, %v2266_v22  ;;  %v2075_v50 = vstv %s2790_s7 }
 0x372   : > { %v2020_v39 = vpop.permute.xlu1 %2019  ;;  %v1763_v63 = vpop.permute.xlu0 %1762  ;;  %v2076_v3 = vmul.f32 %v2075_v50, %v4427_v59  ;;  %p3003_p9 = pnand %p3002_p2, %p4711_p7 }
 0x373   : > { %v2022_v12 = vadd.f32 %v2020_v39, %v2014_v4  ;;  %v1765_v53 = vadd.f32 %v1763_v63, %v1757_v24  ;;  %v2290_v39 = vstv %s2822_s29  ;;  %s2839_s29 = sshll.u32 %s3091_s16, 4 }
 0x374   : > { %v2291_v5 = vmul.f32 %v4441_v2, %v2290_v39  ;;  %s2408_s30 = sadd.s32 %s3087_s15, %s2839_s29  ;;  %p3004_p11 = pneg %p3003_p9 }
 0x376   : > { %v1771_v26 = vpop.permute.xlu1 %1770  ;;  %v2277_v56 = vpop.permute.xlu0 %2276 }
 0x377   : > { %v1773_v11 = vadd.f32 %v1771_v26, %v1765_v53  ;;  %v2279_v60 = vadd.f32 %v2277_v56, %v2271_v10  ;;  %v1797_v26 = vstv %s2749_s5  ;;  %s2840_s5 = sshll.u32 %s2408_s30, 7 }
 0x378   : > { %v1798_v56 = vmul.f32 %v4476_v17, %v1797_v26  ;;  %v2374_v26 = vstv %s2834_s4  ;;  %s4632_s7 = scalar_lea.hbm %s4697_s3, %s2840_s5 }
 0x379   : > { %v1778_v7 = vadd.f32 %v1777_v36, %v1773_v11 }
 0x37a   : > { %v2285_v47 = vpop.permute.xlu1 %2284  ;;  %v2028_v42 = vpop.permute.xlu0 %2027 }
 0x37b   : > { %v2030_v9 = vadd.f32 %v2028_v42, %v2022_v12  ;;  %v2287_v29 = vadd.f32 %v2285_v47, %v2279_v60  ;;  %v2333_v12 = vmul.f32 %v2332_v15, %v4427_v59 }
 0x37d   : > { %v2035_v52 = vadd.f32 %v2034_v31, %v2030_v9  ;;  %v2292_v43 = vadd.f32 %v2291_v5, %v2287_v29  ;;  %v2096_v31 = vstv %s2793_s20  ;;  %s3115_s20 = smov [#allocation8]  }
 0x37e   : > { %v2041_v62 = vpop.permute.xlu1 %2040  ;;  %v1784_v38 = vpop.permute.xlu0 %1783 }
 0x37f   : > { %v2043_v6 = vadd.f32 %v2041_v62, %v2035_v52  ;;  %v1786_v54 = vadd.f32 %v1784_v38, %v1778_v7  ;;  %v1818_v62 = vstv %s2752_s9  ;;  %v2097_v52 = vmul.f32 %v2096_v31, %v4497_v32  ;;  %s4710_s9 = sand.u32 1, %s3079_s13  }
 0x380   : > { %v1819_v41 = vmul.f32 %v4427_v59, %v1818_v62  ;;  %s4642_s10 = scalar_lea.sflag [#allocation4], %s4710_s9 }
 0x382   : > { %v1792_v27 = vpop.permute.xlu1 %1791  ;;  %v2298_v20 = vpop.permute.xlu0 %2297 }
 0x383   : > { %v1794_v30 = vadd.f32 %v1792_v27, %v1786_v54  ;;  %v2300_v47 = vadd.f32 %v2298_v20, %v2292_v43 }
 0x385   : > { %v1799_v42 = vadd.f32 %v1798_v56, %v1794_v30 }
 0x386   : > { %v2306_v57 = vpop.permute.xlu1 %2305  ;;  %v2049_v18 = vpop.permute.xlu0 %2048 }
 0x387   : > { %v2051_v63 = vadd.f32 %v2049_v18, %v2043_v6  ;;  %v2308_v2 = vadd.f32 %v2306_v57, %v2300_v47  ;;  %v1840_v18 = vmul.f32 %v4497_v32, %v1839_v35 }
 0x389   : > { %v2056_v14 = vadd.f32 %v2055_v51, %v2051_v63  ;;  %v2313_v8 = vadd.f32 %v2312_v40, %v2308_v2  ;;  %v1861_v63 = vmul.f32 %v4549_v23, %v1860_v49 }
 0x38a   : > { %v2062_v34 = vpop.permute.xlu1 %2061  ;;  %v1805_v21 = vpop.permute.xlu0 %1804 }
 0x38b   : > { %v2064_v45 = vadd.f32 %v2062_v34, %v2056_v14  ;;  %v1807_v61 = vadd.f32 %v1805_v21, %v1799_v42  ;;  %v2353_v34 = vstv %s2831_s21  ;;  %v2375_v14 = vmul.f32 %v2374_v26, %v4549_v23  ;;  %s3005_s21 = sshll.u32 %s3115_s20, 4  ;;  %s3006_s21 = int_to_ptr.vmem [resolvable:$false] %s3005_s21 }
 0x38c   : > { %v2354_v21 = vmul.f32 %v2353_v34, %v4497_v32  ;;  %s3007_s28 = scalar_lea.vmem %s3006_s21, 2048  ;;  %p3008_p13 = scmp.lt.s32.totalorder %s4634_s6, %s3006_s21 }
 0x38d   : > { %p3009_p1 = scmp.lt.s32.totalorder %s3007_s28, %s3001_s11 }
 0x38e   : > { %v1813_v28 = vpop.permute.xlu1 %1812  ;;  %v2319_v58 = vpop.permute.xlu0 %2318 }
 0x38f   : > { %v1815_v4 = vadd.f32 %v1813_v28, %v1807_v61  ;;  %v2321_v13 = vadd.f32 %v2319_v58, %v2313_v8  ;;  %v2117_v58 = vstv %s2796_s25  ;;  %p3010_p4 = por %p3009_p1, %p3008_p13 }
 0x390   : > { %v2118_v30 = vmul.f32 %v2117_v58, %v4549_v23 }
 0x391   : > { %v1820_v20 = vadd.f32 %v1819_v41, %v1815_v4  ;;  %p3011_p5 = pnand %p3010_p4, %p3004_p11 }
 0x392   : > { %v2327_v48 = vpop.permute.xlu1 %2326  ;;  %v2070_v25 = vpop.permute.xlu0 %2069 }
 0x393   : > { %v2072_v16 = vadd.f32 %v2070_v25, %v2064_v45  ;;  %v2329_v1 = vadd.f32 %v2327_v48, %v2321_v13 }
 0x395   : > { %v2077_v17 = vadd.f32 %v2076_v3, %v2072_v16  ;;  %v2334_v33 = vadd.f32 %v2333_v12, %v2329_v1 }
 0x396   : > { %v2083_v0 = vpop.permute.xlu1 %2082  ;;  %v1826_v46 = vpop.permute.xlu0 %1825 }
 0x397   : > { %v1828_v9 = vadd.f32 %v1826_v46, %v1820_v20  ;;  %v2085_v57 = vadd.f32 %v2083_v0, %v2077_v17 }
 0x39a   : > { %v1834_v38 = vpop.permute.xlu1 %1833  ;;  %v2340_v27 = vpop.permute.xlu0 %2339 }
 0x39b   : > { %v1836_v24 = vadd.f32 %v1834_v38, %v1828_v9  ;;  %v2342_v11 = vadd.f32 %v2340_v27, %v2334_v33 }
 0x39d   : > { %v1841_v36 = vadd.f32 %v1840_v18, %v1836_v24 }
 0x39e   : > { %v2348_v55 = vpop.permute.xlu1 %2347  ;;  %v2091_v44 = vpop.permute.xlu0 %2090 }
 0x39f   : > { %v2093_v53 = vadd.f32 %v2091_v44, %v2085_v57  ;;  %v2350_v10 = vadd.f32 %v2348_v55, %v2342_v11 }
 0x3a1   : > { %v2098_v60 = vadd.f32 %v2097_v52, %v2093_v53  ;;  %v2355_v7 = vadd.f32 %v2354_v21, %v2350_v10 }
 0x3a2   : > { %v2104_v22 = vpop.permute.xlu1 %2103  ;;  %v1847_v19 = vpop.permute.xlu0 %1846 }
 0x3a3   : > { %v1849_v6 = vadd.f32 %v1847_v19, %v1841_v36  ;;  %v2106_v51 = vadd.f32 %v2104_v22, %v2098_v60 }
 0x3a6   : > { %v1855_v59 = vpop.permute.xlu1 %1854  ;;  %v2361_v39 = vpop.permute.xlu0 %2360 }
 0x3a7   : > { %v1857_v29 = vadd.f32 %v1855_v59, %v1849_v6  ;;  %v2363_v54 = vadd.f32 %v2361_v39, %v2355_v7 }
 0x3a9   : > { %v1862_v56 = vadd.f32 %v1861_v63, %v1857_v29 }
 0x3aa   : > { %v2369_v28 = vpop.permute.xlu1 %2368  ;;  %v2112_v5 = vpop.permute.xlu0 %2111 }
 0x3ab   : > { %v2114_v48 = vadd.f32 %v2112_v5, %v2106_v51  ;;  %v2371_v43 = vadd.f32 %v2369_v28, %v2363_v54 }
 0x3ad   : > { %v2119_v47 = vadd.f32 %v2118_v30, %v2114_v48  ;;  %v2376_v42 = vadd.f32 %v2375_v14, %v2371_v43 }
 0x3ae   : > { %v2125_v32 = vpop.permute.xlu1 %2124  ;;  %v1868_v25 = vpop.permute.xlu0 %1867 }
 0x3af   : > { %v1870_v37 = vadd.f32 %v1868_v25, %v1862_v56  ;;  %v2127_v45 = vadd.f32 %v2125_v32, %v2119_v47 }
 0x3b2   : > { %v1876_v0 = vpop.permute.xlu1 %1875  ;;  %v2382_v40 = vpop.permute.xlu0 %2381 }
 0x3b3   : > { %v1878_v2 = vadd.f32 %v1876_v0, %v1870_v37  ;;  %v2384_v46 = vadd.f32 %v2382_v40, %v2376_v42 }
 0x3b5   : > { %v1879_v50 = vmax.f32 %v1878_v2, 0.0 }
 0x3b6   : > { %v2390_v62 = vpop.permute.xlu1 %2389  ;;  %v2133_v61 = vpop.permute.xlu0 %2132 }
 0x3b7   : > { %2761 = vst.msk [vmem:[%s3284_s24 + $0x28] sm:$0xff] %vm595_vm9, %v1879_v50  ;;  %v2392_v23 = vadd.f32 %v2390_v62, %v2384_v46  ;;  %v2135_v16 = vadd.f32 %v2133_v61, %v2127_v45 }
 0x3b9   : > { %v2393_v3 = vmax.f32 %v2392_v23, 0.0  ;;  %v2136_v38 = vmax.f32 %v2135_v16, 0.0 }
 0x3bb   : > { %2837 = vst.msk [vmem:[%s3284_s24 + $0x38] sm:$0xff] %vm595_vm9, %v2393_v3  ;;  %2799 = vst.msk [vmem:[%s3284_s24 + $0x30] sm:$0xff] %vm595_vm9, %v2136_v38 }
 0x3bc   : > { %3014 = shalt.err (!%p3011_p5)
}
 0x3bd   : > { %s3015_s24 = scalar_lea.hbm %s4632_s7, 1024  ;;  %s3019_s29 = scalar_lea.hbm %s4697_s3, 4096 }
 0x3be   : > { %p3016_p6 = scmp.ne.s32.totalorder %s4632_s7, %s3015_s24  ;;  %p3020_p10 = scmp.lt.u32.totalorder %s4632_s7, %s4697_s3 }
 0x3bf   : > { %p3021_p12 = scmp.lt.u32.totalorder %s3019_s29, %s3015_s24  ;;  %p3023_p2 = scmp.lt.u32.totalorder %s3015_s24, %s4632_s7 }
 0x3c0   : > { %p3017_p3 = pnand %p3016_p6, %p4711_p7 }
 0x3c1   : > { %p3022_p0 = por %p3021_p12, %p3020_p10 }
 0x3c2   : > { %p3018_p8 = pneg %p3017_p3 }
 0x3c3   : > { %p3024_p9 = por %p3023_p2, %p3022_p0 }
 0x3c5   : > { %p3025_p11 = pnand %p3024_p9, %p3018_p8 }
 0x3c7   : > { %3028 = shalt.err (!%p3025_p11)
}
 0x3c8   : > { %s3116_s16 = smov 128   ;;  %s3117_s15 = smov 256  }
 0x3c9   : > { %s3118_s9 = smov 8  }
 0x3ca   : > { %2852 = dma.vmem_to_hbm [thread:$0]  (%p4711_p7), %s4634_s6, 1024, %s4632_s7, %s4642_s10, %s3116_s16, %s3117_s15, %s3118_s9  }
 0x3cb PF: > { %p2869_p13 = scmp.ge.s32.totalorder %s3103_s19, 2  ;;  %s2426_s11 = sand.u32 1, %s3075_s12  }
 0x3cc   : > { %p4712_p1 = scmp.ne.s32.totalorder %s4704_s27, 0  ;;  %s2427_s20 = scalar_lea.sflag [#allocation4], %s2426_s11 }
 0x3ce   : > { %p2862_p4 = pnand %p2869_p13, %p4712_p1 }
 0x3d0   : > { %3070 = dma.done.wait (!%p2862_p4), %s2427_s20, 1024  }
 0x3d1   : > { %3072 = vsyncadd (!%p2862_p4), %s2427_s20, 4294966272  ;;  %s18_s19 = sadd.s32 1, %s3103_s19   ;;  %s4713_s12 = smov %s3079_s13 }
 0x3d2   : > { %p15_p5 = scmp.ge.s32.totalorder %s18_s19, 6   ;;  %s4714_s13 = smov %s3083_s14 }
 0x3d3   : > { %s4715_s14 = smov %s3221_s8  ;;  %s4716_s15 = smov %s3095_s17 }
 0x3d4   : > { %s4717_s16 = smov %s3099_s18  ;;  %s4718_s17 = smov %s4721_s22 }
 0x3d5   : > { %s4719_s18 = smov %s4725_s23  ;;  %17 = sbr.rel (!%p15_p5) target bundleno = 7 (0x7), region = 105 }
 0x3dc   :  { %2432 = vsyncpa [#allocation4], 1 }
 0x3dd   :  { %2434 = vsyncpa [#allocation4 + $0x1], 1 }
 0x3de   :  { %2435 = vsyncpa [#allocation5], 1 }
 0x3df   :  { %2437 = vsyncpa [#allocation5 + $0x1], 1 }
 0x3e0   :  { %2438 = vsyncpa [#allocation7], 1 }

</bundles_post_ra>
